<compile_context>
chip_gen: v7x
topology: tpu7x:2x2x1
jax: 0.10.0
libtpu: 0.0.40
codegen_flags: <defaults>
</compile_context>

<pallas_src>
import functools

import jax
import jax.numpy as jnp
from jax.experimental import pallas as pl
from jax.experimental.pallas import tpu as pltpu


def _round_up(x, m):
    return (x + m - 1) // m * m


def _pick_rows(n, s_pad):
    # Aim for ~256 flattened (row, seq) positions per grid step so the
    # projection matmuls have M ~ 256 (feeds a 256-wide MXU; 128 already
    # saturates v5e).  Keep R a multiple of 8 and don't exceed the padded
    # number of rows.
    target = _round_up(max(1, 256 // max(s_pad, 1)), 8)
    target = max(8, min(target, 64))
    return min(target, _round_up(n, 8))


# ---------------------------------------------------------------------------
# Kernel 1: multi-head self-attention + additive-attention pooling over a
# block of R rows.  Input arrives as a flat (R*S, E) bf16 slab.
# ---------------------------------------------------------------------------
def _attn_pool_kernel(x_ref, wq_ref, wk_ref, wv_ref, wa_ref, ba_ref, qa_ref,
                      out_ref, *, num_heads, rows, seq, seq_real):
    R, S = rows, seq
    x = x_ref[...]                                                # (R*S, E) bf16

    # Three MXU-shaped projections over all heads at once (bf16 in, f32 acc).
    q = jnp.dot(x, wq_ref[...], preferred_element_type=jnp.float32)  # (R*S, H)
    k = jnp.dot(x, wk_ref[...], preferred_element_type=jnp.float32)
    v = jnp.dot(x, wv_ref[...], preferred_element_type=jnp.float32)

    H = q.shape[-1]
    dh = H // num_heads
    scale = 1.0 / (float(dh) ** 0.5)

    q3 = q.reshape(R, S, H)
    k3 = k.reshape(R, S, H)
    v3 = v.reshape(R, S, H)

    key_valid = None
    if seq_real < S:          # static: only emitted when sequence was padded
        key_valid = jax.lax.broadcasted_iota(jnp.int32, (1, 1, S), 2) < seq_real

    # --- multi-head scaled-dot-product self-attention (static head loop) ---
    ctx_heads = []
    for h in range(num_heads):
        lo, hi = h * dh, (h + 1) * dh
        qh = q3[:, :, lo:hi]                                      # (R, S, dh)
        kh = k3[:, :, lo:hi]
        vh = v3[:, :, lo:hi]

        # scores: row-batched (R, S, S)
        sc = jax.lax.dot_general(
            qh, kh, (((2,), (2,)), ((0,), (0,))),
            preferred_element_type=jnp.float32) * scale
        if key_valid is not None:
            sc = jnp.where(key_valid, sc, -1e30)
        sc = sc - jnp.max(sc, axis=-1, keepdims=True)
        p = jnp.exp(sc)
        p = p * pl.reciprocal(jnp.sum(p, axis=-1, keepdims=True), approx=True)

        # context: row-batched (R, S, dh)
        ctx_heads.append(jax.lax.dot_general(
            p, vh, (((2,), (1,)), ((0,), (0,))),
            preferred_element_type=jnp.float32))

    ctx = jnp.concatenate(ctx_heads, axis=-1)                     # (R, S, H) f32

    # --- additive-attention pooling over the sequence axis ---
    # Single full-K MXU matmul for the projection (instead of per-head K=dh).
    proj = jnp.dot(ctx.reshape(R * S, H), wa_ref[...],
                   preferred_element_type=jnp.float32)            # (R*S, A)
    A = proj.shape[-1]
    t = jnp.tanh(proj + ba_ref[...])                              # (R*S, A)
    s = jnp.sum(t.reshape(R, S, A) * qa_ref[...].reshape(1, 1, A),
                axis=-1, keepdims=True)                           # (R, S, 1)
    if seq_real < S:
        q_valid = jax.lax.broadcasted_iota(jnp.int32, (R, S, 1), 1) < seq_real
        s = jnp.where(q_valid, s, -1e30)
    s = s - jnp.max(s, axis=1, keepdims=True)
    a = jnp.exp(s)
    a = a * pl.reciprocal(jnp.sum(a, axis=1, keepdims=True), approx=True)

    out_ref[...] = jnp.sum(ctx * a, axis=1)                       # (R, H) f32


def attn_encode(x, wq, wk, wv, wa, ba, qa, *, num_heads):
    """x: (N, S, E) -> (N, H) f32.  wq/wk/wv: (E, H); wa: (H, A); ba/qa: (1, A)."""
    N, S, E = x.shape
    H = wq.shape[-1]
    A = wa.shape[-1]
    assert H % num_heads == 0

    S_pad = _round_up(S, 8)
    R = _pick_rows(N, S_pad)
    N_pad = _round_up(N, R)

    xb = x.astype(jnp.bfloat16)
    if S_pad != S or N_pad != N:
        xb = jnp.pad(xb, ((0, N_pad - N), (0, S_pad - S), (0, 0)))
    x2d = xb.reshape(N_pad * S_pad, E)                            # flat slab

    kernel = functools.partial(_attn_pool_kernel, num_heads=num_heads,
                               rows=R, seq=S_pad, seq_real=S)
    out = pl.pallas_call(
        kernel,
        out_shape=jax.ShapeDtypeStruct((N_pad, H), jnp.float32),
        grid=(N_pad // R,),
        in_specs=[
            pl.BlockSpec((R * S_pad, E), lambda i: (i, 0)),       # activations
            pl.BlockSpec((E, H), lambda i: (0, 0)),               # wq (resident)
            pl.BlockSpec((E, H), lambda i: (0, 0)),               # wk
            pl.BlockSpec((E, H), lambda i: (0, 0)),               # wv
            pl.BlockSpec((H, A), lambda i: (0, 0)),               # wa
            pl.BlockSpec((1, A), lambda i: (0, 0)),               # ba
            pl.BlockSpec((1, A), lambda i: (0, 0)),               # qa
        ],
        out_specs=pl.BlockSpec((R, H), lambda i: (i, 0)),
        compiler_params=pltpu.CompilerParams(
            dimension_semantics=("parallel",)),
    )(x2d, wq.astype(jnp.bfloat16), wk.astype(jnp.bfloat16),
      wv.astype(jnp.bfloat16), wa, ba, qa)
    return out[:N]


# ---------------------------------------------------------------------------
# Kernel 2: candidate/user dot-product scoring + per-example cross entropy.
# Single invocation (no grid) over the whole (B, C, H) block.
# ---------------------------------------------------------------------------
def _score_loss_kernel(cand_ref, user_ref, tgt_ref, logits_ref, loss_ref):
    cand = cand_ref[...]                                          # (B, C, H)
    user = user_ref[...]                                          # (B, H)
    B, C, H = cand.shape

    # bmm(cand, user.unsqueeze(-1)).squeeze(): multiply + lane reduction
    logits = jnp.sum(cand * user.reshape(B, 1, H), axis=-1)       # (B, C) f32

    m = jnp.max(logits, axis=-1, keepdims=True)
    e = jnp.exp(logits - m)
    lse = m + jnp.log(jnp.sum(e, axis=-1, keepdims=True))         # (B, 1)

    tgt = tgt_ref[...]                                            # (B, 1) int32
    onehot = jax.lax.broadcasted_iota(jnp.int32, (B, C), 1) == tgt
    tgt_logit = jnp.sum(jnp.where(onehot, logits, 0.0), axis=-1, keepdims=True)

    logits_ref[...] = logits
    loss_ref[...] = lse - tgt_logit                               # (B, 1)


def score_and_loss(cand_enc, user_enc, target):
    """cand_enc: (B, C, H) f32, user_enc: (B, H) f32, target: (B,) int."""
    B, C, _ = cand_enc.shape
    tgt2d = target.reshape(B, 1).astype(jnp.int32)
    logits, per_loss = pl.pallas_call(
        _score_loss_kernel,
        out_shape=(jax.ShapeDtypeStruct((B, C), jnp.float32),
                   jax.ShapeDtypeStruct((B, 1), jnp.float32)),
    )(cand_enc, user_enc, tgt2d)
    return logits, per_loss


# ---------------------------------------------------------------------------
# Parameter construction (deterministic, synthetic).
# Q/K/V weights are stored head-fused as (in_dim, hidden).
# ---------------------------------------------------------------------------
def init_params(key, vocab, emb_dim, hidden, num_heads, attn_dim):
    assert hidden % num_heads == 0
    ks = jax.random.split(key, 13)
    s = 0.1
    return {
        "embedding": s * jax.random.normal(ks[0], (vocab, emb_dim), jnp.float32),
        # news encoder
        "n_wq": s * jax.random.normal(ks[1], (emb_dim, hidden), jnp.float32),
        "n_wk": s * jax.random.normal(ks[2], (emb_dim, hidden), jnp.float32),
        "n_wv": s * jax.random.normal(ks[3], (emb_dim, hidden), jnp.float32),
        "n_wa": s * jax.random.normal(ks[4], (hidden, attn_dim), jnp.float32),
        "n_ba": s * jax.random.normal(ks[5], (1, attn_dim), jnp.float32),
        "n_qa": s * jax.random.normal(ks[6], (1, attn_dim), jnp.float32),
        # user encoder (operates on hidden-size news vectors)
        "u_wq": s * jax.random.normal(ks[7], (hidden, hidden), jnp.float32),
        "u_wk": s * jax.random.normal(ks[8], (hidden, hidden), jnp.float32),
        "u_wv": s * jax.random.normal(ks[9], (hidden, hidden), jnp.float32),
        "u_wa": s * jax.random.normal(ks[10], (hidden, attn_dim), jnp.float32),
        "u_ba": s * jax.random.normal(ks[11], (1, attn_dim), jnp.float32),
        "u_qa": s * jax.random.normal(ks[12], (1, attn_dim), jnp.float32),
    }


# ---------------------------------------------------------------------------
# NRMS forward (mirrors the PyTorch module, training mode).
# ---------------------------------------------------------------------------
def nrms_forward(params, candidate_news, news_histories, target, *, num_heads):
    B, C, S = candidate_news.shape
    _, Hn, Sh = news_histories.shape
    H = params["n_wq"].shape[-1]

    # Embedding lookup stays in plain JAX (gather); table kept in bf16 so the
    # kernel's activation stream is already half-width.
    emb = params["embedding"].astype(jnp.bfloat16)

    cand_tok = candidate_news.reshape(B * C, S)
    hist_tok = news_histories.reshape(B * Hn, Sh)
    n_args = (params["n_wq"], params["n_wk"], params["n_wv"],
              params["n_wa"], params["n_ba"], params["n_qa"])

    if S == Sh:
        # One fused news-encoder call over candidates + histories.
        all_x = emb[jnp.concatenate([cand_tok, hist_tok], axis=0)]
        all_enc = attn_encode(all_x, *n_args, num_heads=num_heads)
        cand_enc = all_enc[:B * C].reshape(B, C, H)
        hist_enc = all_enc[B * C:].reshape(B, Hn, H)
    else:
        cand_enc = attn_encode(emb[cand_tok], *n_args,
                               num_heads=num_heads).reshape(B, C, H)
        hist_enc = attn_encode(emb[hist_tok], *n_args,
                               num_heads=num_heads).reshape(B, Hn, H)

    # user encoder: self-attention + pooling over the encoded history items
    user_enc = attn_encode(hist_enc, params["u_wq"], params["u_wk"],
                           params["u_wv"], params["u_wa"], params["u_ba"],
                           params["u_qa"], num_heads=num_heads)   # (B, H)

    # bmm(candidates, user.unsqueeze(-1)).squeeze() + CrossEntropyLoss
    logits, per_loss = score_and_loss(cand_enc, user_enc, target)
    loss = jnp.mean(per_loss)                                     # reduction='mean'
    # TODO(synk): eval-mode path (loss = -1) of the PyTorch module is not
    # replicated; this implements the training-mode forward.
    return {"logits": logits, "loss": loss, "labels": target}


if __name__ == "__main__":
    # small shapes consistent with the module's forward
    B, C, Hn, S = 2, 4, 6, 8
    VOCAB, EMB, HIDDEN, HEADS, ATTN = 64, 32, 32, 4, 16

    key = jax.random.PRNGKey(0)
    kp, k1, k2, k3 = jax.random.split(key, 4)
    params = init_params(kp, VOCAB, EMB, HIDDEN, HEADS, ATTN)

    candidate_news = jax.random.randint(k1, (B, C, S), 0, VOCAB, dtype=jnp.int32)
    news_histories = jax.random.randint(k2, (B, Hn, S), 0, VOCAB, dtype=jnp.int32)
    target = jax.random.randint(k3, (B,), 0, C, dtype=jnp.int32)

    fwd = jax.jit(functools.partial(nrms_forward, num_heads=HEADS))
    out = fwd(params, candidate_news, news_histories, target)
    jax.block_until_ready(out)

    assert out["logits"].shape == (B, C)
    assert out["loss"].shape == ()
    assert bool(jnp.isfinite(out["loss"]))
    print("KERNEL_OK")
</pallas_src>

<mosaic_0001>
module attributes {stable_mosaic.version = 11 : i64} {
  func.func @_attn_pool_kernel(%arg0: i32, %arg1: memref<192x32xbf16, #tpu.memory_space<vmem>>, %arg2: memref<32x32xbf16, #tpu.memory_space<vmem>>, %arg3: memref<32x32xbf16, #tpu.memory_space<vmem>>, %arg4: memref<32x32xbf16, #tpu.memory_space<vmem>>, %arg5: memref<32x16xf32, #tpu.memory_space<vmem>>, %arg6: memref<1x16xf32, #tpu.memory_space<vmem>>, %arg7: memref<1x16xf32, #tpu.memory_space<vmem>>, %arg8: memref<24x32xf32, #tpu.memory_space<vmem>>) attributes {dimension_semantics = [#tpu.dimension_semantics<parallel>], iteration_bounds = array<i64: 1>, scalar_prefetch = 0 : i64, scratch_operands = 0 : i64, tpu.core_type = #tpu.core_type<tc>, window_params = [{transform_indices = @transform_0, window_bounds = array<i64: 192, 32>}, {pipeline_mode = #tpu.pipeline_mode<synchronous>, transform_indices = @transform_1, window_bounds = array<i64: 32, 32>}, {pipeline_mode = #tpu.pipeline_mode<synchronous>, transform_indices = @transform_2, window_bounds = array<i64: 32, 32>}, {pipeline_mode = #tpu.pipeline_mode<synchronous>, transform_indices = @transform_3, window_bounds = array<i64: 32, 32>}, {pipeline_mode = #tpu.pipeline_mode<synchronous>, transform_indices = @transform_4, window_bounds = array<i64: 32, 16>}, {pipeline_mode = #tpu.pipeline_mode<synchronous>, transform_indices = @transform_5, window_bounds = array<i64: 1, 16>}, {pipeline_mode = #tpu.pipeline_mode<synchronous>, transform_indices = @transform_6, window_bounds = array<i64: 1, 16>}, {transform_indices = @transform_7, window_bounds = array<i64: 24, 32>}]} {
    %c0 = arith.constant 0 : index
    %c0_0 = arith.constant 0 : index
    %0 = vector.load %arg1[%c0, %c0_0] : memref<192x32xbf16, #tpu.memory_space<vmem>>, vector<192x32xbf16>
    %c0_1 = arith.constant 0 : index
    %c0_2 = arith.constant 0 : index
    %1 = vector.load %arg2[%c0_1, %c0_2] : memref<32x32xbf16, #tpu.memory_space<vmem>>, vector<32x32xbf16>
    %cst = arith.constant dense<0.000000e+00> : vector<192x32xf32>
    %2 = tpu.matmul %0, %1, %cst {dimension_numbers = #tpu.dot_dimension_numbers<[1], [0], [0], [1], [0, 0, 1, 1], [], []>} : vector<192x32xbf16>, vector<32x32xbf16>, vector<192x32xf32> -> vector<192x32xf32>
    %c0_3 = arith.constant 0 : index
    %c0_4 = arith.constant 0 : index
    %3 = vector.load %arg3[%c0_3, %c0_4] : memref<32x32xbf16, #tpu.memory_space<vmem>>, vector<32x32xbf16>
    %cst_5 = arith.constant dense<0.000000e+00> : vector<192x32xf32>
    %4 = tpu.matmul %0, %3, %cst_5 {dimension_numbers = #tpu.dot_dimension_numbers<[1], [0], [0], [1], [0, 0, 1, 1], [], []>} : vector<192x32xbf16>, vector<32x32xbf16>, vector<192x32xf32> -> vector<192x32xf32>
    %c0_6 = arith.constant 0 : index
    %c0_7 = arith.constant 0 : index
    %5 = vector.load %arg4[%c0_6, %c0_7] : memref<32x32xbf16, #tpu.memory_space<vmem>>, vector<32x32xbf16>
    %cst_8 = arith.constant dense<0.000000e+00> : vector<192x32xf32>
    %6 = tpu.matmul %0, %5, %cst_8 {dimension_numbers = #tpu.dot_dimension_numbers<[1], [0], [0], [1], [0, 0, 1, 1], [], []>} : vector<192x32xbf16>, vector<32x32xbf16>, vector<192x32xf32> -> vector<192x32xf32>
    %7 = vector.shape_cast %2 : vector<192x32xf32> to vector<24x8x32xf32>
    %8 = vector.shape_cast %4 : vector<192x32xf32> to vector<24x8x32xf32>
    %9 = vector.shape_cast %6 : vector<192x32xf32> to vector<24x8x32xf32>
    %10 = vector.extract_strided_slice %7 {offsets = [0, 0, 0], sizes = [24, 8, 8], strides = [1, 1, 1]} : vector<24x8x32xf32> to vector<24x8x8xf32>
    %11 = vector.extract_strided_slice %8 {offsets = [0, 0, 0], sizes = [24, 8, 8], strides = [1, 1, 1]} : vector<24x8x32xf32> to vector<24x8x8xf32>
    %12 = vector.extract_strided_slice %9 {offsets = [0, 0, 0], sizes = [24, 8, 8], strides = [1, 1, 1]} : vector<24x8x32xf32> to vector<24x8x8xf32>
    %cst_9 = arith.constant dense<0.000000e+00> : vector<24x8x8xf32>
    %13 = tpu.matmul %10, %11, %cst_9 {dimension_numbers = #tpu.dot_dimension_numbers<[2], [2], [1], [1], [0, 0, 0, 1, 1, 1], [0], [0]>} : vector<24x8x8xf32>, vector<24x8x8xf32>, vector<24x8x8xf32> -> vector<24x8x8xf32>
    %cst_10 = arith.constant 0.353553385 : f32
    %14 = vector.broadcast %cst_10 : f32 to vector<24x8x8xf32>
    %15 = arith.mulf %13, %14 : vector<24x8x8xf32>
    %cst_11 = arith.constant dense<0xFF800000> : vector<24x8xf32>
    %16 = vector.multi_reduction <maximumf>, %15, %cst_11 [2] : vector<24x8x8xf32> to vector<24x8xf32>
    %17 = vector.shape_cast %16 : vector<24x8xf32> to vector<24x8x1xf32>
    %18 = vector.broadcast %17 : vector<24x8x1xf32> to vector<24x8x8xf32>
    %19 = arith.subf %15, %18 : vector<24x8x8xf32>
    %20 = math.exp %19 : vector<24x8x8xf32>
    %cst_12 = arith.constant dense<0.000000e+00> : vector<24x8xf32>
    %21 = vector.multi_reduction <add>, %20, %cst_12 [2] : vector<24x8x8xf32> to vector<24x8xf32>
    %22 = vector.shape_cast %21 : vector<24x8xf32> to vector<24x8x1xf32>
    %23 = tpu.reciprocal %22 {approx = true} : vector<24x8x1xf32> -> vector<24x8x1xf32>
    %24 = vector.broadcast %23 : vector<24x8x1xf32> to vector<24x8x8xf32>
    %25 = arith.mulf %20, %24 : vector<24x8x8xf32>
    %cst_13 = arith.constant dense<0.000000e+00> : vector<24x8x8xf32>
    %26 = tpu.matmul %25, %12, %cst_13 {dimension_numbers = #tpu.dot_dimension_numbers<[2], [1], [1], [2], [0, 0, 0, 1, 1, 2], [0], [0]>} : vector<24x8x8xf32>, vector<24x8x8xf32>, vector<24x8x8xf32> -> vector<24x8x8xf32>
    %27 = vector.extract_strided_slice %7 {offsets = [0, 0, 8], sizes = [24, 8, 8], strides = [1, 1, 1]} : vector<24x8x32xf32> to vector<24x8x8xf32>
    %28 = vector.extract_strided_slice %8 {offsets = [0, 0, 8], sizes = [24, 8, 8], strides = [1, 1, 1]} : vector<24x8x32xf32> to vector<24x8x8xf32>
    %29 = vector.extract_strided_slice %9 {offsets = [0, 0, 8], sizes = [24, 8, 8], strides = [1, 1, 1]} : vector<24x8x32xf32> to vector<24x8x8xf32>
    %cst_14 = arith.constant dense<0.000000e+00> : vector<24x8x8xf32>
    %30 = tpu.matmul %27, %28, %cst_14 {dimension_numbers = #tpu.dot_dimension_numbers<[2], [2], [1], [1], [0, 0, 0, 1, 1, 1], [0], [0]>} : vector<24x8x8xf32>, vector<24x8x8xf32>, vector<24x8x8xf32> -> vector<24x8x8xf32>
    %cst_15 = arith.constant 0.353553385 : f32
    %31 = vector.broadcast %cst_15 : f32 to vector<24x8x8xf32>
    %32 = arith.mulf %30, %31 : vector<24x8x8xf32>
    %cst_16 = arith.constant dense<0xFF800000> : vector<24x8xf32>
    %33 = vector.multi_reduction <maximumf>, %32, %cst_16 [2] : vector<24x8x8xf32> to vector<24x8xf32>
    %34 = vector.shape_cast %33 : vector<24x8xf32> to vector<24x8x1xf32>
    %35 = vector.broadcast %34 : vector<24x8x1xf32> to vector<24x8x8xf32>
    %36 = arith.subf %32, %35 : vector<24x8x8xf32>
    %37 = math.exp %36 : vector<24x8x8xf32>
    %cst_17 = arith.constant dense<0.000000e+00> : vector<24x8xf32>
    %38 = vector.multi_reduction <add>, %37, %cst_17 [2] : vector<24x8x8xf32> to vector<24x8xf32>
    %39 = vector.shape_cast %38 : vector<24x8xf32> to vector<24x8x1xf32>
    %40 = tpu.reciprocal %39 {approx = true} : vector<24x8x1xf32> -> vector<24x8x1xf32>
    %41 = vector.broadcast %40 : vector<24x8x1xf32> to vector<24x8x8xf32>
    %42 = arith.mulf %37, %41 : vector<24x8x8xf32>
    %cst_18 = arith.constant dense<0.000000e+00> : vector<24x8x8xf32>
    %43 = tpu.matmul %42, %29, %cst_18 {dimension_numbers = #tpu.dot_dimension_numbers<[2], [1], [1], [2], [0, 0, 0, 1, 1, 2], [0], [0]>} : vector<24x8x8xf32>, vector<24x8x8xf32>, vector<24x8x8xf32> -> vector<24x8x8xf32>
    %44 = vector.extract_strided_slice %7 {offsets = [0, 0, 16], sizes = [24, 8, 8], strides = [1, 1, 1]} : vector<24x8x32xf32> to vector<24x8x8xf32>
    %45 = vector.extract_strided_slice %8 {offsets = [0, 0, 16], sizes = [24, 8, 8], strides = [1, 1, 1]} : vector<24x8x32xf32> to vector<24x8x8xf32>
    %46 = vector.extract_strided_slice %9 {offsets = [0, 0, 16], sizes = [24, 8, 8], strides = [1, 1, 1]} : vector<24x8x32xf32> to vector<24x8x8xf32>
    %cst_19 = arith.constant dense<0.000000e+00> : vector<24x8x8xf32>
    %47 = tpu.matmul %44, %45, %cst_19 {dimension_numbers = #tpu.dot_dimension_numbers<[2], [2], [1], [1], [0, 0, 0, 1, 1, 1], [0], [0]>} : vector<24x8x8xf32>, vector<24x8x8xf32>, vector<24x8x8xf32> -> vector<24x8x8xf32>
    %cst_20 = arith.constant 0.353553385 : f32
    %48 = vector.broadcast %cst_20 : f32 to vector<24x8x8xf32>
    %49 = arith.mulf %47, %48 : vector<24x8x8xf32>
    %cst_21 = arith.constant dense<0xFF800000> : vector<24x8xf32>
    %50 = vector.multi_reduction <maximumf>, %49, %cst_21 [2] : vector<24x8x8xf32> to vector<24x8xf32>
    %51 = vector.shape_cast %50 : vector<24x8xf32> to vector<24x8x1xf32>
    %52 = vector.broadcast %51 : vector<24x8x1xf32> to vector<24x8x8xf32>
    %53 = arith.subf %49, %52 : vector<24x8x8xf32>
    %54 = math.exp %53 : vector<24x8x8xf32>
    %cst_22 = arith.constant dense<0.000000e+00> : vector<24x8xf32>
    %55 = vector.multi_reduction <add>, %54, %cst_22 [2] : vector<24x8x8xf32> to vector<24x8xf32>
    %56 = vector.shape_cast %55 : vector<24x8xf32> to vector<24x8x1xf32>
    %57 = tpu.reciprocal %56 {approx = true} : vector<24x8x1xf32> -> vector<24x8x1xf32>
    %58 = vector.broadcast %57 : vector<24x8x1xf32> to vector<24x8x8xf32>
    %59 = arith.mulf %54, %58 : vector<24x8x8xf32>
    %cst_23 = arith.constant dense<0.000000e+00> : vector<24x8x8xf32>
    %60 = tpu.matmul %59, %46, %cst_23 {dimension_numbers = #tpu.dot_dimension_numbers<[2], [1], [1], [2], [0, 0, 0, 1, 1, 2], [0], [0]>} : vector<24x8x8xf32>, vector<24x8x8xf32>, vector<24x8x8xf32> -> vector<24x8x8xf32>
    %61 = vector.extract_strided_slice %7 {offsets = [0, 0, 24], sizes = [24, 8, 8], strides = [1, 1, 1]} : vector<24x8x32xf32> to vector<24x8x8xf32>
    %62 = vector.extract_strided_slice %8 {offsets = [0, 0, 24], sizes = [24, 8, 8], strides = [1, 1, 1]} : vector<24x8x32xf32> to vector<24x8x8xf32>
    %63 = vector.extract_strided_slice %9 {offsets = [0, 0, 24], sizes = [24, 8, 8], strides = [1, 1, 1]} : vector<24x8x32xf32> to vector<24x8x8xf32>
    %cst_24 = arith.constant dense<0.000000e+00> : vector<24x8x8xf32>
    %64 = tpu.matmul %61, %62, %cst_24 {dimension_numbers = #tpu.dot_dimension_numbers<[2], [2], [1], [1], [0, 0, 0, 1, 1, 1], [0], [0]>} : vector<24x8x8xf32>, vector<24x8x8xf32>, vector<24x8x8xf32> -> vector<24x8x8xf32>
    %cst_25 = arith.constant 0.353553385 : f32
    %65 = vector.broadcast %cst_25 : f32 to vector<24x8x8xf32>
    %66 = arith.mulf %64, %65 : vector<24x8x8xf32>
    %cst_26 = arith.constant dense<0xFF800000> : vector<24x8xf32>
    %67 = vector.multi_reduction <maximumf>, %66, %cst_26 [2] : vector<24x8x8xf32> to vector<24x8xf32>
    %68 = vector.shape_cast %67 : vector<24x8xf32> to vector<24x8x1xf32>
    %69 = vector.broadcast %68 : vector<24x8x1xf32> to vector<24x8x8xf32>
    %70 = arith.subf %66, %69 : vector<24x8x8xf32>
    %71 = math.exp %70 : vector<24x8x8xf32>
    %cst_27 = arith.constant dense<0.000000e+00> : vector<24x8xf32>
    %72 = vector.multi_reduction <add>, %71, %cst_27 [2] : vector<24x8x8xf32> to vector<24x8xf32>
    %73 = vector.shape_cast %72 : vector<24x8xf32> to vector<24x8x1xf32>
    %74 = tpu.reciprocal %73 {approx = true} : vector<24x8x1xf32> -> vector<24x8x1xf32>
    %75 = vector.broadcast %74 : vector<24x8x1xf32> to vector<24x8x8xf32>
    %76 = arith.mulf %71, %75 : vector<24x8x8xf32>
    %cst_28 = arith.constant dense<0.000000e+00> : vector<24x8x8xf32>
    %77 = tpu.matmul %76, %63, %cst_28 {dimension_numbers = #tpu.dot_dimension_numbers<[2], [1], [1], [2], [0, 0, 0, 1, 1, 2], [0], [0]>} : vector<24x8x8xf32>, vector<24x8x8xf32>, vector<24x8x8xf32> -> vector<24x8x8xf32>
    %78 = tpu.concatenate %26, %43, %60, %77 in 2 : vector<24x8x8xf32>, vector<24x8x8xf32>, vector<24x8x8xf32>, vector<24x8x8xf32> -> vector<24x8x32xf32>
    %79 = vector.shape_cast %78 : vector<24x8x32xf32> to vector<192x32xf32>
    %c0_29 = arith.constant 0 : index
    %c0_30 = arith.constant 0 : index
    %80 = vector.load %arg5[%c0_29, %c0_30] : memref<32x16xf32, #tpu.memory_space<vmem>>, vector<32x16xf32>
    %cst_31 = arith.constant dense<0.000000e+00> : vector<192x16xf32>
    %81 = tpu.matmul %79, %80, %cst_31 {dimension_numbers = #tpu.dot_dimension_numbers<[1], [0], [0], [1], [0, 0, 1, 1], [], []>} : vector<192x32xf32>, vector<32x16xf32>, vector<192x16xf32> -> vector<192x16xf32>
    %c0_32 = arith.constant 0 : index
    %c0_33 = arith.constant 0 : index
    %82 = vector.load %arg6[%c0_32, %c0_33] : memref<1x16xf32, #tpu.memory_space<vmem>>, vector<1x16xf32>
    %83 = vector.broadcast %82 : vector<1x16xf32> to vector<192x16xf32>
    %84 = arith.addf %81, %83 : vector<192x16xf32>
    %85 = math.tanh %84 : vector<192x16xf32>
    %86 = vector.shape_cast %85 : vector<192x16xf32> to vector<24x8x16xf32>
    %c0_34 = arith.constant 0 : index
    %c0_35 = arith.constant 0 : index
    %87 = vector.load %arg7[%c0_34, %c0_35] : memref<1x16xf32, #tpu.memory_space<vmem>>, vector<1x16xf32>
    %88 = vector.shape_cast %87 : vector<1x16xf32> to vector<1x1x16xf32>
    %89 = vector.broadcast %88 : vector<1x1x16xf32> to vector<24x8x16xf32>
    %90 = arith.mulf %86, %89 : vector<24x8x16xf32>
    %cst_36 = arith.constant dense<0.000000e+00> : vector<24x8xf32>
    %91 = vector.multi_reduction <add>, %90, %cst_36 [2] : vector<24x8x16xf32> to vector<24x8xf32>
    %92 = vector.shape_cast %91 : vector<24x8xf32> to vector<24x8x1xf32>
    %cst_37 = arith.constant dense<0xFF800000> : vector<24x1xf32>
    %93 = vector.multi_reduction <maximumf>, %92, %cst_37 [1] : vector<24x8x1xf32> to vector<24x1xf32>
    %94 = vector.shape_cast %93 : vector<24x1xf32> to vector<24x1x1xf32>
    %95 = vector.broadcast %94 : vector<24x1x1xf32> to vector<24x8x1xf32>
    %96 = arith.subf %92, %95 : vector<24x8x1xf32>
    %97 = math.exp %96 : vector<24x8x1xf32>
    %cst_38 = arith.constant dense<0.000000e+00> : vector<24x1xf32>
    %98 = vector.multi_reduction <add>, %97, %cst_38 [1] : vector<24x8x1xf32> to vector<24x1xf32>
    %99 = vector.shape_cast %98 : vector<24x1xf32> to vector<24x1x1xf32>
    %100 = tpu.reciprocal %99 {approx = true} : vector<24x1x1xf32> -> vector<24x1x1xf32>
    %101 = vector.broadcast %100 : vector<24x1x1xf32> to vector<24x8x1xf32>
    %102 = arith.mulf %97, %101 : vector<24x8x1xf32>
    %103 = vector.broadcast %102 : vector<24x8x1xf32> to vector<24x8x32xf32>
    %104 = arith.mulf %78, %103 : vector<24x8x32xf32>
    %cst_39 = arith.constant dense<0.000000e+00> : vector<24x32xf32>
    %105 = vector.multi_reduction <add>, %104, %cst_39 [1] : vector<24x8x32xf32> to vector<24x32xf32>
    %c0_40 = arith.constant 0 : index
    %c0_41 = arith.constant 0 : index
    %106 = vector.load %arg8[%c0_40, %c0_41] : memref<24x32xf32, #tpu.memory_space<vmem>>, vector<24x32xf32>
    tpu.vector_store %arg8[%c0_40, %c0_41], %105 {strides = array<i32>} : memref<24x32xf32, #tpu.memory_space<vmem>>, vector<24x32xf32>,
    return
  }
  func.func @transform_0(%arg0: i32) -> (i32, i32) {
    %c0_i32 = arith.constant 0 : i32
    %c0_i32_0 = arith.constant 0 : i32
    return %arg0, %c0_i32 : i32, i32
  }
  func.func @transform_1(%arg0: i32) -> (i32, i32) {
    %c0_i32 = arith.constant 0 : i32
    %c0_i32_0 = arith.constant 0 : i32
    %c0_i32_1 = arith.constant 0 : i32
    return %c0_i32, %c0_i32_0 : i32, i32
  }
  func.func @transform_2(%arg0: i32) -> (i32, i32) {
    %c0_i32 = arith.constant 0 : i32
    %c0_i32_0 = arith.constant 0 : i32
    %c0_i32_1 = arith.constant 0 : i32
    return %c0_i32, %c0_i32_0 : i32, i32
  }
  func.func @transform_3(%arg0: i32) -> (i32, i32) {
    %c0_i32 = arith.constant 0 : i32
    %c0_i32_0 = arith.constant 0 : i32
    %c0_i32_1 = arith.constant 0 : i32
    return %c0_i32, %c0_i32_0 : i32, i32
  }
  func.func @transform_4(%arg0: i32) -> (i32, i32) {
    %c0_i32 = arith.constant 0 : i32
    %c0_i32_0 = arith.constant 0 : i32
    %c0_i32_1 = arith.constant 0 : i32
    return %c0_i32, %c0_i32_0 : i32, i32
  }
  func.func @transform_5(%arg0: i32) -> (i32, i32) {
    %c0_i32 = arith.constant 0 : i32
    %c0_i32_0 = arith.constant 0 : i32
    %c0_i32_1 = arith.constant 0 : i32
    return %c0_i32, %c0_i32_0 : i32, i32
  }
  func.func @transform_6(%arg0: i32) -> (i32, i32) {
    %c0_i32 = arith.constant 0 : i32
    %c0_i32_0 = arith.constant 0 : i32
    %c0_i32_1 = arith.constant 0 : i32
    return %c0_i32, %c0_i32_0 : i32, i32
  }
  func.func @transform_7(%arg0: i32) -> (i32, i32) {
    %c0_i32 = arith.constant 0 : i32
    %c0_i32_0 = arith.constant 0 : i32
    return %arg0, %c0_i32 : i32, i32
  }
}

module attributes {stable_mosaic.version = 11 : i64} {
  func.func @_score_loss_kernel(%arg0: memref<2x4x32xf32, #tpu.memory_space<vmem>>, %arg1: memref<2x32xf32, #tpu.memory_space<vmem>>, %arg2: memref<2x1xi32, #tpu.memory_space<vmem>>, %arg3: memref<2x4xf32, #tpu.memory_space<vmem>>, %arg4: memref<2x1xf32, #tpu.memory_space<vmem>>) attributes {dimension_semantics = [], scalar_prefetch = 0 : i64, scratch_operands = 0 : i64, tpu.core_type = #tpu.core_type<tc>} {
    %c0 = arith.constant 0 : index
    %c0_0 = arith.constant 0 : index
    %c0_1 = arith.constant 0 : index
    %0 = vector.load %arg0[%c0, %c0_0, %c0_1] : memref<2x4x32xf32, #tpu.memory_space<vmem>>, vector<2x4x32xf32>
    %c0_2 = arith.constant 0 : index
    %c0_3 = arith.constant 0 : index
    %1 = vector.load %arg1[%c0_2, %c0_3] : memref<2x32xf32, #tpu.memory_space<vmem>>, vector<2x32xf32>
    %2 = vector.shape_cast %1 : vector<2x32xf32> to vector<2x1x32xf32>
    %3 = vector.broadcast %2 : vector<2x1x32xf32> to vector<2x4x32xf32>
    %4 = arith.mulf %0, %3 : vector<2x4x32xf32>
    %cst = arith.constant dense<0.000000e+00> : vector<2x4xf32>
    %5 = vector.multi_reduction <add>, %4, %cst [2] : vector<2x4x32xf32> to vector<2x4xf32>
    %cst_4 = arith.constant dense<0xFF800000> : vector<2xf32>
    %6 = vector.multi_reduction <maximumf>, %5, %cst_4 [1] : vector<2x4xf32> to vector<2xf32>
    %7 = vector.shape_cast %6 : vector<2xf32> to vector<2x1xf32>
    %8 = vector.broadcast %7 : vector<2x1xf32> to vector<2x4xf32>
    %9 = arith.subf %5, %8 : vector<2x4xf32>
    %10 = math.exp %9 : vector<2x4xf32>
    %cst_5 = arith.constant dense<0.000000e+00> : vector<2xf32>
    %11 = vector.multi_reduction <add>, %10, %cst_5 [1] : vector<2x4xf32> to vector<2xf32>
    %12 = vector.shape_cast %11 : vector<2xf32> to vector<2x1xf32>
    %13 = math.log %12 : vector<2x1xf32>
    %14 = arith.addf %7, %13 : vector<2x1xf32>
    %c0_6 = arith.constant 0 : index
    %c0_7 = arith.constant 0 : index
    %15 = vector.load %arg2[%c0_6, %c0_7] : memref<2x1xi32, #tpu.memory_space<vmem>>, vector<2x1xi32>
    %16 = tpu.iota {dimensions = array<i32: 1>} : vector<2x4xi32>
    %17 = vector.broadcast %15 : vector<2x1xi32> to vector<2x4xi32>
    %18 = arith.cmpi eq, %16, %17 : vector<2x4xi32>
    %cst_8 = arith.constant 0.000000e+00 : f32
    %19 = vector.broadcast %cst_8 : f32 to vector<2x4xf32>
    %20 = arith.select %18, %5, %19 : vector<2x4xi1>, vector<2x4xf32>
    %cst_9 = arith.constant dense<0.000000e+00> : vector<2xf32>
    %21 = vector.multi_reduction <add>, %20, %cst_9 [1] : vector<2x4xf32> to vector<2xf32>
    %22 = vector.shape_cast %21 : vector<2xf32> to vector<2x1xf32>
    %c0_10 = arith.constant 0 : index
    %c0_11 = arith.constant 0 : index
    %23 = vector.load %arg3[%c0_10, %c0_11] : memref<2x4xf32, #tpu.memory_space<vmem>>, vector<2x4xf32>
    tpu.vector_store %arg3[%c0_10, %c0_11], %5 {strides = array<i32>} : memref<2x4xf32, #tpu.memory_space<vmem>>, vector<2x4xf32>,
    %24 = arith.subf %14, %22 : vector<2x1xf32>
    %c0_12 = arith.constant 0 : index
    %c0_13 = arith.constant 0 : index
    %25 = vector.load %arg4[%c0_12, %c0_13] : memref<2x1xf32, #tpu.memory_space<vmem>>, vector<2x1xf32>
    tpu.vector_store %arg4[%c0_12, %c0_13], %24 {strides = array<i32>} : memref<2x1xf32, #tpu.memory_space<vmem>>, vector<2x1xf32>,
    return
  }
}

module attributes {stable_mosaic.version = 11 : i64} {
  func.func @_attn_pool_kernel(%arg0: i32, %arg1: memref<64x32xbf16, #tpu.memory_space<vmem>>, %arg2: memref<32x32xbf16, #tpu.memory_space<vmem>>, %arg3: memref<32x32xbf16, #tpu.memory_space<vmem>>, %arg4: memref<32x32xbf16, #tpu.memory_space<vmem>>, %arg5: memref<32x16xf32, #tpu.memory_space<vmem>>, %arg6: memref<1x16xf32, #tpu.memory_space<vmem>>, %arg7: memref<1x16xf32, #tpu.memory_space<vmem>>, %arg8: memref<8x32xf32, #tpu.memory_space<vmem>>) attributes {dimension_semantics = [#tpu.dimension_semantics<parallel>], iteration_bounds = array<i64: 1>, scalar_prefetch = 0 : i64, scratch_operands = 0 : i64, tpu.core_type = #tpu.core_type<tc>, window_params = [{transform_indices = @transform_0, window_bounds = array<i64: 64, 32>}, {pipeline_mode = #tpu.pipeline_mode<synchronous>, transform_indices = @transform_1, window_bounds = array<i64: 32, 32>}, {pipeline_mode = #tpu.pipeline_mode<synchronous>, transform_indices = @transform_2, window_bounds = array<i64: 32, 32>}, {pipeline_mode = #tpu.pipeline_mode<synchronous>, transform_indices = @transform_3, window_bounds = array<i64: 32, 32>}, {pipeline_mode = #tpu.pipeline_mode<synchronous>, transform_indices = @transform_4, window_bounds = array<i64: 32, 16>}, {pipeline_mode = #tpu.pipeline_mode<synchronous>, transform_indices = @transform_5, window_bounds = array<i64: 1, 16>}, {pipeline_mode = #tpu.pipeline_mode<synchronous>, transform_indices = @transform_6, window_bounds = array<i64: 1, 16>}, {transform_indices = @transform_7, window_bounds = array<i64: 8, 32>}]} {
    %c0 = arith.constant 0 : index
    %c0_0 = arith.constant 0 : index
    %0 = vector.load %arg1[%c0, %c0_0] : memref<64x32xbf16, #tpu.memory_space<vmem>>, vector<64x32xbf16>
    %c0_1 = arith.constant 0 : index
    %c0_2 = arith.constant 0 : index
    %1 = vector.load %arg2[%c0_1, %c0_2] : memref<32x32xbf16, #tpu.memory_space<vmem>>, vector<32x32xbf16>
    %cst = arith.constant dense<0.000000e+00> : vector<64x32xf32>
    %2 = tpu.matmul %0, %1, %cst {dimension_numbers = #tpu.dot_dimension_numbers<[1], [0], [0], [1], [0, 0, 1, 1], [], []>} : vector<64x32xbf16>, vector<32x32xbf16>, vector<64x32xf32> -> vector<64x32xf32>
    %c0_3 = arith.constant 0 : index
    %c0_4 = arith.constant 0 : index
    %3 = vector.load %arg3[%c0_3, %c0_4] : memref<32x32xbf16, #tpu.memory_space<vmem>>, vector<32x32xbf16>
    %cst_5 = arith.constant dense<0.000000e+00> : vector<64x32xf32>
    %4 = tpu.matmul %0, %3, %cst_5 {dimension_numbers = #tpu.dot_dimension_numbers<[1], [0], [0], [1], [0, 0, 1, 1], [], []>} : vector<64x32xbf16>, vector<32x32xbf16>, vector<64x32xf32> -> vector<64x32xf32>
    %c0_6 = arith.constant 0 : index
    %c0_7 = arith.constant 0 : index
    %5 = vector.load %arg4[%c0_6, %c0_7] : memref<32x32xbf16, #tpu.memory_space<vmem>>, vector<32x32xbf16>
    %cst_8 = arith.constant dense<0.000000e+00> : vector<64x32xf32>
    %6 = tpu.matmul %0, %5, %cst_8 {dimension_numbers = #tpu.dot_dimension_numbers<[1], [0], [0], [1], [0, 0, 1, 1], [], []>} : vector<64x32xbf16>, vector<32x32xbf16>, vector<64x32xf32> -> vector<64x32xf32>
    %7 = vector.shape_cast %2 : vector<64x32xf32> to vector<8x8x32xf32>
    %8 = vector.shape_cast %4 : vector<64x32xf32> to vector<8x8x32xf32>
    %9 = vector.shape_cast %6 : vector<64x32xf32> to vector<8x8x32xf32>
    %10 = tpu.iota {dimensions = array<i32: 2>} : vector<1x1x8xi32>
    %c6_i32 = arith.constant 6 : i32
    %11 = vector.broadcast %c6_i32 : i32 to vector<1x1x8xi32>
    %12 = arith.cmpi slt, %10, %11 : vector<1x1x8xi32>
    %13 = vector.extract_strided_slice %7 {offsets = [0, 0, 0], sizes = [8, 8, 8], strides = [1, 1, 1]} : vector<8x8x32xf32> to vector<8x8x8xf32>
    %14 = vector.extract_strided_slice %8 {offsets = [0, 0, 0], sizes = [8, 8, 8], strides = [1, 1, 1]} : vector<8x8x32xf32> to vector<8x8x8xf32>
    %15 = vector.extract_strided_slice %9 {offsets = [0, 0, 0], sizes = [8, 8, 8], strides = [1, 1, 1]} : vector<8x8x32xf32> to vector<8x8x8xf32>
    %cst_9 = arith.constant dense<0.000000e+00> : vector<8x8x8xf32>
    %16 = tpu.matmul %13, %14, %cst_9 {dimension_numbers = #tpu.dot_dimension_numbers<[2], [2], [1], [1], [0, 0, 0, 1, 1, 1], [0], [0]>} : vector<8x8x8xf32>, vector<8x8x8xf32>, vector<8x8x8xf32> -> vector<8x8x8xf32>
    %cst_10 = arith.constant 0.353553385 : f32
    %17 = vector.broadcast %cst_10 : f32 to vector<8x8x8xf32>
    %18 = arith.mulf %16, %17 : vector<8x8x8xf32>
    %cst_11 = arith.constant -1.000000e+30 : f32
    %19 = vector.shape_cast %12 : vector<1x1x8xi1> to vector<1x1x8xi1>
    %20 = vector.broadcast %19 : vector<1x1x8xi1> to vector<8x8x8xi1>
    %21 = vector.broadcast %cst_11 : f32 to vector<8x8x8xf32>
    %22 = arith.select %20, %18, %21 : vector<8x8x8xi1>, vector<8x8x8xf32>
    %cst_12 = arith.constant dense<0xFF800000> : vector<8x8xf32>
    %23 = vector.multi_reduction <maximumf>, %22, %cst_12 [2] : vector<8x8x8xf32> to vector<8x8xf32>
    %24 = vector.shape_cast %23 : vector<8x8xf32> to vector<8x8x1xf32>
    %25 = vector.broadcast %24 : vector<8x8x1xf32> to vector<8x8x8xf32>
    %26 = arith.subf %22, %25 : vector<8x8x8xf32>
    %27 = math.exp %26 : vector<8x8x8xf32>
    %cst_13 = arith.constant dense<0.000000e+00> : vector<8x8xf32>
    %28 = vector.multi_reduction <add>, %27, %cst_13 [2] : vector<8x8x8xf32> to vector<8x8xf32>
    %29 = vector.shape_cast %28 : vector<8x8xf32> to vector<8x8x1xf32>
    %30 = tpu.reciprocal %29 {approx = true} : vector<8x8x1xf32> -> vector<8x8x1xf32>
    %31 = vector.broadcast %30 : vector<8x8x1xf32> to vector<8x8x8xf32>
    %32 = arith.mulf %27, %31 : vector<8x8x8xf32>
    %cst_14 = arith.constant dense<0.000000e+00> : vector<8x8x8xf32>
    %33 = tpu.matmul %32, %15, %cst_14 {dimension_numbers = #tpu.dot_dimension_numbers<[2], [1], [1], [2], [0, 0, 0, 1, 1, 2], [0], [0]>} : vector<8x8x8xf32>, vector<8x8x8xf32>, vector<8x8x8xf32> -> vector<8x8x8xf32>
    %34 = vector.extract_strided_slice %7 {offsets = [0, 0, 8], sizes = [8, 8, 8], strides = [1, 1, 1]} : vector<8x8x32xf32> to vector<8x8x8xf32>
    %35 = vector.extract_strided_slice %8 {offsets = [0, 0, 8], sizes = [8, 8, 8], strides = [1, 1, 1]} : vector<8x8x32xf32> to vector<8x8x8xf32>
    %36 = vector.extract_strided_slice %9 {offsets = [0, 0, 8], sizes = [8, 8, 8], strides = [1, 1, 1]} : vector<8x8x32xf32> to vector<8x8x8xf32>
    %cst_15 = arith.constant dense<0.000000e+00> : vector<8x8x8xf32>
    %37 = tpu.matmul %34, %35, %cst_15 {dimension_numbers = #tpu.dot_dimension_numbers<[2], [2], [1], [1], [0, 0, 0, 1, 1, 1], [0], [0]>} : vector<8x8x8xf32>, vector<8x8x8xf32>, vector<8x8x8xf32> -> vector<8x8x8xf32>
    %cst_16 = arith.constant 0.353553385 : f32
    %38 = vector.broadcast %cst_16 : f32 to vector<8x8x8xf32>
    %39 = arith.mulf %37, %38 : vector<8x8x8xf32>
    %cst_17 = arith.constant -1.000000e+30 : f32
    %40 = vector.shape_cast %12 : vector<1x1x8xi1> to vector<1x1x8xi1>
    %41 = vector.broadcast %40 : vector<1x1x8xi1> to vector<8x8x8xi1>
    %42 = vector.broadcast %cst_17 : f32 to vector<8x8x8xf32>
    %43 = arith.select %41, %39, %42 : vector<8x8x8xi1>, vector<8x8x8xf32>
    %cst_18 = arith.constant dense<0xFF800000> : vector<8x8xf32>
    %44 = vector.multi_reduction <maximumf>, %43, %cst_18 [2] : vector<8x8x8xf32> to vector<8x8xf32>
    %45 = vector.shape_cast %44 : vector<8x8xf32> to vector<8x8x1xf32>
    %46 = vector.broadcast %45 : vector<8x8x1xf32> to vector<8x8x8xf32>
    %47 = arith.subf %43, %46 : vector<8x8x8xf32>
    %48 = math.exp %47 : vector<8x8x8xf32>
    %cst_19 = arith.constant dense<0.000000e+00> : vector<8x8xf32>
    %49 = vector.multi_reduction <add>, %48, %cst_19 [2] : vector<8x8x8xf32> to vector<8x8xf32>
    %50 = vector.shape_cast %49 : vector<8x8xf32> to vector<8x8x1xf32>
    %51 = tpu.reciprocal %50 {approx = true} : vector<8x8x1xf32> -> vector<8x8x1xf32>
    %52 = vector.broadcast %51 : vector<8x8x1xf32> to vector<8x8x8xf32>
    %53 = arith.mulf %48, %52 : vector<8x8x8xf32>
    %cst_20 = arith.constant dense<0.000000e+00> : vector<8x8x8xf32>
    %54 = tpu.matmul %53, %36, %cst_20 {dimension_numbers = #tpu.dot_dimension_numbers<[2], [1], [1], [2], [0, 0, 0, 1, 1, 2], [0], [0]>} : vector<8x8x8xf32>, vector<8x8x8xf32>, vector<8x8x8xf32> -> vector<8x8x8xf32>
    %55 = vector.extract_strided_slice %7 {offsets = [0, 0, 16], sizes = [8, 8, 8], strides = [1, 1, 1]} : vector<8x8x32xf32> to vector<8x8x8xf32>
    %56 = vector.extract_strided_slice %8 {offsets = [0, 0, 16], sizes = [8, 8, 8], strides = [1, 1, 1]} : vector<8x8x32xf32> to vector<8x8x8xf32>
    %57 = vector.extract_strided_slice %9 {offsets = [0, 0, 16], sizes = [8, 8, 8], strides = [1, 1, 1]} : vector<8x8x32xf32> to vector<8x8x8xf32>
    %cst_21 = arith.constant dense<0.000000e+00> : vector<8x8x8xf32>
    %58 = tpu.matmul %55, %56, %cst_21 {dimension_numbers = #tpu.dot_dimension_numbers<[2], [2], [1], [1], [0, 0, 0, 1, 1, 1], [0], [0]>} : vector<8x8x8xf32>, vector<8x8x8xf32>, vector<8x8x8xf32> -> vector<8x8x8xf32>
    %cst_22 = arith.constant 0.353553385 : f32
    %59 = vector.broadcast %cst_22 : f32 to vector<8x8x8xf32>
    %60 = arith.mulf %58, %59 : vector<8x8x8xf32>
    %cst_23 = arith.constant -1.000000e+30 : f32
    %61 = vector.shape_cast %12 : vector<1x1x8xi1> to vector<1x1x8xi1>
    %62 = vector.broadcast %61 : vector<1x1x8xi1> to vector<8x8x8xi1>
    %63 = vector.broadcast %cst_23 : f32 to vector<8x8x8xf32>
    %64 = arith.select %62, %60, %63 : vector<8x8x8xi1>, vector<8x8x8xf32>
    %cst_24 = arith.constant dense<0xFF800000> : vector<8x8xf32>
    %65 = vector.multi_reduction <maximumf>, %64, %cst_24 [2] : vector<8x8x8xf32> to vector<8x8xf32>
    %66 = vector.shape_cast %65 : vector<8x8xf32> to vector<8x8x1xf32>
    %67 = vector.broadcast %66 : vector<8x8x1xf32> to vector<8x8x8xf32>
    %68 = arith.subf %64, %67 : vector<8x8x8xf32>
    %69 = math.exp %68 : vector<8x8x8xf32>
    %cst_25 = arith.constant dense<0.000000e+00> : vector<8x8xf32>
    %70 = vector.multi_reduction <add>, %69, %cst_25 [2] : vector<8x8x8xf32> to vector<8x8xf32>
    %71 = vector.shape_cast %70 : vector<8x8xf32> to vector<8x8x1xf32>
    %72 = tpu.reciprocal %71 {approx = true} : vector<8x8x1xf32> -> vector<8x8x1xf32>
    %73 = vector.broadcast %72 : vector<8x8x1xf32> to vector<8x8x8xf32>
    %74 = arith.mulf %69, %73 : vector<8x8x8xf32>
    %cst_26 = arith.constant dense<0.000000e+00> : vector<8x8x8xf32>
    %75 = tpu.matmul %74, %57, %cst_26 {dimension_numbers = #tpu.dot_dimension_numbers<[2], [1], [1], [2], [0, 0, 0, 1, 1, 2], [0], [0]>} : vector<8x8x8xf32>, vector<8x8x8xf32>, vector<8x8x8xf32> -> vector<8x8x8xf32>
    %76 = vector.extract_strided_slice %7 {offsets = [0, 0, 24], sizes = [8, 8, 8], strides = [1, 1, 1]} : vector<8x8x32xf32> to vector<8x8x8xf32>
    %77 = vector.extract_strided_slice %8 {offsets = [0, 0, 24], sizes = [8, 8, 8], strides = [1, 1, 1]} : vector<8x8x32xf32> to vector<8x8x8xf32>
    %78 = vector.extract_strided_slice %9 {offsets = [0, 0, 24], sizes = [8, 8, 8], strides = [1, 1, 1]} : vector<8x8x32xf32> to vector<8x8x8xf32>
    %cst_27 = arith.constant dense<0.000000e+00> : vector<8x8x8xf32>
    %79 = tpu.matmul %76, %77, %cst_27 {dimension_numbers = #tpu.dot_dimension_numbers<[2], [2], [1], [1], [0, 0, 0, 1, 1, 1], [0], [0]>} : vector<8x8x8xf32>, vector<8x8x8xf32>, vector<8x8x8xf32> -> vector<8x8x8xf32>
    %cst_28 = arith.constant 0.353553385 : f32
    %80 = vector.broadcast %cst_28 : f32 to vector<8x8x8xf32>
    %81 = arith.mulf %79, %80 : vector<8x8x8xf32>
    %cst_29 = arith.constant -1.000000e+30 : f32
    %82 = vector.shape_cast %12 : vector<1x1x8xi1> to vector<1x1x8xi1>
    %83 = vector.broadcast %82 : vector<1x1x8xi1> to vector<8x8x8xi1>
    %84 = vector.broadcast %cst_29 : f32 to vector<8x8x8xf32>
    %85 = arith.select %83, %81, %84 : vector<8x8x8xi1>, vector<8x8x8xf32>
    %cst_30 = arith.constant dense<0xFF800000> : vector<8x8xf32>
    %86 = vector.multi_reduction <maximumf>, %85, %cst_30 [2] : vector<8x8x8xf32> to vector<8x8xf32>
    %87 = vector.shape_cast %86 : vector<8x8xf32> to vector<8x8x1xf32>
    %88 = vector.broadcast %87 : vector<8x8x1xf32> to vector<8x8x8xf32>
    %89 = arith.subf %85, %88 : vector<8x8x8xf32>
    %90 = math.exp %89 : vector<8x8x8xf32>
    %cst_31 = arith.constant dense<0.000000e+00> : vector<8x8xf32>
    %91 = vector.multi_reduction <add>, %90, %cst_31 [2] : vector<8x8x8xf32> to vector<8x8xf32>
    %92 = vector.shape_cast %91 : vector<8x8xf32> to vector<8x8x1xf32>
    %93 = tpu.reciprocal %92 {approx = true} : vector<8x8x1xf32> -> vector<8x8x1xf32>
    %94 = vector.broadcast %93 : vector<8x8x1xf32> to vector<8x8x8xf32>
    %95 = arith.mulf %90, %94 : vector<8x8x8xf32>
    %cst_32 = arith.constant dense<0.000000e+00> : vector<8x8x8xf32>
    %96 = tpu.matmul %95, %78, %cst_32 {dimension_numbers = #tpu.dot_dimension_numbers<[2], [1], [1], [2], [0, 0, 0, 1, 1, 2], [0], [0]>} : vector<8x8x8xf32>, vector<8x8x8xf32>, vector<8x8x8xf32> -> vector<8x8x8xf32>
    %97 = tpu.concatenate %33, %54, %75, %96 in 2 : vector<8x8x8xf32>, vector<8x8x8xf32>, vector<8x8x8xf32>, vector<8x8x8xf32> -> vector<8x8x32xf32>
    %98 = vector.shape_cast %97 : vector<8x8x32xf32> to vector<64x32xf32>
    %c0_33 = arith.constant 0 : index
    %c0_34 = arith.constant 0 : index
    %99 = vector.load %arg5[%c0_33, %c0_34] : memref<32x16xf32, #tpu.memory_space<vmem>>, vector<32x16xf32>
    %cst_35 = arith.constant dense<0.000000e+00> : vector<64x16xf32>
    %100 = tpu.matmul %98, %99, %cst_35 {dimension_numbers = #tpu.dot_dimension_numbers<[1], [0], [0], [1], [0, 0, 1, 1], [], []>} : vector<64x32xf32>, vector<32x16xf32>, vector<64x16xf32> -> vector<64x16xf32>
    %c0_36 = arith.constant 0 : index
    %c0_37 = arith.constant 0 : index
    %101 = vector.load %arg6[%c0_36, %c0_37] : memref<1x16xf32, #tpu.memory_space<vmem>>, vector<1x16xf32>
    %102 = vector.broadcast %101 : vector<1x16xf32> to vector<64x16xf32>
    %103 = arith.addf %100, %102 : vector<64x16xf32>
    %104 = math.tanh %103 : vector<64x16xf32>
    %105 = vector.shape_cast %104 : vector<64x16xf32> to vector<8x8x16xf32>
    %c0_38 = arith.constant 0 : index
    %c0_39 = arith.constant 0 : index
    %106 = vector.load %arg7[%c0_38, %c0_39] : memref<1x16xf32, #tpu.memory_space<vmem>>, vector<1x16xf32>
    %107 = vector.shape_cast %106 : vector<1x16xf32> to vector<1x1x16xf32>
    %108 = vector.broadcast %107 : vector<1x1x16xf32> to vector<8x8x16xf32>
    %109 = arith.mulf %105, %108 : vector<8x8x16xf32>
    %cst_40 = arith.constant dense<0.000000e+00> : vector<8x8xf32>
    %110 = vector.multi_reduction <add>, %109, %cst_40 [2] : vector<8x8x16xf32> to vector<8x8xf32>
    %111 = vector.shape_cast %110 : vector<8x8xf32> to vector<8x8x1xf32>
    %112 = tpu.iota {dimensions = array<i32: 1>} : vector<8x8x1xi32>
    %c6_i32_41 = arith.constant 6 : i32
    %113 = vector.broadcast %c6_i32_41 : i32 to vector<8x8x1xi32>
    %114 = arith.cmpi slt, %112, %113 : vector<8x8x1xi32>
    %cst_42 = arith.constant -1.000000e+30 : f32
    %115 = vector.broadcast %cst_42 : f32 to vector<8x8x1xf32>
    %116 = arith.select %114, %111, %115 : vector<8x8x1xi1>, vector<8x8x1xf32>
    %cst_43 = arith.constant dense<0xFF800000> : vector<8x1xf32>
    %117 = vector.multi_reduction <maximumf>, %116, %cst_43 [1] : vector<8x8x1xf32> to vector<8x1xf32>
    %118 = vector.shape_cast %117 : vector<8x1xf32> to vector<8x1x1xf32>
    %119 = vector.broadcast %118 : vector<8x1x1xf32> to vector<8x8x1xf32>
    %120 = arith.subf %116, %119 : vector<8x8x1xf32>
    %121 = math.exp %120 : vector<8x8x1xf32>
    %cst_44 = arith.constant dense<0.000000e+00> : vector<8x1xf32>
    %122 = vector.multi_reduction <add>, %121, %cst_44 [1] : vector<8x8x1xf32> to vector<8x1xf32>
    %123 = vector.shape_cast %122 : vector<8x1xf32> to vector<8x1x1xf32>
    %124 = tpu.reciprocal %123 {approx = true} : vector<8x1x1xf32> -> vector<8x1x1xf32>
    %125 = vector.broadcast %124 : vector<8x1x1xf32> to vector<8x8x1xf32>
    %126 = arith.mulf %121, %125 : vector<8x8x1xf32>
    %127 = vector.broadcast %126 : vector<8x8x1xf32> to vector<8x8x32xf32>
    %128 = arith.mulf %97, %127 : vector<8x8x32xf32>
    %cst_45 = arith.constant dense<0.000000e+00> : vector<8x32xf32>
    %129 = vector.multi_reduction <add>, %128, %cst_45 [1] : vector<8x8x32xf32> to vector<8x32xf32>
    %c0_46 = arith.constant 0 : index
    %c0_47 = arith.constant 0 : index
    %130 = vector.load %arg8[%c0_46, %c0_47] : memref<8x32xf32, #tpu.memory_space<vmem>>, vector<8x32xf32>
    tpu.vector_store %arg8[%c0_46, %c0_47], %129 {strides = array<i32>} : memref<8x32xf32, #tpu.memory_space<vmem>>, vector<8x32xf32>,
    return
  }
  func.func @transform_0(%arg0: i32) -> (i32, i32) {
    %c0_i32 = arith.constant 0 : i32
    %c0_i32_0 = arith.constant 0 : i32
    return %arg0, %c0_i32 : i32, i32
  }
  func.func @transform_1(%arg0: i32) -> (i32, i32) {
    %c0_i32 = arith.constant 0 : i32
    %c0_i32_0 = arith.constant 0 : i32
    %c0_i32_1 = arith.constant 0 : i32
    return %c0_i32, %c0_i32_0 : i32, i32
  }
  func.func @transform_2(%arg0: i32) -> (i32, i32) {
    %c0_i32 = arith.constant 0 : i32
    %c0_i32_0 = arith.constant 0 : i32
    %c0_i32_1 = arith.constant 0 : i32
    return %c0_i32, %c0_i32_0 : i32, i32
  }
  func.func @transform_3(%arg0: i32) -> (i32, i32) {
    %c0_i32 = arith.constant 0 : i32
    %c0_i32_0 = arith.constant 0 : i32
    %c0_i32_1 = arith.constant 0 : i32
    return %c0_i32, %c0_i32_0 : i32, i32
  }
  func.func @transform_4(%arg0: i32) -> (i32, i32) {
    %c0_i32 = arith.constant 0 : i32
    %c0_i32_0 = arith.constant 0 : i32
    %c0_i32_1 = arith.constant 0 : i32
    return %c0_i32, %c0_i32_0 : i32, i32
  }
  func.func @transform_5(%arg0: i32) -> (i32, i32) {
    %c0_i32 = arith.constant 0 : i32
    %c0_i32_0 = arith.constant 0 : i32
    %c0_i32_1 = arith.constant 0 : i32
    return %c0_i32, %c0_i32_0 : i32, i32
  }
  func.func @transform_6(%arg0: i32) -> (i32, i32) {
    %c0_i32 = arith.constant 0 : i32
    %c0_i32_0 = arith.constant 0 : i32
    %c0_i32_1 = arith.constant 0 : i32
    return %c0_i32, %c0_i32_0 : i32, i32
  }
  func.func @transform_7(%arg0: i32) -> (i32, i32) {
    %c0_i32 = arith.constant 0 : i32
    %c0_i32_0 = arith.constant 0 : i32
    return %arg0, %c0_i32 : i32, i32
  }
}

</mosaic_0001>

<bundles_post_ra>
// kernel: nrms_forward.5
= control target key start
LH: loop header
LB: loop body
LE: loop exit
PB: predicated region body
PF: predicated region fallthrough
CT: control target
= control target key end

     0   :  { %v32_v0 = vlaneseq  ;;  %v189_v1 = vmov 1966171168   ;;  %s250_s0 = inlined_call_operand.vmem [shape: f32[2,4,32], index: 0, kind: input, shape index: {}]   ;;  %s251_s1 = inlined_call_operand.vmem [shape: f32[2,32], index: 1, kind: input, shape index: {}]   ;;  %s252_s2 = inlined_call_operand.vmem [shape: s32[2,1], index: 2, kind: input, shape index: {}]   ;;  %s253_s3 = inlined_call_operand.hbm [shape: f32[2,4], index: 3, kind: output, shape index: {0}]   ;;  %s254_s4 = inlined_call_operand.vmem [shape: f32[2,1], index: 4, kind: output, shape index: {1}]  }
   0x1   :  { %v30_v2 = vunpack.c.l.s4 %v189_v1 }
   0x2   :  { %v33_v3 = vshrl.u32 %v32_v0, 7 }
   0x3   :  { %10 = vsyncpa [#allocation3], 0  ;;  %v153_v4 = vld.sshfl [vmem:[%s251_s1] sm:$0x11 pattern:$0x75316420]  ;;  %v31_v6 = vunpack.c.0.s8 %v30_v2 }
   0x4   :  { %v28_v5 = vcombine.high %v153_v4, %v153_v4  ;;  %v45_v8 = vsub.s32 0, %v33_v3  ;;  %v17_v11 = vld [vmem:[%s250_s0] sm:$0xf]  ;;  %v18_v12 = vld [vmem:[%s250_s0 + $0x4] sm:$0xf]  ;;  %vm55_vm0 = vcmask 257024  }
   0x5   :  { %v34_v7 = vsub.s32 %v31_v6, %v33_v3  ;;  %v65_v19 = vand.u32 127, %v32_v0  ;;  %vm74_vm1 = vcmask 1041409   ;;  %vm77_vm2 = vcmask 25600   ;;  %v122_v38 = vld [vmem:[%s252_s2] sm:$0x3]  ;;  %s191_s21 = smov [#allocation2]  }
   0x6   :  { %v190_v27 = vmov 0   ;;  %v88_v28 = vsub.s32 1, %v33_v3  ;;  %s141_s22 = sshll.u32 %s191_s21, 4  ;;  %s142_s22 = int_to_ptr.vmem [resolvable:$true] %s141_s22 }
   0x7   :  { %v35_v9 = vrot.slane %v153_v4, %v34_v7  ;;  %v42_v10 = vrot.slane %v28_v5, %v34_v7  ;;  %v68_v21 = vsub.s32 %v65_v19, %v33_v3  ;;  %158 = vset.pattern.permute.xlu0 %v190_v27  ;;  %157 = vset.pattern.permute.xlu1 %v190_v27  ;;  %s165_s2 = scalar_lea.vmem %s142_s22, 32  ;;  %p170_p1 = scmp.lt.s32.totalorder %s142_s22, %s142_s22 }
   0x8   :  { %p166_p0 = scmp.ne.s32.totalorder %s142_s22, %s165_s2  ;;  %p171_p2 = scmp.lt.s32.totalorder %s165_s2, %s165_s2 }
   0x9   :  { %v46_v13 = vrot.slane %v35_v9, %v45_v8  ;;  %v50_v14 = vrot.slane %v42_v10, %v45_v8 }
   0xa   :  { %p172_p3 = por %p171_p2, %p170_p1 }
   0xb   :  { %v53_v15 = vmul.f32 %v46_v13, %v17_v11  ;;  %v54_v16 = vmul.f32 %v50_v14, %v18_v12 }
   0xc   :  { %p173_p4 = pnand %p172_p3, %p166_p0 }
   0xd   :  { %v56_v17 = vsel %vm55_vm0, %v53_v15, 0.0  ;;  %v59_v18 = vsel %vm55_vm0, %v54_v16, 0.0 }
   0xe   :  { %57 = vadd.xlane.f32.xlu0 %v56_v17 }
  0x12   :  { %60 = vadd.xlane.f32.xlu0 %v59_v18 }
  0x9b   :  { %v58_v20 = vpop.xlane.xlu0 %57 }
  0x9c   :  { %v69_v23 = vrot.slane %v58_v20, %v68_v21 }
  0x9f   :  { %v61_v22 = vpop.xlane.xlu0 %60 }
  0xa0   :  { %v73_v24 = vrot.slane %v61_v22, %v68_v21 }
  0xa2   :  { %v75_v25 = vsel %vm74_vm1, %v73_v24, %v69_v23 }
  0xa3   :  { %v78_v26 = vsel %vm77_vm2, %v75_v25, -inf  ;;  %131 = vst.msk [vmem:[#allocation2] sm:$0x3] %vm77_vm2, %v75_v25 }
  0xa4   :  { %79 = vmax.xlane.f32.xlu1 %v78_v26 }
 0x131   :  { %v80_v29 = vpop.xlane.xlu1 %79 }
 0x132   :  { %v85_v30 = vrot.slane %v80_v29, %v45_v8  ;;  %v89_v31 = vrot.slane %v80_v29, %v88_v28 }
 0x134   :  { %v92_v32 = vsub.f32 %v58_v20, %v85_v30  ;;  %v93_v33 = vsub.f32 %v61_v22, %v89_v31 }
 0x136   :  { %v94_v34 = vmul.f32 1.442695, %v92_v32  ;;  %v96_v35 = vmul.f32 1.442695, %v93_v33 }
 0x138   :  { %159 = vpow2.f32 %v94_v34 }
 0x139   :  { %161 = vpow2.f32 %v96_v35 }
 0x142   :  { %v160_v36 = vpop.eup %159 }
 0x143   :  { %v162_v37 = vpop.eup %161  ;;  %101 = vperm.xlu1 %157, %v160_v36  }
 0x144   :  { %104 = vperm.xlu0 %158, %v162_v37  }
 0x147   :  { %124 = vperm.xlu1 %157, %v122_v38  }
 0x1c2   :  { %v102_v39 = vpop.permute.xlu1 %101 }
 0x1c3   :  { %v105_v40 = vpop.permute.xlu0 %104  ;;  %v109_v41 = vrot.slane %v102_v39, %v68_v21 }
 0x1c4   :  { %v113_v42 = vrot.slane %v105_v40, %v68_v21 }
 0x1c6   :  { %v125_v43 = vpop.permute.xlu1 %124  ;;  %v114_v44 = vsel %vm74_vm1, %v113_v42, %v109_v41 }
 0x1c7   :  { %vm126_vm3 = vcmp.eq.s32.totalorder %v65_v19, %v125_v43  ;;  %v116_v45 = vsel %vm77_vm2, %v114_v44, 0.0 }
 0x1c8   :  { %117 = vadd.xlane.f32.xlu1 %v116_v45  ;;  %v127_v46 = vsel %vm126_vm3, %v75_v25, 0.0 }
 0x1c9   :  { %v128_v47 = vsel %vm77_vm2, %v127_v46, 0.0 }
 0x1ca   :  { %129 = vadd.xlane.f32.xlu0 %v128_v47 }
 0x1cb   :  { %176 = shalt.err (!%p173_p4)
}
 0x1cc   :  { %s177_s25 = scalar_lea.hbm %s253_s3, 32 }
 0x1cd   :  { %p178_p5 = scmp.ne.s32.totalorder %s253_s3, %s177_s25  ;;  %p181_p6 = scmp.lt.u32.totalorder %s177_s25, %s253_s3 }
 0x1cf   :  { %p183_p7 = pnand %p181_p6, %p178_p5 }
 0x1d1   :  { %186 = shalt.err (!%p183_p7)
}
 0x1d2   :  { %144 = dma.vmem_to_hbm [thread:$0]  %s142_s22, 32, %s253_s3, [#allocation3]   ;;  %vm133_vm4 = vcmask 1024  }
 0x255   :  { %v118_v48 = vpop.xlane.xlu1 %117 }
 0x256   :  { %163 = vlog2.f32 %v118_v48 }
 0x257   :  { %v130_v52 = vpop.xlane.xlu0 %129 }
 0x260   :  { %v164_v49 = vpop.eup %163 }
 0x261   :  { %v120_v50 = vmul.f32 0.6931472, %v164_v49 }
 0x263   :  { %v121_v51 = vadd.f32 %v120_v50, %v80_v29 }
 0x265   :  { %v132_v53 = vsub.f32 %v121_v51, %v130_v52 }
 0x267   :  { %134 = vst.msk [vmem:[%s254_s4] sm:$0x3] %vm133_vm4, %v132_v53 }
 0x268   :  { %187 = dma.done.wait [#allocation3], 32  }
 0x269   :  { %188 = vsyncadd [#allocation3], 4294967264 }
 0x26a   :  { %152 = vsyncpa [#allocation3], 1 }

// kernel: nrms_forward.4
= control target key start
LH: loop header
LB: loop body
LE: loop exit
PB: predicated region body
PF: predicated region fallthrough
CT: control target
= control target key end

     0   :  { %vm71_vm0 = vcmask 261120   ;;  %v8226_v10 = vmov 0.0   ;;  %vm7046_vm1 = vmmov 0   ;;  %vm314_vm2 = vcmask 64512   ;;  %s7048_s18 = smov 112   ;;  %s7049_s19 = smov 104   ;;  %s8217_s1 = inlined_call_operand.vmem [shape: bf16[32,32], index: 1, kind: input, shape index: {}]   ;;  %s8218_s0 = inlined_call_operand.vmem [shape: bf16[64,32], index: 0, kind: input, shape index: {}]   ;;  %s8219_s2 = inlined_call_operand.vmem [shape: bf16[32,32], index: 2, kind: input, shape index: {}]   ;;  %s8220_s3 = inlined_call_operand.vmem [shape: bf16[32,32], index: 3, kind: input, shape index: {}]   ;;  %s8221_s4 = inlined_call_operand.vmem [shape: f32[32,16], index: 4, kind: input, shape index: {}]   ;;  %s8222_s5 = inlined_call_operand.vmem [shape: f32[1,16], index: 5, kind: input, shape index: {}]   ;;  %s8223_s6 = inlined_call_operand.vmem [shape: f32[1,16], index: 6, kind: input, shape index: {}]   ;;  %s8224_s7 = inlined_call_operand.vmem [shape: f32[8,32], index: 7, kind: output, shape index: {}]  }
   0x1   :  { %v6859_v0 = vld [vmem:[%s8217_s1] sm:$0xff]   ;;  %v6860_v1 = vld [vmem:[%s8217_s1 + $0x8] sm:$0xff]   ;;  %v6861_v2 = vld [vmem:[%s8218_s0 + $0x10] sm:$0xff]   ;;  %v8225_v35 = vlaneseq  ;;  %s7050_s20 = smov 8   ;;  %s7051_s21 = smov 16   ;;  %vm5733_vm4 = vcmask 130048  }
   0x2   :  { %6847 = vmatprep.subr.bf16.mxu1 %v6859_v0  ;;  %6463 = vmatprep.subr.bf16.mxu0 %v6859_v0  ;;  %v6863_v3 = vld [vmem:[%s8219_s2] sm:$0xff]   ;;  %v6862_v4 = vld [vmem:[%s8218_s0 + $0x18] sm:$0xff]   ;;  %v6864_v5 = vld [vmem:[%s8219_s2 + $0x8] sm:$0xff]   ;;  %s7052_s30 = smov 24   ;;  %vm5742_vm5 = vcmask 195584   ;;  %vm6157_vm7 = vcmask 1041409  }
   0x3   :  { %6849 = vmatpush3.bf16.msra.mxu1 %v6859_v0  ;;  %6464 = vmatpush3.bf16.msra.mxu0 %v6859_v0  ;;  %v6865_v6 = vld [vmem:[%s8218_s0] sm:$0xff]   ;;  %v6866_v7 = vld [vmem:[%s8218_s0 + $0x8] sm:$0xff]   ;;  %v7250_v36 = vand.u32 127, %v8225_v35  ;;  %vm6159_vm8 = vcmask 1042434   ;;  %vm6161_vm9 = vcmask 1043459   ;;  %vm6163_vm10 = vcmask 1044484  }
   0x4   :  { %6848 = vmatprep.subr.bf16.mxu1 %v6860_v1  ;;  %6471 = vmatprep.mubr.msk.bf16.mxu1 %vm71_vm0, %v6861_v2  ;;  %v6867_v8 = vld [vmem:[%s8220_s3] sm:$0xff]   ;;  %v6868_v9 = vld [vmem:[%s8220_s3 + $0x8] sm:$0xff]   ;;  %s7047_s3 = smov 120   ;;  %vm6165_vm11 = vcmask 1045509   ;;  %vm6167_vm12 = vcmask 1046534   ;;  %vm6169_vm13 = vcmask 1047559  }
   0x5   :  { %6465 = vmatprep.subr.bf16.mxu0 %v6860_v1  ;;  %6467 = vmatprep.mubr.msk.bf16.mxu0 %vm71_vm0, %v6865_v6  ;;  %vm313_vm3 = vcmp.lt.s32.totalorder %v7250_v36, 6 }
   0x7   :  { %6850 = vmatpush3.bf16.msra.mxu1 %v6860_v1  ;;  %6466 = vmatpush3.bf16.msra.mxu0 %v6860_v1 }
   0x8   :  { %6475 = vmatprep.subr.bf16.mxu1 %v6863_v3  ;;  %6487 = vmatprep.subr.bf16.mxu0 %v6867_v8 }
   0xa   :  { %6472 = vmatmul.mubr.msk.bf16.vlgmr.msra.gmra.mrb[0].mxu1 %vm71_vm0, %v6862_v4  ;;  %6468 = vmatmul.mubr.msk.bf16.vlgmr.msra.gmra.mrb[0].mxu0 %vm71_vm0, %v6866_v7 }
   0xb   :  { %6476 = vmatpush3.bf16.msra.mxu1 %v6863_v3  ;;  %6479 = vmatprep.mubr.msk.bf16.mxu1 %vm71_vm0, %v6865_v6 }
   0xc   :  { %6477 = vmatprep.subr.bf16.mxu1 %v6864_v5  ;;  %6488 = vmatpush3.bf16.msra.mxu0 %v6867_v8 }
   0xd   :  { %6491 = vmatprep.mubr.msk.bf16.mxu0 %vm71_vm0, %v6865_v6  ;;  %6489 = vmatprep.subr.bf16.mxu0 %v6868_v9 }
   0xf   :  { %6478 = vmatpush3.bf16.msra.mxu1 %v6864_v5 }
  0x10   :  { %6490 = vmatpush3.bf16.msra.mxu0 %v6868_v9  ;;  %6499 = vmatprep.subr.mxu1 %v8226_v10 }
  0x11   :  { %6519 = vmatprep.subr.mxu0 %v8226_v10 }
  0x12   :  { %6480 = vmatmul.mubr.msk.bf16.vlgmr.msra.gmra.mrb[4].mxu1 %vm71_vm0, %v6866_v7 }
  0x13   :  { %6483 = vmatprep.mubr.msk.bf16.mxu1 %vm71_vm0, %v6861_v2  ;;  %6492 = vmatmul.mubr.msk.bf16.vlgmr.msra.gmra.mrb[4].mxu0 %vm71_vm0, %v6866_v7 }
  0x14   :  { %6495 = vmatprep.mubr.msk.bf16.mxu0 %vm71_vm0, %v6861_v2 }
  0x1a   :  { %6484 = vmatmul.mubr.msk.bf16.gmra.mrb[8].mxu1 %vm71_vm0, %v6862_v4 }
  0x1b   :  { %6501 = vmatprep.mubr.msk.f32.mxu1 %vm7046_vm1, %v8226_v10  ;;  %6496 = vmatmul.mubr.msk.bf16.gmra.mrb[8].mxu0 %vm71_vm0, %v6862_v4 }
  0x1c   :  { %6521 = vmatprep.mubr.msk.f32.mxu0 %vm7046_vm1, %v8226_v10 }
  0xdd   :  { %v7141_v11 = vpop.f32.mrb[0].mxu1  ;;  %v7143_v12 = vpop.f32.mrb[0].mxu0 }
  0xde   :  { %v7145_v13 = vpop.f32.mrb[1].mxu1  ;;  %v7147_v14 = vpop.f32.mrb[1].mxu0 }
  0xdf   :  { %v7149_v15 = vpop.f32.mrb[2].mxu1  ;;  %v7151_v16 = vpop.f32.mrb[2].mxu0 }
  0xe0   :  { %v7153_v17 = vpop.f32.mrb[3].mxu1  ;;  %v7155_v18 = vpop.f32.mrb[3].mxu0 }
  0xe5   :  { %v7157_v19 = vpop.f32.mrb[4].mxu1 }
  0xe6   :  { %v7159_v20 = vpop.f32.mrb[5].mxu1  ;;  %v7229_v27 = vpop.f32.mrb[4].mxu0 }
  0xe7   :  { %v7161_v21 = vpop.f32.mrb[6].mxu1  ;;  %6500 = vmatpush3.xpose.msk.msra.mxu1 %vm314_vm2, %v7159_v20  ;;  %v7231_v28 = vpop.f32.mrb[5].mxu0 }
  0xe8   :  { %v7165_v22 = vpop.f32.mrb[7].mxu1  ;;  %6504 = vmatprep.subr.mxu1 %v8226_v10  ;;  %v7233_v29 = vpop.f32.mrb[6].mxu0 }
  0xe9   :  { %v7236_v30 = vpop.f32.mrb[7].mxu0 }
  0xea   :  { %6502 = vmatmul.mubr.msk.f32.vlgmr.msra.gmra.mrb[12].mxu1 %vm314_vm2, %v7147_v14 }
  0xeb   :  { %6505 = vmatpush3.xpose.msk.msra.mxu1 %vm314_vm2, %v7165_v22  ;;  %6506 = vmatprep.mubr.msk.f32.mxu1 %vm7046_vm1, %v8226_v10 }
  0xec   :  { %6509 = vmatprep.subr.mxu1 %v8226_v10 }
  0xed   :  { %v7175_v23 = vpop.f32.mrb[8].mxu1 }
  0xee   :  { %v7177_v24 = vpop.f32.mrb[9].mxu1  ;;  %6507 = vmatmul.mubr.msk.f32.vlgmr.msra.gmra.mrb[14].mxu1 %vm314_vm2, %v7155_v18  ;;  %v7239_v31 = vpop.f32.mrb[8].mxu0 }
  0xef   :  { %6510 = vmatpush3.xpose.msk.msra.mxu1 %vm314_vm2, %v7157_v19  ;;  %6520 = vmatpush3.xpose.msk.msra.mxu0 %vm314_vm2, %v7177_v24  ;;  %v7185_v25 = vpop.f32.mrb[10].mxu1  ;;  %v7242_v32 = vpop.f32.mrb[9].mxu0 }
  0xf0   :  { %6511 = vmatprep.mubr.msk.f32.mxu1 %vm7046_vm1, %v8226_v10  ;;  %6514 = vmatprep.subr.mxu1 %v8226_v10  ;;  %v7190_v26 = vpop.f32.mrb[11].mxu1  ;;  %v7245_v33 = vpop.f32.mrb[10].mxu0 }
  0xf1   :  { %6529 = vmatprep.subr.mxu0 %v8226_v10  ;;  %v7247_v34 = vpop.f32.mrb[11].mxu0 }
  0xf2   :  { %6512 = vmatmul.mubr.msk.f32.vlgmr.msra.gmra.mrb[16].mxu1 %vm314_vm2, %v7143_v12  ;;  %6522 = vmatmul.mubr.msk.f32.vlgmr.msra.gmra.mrb[12].mxu0 %vm314_vm2, %v7145_v13 }
  0xf3   :  { %6515 = vmatpush3.xpose.msk.msra.mxu1 %vm314_vm2, %v7161_v21  ;;  %6530 = vmatpush3.xpose.msk.msra.mxu0 %vm314_vm2, %v7175_v23 }
  0xf4   :  { %6516 = vmatprep.mubr.msk.f32.mxu1 %vm7046_vm1, %v8226_v10  ;;  %6531 = vmatprep.mubr.msk.f32.mxu0 %vm7046_vm1, %v8226_v10 }
  0xf5   :  { %6524 = vmatprep.subr.mxu1 %v8226_v10  ;;  %6539 = vmatprep.subr.mxu0 %v8226_v10 }
  0xf6   :  { %6517 = vmatmul.mubr.msk.f32.vlgmr.msra.gmra.mrb[18].mxu1 %vm314_vm2, %v7151_v16  ;;  %6532 = vmatmul.mubr.msk.f32.vlgmr.msra.gmra.mrb[14].mxu0 %vm314_vm2, %v7141_v11 }
  0xf7   :  { %6525 = vmatpush3.xpose.msk.msra.mxu1 %vm314_vm2, %v7190_v26  ;;  %6526 = vmatprep.mubr.msk.f32.mxu1 %vm7046_vm1, %v8226_v10 }
  0xf8   :  { %6534 = vmatprep.subr.mxu1 %v8226_v10  ;;  %6541 = vmatprep.mubr.msk.f32.mxu0 %vm7046_vm1, %v8226_v10 }
  0xf9   :  { %6540 = vmatpush3.msra.mxu0 %v7231_v28 }
  0xfa   :  { %6527 = vmatmul.mubr.msk.f32.vlgmr.msra.gmra.mrb[20].mxu1 %vm314_vm2, %v7153_v17  ;;  %6549 = vmatprep.subr.mxu0 %v8226_v10 }
  0xfb   :  { %6535 = vmatpush3.xpose.msk.msra.mxu1 %vm314_vm2, %v7185_v25  ;;  %6536 = vmatprep.mubr.msk.f32.mxu1 %vm7046_vm1, %v8226_v10 }
  0xfc   :  { %6544 = vmatprep.subr.mxu1 %v8226_v10 }
  0xfe   :  { %6537 = vmatmul.mubr.msk.f32.vlgmr.msra.gmra.mrb[22].mxu1 %vm314_vm2, %v7149_v15 }
  0xff   :  { %6546 = vmatprep.mubr.msk.f32.mxu1 %vm7046_vm1, %v8226_v10  ;;  %6545 = vmatpush3.msra.mxu1 %v7236_v30 }
 0x100   :  { %6554 = vmatprep.subr.mxu1 %v8226_v10 }
 0x1bd   :  { %v387_v37 = vpop.f32.mrb[12].mxu1 }
 0x1be   :  { %v923_v38 = vmul.f32 0.35355338, %v387_v37  ;;  %v6503_v39 = vpop.f32.mrb[13].mxu1 }
 0x1c0   :  { %v933_v40 = vsel %vm313_vm3, %v923_v38, -1e+30 }
 0x1c1   :  { %v463_v41 = vpop.f32.mrb[14].mxu1  ;;  %v941_v42 = vsel %vm314_vm2, %v933_v40, -inf }
 0x1c2   :  { %v924_v43 = vmul.f32 0.35355338, %v463_v41  ;;  %942 = vmax.xlane.f32.xlu0 %v941_v42  ;;  %v6508_v44 = vpop.f32.mrb[15].mxu1 }
 0x1c4   :  { %v934_v45 = vsel %vm313_vm3, %v924_v43, -1e+30 }
 0x1c5   :  { %v539_v46 = vpop.f32.mrb[16].mxu1  ;;  %v691_v47 = vpop.f32.mrb[12].mxu0  ;;  %v944_v48 = vsel %vm314_vm2, %v934_v45, -inf }
 0x1c6   :  { %v925_v49 = vmul.f32 0.35355338, %v539_v46  ;;  %v927_v50 = vmul.f32 0.35355338, %v691_v47  ;;  %945 = vmax.xlane.f32.xlu0 %v944_v48  ;;  %v6523_v51 = vpop.f32.mrb[13].mxu0  ;;  %v6513_v52 = vpop.f32.mrb[17].mxu1 }
 0x1c8   :  { %v935_v53 = vsel %vm313_vm3, %v925_v49, -1e+30  ;;  %v937_v54 = vsel %vm313_vm3, %v927_v50, -1e+30 }
 0x1c9   :  { %v615_v55 = vpop.f32.mrb[18].mxu1  ;;  %v843_v56 = vpop.f32.mrb[14].mxu0  ;;  %v947_v57 = vsel %vm314_vm2, %v935_v53, -inf  ;;  %v953_v58 = vsel %vm314_vm2, %v937_v54, -inf }
 0x1ca   :  { %v926_v59 = vmul.f32 0.35355338, %v615_v55  ;;  %v929_v60 = vmul.f32 0.35355338, %v843_v56  ;;  %948 = vmax.xlane.f32.xlu1 %v947_v57  ;;  %v6518_v61 = vpop.f32.mrb[19].mxu1  ;;  %954 = vmax.xlane.f32.xlu0 %v953_v58  ;;  %v6533_v62 = vpop.f32.mrb[15].mxu0 }
 0x1cc   :  { %v936_v63 = vsel %vm313_vm3, %v926_v59, -1e+30  ;;  %v939_v0 = vsel %vm313_vm3, %v929_v60, -1e+30 }
 0x1cd   :  { %v767_v1 = vpop.f32.mrb[20].mxu1  ;;  %v950_v2 = vsel %vm314_vm2, %v936_v63, -inf  ;;  %v959_v3 = vsel %vm314_vm2, %v939_v0, -inf }
 0x1ce   :  { %951 = vmax.xlane.f32.xlu1 %v950_v2  ;;  %v6528_v4 = vpop.f32.mrb[21].mxu1  ;;  %960 = vmax.xlane.f32.xlu0 %v959_v3  ;;  %v928_v7 = vmul.f32 0.35355338, %v767_v1 }
 0x1d0   :  { %v938_v9 = vsel %vm313_vm3, %v928_v7, -1e+30 }
 0x1d1   :  { %v919_v5 = vpop.f32.mrb[22].mxu1  ;;  %v956_v37 = vsel %vm314_vm2, %v938_v9, -inf }
 0x1d2   :  { %v6538_v6 = vpop.f32.mrb[23].mxu1  ;;  %v930_v8 = vmul.f32 0.35355338, %v919_v5 }
 0x1d4   :  { %v940_v38 = vsel %vm313_vm3, %v930_v8, -1e+30 }
 0x1d5   :  { %v962_v39 = vsel %vm314_vm2, %v940_v38, -inf }
 0x1df   :  { %1693 = vrot.lane.b32.xlu1 %v7165_v22, %s7047_s3 }
 0x1e3   :  { %1613 = vrot.lane.b32.xlu1 %v7147_v14, %s7047_s3 }
 0x1e4   :  { %1615 = vrot.lane.b32.xlu0 %v7159_v20, %s7047_s3 }
 0x1e7   :  { %1691 = vrot.lane.b32.xlu1 %v7155_v18, %s7047_s3 }
 0x1e8   :  { %1771 = vrot.lane.b32.xlu0 %v7157_v19, %s7047_s3 }
 0x20b   :  { %957 = vmax.xlane.f32.xlu1 %v956_v37 }
 0x20f   :  { %963 = vmax.xlane.f32.xlu1 %v962_v39 }
 0x220   :  { %1849 = vrot.lane.b32.xlu1 %v7161_v21, %s7047_s3 }
 0x24f   :  { %v943_v41 = vpop.xlane.xlu0 %942 }
 0x250   :  { %v965_v42 = vsub.f32 %v933_v40, %v943_v41 }
 0x252   :  { %v973_v43 = vmul.f32 1.442695, %v965_v42 }
 0x253   :  { %v946_v44 = vpop.xlane.xlu0 %945 }
 0x254   :  { %6869 = vpow2.f32 %v973_v43  ;;  %v966_v46 = vsub.f32 %v934_v45, %v946_v44 }
 0x256   :  { %v975_v47 = vmul.f32 1.442695, %v966_v46 }
 0x257   :  { %v949_v48 = vpop.xlane.xlu1 %948  ;;  %v955_v49 = vpop.xlane.xlu0 %954 }
 0x258   :  { %6871 = vpow2.f32 %v975_v47  ;;  %v967_v50 = vsub.f32 %v935_v53, %v949_v48  ;;  %v969_v51 = vsub.f32 %v937_v54, %v955_v49 }
 0x25a   :  { %v977_v52 = vmul.f32 1.442695, %v967_v50  ;;  %v981_v55 = vmul.f32 1.442695, %v969_v51 }
 0x25b   :  { %v952_v56 = vpop.xlane.xlu1 %951  ;;  %v961_v57 = vpop.xlane.xlu0 %960 }
 0x25c   :  { %6873 = vpow2.f32 %v977_v52  ;;  %v968_v58 = vsub.f32 %v936_v63, %v952_v56  ;;  %v971_v59 = vsub.f32 %v939_v0, %v961_v57 }
 0x25d   :  { %6875 = vpow2.f32 %v981_v55 }
 0x25e   :  { %v6870_v60 = vpop.eup %6869  ;;  %v979_v40 = vmul.f32 1.442695, %v968_v58  ;;  %v985_v61 = vmul.f32 1.442695, %v971_v59 }
 0x25f   :  { %v989_v62 = vsel %vm314_vm2, %v6870_v60, 0.0  ;;  %v7314_v6 = vpop.permute.xlu1 %1693 }
 0x260   :  { %6877 = vpow2.f32 %v979_v40  ;;  %990 = vadd.xlane.f32.xlu0 %v989_v62 }
 0x261   :  { %6879 = vpow2.f32 %v985_v61 }
 0x262   :  { %v7290_v45 = vpop.eup %6871 }
 0x263   :  { %v992_v53 = vsel %vm314_vm2, %v7290_v45, 0.0  ;;  %v7318_v7 = vpop.permute.xlu1 %1613 }
 0x264   :  { %993 = vadd.xlane.f32.xlu1 %v992_v53 }
 0x266   :  { %v7294_v54 = vpop.eup %6873 }
 0x267   :  { %v995_v63 = vsel %vm314_vm2, %v7294_v54, 0.0  ;;  %v7298_v0 = vpop.eup %6875  ;;  %v7324_v8 = vpop.permute.xlu1 %1691 }
 0x268   :  { %996 = vadd.xlane.f32.xlu0 %v995_v63  ;;  %v1001_v3 = vsel %vm314_vm2, %v7298_v0, 0.0 }
 0x26a   :  { %v7300_v1 = vpop.eup %6877 }
 0x26b   :  { %v998_v2 = vsel %vm314_vm2, %v7300_v1, 0.0  ;;  %v7306_v4 = vpop.eup %6879 }
 0x26c   :  { %999 = vadd.xlane.f32.xlu1 %v998_v2  ;;  %1002 = vadd.xlane.f32.xlu0 %v1001_v3  ;;  %v1007_v5 = vsel %vm314_vm2, %v7306_v4, 0.0 }
 0x270   :  { %1008 = vadd.xlane.f32.xlu0 %v1007_v5 }
 0x27d   :  { %1847 = vrot.lane.b32.xlu1 %v7151_v16, %s7047_s3 }
 0x286   :  { %1769 = vrot.lane.b32.xlu0 %v7143_v12, %s7047_s3 }
 0x28a   :  { %1927 = vrot.lane.b32.xlu0 %v7177_v24, %s7047_s3 }
 0x28e   :  { %1925 = vrot.lane.b32.xlu0 %v7145_v13, %s7047_s3 }
 0x292   :  { %2083 = vrot.lane.b32.xlu0 %v7175_v23, %s7047_s3 }
 0x296   :  { %2081 = vrot.lane.b32.xlu0 %v7141_v11, %s7047_s3 }
 0x298   :  { %v958_v37 = vpop.xlane.xlu1 %957 }
 0x299   :  { %v970_v39 = vsub.f32 %v938_v9, %v958_v37  ;;  %v1616_v9 = vpop.permute.xlu0 %1615 }
 0x29b   :  { %v983_v41 = vmul.f32 1.442695, %v970_v39 }
 0x29c   :  { %v964_v42 = vpop.xlane.xlu1 %963 }
 0x29d   :  { %6881 = vpow2.f32 %v983_v41  ;;  %v972_v43 = vsub.f32 %v940_v38, %v964_v42  ;;  %v1772_v38 = vpop.permute.xlu0 %1771 }
 0x29f   :  { %v987_v44 = vmul.f32 1.442695, %v972_v43 }
 0x2a0   :  { %v7344_v50 = vpop.permute.xlu1 %1849 }
 0x2a1   :  { %6883 = vpow2.f32 %v987_v44 }
 0x2a7   :  { %v7328_v46 = vpop.eup %6881 }
 0x2a8   :  { %v1004_v47 = vsel %vm314_vm2, %v7328_v46, 0.0 }
 0x2a9   :  { %1005 = vadd.xlane.f32.xlu1 %v1004_v47 }
 0x2ab   :  { %v7332_v48 = vpop.eup %6883 }
 0x2ac   :  { %v1010_v49 = vsel %vm314_vm2, %v7332_v48, 0.0 }
 0x2ad   :  { %1011 = vadd.xlane.f32.xlu1 %v1010_v49 }
 0x2be   :  { %2005 = vrot.lane.b32.xlu1 %v7190_v26, %s7047_s3 }
 0x2c2   :  { %2003 = vrot.lane.b32.xlu1 %v7153_v17, %s7047_s3 }
 0x2c6   :  { %2161 = vrot.lane.b32.xlu1 %v7185_v25, %s7047_s3 }
 0x2ca   :  { %2159 = vrot.lane.b32.xlu1 %v7149_v15, %s7047_s3 }
 0x2ed   :  { %v991_v51 = vpop.xlane.xlu0 %990 }
 0x2ee   :  { %6885 = vrcp.f32 %v991_v51 }
 0x2f1   :  { %v994_v52 = vpop.xlane.xlu1 %993 }
 0x2f2   :  { %6887 = vrcp.f32 %v994_v52 }
 0x2f5   :  { %v997_v55 = vpop.xlane.xlu0 %996 }
 0x2f6   :  { %6889 = vrcp.f32 %v997_v55 }
 0x2f8   :  { %v6886_v56 = vpop.eup %6885 }
 0x2f9   :  { %v1000_v57 = vpop.xlane.xlu1 %999  ;;  %v1003_v58 = vpop.xlane.xlu0 %1002  ;;  %v1021_v59 = vmul.f32 %v6886_v56, %v6870_v60 }
 0x2fa   :  { %6891 = vrcp.f32 %v1000_v57 }
 0x2fb   :  { %6893 = vrcp.f32 %v1003_v58  ;;  %6542 = vmatmul.mubr.msk.f32.vlgmr.msra.gmra.mrb[16].mxu0 %vm314_vm2, %v1021_v59 }
 0x2fc   :  { %v6888_v40 = vpop.eup %6887  ;;  %6550 = vmatpush3.msra.mxu0 %v7229_v27  ;;  %6551 = vmatprep.mubr.msk.f32.mxu0 %vm7046_vm1, %v8226_v10 }
 0x2fd   :  { %v1009_v61 = vpop.xlane.xlu0 %1008  ;;  %v1022_v62 = vmul.f32 %v6888_v40, %v7290_v45  ;;  %6559 = vmatprep.subr.mxu0 %v8226_v10  ;;  %v1848_v39 = vpop.permute.xlu1 %1847 }
 0x2fe   :  { %6895 = vrcp.f32 %v1009_v61 }
 0x2ff   :  { %6547 = vmatmul.mubr.msk.f32.vlgmr.msra.gmra.mrb[24].mxu1 %vm314_vm2, %v1022_v62 }
 0x300   :  { %v6890_v53 = vpop.eup %6889  ;;  %6555 = vmatpush3.msra.mxu1 %v7233_v29  ;;  %6556 = vmatprep.mubr.msk.f32.mxu1 %vm7046_vm1, %v8226_v10 }
 0x301   :  { %v1023_v60 = vmul.f32 %v6890_v53, %v7294_v54  ;;  %6564 = vmatprep.subr.mxu1 %v8226_v10  ;;  %v1770_v3 = vpop.permute.xlu0 %1769 }
 0x303   :  { %6552 = vmatmul.mubr.msk.f32.vlgmr.msra.gmra.mrb[18].mxu0 %vm314_vm2, %v1023_v60 }
 0x304   :  { %v6892_v63 = vpop.eup %6891  ;;  %6560 = vmatpush3.msra.mxu0 %v7242_v32  ;;  %6561 = vmatprep.mubr.msk.f32.mxu0 %vm7046_vm1, %v8226_v10 }
 0x305   :  { %v6894_v45 = vpop.eup %6893  ;;  %6569 = vmatprep.subr.mxu0 %v8226_v10  ;;  %v1024_v2 = vmul.f32 %v6892_v63, %v7300_v1 }
 0x306   :  { %v1025_v5 = vmul.f32 %v6894_v45, %v7298_v0  ;;  %v1928_v0 = vpop.permute.xlu0 %1927 }
 0x307   :  { %6557 = vmatmul.mubr.msk.f32.vlgmr.msra.gmra.mrb[26].mxu1 %vm314_vm2, %v1024_v2 }
 0x308   :  { %v6896_v54 = vpop.eup %6895  ;;  %6562 = vmatmul.mubr.msk.f32.vlgmr.msra.gmra.mrb[20].mxu0 %vm314_vm2, %v1025_v5  ;;  %6565 = vmatpush3.msra.mxu1 %v7247_v34 }
 0x309   :  { %6570 = vmatpush3.msra.mxu0 %v7239_v31  ;;  %6571 = vmatprep.mubr.msk.f32.mxu0 %vm7046_vm1, %v8226_v10  ;;  %v1027_v37 = vmul.f32 %v6896_v54, %v7306_v4 }
 0x30a   :  { %6579 = vmatprep.subr.mxu0 %v8226_v10  ;;  %6566 = vmatprep.mubr.msk.f32.mxu1 %vm7046_vm1, %v8226_v10  ;;  %v1926_v1 = vpop.permute.xlu0 %1925 }
 0x30b   :  { %6574 = vmatprep.subr.mxu1 %v8226_v10 }
 0x30c   :  { %6572 = vmatmul.mubr.msk.f32.vlgmr.msra.gmra.mrb[22].mxu0 %vm314_vm2, %v1027_v37 }
 0x30d   :  { %6581 = vmatprep.mubr.msk.f32.mxu0 %vm7046_vm1, %v8226_v10 }
 0x30e   :  { %v2084_v4 = vpop.permute.xlu0 %2083 }
 0x310   :  { %6580 = vmatpush3.xpose.msk.msra.mxu0 %vm314_vm2, %v1616_v9 }
 0x311   :  { %6589 = vmatprep.subr.mxu0 %v8226_v10 }
 0x313   :  { %6582 = vmatmul.mubr.msk.f32.vlgmr.msra.gmra.mrb[24].mxu0 %vm314_vm2, %v7318_v7  ;;  %v2082_v7 = vpop.permute.xlu0 %2081 }
 0x314   :  { %6590 = vmatpush3.xpose.msk.msra.mxu0 %vm314_vm2, %v1772_v38  ;;  %6591 = vmatprep.mubr.msk.f32.mxu0 %vm7046_vm1, %v8226_v10 }
 0x315   :  { %6599 = vmatprep.subr.mxu0 %v8226_v10 }
 0x317   :  { %6592 = vmatmul.mubr.msk.f32.vlgmr.msra.gmra.mrb[26].mxu0 %vm314_vm2, %v1770_v3 }
 0x318   :  { %6600 = vmatpush3.xpose.msk.msra.mxu0 %vm314_vm2, %v1928_v0  ;;  %6601 = vmatprep.mubr.msk.f32.mxu0 %vm7046_vm1, %v8226_v10 }
 0x319   :  { %6609 = vmatprep.subr.mxu0 %v8226_v10 }
 0x31b   :  { %6602 = vmatmul.mubr.msk.f32.vlgmr.msra.gmra.mrb[28].mxu0 %vm314_vm2, %v1926_v1 }
 0x31c   :  { %6610 = vmatpush3.xpose.msk.msra.mxu0 %vm314_vm2, %v2084_v4  ;;  %6611 = vmatprep.mubr.msk.f32.mxu0 %vm7046_vm1, %v8226_v10 }
 0x31d   :  { %6619 = vmatprep.subr.mxu0 %v8226_v10 }
 0x31f   :  { %6612 = vmatmul.mubr.msk.f32.vlgmr.msra.gmra.mrb[30].mxu0 %vm314_vm2, %v2082_v7 }
 0x320   :  { %6621 = vmatprep.mubr.msk.f32.mxu0 %vm7046_vm1, %v8226_v10 }
 0x336   :  { %v1006_v41 = vpop.xlane.xlu1 %1005 }
 0x337   :  { %6897 = vrcp.f32 %v1006_v41 }
 0x33a   :  { %v1012_v42 = vpop.xlane.xlu1 %1011 }
 0x33b   :  { %6899 = vrcp.f32 %v1012_v42 }
 0x33e   :  { %v2006_v9 = vpop.permute.xlu1 %2005 }
 0x341   :  { %v6898_v43 = vpop.eup %6897 }
 0x342   :  { %v1026_v44 = vmul.f32 %v6898_v43, %v7328_v46  ;;  %v2004_v46 = vpop.permute.xlu1 %2003 }
 0x344   :  { %6567 = vmatmul.mubr.msk.f32.vlgmr.msra.gmra.mrb[28].mxu1 %vm314_vm2, %v1026_v44 }
 0x345   :  { %v6900_v47 = vpop.eup %6899  ;;  %6575 = vmatpush3.msra.mxu1 %v7245_v33  ;;  %6576 = vmatprep.mubr.msk.f32.mxu1 %vm7046_vm1, %v8226_v10 }
 0x346   :  { %v1028_v49 = vmul.f32 %v6900_v47, %v7332_v48  ;;  %6584 = vmatprep.subr.mxu1 %v8226_v10  ;;  %v2162_v48 = vpop.permute.xlu1 %2161 }
 0x348   :  { %6577 = vmatmul.mubr.msk.f32.vlgmr.msra.gmra.mrb[30].mxu1 %vm314_vm2, %v1028_v49 }
 0x349   :  { %6586 = vmatprep.mubr.msk.f32.mxu1 %vm7046_vm1, %v8226_v10 }
 0x34c   :  { %6585 = vmatpush3.xpose.msk.msra.mxu1 %vm314_vm2, %v7314_v6  ;;  %v2160_v6 = vpop.permute.xlu1 %2159 }
 0x34d   :  { %6594 = vmatprep.subr.mxu1 %v8226_v10 }
 0x34f   :  { %6587 = vmatmul.mubr.msk.f32.vlgmr.msra.gmra.mrb[32].mxu1 %vm314_vm2, %v7324_v8 }
 0x350   :  { %6595 = vmatpush3.xpose.msk.msra.mxu1 %vm314_vm2, %v7344_v50  ;;  %6596 = vmatprep.mubr.msk.f32.mxu1 %vm7046_vm1, %v8226_v10 }
 0x351   :  { %6604 = vmatprep.subr.mxu1 %v8226_v10 }
 0x353   :  { %6597 = vmatmul.mubr.msk.f32.vlgmr.msra.gmra.mrb[34].mxu1 %vm314_vm2, %v1848_v39 }
 0x354   :  { %6605 = vmatpush3.xpose.msk.msra.mxu1 %vm314_vm2, %v2006_v9  ;;  %6606 = vmatprep.mubr.msk.f32.mxu1 %vm7046_vm1, %v8226_v10 }
 0x355   :  { %6614 = vmatprep.subr.mxu1 %v8226_v10 }
 0x357   :  { %6607 = vmatmul.mubr.msk.f32.vlgmr.msra.gmra.mrb[36].mxu1 %vm314_vm2, %v2004_v46 }
 0x358   :  { %6615 = vmatpush3.xpose.msk.msra.mxu1 %vm314_vm2, %v2162_v48  ;;  %6616 = vmatprep.mubr.msk.f32.mxu1 %vm7046_vm1, %v8226_v10 }
 0x359   :  { %6624 = vmatprep.subr.mxu1 %v8226_v10 }
 0x35b   :  { %6617 = vmatmul.mubr.msk.f32.vlgmr.msra.gmra.mrb[38].mxu1 %vm314_vm2, %v2160_v6 }
 0x35c   :  { %6626 = vmatprep.mubr.msk.f32.mxu1 %vm7046_vm1, %v8226_v10 }
 0x3ce   :  { %v7433_v8 = vpop.f32.mrb[16].mxu0 }
 0x3cf   :  { %v6543_v38 = vpop.f32.mrb[17].mxu0 }
 0x3d2   :  { %v7435_v50 = vpop.f32.mrb[24].mxu1 }
 0x3d3   :  { %v6548_v51 = vpop.f32.mrb[25].mxu1 }
 0x3d6   :  { %v7437_v52 = vpop.f32.mrb[18].mxu0 }
 0x3d7   :  { %v6553_v55 = vpop.f32.mrb[19].mxu0 }
 0x3da   :  { %v7439_v56 = vpop.f32.mrb[26].mxu1 }
 0x3db   :  { %v7441_v57 = vpop.f32.mrb[20].mxu0  ;;  %v6558_v58 = vpop.f32.mrb[27].mxu1 }
 0x3dc   :  { %v6563_v59 = vpop.f32.mrb[21].mxu0 }
 0x3df   :  { %v7443_v40 = vpop.f32.mrb[22].mxu0 }
 0x3e0   :  { %v6573_v61 = vpop.f32.mrb[23].mxu0 }
 0x3e6   :  { %v1687_v62 = vpop.f32.mrb[24].mxu0 }
 0x3e7   :  { %v2237_v53 = vmul.f32 0.35355338, %v1687_v62  ;;  %v6583_v60 = vpop.f32.mrb[25].mxu0 }
 0x3e9   :  { %v7447_v63 = vsel %vm313_vm3, %v2237_v53, -1e+30 }
 0x3ea   :  { %v1843_v45 = vpop.f32.mrb[26].mxu0  ;;  %v2253_v2 = vsel %vm314_vm2, %v7447_v63, -inf }
 0x3eb   :  { %v2239_v3 = vmul.f32 0.35355338, %v1843_v45  ;;  %2254 = vmax.xlane.f32.xlu0 %v2253_v2  ;;  %v6593_v5 = vpop.f32.mrb[27].mxu0 }
 0x3ed   :  { %v7453_v54 = vsel %vm313_vm3, %v2239_v3, -1e+30 }
 0x3ee   :  { %v1999_v37 = vpop.f32.mrb[28].mxu0  ;;  %v2259_v0 = vsel %vm314_vm2, %v7453_v54, -inf }
 0x3ef   :  { %2260 = vmax.xlane.f32.xlu0 %v2259_v0  ;;  %v6603_v1 = vpop.f32.mrb[29].mxu0  ;;  %v2241_v46 = vmul.f32 0.35355338, %v1999_v37 }
 0x3f1   :  { %v2249_v61 = vsel %vm313_vm3, %v2241_v46, -1e+30 }
 0x3f2   :  { %v2155_v4 = vpop.f32.mrb[30].mxu0  ;;  %v2265_v5 = vsel %vm314_vm2, %v2249_v61, -inf }
 0x3f3   :  { %v6613_v7 = vpop.f32.mrb[31].mxu0  ;;  %v2243_v62 = vmul.f32 0.35355338, %v2155_v4 }
 0x3f5   :  { %v2251_v0 = vsel %vm313_vm3, %v2243_v62, -1e+30 }
 0x3f6   :  { %v2271_v1 = vsel %vm314_vm2, %v2251_v0, -inf }
 0x417   :  { %v7457_v39 = vpop.f32.mrb[28].mxu1 }
 0x418   :  { %v6568_v41 = vpop.f32.mrb[29].mxu1 }
 0x41b   :  { %v7459_v42 = vpop.f32.mrb[30].mxu1 }
 0x41c   :  { %8228 = vst [vmem:[#allocation2_spill] sm:$0xff] %v7459_v42  ;;  %v6578_v43 = vpop.f32.mrb[31].mxu1 }
 0x422   :  { %v1765_v44 = vpop.f32.mrb[32].mxu1 }
 0x423   :  { %v2238_v47 = vmul.f32 0.35355338, %v1765_v44  ;;  %v6588_v49 = vpop.f32.mrb[33].mxu1 }
 0x425   :  { %v2246_v9 = vsel %vm313_vm3, %v2238_v47, -1e+30 }
 0x426   :  { %v1921_v48 = vpop.f32.mrb[34].mxu1  ;;  %v2256_v6 = vsel %vm314_vm2, %v2246_v9, -inf }
 0x427   :  { %v2240_v38 = vmul.f32 0.35355338, %v1921_v48  ;;  %2257 = vmax.xlane.f32.xlu1 %v2256_v6  ;;  %v6598_v51 = vpop.f32.mrb[35].mxu1 }
 0x429   :  { %v2248_v55 = vsel %vm313_vm3, %v2240_v38, -1e+30 }
 0x42a   :  { %v2077_v58 = vpop.f32.mrb[36].mxu1  ;;  %v2262_v59 = vsel %vm314_vm2, %v2248_v55, -inf }
 0x42b   :  { %v2242_v53 = vmul.f32 0.35355338, %v2077_v58  ;;  %v6608_v60 = vpop.f32.mrb[37].mxu1  ;;  %2263 = vmax.xlane.f32.xlu0 %v2262_v59 }
 0x42d   :  { %v2250_v45 = vsel %vm313_vm3, %v2242_v53, -1e+30 }
 0x42e   :  { %v2233_v2 = vpop.f32.mrb[38].mxu1  ;;  %v2268_v3 = vsel %vm314_vm2, %v2250_v45, -inf }
 0x42f   :  { %2269 = vmax.xlane.f32.xlu1 %v2268_v3  ;;  %v6618_v37 = vpop.f32.mrb[39].mxu1  ;;  %2266 = vmax.xlane.f32.xlu0 %v2265_v5  ;;  %v2244_v4 = vmul.f32 0.35355338, %v2233_v2 }
 0x431   :  { %v7504_v41 = vsel %vm313_vm3, %v2244_v4, -1e+30 }
 0x432   :  { %v2274_v47 = vsel %vm314_vm2, %v7504_v41, -inf }
 0x433   :  { %2272 = vmax.xlane.f32.xlu0 %v2271_v1 }
 0x440   :  { %2419 = vrot.lane.b32.xlu1 %v7236_v30, %s7047_s3 }
 0x444   :  { %2496 = vrot.lane.b32.xlu1 %v7229_v27, %s7047_s3 }
 0x448   :  { %2573 = vrot.lane.b32.xlu1 %v7233_v29, %s7047_s3 }
 0x449   :  { %2342 = vrot.lane.b32.xlu0 %v7231_v28, %s7047_s3 }
 0x44c   :  { %2727 = vrot.lane.b32.xlu1 %v7247_v34, %s7047_s3 }
 0x44d   :  { %2650 = vrot.lane.b32.xlu0 %v7242_v32, %s7047_s3 }
 0x450   :  { %2881 = vrot.lane.b32.xlu1 %v7245_v33, %s7047_s3 }
 0x451   :  { %2804 = vrot.lane.b32.xlu0 %v7239_v31, %s7047_s3 }
 0x454   :  { %3037 = vrot.lane.b32.xlu1 %v7165_v22, %s7048_s18 }
 0x455   :  { %2959 = vrot.lane.b32.xlu0 %v7159_v20, %s7048_s18 }
 0x458   :  { %3035 = vrot.lane.b32.xlu1 %v7155_v18, %s7048_s18 }
 0x459   :  { %2957 = vrot.lane.b32.xlu0 %v7147_v14, %s7048_s18 }
 0x45d   :  { %3115 = vrot.lane.b32.xlu0 %v7157_v19, %s7048_s18 }
 0x478   :  { %v2255_v7 = vpop.xlane.xlu0 %2254 }
 0x479   :  { %v2277_v43 = vsub.f32 %v7447_v63, %v2255_v7 }
 0x47b   :  { %v2285_v44 = vmul.f32 1.442695, %v2277_v43 }
 0x47c   :  { %v2261_v49 = vpop.xlane.xlu0 %2260  ;;  %2275 = vmax.xlane.f32.xlu1 %v2274_v47 }
 0x47d   :  { %6901 = vpow2.f32 %v2285_v44  ;;  %v2279_v46 = vsub.f32 %v7453_v54, %v2261_v49 }
 0x47f   :  { %v2289_v48 = vmul.f32 1.442695, %v2279_v46 }
 0x481   :  { %6903 = vpow2.f32 %v2289_v48 }
 0x487   :  { %v7510_v6 = vpop.eup %6901 }
 0x488   :  { %v2301_v38 = vsel %vm314_vm2, %v7510_v6, 0.0 }
 0x489   :  { %2302 = vadd.xlane.f32.xlu0 %v2301_v38 }
 0x48b   :  { %v7514_v51 = vpop.eup %6903 }
 0x48c   :  { %v2307_v63 = vsel %vm314_vm2, %v7514_v51, 0.0 }
 0x48d   :  { %2308 = vadd.xlane.f32.xlu0 %v2307_v63  ;;  %3193 = vrot.lane.b32.xlu1 %v7161_v21, %s7048_s18 }
 0x4b4   :  { %v2258_v58 = vpop.xlane.xlu1 %2257 }
 0x4b5   :  { %v2278_v59 = vsub.f32 %v2246_v9, %v2258_v58 }
 0x4b7   :  { %v2287_v54 = vmul.f32 1.442695, %v2278_v59 }
 0x4b8   :  { %v2264_v62 = vpop.xlane.xlu0 %2263 }
 0x4b9   :  { %6905 = vpow2.f32 %v2287_v54  ;;  %v2280_v53 = vsub.f32 %v2248_v55, %v2264_v62 }
 0x4bb   :  { %v2291_v60 = vmul.f32 1.442695, %v2280_v53 }
 0x4bc   :  { %v2270_v2 = vpop.xlane.xlu1 %2269  ;;  %v2267_v3 = vpop.xlane.xlu0 %2266 }
 0x4bd   :  { %6907 = vpow2.f32 %v2291_v60  ;;  %v2282_v5 = vsub.f32 %v2250_v45, %v2270_v2  ;;  %v2281_v37 = vsub.f32 %v2249_v61, %v2267_v3 }
 0x4bf   :  { %v2295_v1 = vmul.f32 1.442695, %v2282_v5  ;;  %v2293_v4 = vmul.f32 1.442695, %v2281_v37 }
 0x4c0   :  { %v2420_v7 = vpop.permute.xlu1 %2419  ;;  %v2273_v43 = vpop.xlane.xlu0 %2272 }
 0x4c1   :  { %6909 = vpow2.f32 %v2295_v1  ;;  %v2283_v44 = vsub.f32 %v2251_v0, %v2273_v43  ;;  %6625 = vmatpush3.msra.mxu1 %v2420_v7 }
 0x4c2   :  { %6911 = vpow2.f32 %v2293_v4  ;;  %6634 = vmatprep.subr.mxu1 %v8226_v10 }
 0x4c3   :  { %v7521_v9 = vpop.eup %6905  ;;  %v2297_v47 = vmul.f32 1.442695, %v2283_v44 }
 0x4c4   :  { %v2343_v55 = vpop.permute.xlu0 %2342  ;;  %v2304_v49 = vsel %vm314_vm2, %v7521_v9, 0.0  ;;  %v2497_v59 = vpop.permute.xlu1 %2496 }
 0x4c5   :  { %6913 = vpow2.f32 %v2297_v47  ;;  %2305 = vadd.xlane.f32.xlu1 %v2304_v49  ;;  %6620 = vmatpush3.msra.mxu0 %v2343_v55 }
 0x4c6   :  { %6629 = vmatprep.subr.mxu0 %v8226_v10 }
 0x4c7   :  { %v7526_v61 = vpop.eup %6907 }
 0x4c8   :  { %v2310_v45 = vsel %vm314_vm2, %v7526_v61, 0.0  ;;  %v7548_v54 = vpop.permute.xlu1 %2573  ;;  %v2651_v60 = vpop.permute.xlu0 %2650 }
 0x4c9   :  { %2311 = vadd.xlane.f32.xlu1 %v2310_v45 }
 0x4cb   :  { %v7530_v0 = vpop.eup %6909 }
 0x4cc   :  { %v7532_v46 = vpop.eup %6911  ;;  %v2316_v48 = vsel %vm314_vm2, %v7530_v0, 0.0  ;;  %v7552_v62 = vpop.permute.xlu1 %2727 }
 0x4cd   :  { %2317 = vadd.xlane.f32.xlu1 %v2316_v48  ;;  %v2313_v38 = vsel %vm314_vm2, %v7532_v46, 0.0  ;;  %v7564_v3 = vpop.permute.xlu0 %2804 }
 0x4ce   :  { %2314 = vadd.xlane.f32.xlu0 %v2313_v38 }
 0x4cf   :  { %v7538_v63 = vpop.eup %6913 }
 0x4d0   :  { %v2319_v58 = vsel %vm314_vm2, %v7538_v63, 0.0  ;;  %v7558_v53 = vpop.permute.xlu1 %2881 }
 0x4d1   :  { %v7572_v37 = vpop.permute.xlu0 %2959 }
 0x4d2   :  { %2320 = vadd.xlane.f32.xlu0 %v2319_v58 }
 0x4d4   :  { %v7562_v2 = vpop.permute.xlu1 %3037 }
 0x4d5   :  { %v7577_v7 = vpop.permute.xlu0 %2957 }
 0x4d8   :  { %v7570_v5 = vpop.permute.xlu1 %3035 }
 0x4d9   :  { %v7581_v44 = vpop.permute.xlu0 %3115 }
 0x4de   :  { %3191 = vrot.lane.b32.xlu1 %v7151_v16, %s7048_s18 }
 0x4e8   :  { %3113 = vrot.lane.b32.xlu0 %v7143_v12, %s7048_s18 }
 0x4ec   :  { %3271 = vrot.lane.b32.xlu0 %v7177_v24, %s7048_s18 }
 0x4f0   :  { %3269 = vrot.lane.b32.xlu0 %v7145_v13, %s7048_s18 }
 0x4f4   :  { %3427 = vrot.lane.b32.xlu0 %v7175_v23, %s7048_s18 }
 0x4f8   :  { %3425 = vrot.lane.b32.xlu0 %v7141_v11, %s7048_s18 }
 0x4fc   :  { %3685 = vrot.lane.b32.xlu0 %v7231_v28, %s7048_s18 }
 0x500   :  { %3989 = vrot.lane.b32.xlu0 %v7242_v32, %s7048_s18 }
 0x504   :  { %4141 = vrot.lane.b32.xlu0 %v7239_v31, %s7048_s18 }
 0x508   :  { %4295 = vrot.lane.b32.xlu0 %v7159_v20, %s7049_s19 }
 0x509   :  { %v2276_v1 = vpop.xlane.xlu1 %2275 }
 0x50a   :  { %v2284_v4 = vsub.f32 %v7504_v41, %v2276_v1 }
 0x50c   :  { %v2299_v43 = vmul.f32 1.442695, %v2284_v4  ;;  %4293 = vrot.lane.b32.xlu0 %v7147_v14, %s7049_s19 }
 0x50e   :  { %6915 = vpow2.f32 %v2299_v43 }
 0x516   :  { %v2303_v47 = vpop.xlane.xlu0 %2302 }
 0x517   :  { %6917 = vrcp.f32 %v2303_v47 }
 0x518   :  { %v7583_v55 = vpop.eup %6915 }
 0x519   :  { %v2322_v49 = vsel %vm314_vm2, %v7583_v55, 0.0 }
 0x51a   :  { %v2309_v20 = vpop.xlane.xlu0 %2308  ;;  %2323 = vadd.xlane.f32.xlu1 %v2322_v49 }
 0x51b   :  { %6919 = vrcp.f32 %v2309_v20 }
 0x521   :  { %v6918_v41 = vpop.eup %6917 }
 0x522   :  { %v2333_v45 = vmul.f32 %v6918_v41, %v7510_v6  ;;  %v7615_v6 = vpop.permute.xlu1 %3193 }
 0x524   :  { %6622 = vmatmul.mubr.msk.f32.vlgmr.msra.gmra.mrb[32].mxu0 %vm314_vm2, %v2333_v45 }
 0x525   :  { %v6920_v48 = vpop.eup %6919  ;;  %6630 = vmatpush3.msra.mxu0 %v2497_v59  ;;  %6631 = vmatprep.mubr.msk.f32.mxu0 %vm7046_vm1, %v8226_v10 }
 0x526   :  { %6639 = vmatprep.subr.mxu0 %v8226_v10  ;;  %v2335_v14 = vmul.f32 %v6920_v48, %v7514_v51 }
 0x528   :  { %6632 = vmatmul.mubr.msk.f32.vlgmr.msra.gmra.mrb[34].mxu0 %vm314_vm2, %v2335_v14 }
 0x529   :  { %6640 = vmatpush3.msra.mxu0 %v2651_v60  ;;  %6641 = vmatprep.mubr.msk.f32.mxu0 %vm7046_vm1, %v8226_v10 }
 0x52a   :  { %6649 = vmatprep.subr.mxu0 %v8226_v10 }
 0x52b   :  { %3349 = vrot.lane.b32.xlu1 %v7190_v26, %s7048_s18 }
 0x52f   :  { %3347 = vrot.lane.b32.xlu1 %v7153_v17, %s7048_s18 }
 0x533   :  { %3505 = vrot.lane.b32.xlu1 %v7185_v25, %s7048_s18 }
 0x537   :  { %3503 = vrot.lane.b32.xlu1 %v7149_v15, %s7048_s18 }
 0x53b   :  { %3761 = vrot.lane.b32.xlu1 %v7236_v30, %s7048_s18 }
 0x53f   :  { %3837 = vrot.lane.b32.xlu1 %v7229_v27, %s7048_s18 }
 0x543   :  { %3913 = vrot.lane.b32.xlu1 %v7233_v29, %s7048_s18 }
 0x547   :  { %4065 = vrot.lane.b32.xlu1 %v7247_v34, %s7048_s18 }
 0x54b   :  { %4217 = vrot.lane.b32.xlu1 %v7245_v33, %s7048_s18 }
 0x54f   :  { %4373 = vrot.lane.b32.xlu1 %v7165_v22, %s7049_s19 }
 0x552   :  { %v2306_v51 = vpop.xlane.xlu1 %2305 }
 0x553   :  { %6921 = vrcp.f32 %v2306_v51  ;;  %4371 = vrot.lane.b32.xlu1 %v7155_v18, %s7049_s19 }
 0x556   :  { %v2312_v38 = vpop.xlane.xlu1 %2311 }
 0x557   :  { %6923 = vrcp.f32 %v2312_v38 }
 0x55a   :  { %v2318_v58 = vpop.xlane.xlu1 %2317 }
 0x55b   :  { %6925 = vrcp.f32 %v2318_v58  ;;  %v2315_v59 = vpop.xlane.xlu0 %2314 }
 0x55c   :  { %6927 = vrcp.f32 %v2315_v59 }
 0x55d   :  { %v6922_v60 = vpop.eup %6921 }
 0x55e   :  { %v2334_v1 = vmul.f32 %v6922_v60, %v7521_v9 }
 0x55f   :  { %v2321_v4 = vpop.xlane.xlu0 %2320 }
 0x560   :  { %6929 = vrcp.f32 %v2321_v4  ;;  %6627 = vmatmul.mubr.msk.f32.vlgmr.msra.gmra.mrb[40].mxu1 %vm314_vm2, %v2334_v1 }
 0x561   :  { %v6924_v43 = vpop.eup %6923  ;;  %6635 = vmatpush3.msra.mxu1 %v7548_v54  ;;  %6636 = vmatprep.mubr.msk.f32.mxu1 %vm7046_vm1, %v8226_v10 }
 0x562   :  { %6644 = vmatprep.subr.mxu1 %v8226_v10  ;;  %v2336_v18 = vmul.f32 %v6924_v43, %v7526_v61 }
 0x563   :  { %v3114_v22 = vpop.permute.xlu0 %3113 }
 0x564   :  { %6637 = vmatmul.mubr.msk.f32.vlgmr.msra.gmra.mrb[42].mxu1 %vm314_vm2, %v2336_v18 }
 0x565   :  { %v6926_v47 = vpop.eup %6925  ;;  %6645 = vmatpush3.msra.mxu1 %v7552_v62  ;;  %6646 = vmatprep.mubr.msk.f32.mxu1 %vm7046_vm1, %v8226_v10 }
 0x566   :  { %v6928_v9 = vpop.eup %6927  ;;  %6654 = vmatprep.subr.mxu1 %v8226_v10  ;;  %v2338_v54 = vmul.f32 %v6926_v47, %v7530_v0 }
 0x567   :  { %v2337_v49 = vmul.f32 %v6928_v9, %v7532_v46  ;;  %v3272_v20 = vpop.permute.xlu0 %3271 }
 0x568   :  { %6647 = vmatmul.mubr.msk.f32.vlgmr.msra.gmra.mrb[44].mxu1 %vm314_vm2, %v2338_v54 }
 0x569   :  { %6642 = vmatmul.mubr.msk.f32.vlgmr.msra.gmra.mrb[36].mxu0 %vm314_vm2, %v2337_v49  ;;  %6655 = vmatpush3.msra.mxu1 %v7558_v53 }
 0x56a   :  { %v6930_v61 = vpop.eup %6929  ;;  %6650 = vmatpush3.msra.mxu0 %v7564_v3  ;;  %6651 = vmatprep.mubr.msk.f32.mxu0 %vm7046_vm1, %v8226_v10  ;;  %v3192_v3 = vpop.permute.xlu1 %3191 }
 0x56b   :  { %v2339_v62 = vmul.f32 %v6930_v61, %v7538_v63  ;;  %6659 = vmatprep.subr.mxu0 %v8226_v10  ;;  %6656 = vmatprep.mubr.msk.f32.mxu1 %vm7046_vm1, %v8226_v10  ;;  %v3270_v0 = vpop.permute.xlu0 %3269 }
 0x56c   :  { %6664 = vmatprep.subr.mxu1 %v8226_v10 }
 0x56d   :  { %6652 = vmatmul.mubr.msk.f32.vlgmr.msra.gmra.mrb[38].mxu0 %vm314_vm2, %v2339_v62 }
 0x56e   :  { %6661 = vmatprep.mubr.msk.f32.mxu0 %vm7046_vm1, %v8226_v10 }
 0x56f   :  { %v3428_v46 = vpop.permute.xlu0 %3427 }
 0x571   :  { %6660 = vmatpush3.xpose.msk.msra.mxu0 %vm314_vm2, %v7572_v37 }
 0x572   :  { %6669 = vmatprep.subr.mxu0 %v8226_v10 }
 0x573   :  { %v3426_v63 = vpop.permute.xlu0 %3425 }
 0x574   :  { %6662 = vmatmul.mubr.msk.f32.vlgmr.msra.gmra.mrb[40].mxu0 %vm314_vm2, %v7577_v7 }
 0x575   :  { %6670 = vmatpush3.xpose.msk.msra.mxu0 %vm314_vm2, %v7581_v44  ;;  %6671 = vmatprep.mubr.msk.f32.mxu0 %vm7046_vm1, %v8226_v10 }
 0x576   :  { %6679 = vmatprep.subr.mxu0 %v8226_v10 }
 0x577   :  { %v3686_v53 = vpop.permute.xlu0 %3685 }
 0x578   :  { %6672 = vmatmul.mubr.msk.f32.vlgmr.msra.gmra.mrb[42].mxu0 %vm314_vm2, %v3114_v22 }
 0x579   :  { %6680 = vmatpush3.xpose.msk.msra.mxu0 %vm314_vm2, %v3272_v20  ;;  %6681 = vmatprep.mubr.msk.f32.mxu0 %vm7046_vm1, %v8226_v10 }
 0x57a   :  { %6689 = vmatprep.subr.mxu0 %v8226_v10 }
 0x57c   :  { %6682 = vmatmul.mubr.msk.f32.vlgmr.msra.gmra.mrb[44].mxu0 %vm314_vm2, %v3270_v0 }
 0x57d   :  { %6690 = vmatpush3.xpose.msk.msra.mxu0 %vm314_vm2, %v3428_v46  ;;  %6691 = vmatprep.mubr.msk.f32.mxu0 %vm7046_vm1, %v8226_v10 }
 0x57e   :  { %6699 = vmatprep.subr.mxu0 %v8226_v10 }
 0x580   :  { %6692 = vmatmul.mubr.msk.f32.vlgmr.msra.gmra.mrb[46].mxu0 %vm314_vm2, %v3426_v63 }
 0x581   :  { %6700 = vmatpush3.msra.mxu0 %v3686_v53  ;;  %6701 = vmatprep.mubr.msk.f32.mxu0 %vm7046_vm1, %v8226_v10 }
 0x582   :  { %6709 = vmatprep.subr.mxu0 %v8226_v10 }
 0x5a7   :  { %v2324_v37 = vpop.xlane.xlu1 %2323 }
 0x5a8   :  { %6931 = vrcp.f32 %v2324_v37 }
 0x5ab   :  { %v3350_v7 = vpop.permute.xlu1 %3349 }
 0x5af   :  { %v3348_v41 = vpop.permute.xlu1 %3347 }
 0x5b2   :  { %v6932_v44 = vpop.eup %6931 }
 0x5b3   :  { %v2340_v45 = vmul.f32 %v6932_v44, %v7583_v55  ;;  %v3506_v48 = vpop.permute.xlu1 %3505 }
 0x5b5   :  { %6657 = vmatmul.mubr.msk.f32.vlgmr.msra.gmra.mrb[46].mxu1 %vm314_vm2, %v2340_v45 }
 0x5b6   :  { %6665 = vmatpush3.xpose.msk.msra.mxu1 %vm314_vm2, %v7562_v2  ;;  %6666 = vmatprep.mubr.msk.f32.mxu1 %vm7046_vm1, %v8226_v10 }
 0x5b7   :  { %6674 = vmatprep.subr.mxu1 %v8226_v10  ;;  %v3504_v2 = vpop.permute.xlu1 %3503 }
 0x5b9   :  { %6667 = vmatmul.mubr.msk.f32.vlgmr.msra.gmra.mrb[48].mxu1 %vm314_vm2, %v7570_v5 }
 0x5ba   :  { %6675 = vmatpush3.xpose.msk.msra.mxu1 %vm314_vm2, %v7615_v6  ;;  %6676 = vmatprep.mubr.msk.f32.mxu1 %vm7046_vm1, %v8226_v10 }
 0x5bb   :  { %6684 = vmatprep.subr.mxu1 %v8226_v10  ;;  %v3762_v5 = vpop.permute.xlu1 %3761 }
 0x5bd   :  { %6677 = vmatmul.mubr.msk.f32.vlgmr.msra.gmra.mrb[50].mxu1 %vm314_vm2, %v3192_v3 }
 0x5be   :  { %6685 = vmatpush3.xpose.msk.msra.mxu1 %vm314_vm2, %v3350_v7  ;;  %6686 = vmatprep.mubr.msk.f32.mxu1 %vm7046_vm1, %v8226_v10 }
 0x5bf   :  { %6694 = vmatprep.subr.mxu1 %v8226_v10 }
 0x5c1   :  { %6687 = vmatmul.mubr.msk.f32.vlgmr.msra.gmra.mrb[52].mxu1 %vm314_vm2, %v3348_v41 }
 0x5c2   :  { %6695 = vmatpush3.xpose.msk.msra.mxu1 %vm314_vm2, %v3506_v48  ;;  %6696 = vmatprep.mubr.msk.f32.mxu1 %vm7046_vm1, %v8226_v10 }
 0x5c3   :  { %6704 = vmatprep.subr.mxu1 %v8226_v10 }
 0x5c5   :  { %6697 = vmatmul.mubr.msk.f32.vlgmr.msra.gmra.mrb[54].mxu1 %vm314_vm2, %v3504_v2 }
 0x5c6   :  { %6705 = vmatpush3.msra.mxu1 %v3762_v5  ;;  %6706 = vmatprep.mubr.msk.f32.mxu1 %vm7046_vm1, %v8226_v10 }
 0x5c7   :  { %6714 = vmatprep.subr.mxu1 %v8226_v10 }
 0x5f7   :  { %v7701_v55 = vpop.f32.mrb[32].mxu0 }
 0x5f8   :  { %v6623_v14 = vpop.f32.mrb[33].mxu0 }
 0x5fb   :  { %v7703_v6 = vpop.f32.mrb[34].mxu0 }
 0x5fc   :  { %v6633_v51 = vpop.f32.mrb[35].mxu0 }
 0x633   :  { %v7705_v38 = vpop.f32.mrb[40].mxu1 }
 0x634   :  { %v6628_v58 = vpop.f32.mrb[41].mxu1 }
 0x637   :  { %v7707_v59 = vpop.f32.mrb[42].mxu1 }
 0x638   :  { %v6638_v60 = vpop.f32.mrb[43].mxu1 }
 0x63b   :  { %v7709_v1 = vpop.f32.mrb[44].mxu1 }
 0x63c   :  { %v7711_v4 = vpop.f32.mrb[36].mxu0  ;;  %v6648_v43 = vpop.f32.mrb[45].mxu1 }
 0x63d   :  { %v6643_v18 = vpop.f32.mrb[37].mxu0 }
 0x640   :  { %v7713_v22 = vpop.f32.mrb[38].mxu0 }
 0x641   :  { %v6653_v47 = vpop.f32.mrb[39].mxu0 }
 0x647   :  { %v3031_v9 = vpop.f32.mrb[40].mxu0 }
 0x648   :  { %v3581_v54 = vmul.f32 0.35355338, %v3031_v9  ;;  %v6663_v49 = vpop.f32.mrb[41].mxu0 }
 0x64a   :  { %v3589_v20 = vsel %vm313_vm3, %v3581_v54, -1e+30 }
 0x64b   :  { %v3187_v61 = vpop.f32.mrb[42].mxu0  ;;  %v3597_v62 = vsel %vm314_vm2, %v3589_v20, -inf }
 0x64c   :  { %v3583_v0 = vmul.f32 0.35355338, %v3187_v61  ;;  %3598 = vmax.xlane.f32.xlu0 %v3597_v62  ;;  %v6673_v46 = vpop.f32.mrb[43].mxu0 }
 0x64e   :  { %v3591_v63 = vsel %vm313_vm3, %v3583_v0, -1e+30 }
 0x64f   :  { %v3343_v53 = vpop.f32.mrb[44].mxu0  ;;  %v3603_v3 = vsel %vm314_vm2, %v3591_v63, -inf }
 0x650   :  { %3604 = vmax.xlane.f32.xlu0 %v3603_v3  ;;  %v6683_v37 = vpop.f32.mrb[45].mxu0  ;;  %v3585_v51 = vmul.f32 0.35355338, %v3343_v53 }
 0x652   :  { %v3593_v49 = vsel %vm313_vm3, %v3585_v51, -1e+30 }
 0x653   :  { %v3499_v7 = vpop.f32.mrb[46].mxu0  ;;  %v3609_v37 = vsel %vm314_vm2, %v3593_v49, -inf }
 0x654   :  { %v6693_v44 = vpop.f32.mrb[47].mxu0  ;;  %v3587_v61 = vmul.f32 0.35355338, %v3499_v7 }
 0x688   :  { %v7721_v41 = vpop.f32.mrb[46].mxu1 }
 0x689   :  { %v6658_v45 = vpop.f32.mrb[47].mxu1 }
 0x68a   :  { %v3595_v45 = vsel %vm313_vm3, %v3587_v61, -1e+30 }
 0x68b   :  { %v3615_v7 = vsel %vm314_vm2, %v3595_v45, -inf }
 0x68c   :  { %v3109_v48 = vpop.f32.mrb[48].mxu1 }
 0x68d   :  { %v3582_v2 = vmul.f32 0.35355338, %v3109_v48  ;;  %v6668_v5 = vpop.f32.mrb[49].mxu1  ;;  %v7745_v48 = vpop.permute.xlu0 %3989 }
 0x68f   :  { %v3590_v14 = vsel %vm313_vm3, %v3582_v2, -1e+30 }
 0x690   :  { %v3265_v58 = vpop.f32.mrb[50].mxu1  ;;  %v3600_v60 = vsel %vm314_vm2, %v3590_v14, -inf }
 0x691   :  { %v3584_v43 = vmul.f32 0.35355338, %v3265_v58  ;;  %3601 = vmax.xlane.f32.xlu1 %v3600_v60  ;;  %v6678_v18 = vpop.f32.mrb[51].mxu1  ;;  %v7747_v5 = vpop.permute.xlu0 %4141 }
 0x693   :  { %v3592_v47 = vsel %vm313_vm3, %v3584_v43, -1e+30 }
 0x694   :  { %v3421_v9 = vpop.f32.mrb[52].mxu1  ;;  %v3606_v54 = vsel %vm314_vm2, %v3592_v47, -inf }
 0x695   :  { %v3586_v62 = vmul.f32 0.35355338, %v3421_v9  ;;  %v6688_v0 = vpop.f32.mrb[53].mxu1  ;;  %3607 = vmax.xlane.f32.xlu0 %v3606_v54  ;;  %v7755_v60 = vpop.permute.xlu0 %4295 }
 0x697   :  { %v7733_v46 = vsel %vm313_vm3, %v3586_v62, -1e+30 }
 0x698   :  { %v3577_v53 = vpop.f32.mrb[54].mxu1  ;;  %v3612_v3 = vsel %vm314_vm2, %v7733_v46, -inf }
 0x699   :  { %3613 = vmax.xlane.f32.xlu1 %v3612_v3  ;;  %v6698_v44 = vpop.f32.mrb[55].mxu1  ;;  %3610 = vmax.xlane.f32.xlu0 %v3609_v37  ;;  %v3588_v2 = vmul.f32 0.35355338, %v3577_v53  ;;  %v7757_v43 = vpop.permute.xlu0 %4293 }
 0x69a   :  { %v3838_v37 = vpop.permute.xlu1 %3837 }
 0x69b   :  { %v7751_v51 = vsel %vm313_vm3, %v3588_v2, -1e+30 }
 0x69c   :  { %v3618_v58 = vsel %vm314_vm2, %v7751_v51, -inf }
 0x69d   :  { %3616 = vmax.xlane.f32.xlu0 %v3615_v7 }
 0x69e   :  { %v7761_v44 = vpop.permute.xlu1 %3913 }
 0x6a2   :  { %v7763_v7 = vpop.permute.xlu1 %4065 }
 0x6aa   :  { %4529 = vrot.lane.b32.xlu1 %v7161_v21, %s7049_s19 }
 0x6b3   :  { %4451 = vrot.lane.b32.xlu0 %v7157_v19, %s7049_s19 }
 0x6ce   :  { %3619 = vmax.xlane.f32.xlu1 %v3618_v58 }
 0x6d9   :  { %v3599_v21 = vpop.xlane.xlu0 %3598 }
 0x6da   :  { %v3621_v18 = vsub.f32 %v3589_v20, %v3599_v21  ;;  %v7765_v20 = vpop.permute.xlu1 %4217 }
 0x6dc   :  { %v3629_v19 = vmul.f32 1.442695, %v3621_v18 }
 0x6dd   :  { %v3605_v9 = vpop.xlane.xlu0 %3604 }
 0x6de   :  { %6933 = vpow2.f32 %v3629_v19  ;;  %v3623_v54 = vsub.f32 %v3591_v63, %v3605_v9  ;;  %v7767_v2 = vpop.permute.xlu1 %4373 }
 0x6e0   :  { %v3633_v61 = vmul.f32 1.442695, %v3623_v54 }
 0x6e2   :  { %6935 = vpow2.f32 %v3633_v61  ;;  %v7769_v63 = vpop.permute.xlu1 %4371 }
 0x6e8   :  { %v6934_v62 = vpop.eup %6933 }
 0x6e9   :  { %v3645_v0 = vsel %vm314_vm2, %v6934_v62, 0.0 }
 0x6ea   :  { %3646 = vadd.xlane.f32.xlu0 %v3645_v0 }
 0x6ec   :  { %v6936_v53 = vpop.eup %6935 }
 0x6ed   :  { %v3651_v3 = vsel %vm314_vm2, %v6936_v53, 0.0 }
 0x6ee   :  { %3652 = vadd.xlane.f32.xlu0 %v3651_v3 }
 0x71e   :  { %v3602_v58 = vpop.xlane.xlu1 %3601 }
 0x71f   :  { %v3622_v21 = vsub.f32 %v3590_v14, %v3602_v58 }
 0x721   :  { %v3631_v18 = vmul.f32 1.442695, %v3622_v21 }
 0x722   :  { %v3608_v19 = vpop.xlane.xlu0 %3607 }
 0x723   :  { %6937 = vpow2.f32 %v3631_v18  ;;  %v3624_v9 = vsub.f32 %v3592_v47, %v3608_v19 }
 0x725   :  { %v3635_v54 = vmul.f32 1.442695, %v3624_v9 }
 0x726   :  { %v3611_v61 = vpop.xlane.xlu0 %3610 }
 0x727   :  { %6939 = vpow2.f32 %v3635_v54  ;;  %v3625_v0 = vsub.f32 %v3593_v49, %v3611_v61  ;;  %v3614_v49 = vpop.xlane.xlu1 %3613 }
 0x729   :  { %v3637_v3 = vmul.f32 1.442695, %v3625_v0 }
 0x72a   :  { %v3617_v21 = vpop.xlane.xlu0 %3616 }
 0x72b   :  { %6941 = vpow2.f32 %v3637_v3  ;;  %v3627_v19 = vsub.f32 %v3595_v45, %v3617_v21  ;;  %v7800_v3 = vpop.permute.xlu1 %4529  ;;  %v8229_v21 = vmov 0.0  }
 0x72d   :  { %v7771_v35 = vpop.eup %6937  ;;  %v3641_v9 = vmul.f32 1.442695, %v3627_v19 }
 0x72e   :  { %v3648_v10 = vsel %vm314_vm2, %v7771_v35, 0.0 }
 0x72f   :  { %3649 = vadd.xlane.f32.xlu1 %v3648_v10  ;;  %v3626_v10 = vsub.f32 %v7733_v46, %v3614_v49 }
 0x731   :  { %v7775_v42 = vpop.eup %6939  ;;  %v3639_v18 = vmul.f32 1.442695, %v3626_v10 }
 0x732   :  { %v3654_v14 = vsel %vm314_vm2, %v7775_v42, 0.0 }
 0x733   :  { %3655 = vadd.xlane.f32.xlu1 %v3654_v14  ;;  %6943 = vpow2.f32 %v3639_v18 }
 0x734   :  { %6945 = vpow2.f32 %v3641_v9 }
 0x735   :  { %v7779_v58 = vpop.eup %6941 }
 0x736   :  { %v3657_v47 = vsel %vm314_vm2, %v7779_v58, 0.0 }
 0x737   :  { %3658 = vadd.xlane.f32.xlu0 %v3657_v47 }
 0x73d   :  { %v7788_v54 = vpop.eup %6943 }
 0x73e   :  { %v3660_v61 = vsel %vm314_vm2, %v7788_v54, 0.0  ;;  %v7792_v0 = vpop.eup %6945 }
 0x744   :  { %4527 = vrot.lane.b32.xlu1 %v7151_v16, %s7049_s19  ;;  %v7796_v16 = vpop.permute.xlu0 %4451 }
 0x74d   :  { %4449 = vrot.lane.b32.xlu0 %v7143_v12, %s7049_s19  ;;  %v3663_v12 = vsel %vm314_vm2, %v7792_v0, 0.0 }
 0x75b   :  { %v3620_v49 = vpop.xlane.xlu1 %3619 }
 0x75c   :  { %v3628_v18 = vsub.f32 %v7751_v51, %v3620_v49 }
 0x768   :  { %3661 = vadd.xlane.f32.xlu1 %v3660_v61 }
 0x76c   :  { %3664 = vadd.xlane.f32.xlu0 %v3663_v12 }
 0x777   :  { %v3647_v46 = vpop.xlane.xlu0 %3646 }
 0x778   :  { %6947 = vrcp.f32 %v3647_v46 }
 0x779   :  { %4685 = vrot.lane.b32.xlu1 %v7190_v26, %s7049_s19 }
 0x77b   :  { %v3653_v45 = vpop.xlane.xlu0 %3652 }
 0x77c   :  { %6949 = vrcp.f32 %v3653_v45 }
 0x782   :  { %v6948_v14 = vpop.eup %6947  ;;  %4607 = vrot.lane.b32.xlu0 %v7177_v24, %s7049_s19  ;;  %v3643_v24 = vmul.f32 1.442695, %v3628_v18 }
 0x783   :  { %v3677_v47 = vmul.f32 %v6948_v14, %v6934_v62 }
 0x784   :  { %6951 = vpow2.f32 %v3643_v24 }
 0x785   :  { %6702 = vmatmul.mubr.msk.f32.vlgmr.msra.gmra.mrb[48].mxu0 %vm314_vm2, %v3677_v47 }
 0x786   :  { %v6950_v10 = vpop.eup %6949  ;;  %6710 = vmatpush3.msra.mxu0 %v3838_v37  ;;  %6711 = vmatprep.mubr.msk.f32.mxu0 %vm7046_vm1, %v8229_v21 }
 0x787   :  { %v3679_v26 = vmul.f32 %v6950_v10, %v6936_v53  ;;  %4605 = vrot.lane.b32.xlu0 %v7145_v13, %s7049_s19  ;;  %6719 = vmatprep.subr.mxu0 %v8229_v21 }
 0x789   :  { %6712 = vmatmul.mubr.msk.f32.vlgmr.msra.gmra.mrb[50].mxu0 %vm314_vm2, %v3679_v26 }
 0x78a   :  { %6720 = vmatpush3.msra.mxu0 %v7745_v48  ;;  %6721 = vmatprep.mubr.msk.f32.mxu0 %vm7046_vm1, %v8229_v21 }
 0x78b   :  { %4763 = vrot.lane.b32.xlu0 %v7175_v23, %s7049_s19  ;;  %6729 = vmatprep.subr.mxu0 %v8229_v21 }
 0x78e   :  { %v7820_v13 = vpop.eup %6951 }
 0x78f   :  { %4761 = vrot.lane.b32.xlu0 %v7141_v11, %s7049_s19  ;;  %v3666_v51 = vsel %vm314_vm2, %v7820_v13, 0.0 }
 0x79d   :  { %3667 = vadd.xlane.f32.xlu1 %v3666_v51 }
 0x7ae   :  { %4683 = vrot.lane.b32.xlu1 %v7153_v17, %s7049_s19 }
 0x7b2   :  { %4841 = vrot.lane.b32.xlu1 %v7185_v25, %s7049_s19 }
 0x7b6   :  { %4839 = vrot.lane.b32.xlu1 %v7149_v15, %s7049_s19 }
 0x7bc   :  { %v3650_v23 = vpop.xlane.xlu1 %3649 }
 0x7bd   :  { %6953 = vrcp.f32 %v3650_v23 }
 0x7c0   :  { %v3656_v48 = vpop.xlane.xlu1 %3655 }
 0x7c1   :  { %6955 = vrcp.f32 %v3656_v48 }
 0x7c4   :  { %v3659_v11 = vpop.xlane.xlu0 %3658 }
 0x7c5   :  { %6957 = vrcp.f32 %v3659_v11 }
 0x7c7   :  { %v6954_v62 = vpop.eup %6953 }
 0x7c8   :  { %v3678_v53 = vmul.f32 %v6954_v62, %v7771_v35  ;;  %v4528_v35 = vpop.permute.xlu1 %4527 }
 0x7ca   :  { %6707 = vmatmul.mubr.msk.f32.vlgmr.msra.gmra.mrb[56].mxu1 %vm314_vm2, %v3678_v53 }
 0x7cb   :  { %v6956_v37 = vpop.eup %6955  ;;  %6715 = vmatpush3.msra.mxu1 %v7761_v44  ;;  %6716 = vmatprep.mubr.msk.f32.mxu1 %vm7046_vm1, %v8229_v21  ;;  %v4450_v44 = vpop.permute.xlu0 %4449 }
 0x7cc   :  { %v3680_v17 = vmul.f32 %v6956_v37, %v7775_v42  ;;  %6724 = vmatprep.subr.mxu1 %v8229_v21 }
 0x7ce   :  { %6717 = vmatmul.mubr.msk.f32.vlgmr.msra.gmra.mrb[58].mxu1 %vm314_vm2, %v3680_v17 }
 0x7cf   :  { %6725 = vmatpush3.msra.mxu1 %v7763_v7  ;;  %6726 = vmatprep.mubr.msk.f32.mxu1 %vm7046_vm1, %v8229_v21  ;;  %v6958_v15 = vpop.eup %6957 }
 0x7d0   :  { %6734 = vmatprep.subr.mxu1 %v8229_v21  ;;  %v3681_v25 = vmul.f32 %v6958_v15, %v7779_v58 }
 0x7d2   :  { %6722 = vmatmul.mubr.msk.f32.vlgmr.msra.gmra.mrb[52].mxu0 %vm314_vm2, %v3681_v25 }
 0x7d3   :  { %6730 = vmatpush3.msra.mxu0 %v7747_v5  ;;  %6731 = vmatprep.mubr.msk.f32.mxu0 %vm7046_vm1, %v8229_v21 }
 0x7d4   :  { %6739 = vmatprep.subr.mxu0 %v8229_v21 }
 0x7f5   :  { %v3662_v42 = vpop.xlane.xlu1 %3661 }
 0x7f6   :  { %6959 = vrcp.f32 %v3662_v42 }
 0x7f9   :  { %v3665_v7 = vpop.xlane.xlu0 %3664 }
 0x7fa   :  { %6961 = vrcp.f32 %v3665_v7 }
 0x7fd   :  { %v4608_v58 = vpop.permute.xlu0 %4607 }
 0x800   :  { %v6960_v19 = vpop.eup %6959 }
 0x801   :  { %v3682_v9 = vmul.f32 %v6960_v19, %v7788_v54  ;;  %v4686_v54 = vpop.permute.xlu1 %4685 }
 0x803   :  { %6727 = vmatmul.mubr.msk.f32.vlgmr.msra.gmra.mrb[60].mxu1 %vm314_vm2, %v3682_v9 }
 0x804   :  { %6735 = vmatpush3.msra.mxu1 %v7765_v20  ;;  %6736 = vmatprep.mubr.msk.f32.mxu1 %vm7046_vm1, %v8229_v21  ;;  %v6962_v5 = vpop.eup %6961  ;;  %v4606_v20 = vpop.permute.xlu0 %4605 }
 0x805   :  { %6744 = vmatprep.subr.mxu1 %v8229_v21  ;;  %v3683_v61 = vmul.f32 %v6962_v5, %v7792_v0 }
 0x807   :  { %6732 = vmatmul.mubr.msk.f32.vlgmr.msra.gmra.mrb[54].mxu0 %vm314_vm2, %v3683_v61 }
 0x808   :  { %6740 = vmatpush3.xpose.msk.msra.mxu0 %vm314_vm2, %v7755_v60  ;;  %6741 = vmatprep.mubr.msk.f32.mxu0 %vm7046_vm1, %v8229_v21  ;;  %v4764_v60 = vpop.permute.xlu0 %4763 }
 0x809   :  { %6749 = vmatprep.subr.mxu0 %v8229_v21 }
 0x80b   :  { %6742 = vmatmul.mubr.msk.f32.vlgmr.msra.gmra.mrb[56].mxu0 %vm314_vm2, %v7757_v43 }
 0x80c   :  { %6750 = vmatpush3.xpose.msk.msra.mxu0 %vm314_vm2, %v7796_v16  ;;  %6751 = vmatprep.mubr.msk.f32.mxu0 %vm7046_vm1, %v8229_v21  ;;  %v4762_v43 = vpop.permute.xlu0 %4761 }
 0x80d   :  { %6759 = vmatprep.subr.mxu0 %v8229_v21 }
 0x80f   :  { %6752 = vmatmul.mubr.msk.f32.vlgmr.msra.gmra.mrb[58].mxu0 %vm314_vm2, %v4450_v44 }
 0x810   :  { %6760 = vmatpush3.xpose.msk.msra.mxu0 %vm314_vm2, %v4608_v58  ;;  %6761 = vmatprep.mubr.msk.f32.mxu0 %vm7046_vm1, %v8229_v21 }
 0x811   :  { %6769 = vmatprep.subr.mxu0 %v8229_v21 }
 0x813   :  { %6762 = vmatmul.mubr.msk.f32.vlgmr.msra.gmra.mrb[60].mxu0 %vm314_vm2, %v4606_v20 }
 0x814   :  { %6770 = vmatpush3.xpose.msk.msra.mxu0 %vm314_vm2, %v4764_v60  ;;  %6771 = vmatprep.mubr.msk.f32.mxu0 %vm7046_vm1, %v8229_v21 }
 0x815   :  { %6779 = vmatprep.subr.mxu0 %v8229_v21 }
 0x817   :  { %6772 = vmatmul.mubr.msk.f32.vlgmr.msra.gmra.mrb[62].mxu0 %vm314_vm2, %v4762_v43 }
 0x818   :  { %6781 = vmatprep.mubr.msk.f32.mxu0 %vm7046_vm1, %v8229_v21 }
 0x82a   :  { %v3668_v0 = vpop.xlane.xlu1 %3667 }
 0x82b   :  { %6963 = vrcp.f32 %v3668_v0 }
 0x82e   :  { %v4684_v46 = vpop.permute.xlu1 %4683 }
 0x835   :  { %v6964_v12 = vpop.eup %6963 }
 0x836   :  { %v3684_v16 = vmul.f32 %v6964_v12, %v7820_v13 }
 0x838   :  { %6737 = vmatmul.mubr.msk.f32.vlgmr.msra.gmra.mrb[62].mxu1 %vm314_vm2, %v3684_v16 }
 0x839   :  { %6745 = vmatpush3.xpose.msk.msra.mxu1 %vm314_vm2, %v7767_v2  ;;  %6746 = vmatprep.mubr.msk.f32.mxu1 %vm7046_vm1, %v8229_v21  ;;  %v4842_v2 = vpop.permute.xlu1 %4841 }
 0x83a   :  { %6754 = vmatprep.subr.mxu1 %v8229_v21 }
 0x83c   :  { %6747 = vmatmul.mubr.msk.f32.vlgmr.msra.gmra.mrb[64].mxu1 %vm314_vm2, %v7769_v63 }
 0x83d   :  { %6755 = vmatpush3.xpose.msk.msra.mxu1 %vm314_vm2, %v7800_v3  ;;  %6756 = vmatprep.mubr.msk.f32.mxu1 %vm7046_vm1, %v8229_v21  ;;  %v4840_v63 = vpop.permute.xlu1 %4839 }
 0x83e   :  { %6764 = vmatprep.subr.mxu1 %v8229_v21 }
 0x840   :  { %6757 = vmatmul.mubr.msk.f32.vlgmr.msra.gmra.mrb[66].mxu1 %vm314_vm2, %v4528_v35 }
 0x841   :  { %6765 = vmatpush3.xpose.msk.msra.mxu1 %vm314_vm2, %v4686_v54  ;;  %6766 = vmatprep.mubr.msk.f32.mxu1 %vm7046_vm1, %v8229_v21 }
 0x842   :  { %6774 = vmatprep.subr.mxu1 %v8229_v21 }
 0x844   :  { %6767 = vmatmul.mubr.msk.f32.vlgmr.msra.gmra.mrb[68].mxu1 %vm314_vm2, %v4684_v46 }
 0x845   :  { %6775 = vmatpush3.xpose.msk.msra.mxu1 %vm314_vm2, %v4842_v2  ;;  %6776 = vmatprep.mubr.msk.f32.mxu1 %vm7046_vm1, %v8229_v21 }
 0x846   :  { %6784 = vmatprep.subr.mxu1 %v8229_v21 }
 0x848   :  { %6777 = vmatmul.mubr.msk.f32.vlgmr.msra.gmra.mrb[70].mxu1 %vm314_vm2, %v4840_v63 }
 0x849   :  { %6786 = vmatprep.mubr.msk.f32.mxu1 %vm7046_vm1, %v8229_v21 }
 0x858   :  { %v7908_v45 = vpop.f32.mrb[48].mxu0 }
 0x859   :  { %v6703_v3 = vpop.f32.mrb[49].mxu0 }
 0x85c   :  { %v7910_v14 = vpop.f32.mrb[50].mxu0 }
 0x85d   :  { %v6713_v47 = vpop.f32.mrb[51].mxu0 }
 0x89d   :  { %v7912_v49 = vpop.f32.mrb[56].mxu1 }
 0x89e   :  { %v6708_v10 = vpop.f32.mrb[57].mxu1 }
 0x8a1   :  { %v7914_v18 = vpop.f32.mrb[58].mxu1 }
 0x8a2   :  { %v6718_v26 = vpop.f32.mrb[59].mxu1 }
 0x8a5   :  { %v7916_v24 = vpop.f32.mrb[52].mxu0 }
 0x8a6   :  { %v6723_v13 = vpop.f32.mrb[53].mxu0 }
 0x8d6   :  { %v7918_v51 = vpop.f32.mrb[60].mxu1 }
 0x8d7   :  { %v6728_v23 = vpop.f32.mrb[61].mxu1 }
 0x8da   :  { %v7920_v48 = vpop.f32.mrb[54].mxu0 }
 0x8db   :  { %v6733_v11 = vpop.f32.mrb[55].mxu0 }
 0x8de   :  { %v4367_v62 = vpop.f32.mrb[56].mxu0 }
 0x8df   :  { %v4917_v53 = vmul.f32 0.35355338, %v4367_v62  ;;  %v6743_v37 = vpop.f32.mrb[57].mxu0 }
 0x8e1   :  { %v4925_v17 = vsel %vm313_vm3, %v4917_v53, -1e+30 }
 0x8e2   :  { %v4523_v15 = vpop.f32.mrb[58].mxu0  ;;  %v4933_v25 = vsel %vm314_vm2, %v4925_v17, -inf }
 0x8e3   :  { %v4919_v35 = vmul.f32 0.35355338, %v4523_v15  ;;  %4934 = vmax.xlane.f32.xlu0 %v4933_v25  ;;  %v6753_v42 = vpop.f32.mrb[59].mxu0 }
 0x8e5   :  { %v4927_v44 = vsel %vm313_vm3, %v4919_v35, -1e+30 }
 0x8e6   :  { %v4679_v7 = vpop.f32.mrb[60].mxu0  ;;  %v4939_v19 = vsel %vm314_vm2, %v4927_v44, -inf }
 0x8e7   :  { %4940 = vmax.xlane.f32.xlu0 %v4939_v19  ;;  %v6763_v9 = vpop.f32.mrb[61].mxu0  ;;  %v4921_v12 = vmul.f32 0.35355338, %v4679_v7 }
 0x8e9   :  { %v4929_v47 = vsel %vm313_vm3, %v4921_v12, -1e+30 }
 0x8ea   :  { %v4835_v5 = vpop.f32.mrb[62].mxu0  ;;  %v4945_v15 = vsel %vm314_vm2, %v4929_v47, -inf }
 0x8eb   :  { %v6773_v58 = vpop.f32.mrb[63].mxu0  ;;  %v4923_v13 = vmul.f32 0.35355338, %v4835_v5 }
 0x8ed   :  { %v4931_v25 = vsel %vm313_vm3, %v4923_v13, -1e+30 }
 0x8ee   :  { %v4951_v9 = vsel %vm314_vm2, %v4931_v25, -inf }
 0x90b   :  { %v7928_v61 = vpop.f32.mrb[62].mxu1 }
 0x90c   :  { %v6738_v20 = vpop.f32.mrb[63].mxu1 }
 0x90f   :  { %v4445_v60 = vpop.f32.mrb[64].mxu1 }
 0x910   :  { %v4918_v43 = vmul.f32 0.35355338, %v4445_v60  ;;  %v6748_v54 = vpop.f32.mrb[65].mxu1 }
 0x912   :  { %v4926_v0 = vsel %vm313_vm3, %v4918_v43, -1e+30 }
 0x913   :  { %v4601_v16 = vpop.f32.mrb[66].mxu1  ;;  %v4936_v46 = vsel %vm314_vm2, %v4926_v0, -inf }
 0x914   :  { %v4920_v2 = vmul.f32 0.35355338, %v4601_v16  ;;  %4937 = vmax.xlane.f32.xlu1 %v4936_v46  ;;  %v6758_v63 = vpop.f32.mrb[67].mxu1 }
 0x916   :  { %v4928_v3 = vsel %vm313_vm3, %v4920_v2, -1e+30 }
 0x917   :  { %v4757_v10 = vpop.f32.mrb[68].mxu1  ;;  %v4942_v26 = vsel %vm314_vm2, %v4928_v3, -inf }
 0x918   :  { %v4922_v23 = vmul.f32 0.35355338, %v4757_v10  ;;  %v6768_v11 = vpop.f32.mrb[69].mxu1  ;;  %4943 = vmax.xlane.f32.xlu0 %v4942_v26 }
 0x91a   :  { %v4930_v62 = vsel %vm313_vm3, %v4922_v23, -1e+30 }
 0x91b   :  { %v4913_v53 = vpop.f32.mrb[70].mxu1  ;;  %v4948_v37 = vsel %vm314_vm2, %v4930_v62, -inf }
 0x91c   :  { %v4924_v35 = vmul.f32 0.35355338, %v4913_v53  ;;  %4949 = vmax.xlane.f32.xlu1 %v4948_v37  ;;  %v6778_v42 = vpop.f32.mrb[71].mxu1  ;;  %4946 = vmax.xlane.f32.xlu0 %v4945_v15 }
 0x91e   :  { %v4932_v7 = vsel %vm313_vm3, %v4924_v35, -1e+30 }
 0x91f   :  { %v4954_v19 = vsel %vm314_vm2, %v4932_v7, -inf }
 0x920   :  { %4955 = vmax.xlane.f32.xlu1 %v4954_v19  ;;  %4952 = vmax.xlane.f32.xlu0 %v4951_v9 }
 0x931   :  { %5097 = vrot.lane.b32.xlu1 %v7236_v30, %s7049_s19 }
 0x935   :  { %5173 = vrot.lane.b32.xlu1 %v7229_v27, %s7049_s19 }
 0x936   :  { %5021 = vrot.lane.b32.xlu0 %v7231_v28, %s7049_s19 }
 0x939   :  { %5249 = vrot.lane.b32.xlu1 %v7233_v29, %s7049_s19 }
 0x93a   :  { %5325 = vrot.lane.b32.xlu0 %v7242_v32, %s7049_s19 }
 0x93d   :  { %5401 = vrot.lane.b32.xlu1 %v7247_v34, %s7049_s19 }
 0x970   :  { %v4935_v36 = vpop.xlane.xlu0 %4934 }
 0x971   :  { %v4957_v5 = vsub.f32 %v4925_v17, %v4935_v36 }
 0x973   :  { %v4965_v58 = vmul.f32 1.442695, %v4957_v5 }
 0x974   :  { %v4941_v20 = vpop.xlane.xlu0 %4940 }
 0x975   :  { %6965 = vpow2.f32 %v4965_v58  ;;  %v4959_v30 = vsub.f32 %v4927_v44, %v4941_v20 }
 0x977   :  { %v4969_v60 = vmul.f32 1.442695, %v4959_v30 }
 0x979   :  { %6967 = vpow2.f32 %v4969_v60 }
 0x97f   :  { %v7960_v27 = vpop.eup %6965 }
 0x980   :  { %v4981_v28 = vsel %vm314_vm2, %v7960_v27, 0.0 }
 0x981   :  { %4982 = vadd.xlane.f32.xlu0 %v4981_v28 }
 0x983   :  { %v7964_v29 = vpop.eup %6967 }
 0x984   :  { %v4987_v32 = vsel %vm314_vm2, %v7964_v29, 0.0 }
 0x985   :  { %4988 = vadd.xlane.f32.xlu0 %v4987_v32 }
 0x9a1   :  { %v4938_v34 = vpop.xlane.xlu1 %4937 }
 0x9a2   :  { %v4958_v17 = vsub.f32 %v4926_v0, %v4938_v34 }
 0x9a4   :  { %v4967_v43 = vmul.f32 1.442695, %v4958_v17 }
 0x9a5   :  { %v4944_v54 = vpop.xlane.xlu0 %4943 }
 0x9a6   :  { %6969 = vpow2.f32 %v4967_v43  ;;  %v4960_v44 = vsub.f32 %v4928_v3, %v4944_v54 }
 0x9a8   :  { %v4971_v12 = vmul.f32 1.442695, %v4960_v44 }
 0x9a9   :  { %v4950_v16 = vpop.xlane.xlu1 %4949  ;;  %v4947_v46 = vpop.xlane.xlu0 %4946 }
 0x9aa   :  { %6971 = vpow2.f32 %v4971_v12  ;;  %v4962_v2 = vsub.f32 %v4930_v62, %v4950_v16  ;;  %v4961_v63 = vsub.f32 %v4929_v47, %v4947_v46 }
 0x9ac   :  { %v4975_v10 = vmul.f32 1.442695, %v4962_v2  ;;  %v4973_v26 = vmul.f32 1.442695, %v4961_v63 }
 0x9ad   :  { %v4956_v13 = vpop.xlane.xlu1 %4955  ;;  %v4953_v23 = vpop.xlane.xlu0 %4952 }
 0x9ae   :  { %6973 = vpow2.f32 %v4975_v10  ;;  %v4964_v11 = vsub.f32 %v4932_v7, %v4956_v13  ;;  %v4963_v53 = vsub.f32 %v4931_v25, %v4953_v23 }
 0x9af   :  { %6975 = vpow2.f32 %v4973_v26 }
 0x9b0   :  { %v7968_v37 = vpop.eup %6969  ;;  %v4979_v0 = vmul.f32 1.442695, %v4964_v11  ;;  %v4977_v15 = vmul.f32 1.442695, %v4963_v53 }
 0x9b1   :  { %v5098_v35 = vpop.permute.xlu1 %5097  ;;  %v5022_v3 = vpop.permute.xlu0 %5021  ;;  %v4984_v42 = vsel %vm314_vm2, %v7968_v37, 0.0 }
 0x9b2   :  { %6977 = vpow2.f32 %v4979_v0  ;;  %4985 = vadd.xlane.f32.xlu1 %v4984_v42  ;;  %6780 = vmatpush3.msra.mxu0 %v5022_v3 }
 0x9b3   :  { %6979 = vpow2.f32 %v4977_v15  ;;  %6785 = vmatpush3.msra.mxu1 %v5098_v35  ;;  %6789 = vmatprep.subr.mxu0 %v8229_v21  ;;  %v5751_v15 = vld [vmem:[%s8221_s4] sm:$0xff]  ;;  %v5753_v35 = vld [vmem:[%s8221_s4 + $0x10] sm:$0xff] }
 0x9b4   :  { %v7973_v47 = vpop.eup %6971  ;;  %6794 = vmatprep.subr.mxu1 %v8229_v21 }
 0x9b5   :  { %v4990_v62 = vsel %vm314_vm2, %v7973_v47, 0.0 }
 0x9b6   :  { %4991 = vadd.xlane.f32.xlu1 %v4990_v62 }
 0x9b8   :  { %v7978_v25 = vpop.eup %6973 }
 0x9b9   :  { %v7980_v7 = vpop.eup %6975  ;;  %v4996_v19 = vsel %vm314_vm2, %v7978_v25, 0.0 }
 0x9ba   :  { %4997 = vadd.xlane.f32.xlu1 %v4996_v19  ;;  %v4993_v9 = vsel %vm314_vm2, %v7980_v7, 0.0 }
 0x9bb   :  { %4994 = vadd.xlane.f32.xlu0 %v4993_v9 }
 0x9bc   :  { %v7986_v36 = vpop.eup %6977 }
 0x9bd   :  { %v7988_v5 = vpop.eup %6979  ;;  %v5002_v58 = vsel %vm314_vm2, %v7986_v36, 0.0 }
 0x9be   :  { %5003 = vadd.xlane.f32.xlu1 %v5002_v58  ;;  %v4999_v20 = vsel %vm314_vm2, %v7988_v5, 0.0 }
 0x9bf   :  { %5000 = vadd.xlane.f32.xlu0 %v4999_v20 }
 0x9cf   :  { %5553 = vrot.lane.b32.xlu1 %v7245_v33, %s7049_s19 }
 0x9d3   :  { %5639 = vrot.lane.b32.xlu1 %v7705_v38, %s7050_s20 }
 0x9d5   :  { %5477 = vrot.lane.b32.xlu0 %v7239_v31, %s7049_s19  ;;  %v5326_v31 = vpop.permute.xlu0 %5325 }
 0x9d7   :  { %5671 = vrot.lane.b32.xlu1 %v7912_v49, %s7051_s21 }
 0x9d9   :  { %5637 = vrot.lane.b32.xlu0 %v7701_v55, %s7050_s20 }
 0x9db   :  { %5643 = vrot.lane.b32.xlu1 %v7707_v59, %s7050_s20  ;;  %v5174_v59 = vpop.permute.xlu1 %5173 }
 0x9dd   :  { %5669 = vrot.lane.b32.xlu0 %v7908_v45, %s7051_s21 }
 0x9df   :  { %5675 = vrot.lane.b32.xlu1 %v7914_v18, %s7051_s21 }
 0x9e1   :  { %5641 = vrot.lane.b32.xlu0 %v7703_v6, %s7050_s20 }
 0x9e3   :  { %5647 = vrot.lane.b32.xlu1 %v7709_v1, %s7050_s20 }
 0x9e5   :  { %5673 = vrot.lane.b32.xlu0 %v7910_v14, %s7051_s21 }
 0x9e7   :  { %5679 = vrot.lane.b32.xlu1 %v7918_v51, %s7051_s21 }
 0x9e9   :  { %5645 = vrot.lane.b32.xlu0 %v7711_v4, %s7050_s20 }
 0x9eb   :  { %5651 = vrot.lane.b32.xlu1 %v7721_v41, %s7050_s20 }
 0x9ed   :  { %5677 = vrot.lane.b32.xlu0 %v7916_v24, %s7051_s21 }
 0x9ef   :  { %5683 = vrot.lane.b32.xlu1 %v7928_v61, %s7051_s21 }
 0x9f1   :  { %5649 = vrot.lane.b32.xlu0 %v7713_v22, %s7050_s20  ;;  %v5250_v22 = vpop.permute.xlu1 %5249 }
 0x9f5   :  { %5681 = vrot.lane.b32.xlu0 %v7920_v48, %s7051_s21  ;;  %v5402_v41 = vpop.permute.xlu1 %5401 }
 0xa0e   :  { %v4983_v33 = vpop.xlane.xlu0 %4982 }
 0xa0f   :  { %6981 = vrcp.f32 %v4983_v33 }
 0xa12   :  { %v4989_v55 = vpop.xlane.xlu0 %4988 }
 0xa13   :  { %6983 = vrcp.f32 %v4989_v55 }
 0xa19   :  { %v6982_v6 = vpop.eup %6981 }
 0xa1a   :  { %v5013_v38 = vmul.f32 %v6982_v6, %v7960_v27 }
 0xa1c   :  { %6782 = vmatmul.mubr.msk.f32.vlgmr.msra.gmra.mrb[64].mxu0 %vm314_vm2, %v5013_v38 }
 0xa1d   :  { %v6984_v1 = vpop.eup %6983  ;;  %6790 = vmatpush3.msra.mxu0 %v5174_v59  ;;  %6791 = vmatprep.mubr.msk.f32.mxu0 %vm7046_vm1, %v8229_v21 }
 0xa1e   :  { %v5015_v4 = vmul.f32 %v6984_v1, %v7964_v29  ;;  %6799 = vmatprep.subr.mxu0 %v8229_v21 }
 0xa20   :  { %6792 = vmatmul.mubr.msk.f32.vlgmr.msra.gmra.mrb[66].mxu0 %vm314_vm2, %v5015_v4 }
 0xa21   :  { %6800 = vmatpush3.msra.mxu0 %v5326_v31  ;;  %6801 = vmatprep.mubr.msk.f32.mxu0 %vm7046_vm1, %v8229_v21 }
 0xa22   :  { %6809 = vmatprep.subr.mxu0 %v8229_v21 }
 0xa3f   :  { %v4986_v45 = vpop.xlane.xlu1 %4985 }
 0xa40   :  { %6985 = vrcp.f32 %v4986_v45 }
 0xa43   :  { %v4992_v14 = vpop.xlane.xlu1 %4991 }
 0xa44   :  { %6987 = vrcp.f32 %v4992_v14 }
 0xa47   :  { %v4998_v49 = vpop.xlane.xlu1 %4997 }
 0xa48   :  { %6989 = vrcp.f32 %v4998_v49  ;;  %v4995_v18 = vpop.xlane.xlu0 %4994 }
 0xa49   :  { %6991 = vrcp.f32 %v4995_v18 }
 0xa4a   :  { %v6986_v24 = vpop.eup %6985 }
 0xa4b   :  { %v5014_v51 = vmul.f32 %v6986_v24, %v7968_v37  ;;  %v5004_v48 = vpop.xlane.xlu1 %5003 }
 0xa4c   :  { %6993 = vrcp.f32 %v5004_v48  ;;  %v5001_v61 = vpop.xlane.xlu0 %5000 }
 0xa4d   :  { %6995 = vrcp.f32 %v5001_v61  ;;  %6787 = vmatmul.mubr.msk.f32.vlgmr.msra.gmra.mrb[72].mxu1 %vm314_vm2, %v5014_v51 }
 0xa4e   :  { %v6988_v30 = vpop.eup %6987  ;;  %6795 = vmatpush3.msra.mxu1 %v5250_v22  ;;  %6796 = vmatprep.mubr.msk.f32.mxu1 %vm7046_vm1, %v8229_v21 }
 0xa4f   :  { %v5016_v60 = vmul.f32 %v6988_v30, %v7973_v47  ;;  %6804 = vmatprep.subr.mxu1 %v8229_v21  ;;  %v5554_v43 = vpop.permute.xlu1 %5553 }
 0xa50   :  { %v5478_v27 = vpop.permute.xlu0 %5477 }
 0xa51   :  { %6797 = vmatmul.mubr.msk.f32.vlgmr.msra.gmra.mrb[74].mxu1 %vm314_vm2, %v5016_v60 }
 0xa52   :  { %v6990_v28 = vpop.eup %6989  ;;  %6805 = vmatpush3.msra.mxu1 %v5402_v41  ;;  %6806 = vmatprep.mubr.msk.f32.mxu1 %vm7046_vm1, %v8229_v21 }
 0xa53   :  { %v6992_v29 = vpop.eup %6991  ;;  %v5018_v32 = vmul.f32 %v6990_v28, %v7978_v25  ;;  %6814 = vmatprep.subr.mxu1 %v8229_v21  ;;  %v5640_v45 = vpop.permute.xlu1 %5639 }
 0xa54   :  { %v5017_v34 = vmul.f32 %v6992_v29, %v7980_v7  ;;  %v8036_v17 = vpop.permute.xlu0 %5637 }
 0xa55   :  { %6807 = vmatmul.mubr.msk.f32.vlgmr.msra.gmra.mrb[76].mxu1 %vm314_vm2, %v5018_v32  ;;  %v5725_v1 = vsel %vm314_vm2, %v7433_v8, %v8036_v17  ;;  %v5726_v8 = vsel %vm314_vm2, %v7435_v50, %v5640_v45 }
 0xa56   :  { %v6994_v54 = vpop.eup %6993  ;;  %6802 = vmatmul.mubr.msk.f32.vlgmr.msra.gmra.mrb[68].mxu0 %vm314_vm2, %v5017_v34  ;;  %6815 = vmatpush3.msra.mxu1 %v5554_v43 }
 0xa57   :  { %v6996_v44 = vpop.eup %6995  ;;  %v5020_v12 = vmul.f32 %v6994_v54, %v7986_v36  ;;  %6810 = vmatpush3.msra.mxu0 %v5478_v27  ;;  %6811 = vmatprep.mubr.msk.f32.mxu0 %vm7046_vm1, %v8229_v21  ;;  %v5672_v14 = vpop.permute.xlu1 %5671 }
 0xa58   :  { %v5019_v16 = vmul.f32 %v6996_v44, %v7988_v5  ;;  %v5670_v46 = vpop.permute.xlu0 %5669  ;;  %6816 = vmatprep.mubr.msk.f32.mxu1 %vm7046_vm1, %v8229_v21  ;;  %v5735_v60 = vsel %vm5733_vm4, %v5726_v8, %v5672_v14 }
 0xa59   :  { %6817 = vmatmul.mubr.msk.f32.vlgmr.msra.gmra.mrb[78].mxu1 %vm314_vm2, %v5020_v12  ;;  %v5734_v4 = vsel %vm5733_vm4, %v5725_v1, %v5670_v46  ;;  %v8230_v46 = vld [vmem:[#allocation2_spill] sm:$0xff] }
 0xa5a   :  { %6812 = vmatmul.mubr.msk.f32.vlgmr.msra.gmra.mrb[70].mxu0 %vm314_vm2, %v5019_v16 }
 0xa5b   :  { %v5644_v49 = vpop.permute.xlu1 %5643 }
 0xa5c   :  { %v5642_v2 = vpop.permute.xlu0 %5641  ;;  %v5728_v32 = vsel %vm314_vm2, %v7439_v56, %v5644_v49 }
 0xa5d   :  { %v5727_v63 = vsel %vm314_vm2, %v7437_v52, %v5642_v2 }
 0xa5f   :  { %v5676_v18 = vpop.permute.xlu1 %5675 }
 0xa60   :  { %v5674_v10 = vpop.permute.xlu0 %5673  ;;  %v5737_v50 = vsel %vm5733_vm4, %v5728_v32, %v5676_v18 }
 0xa61   :  { %v8051_v26 = vsel %vm5733_vm4, %v5727_v63, %v5674_v10 }
 0xa63   :  { %v5648_v24 = vpop.permute.xlu1 %5647 }
 0xa64   :  { %v5646_v13 = vpop.permute.xlu0 %5645  ;;  %v5730_v43 = vsel %vm314_vm2, %v7457_v39, %v5648_v24 }
 0xa65   :  { %v5729_v23 = vsel %vm314_vm2, %v7441_v57, %v5646_v13  ;;  %v5752_v57 = vld [vmem:[%s8221_s4 + $0x8] sm:$0xff] }
 0xa66   :  { %v6839_v3 = vpack.c.bf16 %v5752_v57, %v5751_v15 }
 0xa67   :  { %v5680_v51 = vpop.permute.xlu1 %5679 }
 0xa68   :  { %v5678_v11 = vpop.permute.xlu0 %5677  ;;  %6840 = vmatprep.subr.bf16.mxu0 %v6839_v3  ;;  %v5739_v54 = vsel %vm5733_vm4, %v5730_v43, %v5680_v51 }
 0xa69   :  { %v8056_v21 = vsel %vm5733_vm4, %v5729_v23, %v5678_v11  ;;  %6842 = vmatpush3.bf16.msra.mxu0 %v6839_v3  ;;  %v6295_v23 = vld [vmem:[%s8222_s5] ss:$0 sm:$0xff] }
 0xa6b   :  { %v5652_v48 = vpop.permute.xlu1 %5651 }
 0xa6c   :  { %v5650_v53 = vpop.permute.xlu0 %5649  ;;  %v5732_v2 = vsel %vm314_vm2, %v8230_v46, %v5652_v48 }
 0xa6d   :  { %v5731_v37 = vsel %vm314_vm2, %v7443_v40, %v5650_v53  ;;  %v5754_v40 = vld [vmem:[%s8221_s4 + $0x18] sm:$0xff] }
 0xa6e   :  { %v6843_v42 = vpack.c.bf16 %v5754_v40, %v5753_v35 }
 0xa6f   :  { %v5684_v61 = vpop.permute.xlu1 %5683 }
 0xa70   :  { %v5682_v0 = vpop.permute.xlu0 %5681  ;;  %6844 = vmatprep.subr.bf16.mxu0 %v6843_v42  ;;  %v5741_v63 = vsel %vm5733_vm4, %v5732_v2, %v5684_v61 }
 0xa71   :  { %v8061_v52 = vsel %vm5733_vm4, %v5731_v37, %v5682_v0  ;;  %6846 = vmatpush3.bf16.msra.mxu0 %v6843_v42  ;;  %v6304_v42 = vld [vmem:[%s8223_s6] ss:$0 sm:$0xff] }
 0xaef   :  { %v5093_v47 = vpop.f32.mrb[64].mxu0 }
 0xaf0   :  { %5701 = vrot.lane.b32.xlu0 %v5093_v47, %s7052_s30  ;;  %v6783_v62 = vpop.f32.mrb[65].mxu0 }
 0xaf3   :  { %v5245_v25 = vpop.f32.mrb[66].mxu0 }
 0xaf4   :  { %5705 = vrot.lane.b32.xlu0 %v5245_v25, %s7052_s30  ;;  %v6793_v7 = vpop.f32.mrb[67].mxu0 }
 0xb20   :  { %v5169_v19 = vpop.f32.mrb[72].mxu1 }
 0xb21   :  { %v6788_v9 = vpop.f32.mrb[73].mxu1  ;;  %5703 = vrot.lane.b32.xlu1 %v5169_v19, %s7052_s30 }
 0xb24   :  { %v5321_v36 = vpop.f32.mrb[74].mxu1 }
 0xb25   :  { %5707 = vrot.lane.b32.xlu1 %v5321_v36, %s7052_s30  ;;  %v6798_v5 = vpop.f32.mrb[75].mxu1 }
 0xb28   :  { %v5473_v58 = vpop.f32.mrb[76].mxu1 }
 0xb29   :  { %v5397_v20 = vpop.f32.mrb[68].mxu0  ;;  %5711 = vrot.lane.b32.xlu1 %v5473_v58, %s7052_s30  ;;  %v6808_v31 = vpop.f32.mrb[77].mxu1 }
 0xb2a   :  { %5709 = vrot.lane.b32.xlu0 %v5397_v20, %s7052_s30  ;;  %v6803_v33 = vpop.f32.mrb[69].mxu0 }
 0xb2c   :  { %v5625_v55 = vpop.f32.mrb[78].mxu1 }
 0xb2d   :  { %v5549_v6 = vpop.f32.mrb[70].mxu0  ;;  %5715 = vrot.lane.b32.xlu1 %v5625_v55, %s7052_s30  ;;  %v6818_v38 = vpop.f32.mrb[79].mxu1 }
 0xb2e   :  { %5713 = vrot.lane.b32.xlu0 %v5549_v6, %s7052_s30  ;;  %v6813_v59 = vpop.f32.mrb[71].mxu0 }
 0xb62   :  { %v5702_v22 = vpop.permute.xlu0 %5701 }
 0xb63   :  { %v8080_v41 = vsel %vm5742_vm5, %v5734_v4, %v5702_v22 }
 0xb64   :  { %6827 = vmatprep.mubr.msk.f32.mxu0 %vm71_vm0, %v8080_v41 }
 0xb66   :  { %v5706_v30 = vpop.permute.xlu0 %5705 }
 0xb67   :  { %v8092_v29 = vsel %vm5742_vm5, %v8051_v26, %v5706_v30 }
 0xb93   :  { %v5704_v27 = vpop.permute.xlu1 %5703 }
 0xb94   :  { %v8088_v28 = vsel %vm5742_vm5, %v5735_v60, %v5704_v27  ;;  %v8231_v60 = vlaneseq }
 0xb95   :  { %6828 = vmatmul.mubr.msk.f32.vlgmr.msra.gmra.mrb[72].mxu0 %vm71_vm0, %v8088_v28 }
 0xb96   :  { %6830 = vmatprep.mubr.msk.f32.mxu0 %vm71_vm0, %v8092_v29  ;;  %v5939_v27 = vshrl.u32 %v8231_v60, 7 }
 0xb97   :  { %v5708_v34 = vpop.permute.xlu1 %5707 }
 0xb98   :  { %v8102_v17 = vsel %vm5742_vm5, %v5737_v50, %v5708_v34  ;;  %vm5940_vm6 = vcmp.lt.s32.totalorder %v5939_v27, 6 }
 0xb99   :  { %6831 = vmatmul.mubr.msk.f32.gmra.mrb[74].mxu0 %vm71_vm0, %v8102_v17 }
 0xb9b   :  { %v5712_v44 = vpop.permute.xlu1 %5711 }
 0xb9c   :  { %v8110_v56 = vsel %vm5742_vm5, %v5739_v54, %v5712_v44  ;;  %v5710_v12 = vpop.permute.xlu0 %5709 }
 0xb9d   :  { %v8114_v16 = vsel %vm5742_vm5, %v8056_v21, %v5710_v12 }
 0xb9e   :  { %6833 = vmatprep.mubr.msk.f32.mxu0 %vm71_vm0, %v8114_v16 }
 0xb9f   :  { %6834 = vmatmul.mubr.msk.f32.gmra.mrb[76].mxu0 %vm71_vm0, %v8110_v56  ;;  %v5716_v39 = vpop.permute.xlu1 %5715 }
 0xba0   :  { %v8124_v10 = vsel %vm5742_vm5, %v5741_v63, %v5716_v39  ;;  %v5714_v26 = vpop.permute.xlu0 %5713 }
 0xba1   :  { %v8128_v13 = vsel %vm5742_vm5, %v8061_v52, %v5714_v26 }
 0xba2   :  { %6836 = vmatprep.mubr.msk.f32.mxu0 %vm71_vm0, %v8128_v13 }
 0xba3   :  { %6837 = vmatmul.mubr.msk.f32.gmra.mrb[78].mxu0 %vm71_vm0, %v8124_v10 }
 0xc68   :  { %v6829_v11 = vpop.f32.mrb[72].mxu0 }
 0xc69   :  { %v5858_v21 = vadd.f32 %v6829_v11, %v6295_v23  ;;  %v5852_v53 = vpop.f32.mrb[73].mxu0 }
 0xc6a   :  { %v5853_v37 = vadd.f32 %v6295_v23, %v5852_v53 }
 0xc6b   :  { %6997 = vtanh.f32 %v5858_v21 }
 0xc6c   :  { %6999 = vtanh.f32 %v5853_v37  ;;  %v6832_v0 = vpop.f32.mrb[74].mxu0 }
 0xc6d   :  { %v5868_v15 = vadd.f32 %v6832_v0, %v6295_v23  ;;  %v5862_v52 = vpop.f32.mrb[75].mxu0 }
 0xc6e   :  { %v5863_v57 = vadd.f32 %v6295_v23, %v5862_v52 }
 0xc6f   :  { %7001 = vtanh.f32 %v5868_v15 }
 0xc70   :  { %7003 = vtanh.f32 %v5863_v57 }
 0xc72   :  { %v6835_v35 = vpop.f32.mrb[76].mxu0 }
 0xc73   :  { %v5878_v3 = vadd.f32 %v6835_v35, %v6295_v23  ;;  %v5872_v40 = vpop.f32.mrb[77].mxu0 }
 0xc74   :  { %v5873_v47 = vadd.f32 %v6295_v23, %v5872_v40 }
 0xc75   :  { %v6998_v62 = vpop.eup %6997  ;;  %7005 = vtanh.f32 %v5878_v3 }
 0xc76   :  { %v7000_v25 = vpop.eup %6999  ;;  %7007 = vtanh.f32 %v5873_v47  ;;  %v6838_v7 = vpop.f32.mrb[78].mxu0  ;;  %v5907_v19 = vmul.f32 %v6998_v62, %v6304_v42 }
 0xc77   :  { %v5888_v9 = vadd.f32 %v6838_v7, %v6295_v23  ;;  %v5882_v36 = vpop.f32.mrb[79].mxu0  ;;  %v5906_v5 = vmul.f32 %v7000_v25, %v6304_v42 }
 0xc78   :  { %v5883_v58 = vadd.f32 %v6295_v23, %v5882_v36  ;;  %v5917_v20 = vsel %vm5733_vm4, %v5907_v19, 0.0 }
 0xc79   :  { %v7002_v31 = vpop.eup %7001  ;;  %7009 = vtanh.f32 %v5888_v9  ;;  %5918 = vadd.xlane.f32.xlu1 %v5917_v20  ;;  %v5914_v33 = vsel %vm5733_vm4, %v5906_v5, 0.0 }
 0xc7a   :  { %v7004_v55 = vpop.eup %7003  ;;  %7011 = vtanh.f32 %v5883_v58  ;;  %5915 = vadd.xlane.f32.xlu0 %v5914_v33  ;;  %v5909_v6 = vmul.f32 %v7002_v31, %v6304_v42 }
 0xc7b   :  { %v5908_v59 = vmul.f32 %v7004_v55, %v6304_v42 }
 0xc7c   :  { %v5923_v38 = vsel %vm5733_vm4, %v5909_v6, 0.0 }
 0xc7d   :  { %v5920_v45 = vsel %vm5733_vm4, %v5908_v59, 0.0 }
 0xc7e   :  { %5924 = vadd.xlane.f32.xlu0 %v5923_v38 }
 0xc7f   :  { %v7006_v1 = vpop.eup %7005 }
 0xc80   :  { %v7008_v4 = vpop.eup %7007  ;;  %v5911_v22 = vmul.f32 %v7006_v1, %v6304_v42 }
 0xc81   :  { %v5910_v14 = vmul.f32 %v7008_v4, %v6304_v42 }
 0xc82   :  { %v5929_v49 = vsel %vm5733_vm4, %v5911_v22, 0.0  ;;  %5921 = vadd.xlane.f32.xlu0 %v5920_v45 }
 0xc83   :  { %v7010_v18 = vpop.eup %7009  ;;  %5930 = vadd.xlane.f32.xlu1 %v5929_v49  ;;  %v5926_v48 = vsel %vm5733_vm4, %v5910_v14, 0.0 }
 0xc84   :  { %v7012_v24 = vpop.eup %7011  ;;  %v5913_v51 = vmul.f32 %v7010_v18, %v6304_v42 }
 0xc85   :  { %v5912_v61 = vmul.f32 %v7012_v24, %v6304_v42 }
 0xc86   :  { %v5935_v8 = vsel %vm5733_vm4, %v5913_v51, 0.0  ;;  %5927 = vadd.xlane.f32.xlu0 %v5926_v48 }
 0xc87   :  { %5936 = vadd.xlane.f32.xlu1 %v5935_v8  ;;  %v5932_v30 = vsel %vm5733_vm4, %v5912_v61, 0.0 }
 0xc8a   :  { %5933 = vadd.xlane.f32.xlu0 %v5932_v30 }
 0xd06   :  { %v5919_v32 = vpop.xlane.xlu1 %5918 }
 0xd07   :  { %v5942_v50 = vsel %vm5940_vm6, %v5919_v32, -1e+30  ;;  %v5916_v34 = vpop.xlane.xlu0 %5915 }
 0xd08   :  { %v5955_v43 = vrot.slane %v5942_v50, 4  ;;  %v5941_v54 = vsel %vm5940_vm6, %v5916_v34, -1e+30 }
 0xd09   :  { %v5949_v44 = vrot.slane %v5941_v54, 4 }
 0xd0a   :  { %v5956_v12 = vmax.f32 %v5942_v50, %v5955_v43 }
 0xd0b   :  { %v5950_v46 = vmax.f32 %v5941_v54, %v5949_v44  ;;  %v5925_v2 = vpop.xlane.xlu0 %5924 }
 0xd0c   :  { %v5957_v63 = vrot.slane %v5956_v12, 2  ;;  %v5944_v39 = vsel %vm5940_vm6, %v5925_v2, -1e+30 }
 0xd0d   :  { %v5951_v26 = vrot.slane %v5950_v46, 2  ;;  %v5967_v23 = vrot.slane %v5944_v39, 4 }
 0xd0e   :  { %v5958_v11 = vmax.f32 %v5956_v12, %v5957_v63 }
 0xd0f   :  { %v5952_v21 = vmax.f32 %v5950_v46, %v5951_v26  ;;  %v5968_v53 = vmax.f32 %v5944_v39, %v5967_v23  ;;  %v5922_v37 = vpop.xlane.xlu0 %5921 }
 0xd10   :  { %v5959_v0 = vrot.slane %v5958_v11, 1  ;;  %v5931_v15 = vpop.xlane.xlu1 %5930  ;;  %v5943_v52 = vsel %vm5940_vm6, %v5922_v37, -1e+30 }
 0xd11   :  { %v5953_v57 = vrot.slane %v5952_v21, 1  ;;  %v5969_v35 = vrot.slane %v5968_v53, 2  ;;  %v5946_v3 = vsel %vm5940_vm6, %v5931_v15, -1e+30  ;;  %v5961_v40 = vrot.slane %v5943_v52, 4 }
 0xd12   :  { %v5960_v42 = vmax.f32 %v5958_v11, %v5959_v0  ;;  %v5979_v47 = vrot.slane %v5946_v3, 4 }
 0xd13   :  { %v5954_v62 = vmax.f32 %v5952_v21, %v5953_v57  ;;  %v5970_v25 = vmax.f32 %v5968_v53, %v5969_v35  ;;  %v5962_v7 = vmax.f32 %v5943_v52, %v5961_v40  ;;  %v5928_v19 = vpop.xlane.xlu0 %5927 }
 0xd14   :  { %v5998_v9 = vsub.f32 %v5942_v50, %v5960_v42  ;;  %v5980_v36 = vmax.f32 %v5946_v3, %v5979_v47  ;;  %v5937_v5 = vpop.xlane.xlu1 %5936  ;;  %v5945_v58 = vsel %vm5940_vm6, %v5928_v19, -1e+30 }
 0xd15   :  { %v5997_v20 = vsub.f32 %v5941_v54, %v5954_v62  ;;  %v5971_v31 = vrot.slane %v5970_v25, 1  ;;  %v5963_v33 = vrot.slane %v5962_v7, 2  ;;  %v5948_v55 = vsel %vm5940_vm6, %v5937_v5, -1e+30 }
 0xd16   :  { %v6007_v6 = vmul.f32 1.442695, %v5998_v9  ;;  %v5981_v38 = vrot.slane %v5980_v36, 2  ;;  %v5991_v59 = vrot.slane %v5948_v55, 4  ;;  %v5973_v1 = vrot.slane %v5945_v58, 4 }
 0xd17   :  { %v6005_v4 = vmul.f32 1.442695, %v5997_v20  ;;  %v5972_v22 = vmax.f32 %v5970_v25, %v5971_v31  ;;  %v5964_v45 = vmax.f32 %v5962_v7, %v5963_v33  ;;  %v5934_v14 = vpop.xlane.xlu0 %5933 }
 0xd18   :  { %7013 = vpow2.f32 %v6007_v6  ;;  %v5982_v49 = vmax.f32 %v5980_v36, %v5981_v38  ;;  %v5992_v18 = vmax.f32 %v5948_v55, %v5991_v59  ;;  %v5974_v24 = vmax.f32 %v5945_v58, %v5973_v1 }
 0xd19   :  { %7015 = vpow2.f32 %v6005_v4  ;;  %v6000_v51 = vsub.f32 %v5944_v39, %v5972_v22  ;;  %v5965_v48 = vrot.slane %v5964_v45, 1  ;;  %v5947_v61 = vsel %vm5940_vm6, %v5934_v14, -1e+30 }
 0xd1a   :  { %v5983_v8 = vrot.slane %v5982_v49, 1  ;;  %v5993_v30 = vrot.slane %v5992_v18, 2  ;;  %v5975_v60 = vrot.slane %v5974_v24, 2  ;;  %v5985_v32 = vrot.slane %v5947_v61, 4 }
 0xd1b   :  { %v6011_v50 = vmul.f32 1.442695, %v6000_v51  ;;  %v5966_v34 = vmax.f32 %v5964_v45, %v5965_v48 }
 0xd1c   :  { %v5984_v43 = vmax.f32 %v5982_v49, %v5983_v8  ;;  %v5994_v54 = vmax.f32 %v5992_v18, %v5993_v30  ;;  %v5976_v44 = vmax.f32 %v5974_v24, %v5975_v60  ;;  %v5986_v12 = vmax.f32 %v5947_v61, %v5985_v32 }
 0xd1d   :  { %7017 = vpow2.f32 %v6011_v50  ;;  %v5999_v46 = vsub.f32 %v5943_v52, %v5966_v34 }
 0xd1e   :  { %v6002_v2 = vsub.f32 %v5946_v3, %v5984_v43  ;;  %v5995_v63 = vrot.slane %v5994_v54, 1  ;;  %v5977_v26 = vrot.slane %v5976_v44, 1  ;;  %v5987_v23 = vrot.slane %v5986_v12, 2 }
 0xd1f   :  { %v6009_v39 = vmul.f32 1.442695, %v5999_v46 }
 0xd20   :  { %v6015_v11 = vmul.f32 1.442695, %v6002_v2  ;;  %v5996_v27 = vmax.f32 %v5994_v54, %v5995_v63  ;;  %v5978_v21 = vmax.f32 %v5976_v44, %v5977_v26  ;;  %v5988_v53 = vmax.f32 %v5986_v12, %v5987_v23 }
 0xd21   :  { %7019 = vpow2.f32 %v6009_v39 }
 0xd22   :  { %v8157_v37 = vpop.eup %7013  ;;  %7021 = vpow2.f32 %v6015_v11  ;;  %v6004_v0 = vsub.f32 %v5948_v55, %v5996_v27  ;;  %v6001_v15 = vsub.f32 %v5945_v58, %v5978_v21  ;;  %v5989_v57 = vrot.slane %v5988_v53, 1 }
 0xd23   :  { %v8159_v35 = vpop.eup %7015  ;;  %v6027_v52 = vrot.slane %v8157_v37, 4 }
 0xd24   :  { %v6021_v3 = vrot.slane %v8159_v35, 4  ;;  %v6019_v40 = vmul.f32 1.442695, %v6004_v0  ;;  %v6013_v42 = vmul.f32 1.442695, %v6001_v15  ;;  %v5990_v47 = vmax.f32 %v5988_v53, %v5989_v57 }
 0xd25   :  { %v6028_v62 = vadd.f32 %v8157_v37, %v6027_v52 }
 0xd26   :  { %v6022_v25 = vadd.f32 %v8159_v35, %v6021_v3  ;;  %7023 = vpow2.f32 %v6019_v40  ;;  %v6003_v7 = vsub.f32 %v5947_v61, %v5990_v47 }
 0xd27   :  { %v8165_v19 = vpop.eup %7017  ;;  %v6029_v9 = vrot.slane %v6028_v62, 2  ;;  %7025 = vpow2.f32 %v6013_v42 }
 0xd28   :  { %v6023_v36 = vrot.slane %v6022_v25, 2  ;;  %v6039_v5 = vrot.slane %v8165_v19, 4  ;;  %v6017_v58 = vmul.f32 1.442695, %v6003_v7 }
 0xd29   :  { %v6030_v20 = vadd.f32 %v6029_v9, %v6028_v62 }
 0xd2a   :  { %v6024_v31 = vadd.f32 %v6023_v36, %v6022_v25  ;;  %v6040_v33 = vadd.f32 %v8165_v19, %v6039_v5  ;;  %7027 = vpow2.f32 %v6017_v58 }
 0xd2b   :  { %v8169_v55 = vpop.eup %7019  ;;  %v6031_v6 = vrot.slane %v6030_v20, 1 }
 0xd2c   :  { %v8171_v38 = vpop.eup %7021  ;;  %v6025_v59 = vrot.slane %v6024_v31, 1  ;;  %v6041_v1 = vrot.slane %v6040_v33, 2  ;;  %v6033_v4 = vrot.slane %v8169_v55, 4 }
 0xd2d   :  { %v6032_v22 = vadd.f32 %v6031_v6, %v6030_v20  ;;  %v6051_v45 = vrot.slane %v8171_v38, 4 }
 0xd2e   :  { %v6026_v14 = vadd.f32 %v6025_v59, %v6024_v31  ;;  %v6042_v49 = vadd.f32 %v6041_v1, %v6040_v33  ;;  %v6034_v18 = vadd.f32 %v8169_v55, %v6033_v4 }
 0xd2f   :  { %7029 = vrcp.f32 %v6032_v22  ;;  %v6052_v24 = vadd.f32 %v8171_v38, %v6051_v45 }
 0xd30   :  { %v8177_v51 = vpop.eup %7023  ;;  %7031 = vrcp.f32 %v6026_v14  ;;  %v6043_v48 = vrot.slane %v6042_v49, 1  ;;  %v6035_v61 = vrot.slane %v6034_v18, 2 }
 0xd31   :  { %v8179_v8 = vpop.eup %7025  ;;  %v6053_v30 = vrot.slane %v6052_v24, 2  ;;  %v6063_v60 = vrot.slane %v8177_v51, 4 }
 0xd32   :  { %v6044_v32 = vadd.f32 %v6043_v48, %v6042_v49  ;;  %v6036_v50 = vadd.f32 %v6035_v61, %v6034_v18  ;;  %v6045_v34 = vrot.slane %v8179_v8, 4 }
 0xd33   :  { %v6054_v43 = vadd.f32 %v6053_v30, %v6052_v24  ;;  %v6064_v54 = vadd.f32 %v8177_v51, %v6063_v60 }
 0xd34   :  { %v8184_v44 = vpop.eup %7027  ;;  %7033 = vrcp.f32 %v6044_v32  ;;  %v6037_v12 = vrot.slane %v6036_v50, 1  ;;  %v6046_v46 = vadd.f32 %v8179_v8, %v6045_v34 }
 0xd35   :  { %v6055_v2 = vrot.slane %v6054_v43, 1  ;;  %v6065_v63 = vrot.slane %v6064_v54, 2  ;;  %v6057_v26 = vrot.slane %v8184_v44, 4 }
 0xd36   :  { %v6038_v23 = vadd.f32 %v6037_v12, %v6036_v50  ;;  %v6047_v39 = vrot.slane %v6046_v46, 2 }
 0xd37   :  { %v6056_v11 = vadd.f32 %v6055_v2, %v6054_v43  ;;  %v6066_v27 = vadd.f32 %v6065_v63, %v6064_v54  ;;  %v6058_v21 = vadd.f32 %v8184_v44, %v6057_v26 }
 0xd38   :  { %7035 = vrcp.f32 %v6038_v23  ;;  %v6048_v53 = vadd.f32 %v6047_v39, %v6046_v46 }
 0xd39   :  { %v7030_v0 = vpop.eup %7029  ;;  %7037 = vrcp.f32 %v6056_v11  ;;  %v6067_v15 = vrot.slane %v6066_v27, 1  ;;  %v6059_v57 = vrot.slane %v6058_v21, 2 }
 0xd3a   :  { %v7032_v52 = vpop.eup %7031  ;;  %v6078_v3 = vmul.f32 %v7030_v0, %v8157_v37  ;;  %v6049_v40 = vrot.slane %v6048_v53, 1 }
 0xd3b   :  { %v6077_v42 = vmul.f32 %v7032_v52, %v8159_v35  ;;  %v6068_v47 = vadd.f32 %v6067_v15, %v6066_v27  ;;  %v6060_v62 = vadd.f32 %v6059_v57, %v6058_v21 }
 0xd3c   :  { %v6086_v25 = vmul.f32 %v6078_v3, %v8088_v28  ;;  %v6050_v7 = vadd.f32 %v6049_v40, %v6048_v53 }
 0xd3d   :  { %v6085_v9 = vmul.f32 %v6077_v42, %v8080_v41  ;;  %7039 = vrcp.f32 %v6068_v47  ;;  %v6061_v36 = vrot.slane %v6060_v62, 1 }
 0xd3e   :  { %v7034_v5 = vpop.eup %7033  ;;  %v6100_v58 = vsel %vm71_vm0, %v6086_v25, 0.0  ;;  %7041 = vrcp.f32 %v6050_v7 }
 0xd3f   :  { %v6101_v20 = vrot.slane %v6100_v58, 4  ;;  %v6093_v31 = vsel %vm71_vm0, %v6085_v9, 0.0  ;;  %v6080_v37 = vmul.f32 %v7034_v5, %v8165_v19  ;;  %v6062_v33 = vadd.f32 %v6061_v36, %v6060_v62 }
 0xd40   :  { %v6094_v35 = vrot.slane %v6093_v31, 4 }
 0xd41   :  { %v6102_v6 = vadd.f32 %v6101_v20, %v6100_v58  ;;  %v6088_v59 = vmul.f32 %v6080_v37, %v8102_v17  ;;  %7043 = vrcp.f32 %v6062_v33 }
 0xd42   :  { %v7036_v28 = vpop.eup %7035  ;;  %v6095_v1 = vadd.f32 %v6094_v35, %v6093_v31 }
 0xd43   :  { %v7038_v41 = vpop.eup %7037  ;;  %v6114_v4 = vsel %vm71_vm0, %v6088_v59, 0.0  ;;  %v6079_v22 = vmul.f32 %v7036_v28, %v8169_v55  ;;  %v6103_v45 = vrot.slane %v6102_v6, 2 }
 0xd44   :  { %v6115_v14 = vrot.slane %v6114_v4, 4  ;;  %v6082_v49 = vmul.f32 %v7038_v41, %v8171_v38  ;;  %v6096_v18 = vrot.slane %v6095_v1, 2 }
 0xd45   :  { %v6087_v19 = vmul.f32 %v6079_v22, %v8092_v29  ;;  %v6104_v60 = vadd.f32 %v6103_v45, %v6102_v6 }
 0xd46   :  { %v6090_v24 = vmul.f32 %v6082_v49, %v8110_v56  ;;  %v6116_v61 = vadd.f32 %v6115_v14, %v6114_v4  ;;  %v6097_v34 = vadd.f32 %v6096_v18, %v6095_v1 }
 0xd47   :  { %v7040_v48 = vpop.eup %7039  ;;  %v6107_v17 = vsel %vm71_vm0, %v6087_v19, 0.0  ;;  %v6105_v23 = vrot.slane %v6104_v60, 1 }
 0xd48   :  { %v7042_v30 = vpop.eup %7041  ;;  %v6128_v32 = vsel %vm71_vm0, %v6090_v24, 0.0  ;;  %v6108_v50 = vrot.slane %v6107_v17, 4  ;;  %v6084_v43 = vmul.f32 %v7040_v48, %v8177_v51  ;;  %v6117_v29 = vrot.slane %v6116_v61, 2 }
 0xd49   :  { %v6129_v55 = vrot.slane %v6128_v32, 4  ;;  %v6081_v38 = vmul.f32 %v7042_v30, %v8179_v8  ;;  %v6098_v39 = vrot.slane %v6097_v34, 1 }
 0xd4a   :  { %v6109_v54 = vadd.f32 %v6108_v50, %v6107_v17  ;;  %v6092_v56 = vmul.f32 %v6084_v43, %v8124_v10  ;;  %v6118_v53 = vadd.f32 %v6117_v29, %v6116_v61 }
 0xd4b   :  { %v7044_v12 = vpop.eup %7043  ;;  %v6130_v46 = vadd.f32 %v6129_v55, %v6128_v32  ;;  %v6089_v2 = vmul.f32 %v6081_v38, %v8114_v16  ;;  %v6106_v16 = vadd.f32 %v6105_v23, %v6104_v60  ;;  %v6099_v3 = vadd.f32 %v6098_v39, %v6097_v34 }
 0xd4c   :  { %v6110_v63 = vrot.slane %v6109_v54, 2  ;;  %v6083_v26 = vmul.f32 %v7044_v12, %v8184_v44  ;;  %v6142_v11 = vsel %vm71_vm0, %v6092_v56, 0.0  ;;  %v6119_v25 = vrot.slane %v6118_v53, 1 }
 0xd4d   :  { %v6121_v27 = vsel %vm71_vm0, %v6089_v2, 0.0  ;;  %v6143_v21 = vrot.slane %v6142_v11, 4  ;;  %v6131_v0 = vrot.slane %v6130_v46, 2  ;;  %v6158_v5 = vsel %vm6157_vm7, %v6106_v16, %v6099_v3 }
 0xd4e   :  { %v6111_v51 = vadd.f32 %v6110_v63, %v6109_v54  ;;  %v6122_v8 = vrot.slane %v6121_v27, 4  ;;  %v6091_v15 = vmul.f32 %v6083_v26, %v8128_v13  ;;  %v6120_v37 = vadd.f32 %v6119_v25, %v6118_v53 }
 0xd4f   :  { %v6144_v10 = vadd.f32 %v6143_v21, %v6142_v11  ;;  %v6132_v7 = vadd.f32 %v6131_v0, %v6130_v46 }
 0xd50   :  { %v6112_v57 = vrot.slane %v6111_v51, 1  ;;  %v6123_v52 = vadd.f32 %v6122_v8, %v6121_v27  ;;  %v6135_v44 = vsel %vm71_vm0, %v6091_v15, 0.0 }
 0xd51   :  { %v6145_v42 = vrot.slane %v6144_v10, 2  ;;  %v6136_v62 = vrot.slane %v6135_v44, 4  ;;  %v6133_v33 = vrot.slane %v6132_v7, 1 }
 0xd52   :  { %v6113_v40 = vadd.f32 %v6112_v57, %v6111_v51  ;;  %v6124_v47 = vrot.slane %v6123_v52, 2 }
 0xd53   :  { %v6137_v36 = vadd.f32 %v6136_v62, %v6135_v44  ;;  %v6146_v58 = vadd.f32 %v6145_v42, %v6144_v10  ;;  %v6134_v4 = vadd.f32 %v6133_v33, %v6132_v7 }
 0xd54   :  { %v6125_v9 = vadd.f32 %v6124_v47, %v6123_v52  ;;  %v6160_v13 = vsel %vm6159_vm8, %v6113_v40, %v6158_v5 }
 0xd55   :  { %v6138_v31 = vrot.slane %v6137_v36, 2  ;;  %v6147_v59 = vrot.slane %v6146_v58, 1  ;;  %v6162_v28 = vsel %vm6161_vm9, %v6120_v37, %v6160_v13 }
 0xd56   :  { %v6126_v20 = vrot.slane %v6125_v9, 1 }
 0xd57   :  { %v6139_v6 = vadd.f32 %v6138_v31, %v6137_v36  ;;  %v6148_v45 = vadd.f32 %v6147_v59, %v6146_v58 }
 0xd58   :  { %v6127_v35 = vadd.f32 %v6126_v20, %v6125_v9 }
 0xd59   :  { %v6140_v41 = vrot.slane %v6139_v6, 1 }
 0xd5a   :  { %v6164_v1 = vsel %vm6163_vm10, %v6127_v35, %v6162_v28 }
 0xd5b   :  { %v6141_v22 = vadd.f32 %v6140_v41, %v6139_v6  ;;  %v6166_v14 = vsel %vm6165_vm11, %v6134_v4, %v6164_v1 }
 0xd5d   :  { %v6168_v49 = vsel %vm6167_vm12, %v6141_v22, %v6166_v14 }
 0xd5e   :  { %v6170_v18 = vsel %vm6169_vm13, %v6148_v45, %v6168_v49 }
 0xd5f   :  { %6172 = vst.msk [vmem:[%s8224_s7] sm:$0xff] %vm71_vm0, %v6170_v18 }

// kernel: nrms_forward.3
= control target key start
LH: loop header
LB: loop body
LE: loop exit
PB: predicated region body
PF: predicated region fallthrough
CT: control target
= control target key end

     0   :  { %vm127_vm0 = vcmask 261120   ;;  %v24387_v18 = vmov 0.0   ;;  %vm20320_vm1 = vmmov 0   ;;  %vm583_vm2 = vcmask 64512   ;;  %s20323_s11 = smov 104   ;;  %s20324_s12 = smov 8   ;;  %s24377_s1 = inlined_call_operand.vmem [shape: bf16[32,32], index: 1, kind: input, shape index: {}]   ;;  %s24378_s0 = inlined_call_operand.vmem [shape: bf16[192,32], index: 0, kind: input, shape index: {}]   ;;  %s24379_s2 = inlined_call_operand.vmem [shape: bf16[32,32], index: 2, kind: input, shape index: {}]   ;;  %s24380_s3 = inlined_call_operand.vmem [shape: bf16[32,32], index: 3, kind: input, shape index: {}]   ;;  %s24381_s4 = inlined_call_operand.vmem [shape: f32[32,16], index: 4, kind: input, shape index: {}]   ;;  %s24382_s5 = inlined_call_operand.vmem [shape: f32[1,16], index: 5, kind: input, shape index: {}]   ;;  %s24383_s6 = inlined_call_operand.vmem [shape: f32[1,16], index: 6, kind: input, shape index: {}]   ;;  %s24384_s7 = inlined_call_operand.vmem [shape: f32[24,32], index: 7, kind: output, shape index: {}]  }
   0x1   :  { %v19773_v0 = vld [vmem:[%s24377_s1] sm:$0xff]   ;;  %v19774_v1 = vld [vmem:[%s24377_s1 + $0x8] sm:$0xff]   ;;  %v19775_v2 = vld [vmem:[%s24378_s0 + $0x30] sm:$0xff]   ;;  %s20322_s1 = smov 112   ;;  %s20325_s13 = smov 16   ;;  %vm16736_vm3 = vcmask 130048  }
   0x2   :  { %19761 = vmatprep.subr.bf16.mxu1 %v19773_v0  ;;  %18665 = vmatprep.subr.bf16.mxu0 %v19773_v0  ;;  %v19777_v3 = vld [vmem:[%s24378_s0] sm:$0xff]   ;;  %v19776_v4 = vld [vmem:[%s24378_s0 + $0x38] sm:$0xff]   ;;  %v19778_v5 = vld [vmem:[%s24378_s0 + $0x8] sm:$0xff]   ;;  %s20326_s22 = smov 24   ;;  %vm16761_vm4 = vcmask 195584   ;;  %vm17805_vm5 = vcmask 1041409  }
   0x3   :  { %19763 = vmatpush3.bf16.msra.mxu1 %v19773_v0  ;;  %18666 = vmatpush3.bf16.msra.mxu0 %v19773_v0  ;;  %v19779_v6 = vld [vmem:[%s24378_s0 + $0x40] sm:$0xff]   ;;  %v19781_v7 = vld [vmem:[%s24378_s0 + $0x10] sm:$0xff]   ;;  %v19780_v8 = vld [vmem:[%s24378_s0 + $0x48] sm:$0xff]   ;;  %vm17807_vm6 = vcmask 1042434   ;;  %vm17809_vm7 = vcmask 1043459   ;;  %vm17811_vm8 = vcmask 1044484  }
   0x4   :  { %19762 = vmatprep.subr.bf16.mxu1 %v19774_v1  ;;  %18681 = vmatprep.mubr.msk.bf16.mxu1 %vm127_vm0, %v19775_v2  ;;  %v19785_v9 = vld [vmem:[%s24379_s2] sm:$0xff]   ;;  %v19786_v10 = vld [vmem:[%s24379_s2 + $0x8] sm:$0xff]   ;;  %v19783_v11 = vld [vmem:[%s24378_s0 + $0x18] sm:$0xff]   ;;  %vm17813_vm9 = vcmask 1045509   ;;  %vm17815_vm10 = vcmask 1046534   ;;  %vm17817_vm11 = vcmask 1047559  }
   0x5   :  { %18667 = vmatprep.subr.bf16.mxu0 %v19774_v1  ;;  %18669 = vmatprep.mubr.msk.bf16.mxu0 %vm127_vm0, %v19777_v3  ;;  %v19782_v12 = vld [vmem:[%s24378_s0 + $0x50] sm:$0xff]   ;;  %v19789_v13 = vld [vmem:[%s24380_s3] sm:$0xff]   ;;  %v19784_v15 = vld [vmem:[%s24378_s0 + $0x58] sm:$0xff]  }
   0x6   :  { %v19787_v14 = vld [vmem:[%s24378_s0 + $0x20] sm:$0xff]   ;;  %v19788_v16 = vld [vmem:[%s24378_s0 + $0x28] sm:$0xff]  }
   0x7   :  { %19764 = vmatpush3.bf16.msra.mxu1 %v19774_v1  ;;  %18668 = vmatpush3.bf16.msra.mxu0 %v19774_v1  ;;  %v19790_v17 = vld [vmem:[%s24380_s3 + $0x8] sm:$0xff]   ;;  %s20321_s3 = smov 120  }
   0x8   :  { %18693 = vmatprep.subr.bf16.mxu1 %v19785_v9  ;;  %18721 = vmatprep.subr.bf16.mxu0 %v19789_v13 }
   0xa   :  { %18682 = vmatmul.mubr.msk.bf16.vlgmr.msra.gmra.mrb[0].mxu1 %vm127_vm0, %v19776_v4  ;;  %18670 = vmatmul.mubr.msk.bf16.vlgmr.msra.gmra.mrb[0].mxu0 %vm127_vm0, %v19778_v5 }
   0xb   :  { %18685 = vmatprep.mubr.msk.bf16.mxu1 %vm127_vm0, %v19779_v6  ;;  %18673 = vmatprep.mubr.msk.bf16.mxu0 %vm127_vm0, %v19781_v7 }
   0xc   :  { %18694 = vmatpush3.bf16.msra.mxu1 %v19785_v9  ;;  %18722 = vmatpush3.bf16.msra.mxu0 %v19789_v13 }
   0xd   :  { %18695 = vmatprep.subr.bf16.mxu1 %v19786_v10  ;;  %18723 = vmatprep.subr.bf16.mxu0 %v19790_v17 }
  0x10   :  { %18696 = vmatpush3.bf16.msra.mxu1 %v19786_v10  ;;  %18724 = vmatpush3.bf16.msra.mxu0 %v19790_v17 }
  0x11   :  { %18749 = vmatprep.subr.mxu1 %v24387_v18  ;;  %18809 = vmatprep.subr.mxu0 %v24387_v18 }
  0x12   :  { %18686 = vmatmul.mubr.msk.bf16.gmra.mrb[4].mxu1 %vm127_vm0, %v19780_v8  ;;  %18674 = vmatmul.mubr.msk.bf16.gmra.mrb[4].mxu0 %vm127_vm0, %v19783_v11 }
  0x13   :  { %18689 = vmatprep.mubr.msk.bf16.mxu1 %vm127_vm0, %v19782_v12  ;;  %18677 = vmatprep.mubr.msk.bf16.mxu0 %vm127_vm0, %v19787_v14 }
  0x1a   :  { %18690 = vmatmul.mubr.msk.bf16.gmra.mrb[8].mxu1 %vm127_vm0, %v19784_v15  ;;  %18678 = vmatmul.mubr.msk.bf16.gmra.mrb[8].mxu0 %vm127_vm0, %v19788_v16 }
  0x1b   :  { %18697 = vmatprep.mubr.msk.bf16.mxu1 %vm127_vm0, %v19777_v3  ;;  %18725 = vmatprep.mubr.msk.bf16.mxu0 %vm127_vm0, %v19777_v3 }
  0x22   :  { %18698 = vmatmul.mubr.msk.bf16.vlgmr.msra.gmra.mrb[12].mxu1 %vm127_vm0, %v19778_v5  ;;  %18726 = vmatmul.mubr.msk.bf16.vlgmr.msra.gmra.mrb[12].mxu0 %vm127_vm0, %v19778_v5 }
  0x23   :  { %18701 = vmatprep.mubr.msk.bf16.mxu1 %vm127_vm0, %v19781_v7  ;;  %18729 = vmatprep.mubr.msk.bf16.mxu0 %vm127_vm0, %v19781_v7 }
  0x2a   :  { %18702 = vmatmul.mubr.msk.bf16.gmra.mrb[16].mxu1 %vm127_vm0, %v19783_v11  ;;  %18730 = vmatmul.mubr.msk.bf16.gmra.mrb[16].mxu0 %vm127_vm0, %v19783_v11 }
  0x2b   :  { %18705 = vmatprep.mubr.msk.bf16.mxu1 %vm127_vm0, %v19787_v14  ;;  %18733 = vmatprep.mubr.msk.bf16.mxu0 %vm127_vm0, %v19787_v14 }
  0x32   :  { %18706 = vmatmul.mubr.msk.bf16.gmra.mrb[20].mxu1 %vm127_vm0, %v19788_v16  ;;  %18734 = vmatmul.mubr.msk.bf16.gmra.mrb[20].mxu0 %vm127_vm0, %v19788_v16 }
  0x33   :  { %18709 = vmatprep.mubr.msk.bf16.mxu1 %vm127_vm0, %v19775_v2  ;;  %18737 = vmatprep.mubr.msk.bf16.mxu0 %vm127_vm0, %v19775_v2 }
  0x3a   :  { %18710 = vmatmul.mubr.msk.bf16.gmra.mrb[24].mxu1 %vm127_vm0, %v19776_v4  ;;  %18738 = vmatmul.mubr.msk.bf16.gmra.mrb[24].mxu0 %vm127_vm0, %v19776_v4 }
  0x3b   :  { %18713 = vmatprep.mubr.msk.bf16.mxu1 %vm127_vm0, %v19779_v6  ;;  %18741 = vmatprep.mubr.msk.bf16.mxu0 %vm127_vm0, %v19779_v6 }
  0x42   :  { %18714 = vmatmul.mubr.msk.bf16.gmra.mrb[28].mxu1 %vm127_vm0, %v19780_v8  ;;  %18742 = vmatmul.mubr.msk.bf16.gmra.mrb[28].mxu0 %vm127_vm0, %v19780_v8 }
  0x43   :  { %18717 = vmatprep.mubr.msk.bf16.mxu1 %vm127_vm0, %v19782_v12  ;;  %18745 = vmatprep.mubr.msk.bf16.mxu0 %vm127_vm0, %v19782_v12 }
  0x4a   :  { %18718 = vmatmul.mubr.msk.bf16.gmra.mrb[32].mxu1 %vm127_vm0, %v19784_v15  ;;  %18746 = vmatmul.mubr.msk.bf16.gmra.mrb[32].mxu0 %vm127_vm0, %v19784_v15 }
  0x4b   :  { %18751 = vmatprep.mubr.msk.f32.mxu1 %vm20320_vm1, %v24387_v18  ;;  %18811 = vmatprep.mubr.msk.f32.mxu0 %vm20320_vm1, %v24387_v18 }
  0xdd   :  { %v20463_v19 = vpop.f32.mrb[0].mxu1  ;;  %v20465_v20 = vpop.f32.mrb[0].mxu0 }
  0xde   :  { %24506 = vst [vmem:[#allocation2_spill] sm:$0xff] %v20465_v20  ;;  %v20467_v21 = vpop.f32.mrb[1].mxu1  ;;  %v20469_v22 = vpop.f32.mrb[1].mxu0  ;;  %4604 = vrot.lane.b32.xlu0 %v20465_v20, %s20321_s3 }
  0xdf   :  { %24507 = vst [vmem:[#allocation3_spill] sm:$0xff] %v20469_v22  ;;  %v20473_v23 = vpop.f32.mrb[2].mxu1  ;;  %4448 = vrot.lane.b32.xlu1 %v20469_v22, %s20321_s3  ;;  %v20477_v24 = vpop.f32.mrb[2].mxu0 }
  0xe0   :  { %24508 = vst [vmem:[#allocation4_spill] sm:$0xff] %v20473_v23  ;;  %24509 = vst [vmem:[#allocation5_spill] sm:$0xff] %v20477_v24  ;;  %v20479_v25 = vpop.f32.mrb[3].mxu1  ;;  %v20481_v26 = vpop.f32.mrb[3].mxu0 }
  0xe1   :  { %24510 = vst [vmem:[#allocation6_spill] sm:$0xff] %v20481_v26 }
  0xe3   :  { %4682 = vrot.lane.b32.xlu1 %v20477_v24, %s20321_s3 }
  0xe5   :  { %v20485_v27 = vpop.f32.mrb[4].mxu1  ;;  %v20487_v28 = vpop.f32.mrb[4].mxu0 }
  0xe6   :  { %24511 = vst [vmem:[#allocation7_spill] sm:$0xff] %v20487_v28  ;;  %v20489_v29 = vpop.f32.mrb[5].mxu1  ;;  %4916 = vrot.lane.b32.xlu0 %v20487_v28, %s20321_s3  ;;  %v20493_v30 = vpop.f32.mrb[5].mxu0 }
  0xe7   :  { %24512 = vst [vmem:[#allocation8_spill] sm:$0xff] %v20493_v30  ;;  %v20495_v31 = vpop.f32.mrb[6].mxu1  ;;  %4526 = vrot.lane.b32.xlu1 %v20481_v26, %s20321_s3  ;;  %v20499_v32 = vpop.f32.mrb[6].mxu0 }
  0xe8   :  { %24513 = vst [vmem:[#allocation9_spill] sm:$0xff] %v20495_v31  ;;  %24514 = vst [vmem:[#allocation10_spill] sm:$0xff] %v20499_v32  ;;  %v20501_v33 = vpop.f32.mrb[7].mxu1  ;;  %v20503_v34 = vpop.f32.mrb[7].mxu0 }
  0xe9   :  { %24515 = vst [vmem:[#allocation11_spill] sm:$0xff] %v20501_v33  ;;  %24516 = vst [vmem:[#allocation12_spill] sm:$0xff] %v20503_v34 }
  0xea   :  { %4760 = vrot.lane.b32.xlu0 %v20493_v30, %s20321_s3 }
  0xeb   :  { %4994 = vrot.lane.b32.xlu1 %v20499_v32, %s20321_s3 }
  0xed   :  { %v20509_v35 = vpop.f32.mrb[8].mxu1  ;;  %v20511_v36 = vpop.f32.mrb[8].mxu0 }
  0xee   :  { %24517 = vst [vmem:[#allocation13_spill] sm:$0xff] %v20509_v35  ;;  %v20513_v37 = vpop.f32.mrb[9].mxu1  ;;  %v20515_v38 = vpop.f32.mrb[9].mxu0 }
  0xef   :  { %24518 = vst [vmem:[#allocation14_spill] sm:$0xff] %v20515_v38  ;;  %v20517_v39 = vpop.f32.mrb[10].mxu1  ;;  %4838 = vrot.lane.b32.xlu1 %v20503_v34, %s20321_s3  ;;  %v20521_v40 = vpop.f32.mrb[10].mxu0 }
  0xf0   :  { %24519 = vst [vmem:[#allocation15_spill] sm:$0xff] %v20517_v39  ;;  %24520 = vst [vmem:[#allocation16_spill] sm:$0xff] %v20521_v40  ;;  %v20523_v41 = vpop.f32.mrb[11].mxu1  ;;  %v20525_v42 = vpop.f32.mrb[11].mxu0 }
  0xf1   :  { %24521 = vst [vmem:[#allocation17_spill] sm:$0xff] %v20523_v41  ;;  %24522 = vst [vmem:[#allocation18_spill] sm:$0xff] %v20525_v42 }
  0xf5   :  { %v20527_v43 = vpop.f32.mrb[12].mxu1  ;;  %v20745_v3 = vpop.f32.mrb[12].mxu0 }
  0xf6   :  { %24523 = vst [vmem:[#allocation19_spill] sm:$0xff] %v20527_v43  ;;  %v20529_v44 = vpop.f32.mrb[13].mxu1  ;;  %4606 = vrot.lane.b32.xlu0 %v20527_v43, %s20321_s3  ;;  %24541 = vst [vmem:[#allocation37_spill] sm:$0xff] %v20745_v3  ;;  %v20765_v4 = vpop.f32.mrb[13].mxu0 }
  0xf7   :  { %24524 = vst [vmem:[#allocation20_spill] sm:$0xff] %v20529_v44  ;;  %v20533_v45 = vpop.f32.mrb[14].mxu1  ;;  %18750 = vmatpush3.xpose.msk.msra.mxu1 %vm583_vm2, %v20529_v44  ;;  %24542 = vst [vmem:[#allocation38_spill] sm:$0xff] %v20765_v4  ;;  %v20767_v5 = vpop.f32.mrb[14].mxu0 }
  0xf8   :  { %24525 = vst [vmem:[#allocation21_spill] sm:$0xff] %v20533_v45  ;;  %v20537_v46 = vpop.f32.mrb[15].mxu1  ;;  %4684 = vrot.lane.b32.xlu1 %v20533_v45, %s20321_s3  ;;  %18754 = vmatprep.subr.mxu1 %v24387_v18  ;;  %24543 = vst [vmem:[#allocation39_spill] sm:$0xff] %v20767_v5  ;;  %v20770_v6 = vpop.f32.mrb[15].mxu0 }
  0xf9   :  { %24526 = vst [vmem:[#allocation22_spill] sm:$0xff] %v20537_v46  ;;  %24544 = vst [vmem:[#allocation40_spill] sm:$0xff] %v20770_v6 }
  0xfa   :  { %18752 = vmatmul.mubr.msk.f32.vlgmr.msra.gmra.mrb[36].mxu1 %vm583_vm2, %v20469_v22  ;;  %4450 = vrot.lane.b32.xlu0 %v20529_v44, %s20321_s3 }
  0xfb   :  { %18755 = vmatpush3.xpose.msk.msra.mxu1 %vm583_vm2, %v20537_v46  ;;  %18756 = vmatprep.mubr.msk.f32.mxu1 %vm20320_vm1, %v24387_v18 }
  0xfc   :  { %4528 = vrot.lane.b32.xlu1 %v20537_v46, %s20321_s3  ;;  %18759 = vmatprep.subr.mxu1 %v24387_v18 }
  0xfd   :  { %v20553_v47 = vpop.f32.mrb[16].mxu1  ;;  %v20773_v7 = vpop.f32.mrb[16].mxu0 }
  0xfe   :  { %24527 = vst [vmem:[#allocation23_spill] sm:$0xff] %v20553_v47  ;;  %18757 = vmatmul.mubr.msk.f32.vlgmr.msra.gmra.mrb[38].mxu1 %vm583_vm2, %v20481_v26  ;;  %v20557_v48 = vpop.f32.mrb[17].mxu1  ;;  %4918 = vrot.lane.b32.xlu0 %v20553_v47, %s20321_s3  ;;  %24545 = vst [vmem:[#allocation41_spill] sm:$0xff] %v20773_v7  ;;  %v20776_v8 = vpop.f32.mrb[17].mxu0 }
  0xff   :  { %24528 = vst [vmem:[#allocation24_spill] sm:$0xff] %v20557_v48  ;;  %18760 = vmatpush3.xpose.msk.msra.mxu1 %vm583_vm2, %v20527_v43  ;;  %18761 = vmatprep.mubr.msk.f32.mxu1 %vm20320_vm1, %v24387_v18  ;;  %v20565_v49 = vpop.f32.mrb[18].mxu1  ;;  %24546 = vst [vmem:[#allocation42_spill] sm:$0xff] %v20776_v8  ;;  %v20779_v9 = vpop.f32.mrb[18].mxu0 }
 0x100   :  { %24529 = vst [vmem:[#allocation25_spill] sm:$0xff] %v20565_v49  ;;  %18764 = vmatprep.subr.mxu1 %v24387_v18  ;;  %v20568_v50 = vpop.f32.mrb[19].mxu1  ;;  %4996 = vrot.lane.b32.xlu1 %v20565_v49, %s20321_s3  ;;  %24547 = vst [vmem:[#allocation43_spill] sm:$0xff] %v20779_v9  ;;  %v20781_v10 = vpop.f32.mrb[19].mxu0 }
 0x101   :  { %24530 = vst [vmem:[#allocation26_spill] sm:$0xff] %v20568_v50  ;;  %24548 = vst [vmem:[#allocation44_spill] sm:$0xff] %v20781_v10 }
 0x102   :  { %18762 = vmatmul.mubr.msk.f32.vlgmr.msra.gmra.mrb[40].mxu1 %vm583_vm2, %v20465_v20  ;;  %4762 = vrot.lane.b32.xlu0 %v20557_v48, %s20321_s3 }
 0x103   :  { %18765 = vmatpush3.xpose.msk.msra.mxu1 %vm583_vm2, %v20533_v45  ;;  %18766 = vmatprep.mubr.msk.f32.mxu1 %vm20320_vm1, %v24387_v18 }
 0x104   :  { %18769 = vmatprep.subr.mxu1 %v24387_v18  ;;  %4840 = vrot.lane.b32.xlu1 %v20568_v50, %s20321_s3 }
 0x105   :  { %v20583_v51 = vpop.f32.mrb[20].mxu1  ;;  %v20783_v11 = vpop.f32.mrb[20].mxu0 }
 0x106   :  { %24531 = vst [vmem:[#allocation27_spill] sm:$0xff] %v20583_v51  ;;  %18767 = vmatmul.mubr.msk.f32.vlgmr.msra.gmra.mrb[42].mxu1 %vm583_vm2, %v20477_v24  ;;  %v20587_v52 = vpop.f32.mrb[21].mxu1  ;;  %24549 = vst [vmem:[#allocation45_spill] sm:$0xff] %v20783_v11  ;;  %v20785_v12 = vpop.f32.mrb[21].mxu0 }
 0x107   :  { %24532 = vst [vmem:[#allocation28_spill] sm:$0xff] %v20587_v52  ;;  %18770 = vmatpush3.xpose.msk.msra.mxu1 %vm583_vm2, %v20557_v48  ;;  %18771 = vmatprep.mubr.msk.f32.mxu1 %vm20320_vm1, %v24387_v18  ;;  %v20593_v53 = vpop.f32.mrb[22].mxu1  ;;  %24550 = vst [vmem:[#allocation46_spill] sm:$0xff] %v20785_v12  ;;  %v20787_v13 = vpop.f32.mrb[22].mxu0 }
 0x108   :  { %24533 = vst [vmem:[#allocation29_spill] sm:$0xff] %v20593_v53  ;;  %18774 = vmatprep.subr.mxu1 %v24387_v18  ;;  %v20596_v54 = vpop.f32.mrb[23].mxu1  ;;  %5074 = vrot.lane.b32.xlu0 %v20587_v52, %s20321_s3  ;;  %24551 = vst [vmem:[#allocation47_spill] sm:$0xff] %v20787_v13  ;;  %v20789_v14 = vpop.f32.mrb[23].mxu0 }
 0x109   :  { %24534 = vst [vmem:[#allocation30_spill] sm:$0xff] %v20596_v54  ;;  %5152 = vrot.lane.b32.xlu1 %v20596_v54, %s20321_s3  ;;  %24552 = vst [vmem:[#allocation48_spill] sm:$0xff] %v20789_v14 }
 0x10a   :  { %18772 = vmatmul.mubr.msk.f32.vlgmr.msra.gmra.mrb[44].mxu1 %vm583_vm2, %v20493_v30 }
 0x10b   :  { %18775 = vmatpush3.xpose.msk.msra.mxu1 %vm583_vm2, %v20568_v50  ;;  %18776 = vmatprep.mubr.msk.f32.mxu1 %vm20320_vm1, %v24387_v18 }
 0x10c   :  { %18779 = vmatprep.subr.mxu1 %v24387_v18 }
 0x10d   :  { %v20609_v55 = vpop.f32.mrb[24].mxu1  ;;  %v20791_v15 = vpop.f32.mrb[24].mxu0 }
 0x10e   :  { %v20611_v56 = vpop.f32.mrb[25].mxu1  ;;  %18777 = vmatmul.mubr.msk.f32.vlgmr.msra.gmra.mrb[46].mxu1 %vm583_vm2, %v20503_v34  ;;  %24553 = vst [vmem:[#allocation49_spill] sm:$0xff] %v20791_v15  ;;  %v20793_v16 = vpop.f32.mrb[25].mxu0 }
 0x10f   :  { %18780 = vmatpush3.xpose.msk.msra.mxu1 %vm583_vm2, %v20553_v47  ;;  %18810 = vmatpush3.xpose.msk.msra.mxu0 %vm583_vm2, %v20611_v56  ;;  %v20619_v57 = vpop.f32.mrb[26].mxu1  ;;  %24554 = vst [vmem:[#allocation50_spill] sm:$0xff] %v20793_v16  ;;  %v20795_v17 = vpop.f32.mrb[26].mxu0 }
 0x110   :  { %24535 = vst [vmem:[#allocation31_spill] sm:$0xff] %v20619_v57  ;;  %18781 = vmatprep.mubr.msk.f32.mxu1 %vm20320_vm1, %v24387_v18  ;;  %18784 = vmatprep.subr.mxu1 %v24387_v18  ;;  %v20624_v58 = vpop.f32.mrb[27].mxu1  ;;  %24555 = vst [vmem:[#allocation51_spill] sm:$0xff] %v20795_v17 }
 0x111   :  { %18819 = vmatprep.subr.mxu0 %v24387_v18 }
 0x112   :  { %18782 = vmatmul.mubr.msk.f32.vlgmr.msra.gmra.mrb[48].mxu1 %vm583_vm2, %v20487_v28  ;;  %18812 = vmatmul.mubr.msk.f32.vlgmr.msra.gmra.mrb[36].mxu0 %vm583_vm2, %v20467_v21 }
 0x113   :  { %18785 = vmatpush3.xpose.msk.msra.mxu1 %vm583_vm2, %v20565_v49  ;;  %18820 = vmatpush3.xpose.msk.msra.mxu0 %vm583_vm2, %v20609_v55 }
 0x114   :  { %18786 = vmatprep.mubr.msk.f32.mxu1 %vm20320_vm1, %v24387_v18  ;;  %18821 = vmatprep.mubr.msk.f32.mxu0 %vm20320_vm1, %v24387_v18 }
 0x115   :  { %v20639_v59 = vpop.f32.mrb[28].mxu1  ;;  %18789 = vmatprep.subr.mxu1 %v24387_v18  ;;  %18829 = vmatprep.subr.mxu0 %v24387_v18 }
 0x116   :  { %v20643_v60 = vpop.f32.mrb[29].mxu1  ;;  %18787 = vmatmul.mubr.msk.f32.vlgmr.msra.gmra.mrb[50].mxu1 %vm583_vm2, %v20499_v32  ;;  %18822 = vmatmul.mubr.msk.f32.vlgmr.msra.gmra.mrb[38].mxu0 %vm583_vm2, %v20463_v19 }
 0x117   :  { %18790 = vmatpush3.xpose.msk.msra.mxu1 %vm583_vm2, %v20587_v52  ;;  %18830 = vmatpush3.xpose.msk.msra.mxu0 %vm583_vm2, %v20643_v60  ;;  %v20653_v61 = vpop.f32.mrb[30].mxu1 }
 0x118   :  { %24536 = vst [vmem:[#allocation32_spill] sm:$0xff] %v20653_v61  ;;  %18791 = vmatprep.mubr.msk.f32.mxu1 %vm20320_vm1, %v24387_v18  ;;  %18831 = vmatprep.mubr.msk.f32.mxu0 %vm20320_vm1, %v24387_v18  ;;  %v20659_v62 = vpop.f32.mrb[31].mxu1 }
 0x119   :  { %24537 = vst [vmem:[#allocation33_spill] sm:$0xff] %v20659_v62  ;;  %18794 = vmatprep.subr.mxu1 %v24387_v18  ;;  %18839 = vmatprep.subr.mxu0 %v24387_v18 }
 0x11a   :  { %18792 = vmatmul.mubr.msk.f32.vlgmr.msra.gmra.mrb[52].mxu1 %vm583_vm2, %v20515_v38  ;;  %18832 = vmatmul.mubr.msk.f32.vlgmr.msra.gmra.mrb[40].mxu0 %vm583_vm2, %v20489_v29 }
 0x11b   :  { %18795 = vmatpush3.xpose.msk.msra.mxu1 %vm583_vm2, %v20596_v54  ;;  %18840 = vmatpush3.xpose.msk.msra.mxu0 %vm583_vm2, %v20639_v59  ;;  %v20797_v54 = vpop.f32.mrb[27].mxu0 }
 0x11c   :  { %18796 = vmatprep.mubr.msk.f32.mxu1 %vm20320_vm1, %v24387_v18  ;;  %18841 = vmatprep.mubr.msk.f32.mxu0 %vm20320_vm1, %v24387_v18  ;;  %24556 = vst [vmem:[#allocation52_spill] sm:$0xff] %v20797_v54 }
 0x11d   :  { %v20675_v63 = vpop.f32.mrb[32].mxu1  ;;  %18799 = vmatprep.subr.mxu1 %v24387_v18  ;;  %18849 = vmatprep.subr.mxu0 %v24387_v18 }
 0x11e   :  { %24538 = vst [vmem:[#allocation34_spill] sm:$0xff] %v20675_v63  ;;  %v20679_v0 = vpop.f32.mrb[33].mxu1  ;;  %18797 = vmatmul.mubr.msk.f32.vlgmr.msra.gmra.mrb[54].mxu1 %vm583_vm2, %v20525_v42  ;;  %18842 = vmatmul.mubr.msk.f32.vlgmr.msra.gmra.mrb[42].mxu0 %vm583_vm2, %v20485_v27 }
 0x11f   :  { %18800 = vmatpush3.xpose.msk.msra.mxu1 %vm583_vm2, %v20583_v51  ;;  %18850 = vmatpush3.xpose.msk.msra.mxu0 %vm583_vm2, %v20679_v0  ;;  %v20689_v1 = vpop.f32.mrb[34].mxu1 }
 0x120   :  { %24539 = vst [vmem:[#allocation35_spill] sm:$0xff] %v20689_v1  ;;  %18801 = vmatprep.mubr.msk.f32.mxu1 %vm20320_vm1, %v24387_v18  ;;  %18851 = vmatprep.mubr.msk.f32.mxu0 %vm20320_vm1, %v24387_v18  ;;  %v20695_v2 = vpop.f32.mrb[35].mxu1 }
 0x121   :  { %24540 = vst [vmem:[#allocation36_spill] sm:$0xff] %v20695_v2  ;;  %18804 = vmatprep.subr.mxu1 %v24387_v18  ;;  %18859 = vmatprep.subr.mxu0 %v24387_v18 }
 0x122   :  { %18802 = vmatmul.mubr.msk.f32.vlgmr.msra.gmra.mrb[56].mxu1 %vm583_vm2, %v20511_v36  ;;  %18852 = vmatmul.mubr.msk.f32.vlgmr.msra.gmra.mrb[44].mxu0 %vm583_vm2, %v20513_v37 }
 0x123   :  { %18805 = vmatpush3.xpose.msk.msra.mxu1 %vm583_vm2, %v20593_v53  ;;  %18860 = vmatpush3.xpose.msk.msra.mxu0 %vm583_vm2, %v20675_v63 }
 0x124   :  { %18806 = vmatprep.mubr.msk.f32.mxu1 %vm20320_vm1, %v24387_v18  ;;  %18861 = vmatprep.mubr.msk.f32.mxu0 %vm20320_vm1, %v24387_v18 }
 0x125   :  { %18814 = vmatprep.subr.mxu1 %v24387_v18  ;;  %18869 = vmatprep.subr.mxu0 %v24387_v18 }
 0x126   :  { %18807 = vmatmul.mubr.msk.f32.vlgmr.msra.gmra.mrb[58].mxu1 %vm583_vm2, %v20521_v40  ;;  %18862 = vmatmul.mubr.msk.f32.vlgmr.msra.gmra.mrb[46].mxu0 %vm583_vm2, %v20509_v35 }
 0x127   :  { %18815 = vmatpush3.xpose.msk.msra.mxu1 %vm583_vm2, %v20624_v58  ;;  %18816 = vmatprep.mubr.msk.f32.mxu1 %vm20320_vm1, %v24387_v18 }
 0x128   :  { %18824 = vmatprep.subr.mxu1 %v24387_v18  ;;  %18871 = vmatprep.mubr.msk.f32.mxu0 %vm20320_vm1, %v24387_v18 }
 0x129   :  { %18870 = vmatpush3.msra.mxu0 %v20765_v4 }
 0x12a   :  { %18817 = vmatmul.mubr.msk.f32.vlgmr.msra.gmra.mrb[60].mxu1 %vm583_vm2, %v20479_v25  ;;  %18879 = vmatprep.subr.mxu0 %v24387_v18 }
 0x12b   :  { %18825 = vmatpush3.xpose.msk.msra.mxu1 %vm583_vm2, %v20619_v57  ;;  %18826 = vmatprep.mubr.msk.f32.mxu1 %vm20320_vm1, %v24387_v18 }
 0x12c   :  { %18834 = vmatprep.subr.mxu1 %v24387_v18 }
 0x12e   :  { %18827 = vmatmul.mubr.msk.f32.vlgmr.msra.gmra.mrb[62].mxu1 %vm583_vm2, %v20473_v23 }
 0x12f   :  { %18835 = vmatpush3.xpose.msk.msra.mxu1 %vm583_vm2, %v20659_v62  ;;  %18836 = vmatprep.mubr.msk.f32.mxu1 %vm20320_vm1, %v24387_v18 }
 0x130   :  { %18844 = vmatprep.subr.mxu1 %v24387_v18 }
 0x132   :  { %18837 = vmatmul.mubr.msk.f32.vlgmr.msra.gmra.mrb[64].mxu1 %vm583_vm2, %v20501_v33 }
 0x133   :  { %18845 = vmatpush3.xpose.msk.msra.mxu1 %vm583_vm2, %v20653_v61  ;;  %18846 = vmatprep.mubr.msk.f32.mxu1 %vm20320_vm1, %v24387_v18 }
 0x134   :  { %18854 = vmatprep.subr.mxu1 %v24387_v18 }
 0x136   :  { %18847 = vmatmul.mubr.msk.f32.vlgmr.msra.gmra.mrb[66].mxu1 %vm583_vm2, %v20495_v31 }
 0x137   :  { %18855 = vmatpush3.xpose.msk.msra.mxu1 %vm583_vm2, %v20695_v2  ;;  %18856 = vmatprep.mubr.msk.f32.mxu1 %vm20320_vm1, %v24387_v18 }
 0x138   :  { %18864 = vmatprep.subr.mxu1 %v24387_v18 }
 0x13a   :  { %18857 = vmatmul.mubr.msk.f32.vlgmr.msra.gmra.mrb[68].mxu1 %vm583_vm2, %v20523_v41 }
 0x13b   :  { %18865 = vmatpush3.xpose.msk.msra.mxu1 %vm583_vm2, %v20689_v1  ;;  %18866 = vmatprep.mubr.msk.f32.mxu1 %vm20320_vm1, %v24387_v18 }
 0x13c   :  { %18874 = vmatprep.subr.mxu1 %v24387_v18 }
 0x13e   :  { %18867 = vmatmul.mubr.msk.f32.vlgmr.msra.gmra.mrb[70].mxu1 %vm583_vm2, %v20517_v39 }
 0x13f   :  { %18876 = vmatprep.mubr.msk.f32.mxu1 %vm20320_vm1, %v24387_v18  ;;  %18875 = vmatpush3.msra.mxu1 %v20770_v6 }
 0x140   :  { %18884 = vmatprep.subr.mxu1 %v24387_v18  ;;  %v20799_v18 = vpop.f32.mrb[28].mxu0 }
 0x141   :  { %24557 = vst [vmem:[#allocation53_spill] sm:$0xff] %v20799_v18  ;;  %v20801_v32 = vpop.f32.mrb[29].mxu0 }
 0x142   :  { %24558 = vst [vmem:[#allocation54_spill] sm:$0xff] %v20801_v32  ;;  %v20803_v49 = vpop.f32.mrb[30].mxu0 }
 0x143   :  { %24559 = vst [vmem:[#allocation55_spill] sm:$0xff] %v20803_v49  ;;  %v20805_v34 = vpop.f32.mrb[31].mxu0 }
 0x144   :  { %24560 = vst [vmem:[#allocation56_spill] sm:$0xff] %v20805_v34  ;;  %v20807_v50 = vpop.f32.mrb[32].mxu0 }
 0x145   :  { %24561 = vst [vmem:[#allocation57_spill] sm:$0xff] %v20807_v50  ;;  %v20809_v24 = vpop.f32.mrb[33].mxu0 }
 0x146   :  { %24562 = vst [vmem:[#allocation58_spill] sm:$0xff] %v20809_v24  ;;  %v20811_v45 = vpop.f32.mrb[34].mxu0 }
 0x147   :  { %24563 = vst [vmem:[#allocation59_spill] sm:$0xff] %v20811_v45  ;;  %v20813_v26 = vpop.f32.mrb[35].mxu0 }
 0x148   :  { %24564 = vst [vmem:[#allocation60_spill] sm:$0xff] %v20813_v26 }
 0x1cd   :  { %v656_v46 = vpop.f32.mrb[36].mxu1 }
 0x1ce   :  { %v20815_v17 = vmul.f32 0.35355338, %v656_v46  ;;  %v18753_v52 = vpop.f32.mrb[37].mxu1 }
 0x1d0   :  { %v2432_v28 = vsel %vm583_vm2, %v20815_v17, -inf }
 0x1d1   :  { %v732_v47 = vpop.f32.mrb[38].mxu1  ;;  %2433 = vmax.xlane.f32.xlu0 %v2432_v28 }
 0x1d2   :  { %v20819_v49 = vmul.f32 0.35355338, %v732_v47  ;;  %v18758_v34 = vpop.f32.mrb[39].mxu1 }
 0x1d4   :  { %v2435_v54 = vsel %vm583_vm2, %v20819_v49, -inf }
 0x1d5   :  { %v808_v30 = vpop.f32.mrb[40].mxu1  ;;  %2436 = vmax.xlane.f32.xlu0 %v2435_v54 }
 0x1d6   :  { %v20823_v45 = vmul.f32 0.35355338, %v808_v30  ;;  %v18763_v26 = vpop.f32.mrb[41].mxu1 }
 0x1d8   :  { %v2438_v46 = vsel %vm583_vm2, %v20823_v45, -inf }
 0x1d9   :  { %v884_v52 = vpop.f32.mrb[42].mxu1  ;;  %2439 = vmax.xlane.f32.xlu1 %v2438_v46 }
 0x1da   :  { %v20827_v48 = vmul.f32 0.35355338, %v884_v52  ;;  %v18768_v20 = vpop.f32.mrb[43].mxu1 }
 0x1dc   :  { %v2441_v28 = vsel %vm583_vm2, %v20827_v48, -inf }
 0x1dd   :  { %v960_v34 = vpop.f32.mrb[44].mxu1  ;;  %2442 = vmax.xlane.f32.xlu1 %v2441_v28 }
 0x1de   :  { %v20831_v47 = vmul.f32 0.35355338, %v960_v34  ;;  %v18773_v43 = vpop.f32.mrb[45].mxu1 }
 0x1e0   :  { %v2444_v30 = vsel %vm583_vm2, %v20831_v47, -inf }
 0x1e1   :  { %2445 = vmax.xlane.f32.xlu0 %v2444_v30  ;;  %v1036_v26 = vpop.f32.mrb[46].mxu1 }
 0x1e2   :  { %v20835_v54 = vmul.f32 0.35355338, %v1036_v26  ;;  %v18778_v22 = vpop.f32.mrb[47].mxu1 }
 0x1e4   :  { %v2447_v46 = vsel %vm583_vm2, %v20835_v54, -inf }
 0x1e5   :  { %2448 = vmax.xlane.f32.xlu1 %v2447_v46  ;;  %v1112_v20 = vpop.f32.mrb[48].mxu1  ;;  %v1568_v52 = vpop.f32.mrb[36].mxu0 }
 0x1e6   :  { %v20839_v6 = vmul.f32 0.35355338, %v1112_v20  ;;  %v18813_v28 = vpop.f32.mrb[37].mxu0  ;;  %v18783_v34 = vpop.f32.mrb[49].mxu1  ;;  %v20841_v44 = vmul.f32 0.35355338, %v1568_v52 }
 0x1e8   :  { %v2450_v43 = vsel %vm583_vm2, %v20839_v6, -inf  ;;  %v2468_v20 = vsel %vm583_vm2, %v20841_v44, -inf }
 0x1e9   :  { %2451 = vmax.xlane.f32.xlu0 %v2450_v43  ;;  %v1188_v30 = vpop.f32.mrb[50].mxu1  ;;  %v1720_v26 = vpop.f32.mrb[38].mxu0 }
 0x1ea   :  { %v20845_v39 = vmul.f32 0.35355338, %v1188_v30  ;;  %v18823_v22 = vpop.f32.mrb[39].mxu0  ;;  %v18788_v50 = vpop.f32.mrb[51].mxu1  ;;  %v20847_v1 = vmul.f32 0.35355338, %v1720_v26 }
 0x1ec   :  { %v2453_v46 = vsel %vm583_vm2, %v20845_v39, -inf  ;;  %v2474_v30 = vsel %vm583_vm2, %v20847_v1, -inf }
 0x1ed   :  { %2454 = vmax.xlane.f32.xlu1 %v2453_v46  ;;  %2469 = vmax.xlane.f32.xlu0 %v2468_v20  ;;  %v1872_v52 = vpop.f32.mrb[40].mxu0  ;;  %v1264_v28 = vpop.f32.mrb[52].mxu1 }
 0x1ee   :  { %v18833_v34 = vpop.f32.mrb[41].mxu0  ;;  %v18793_v43 = vpop.f32.mrb[53].mxu1  ;;  %v20853_v24 = vmul.f32 0.35355338, %v1264_v28  ;;  %v20859_v2 = vmul.f32 0.35355338, %v1872_v52 }
 0x1f0   :  { %v2456_v20 = vsel %vm583_vm2, %v20853_v24, -inf }
 0x1f1   :  { %v1340_v50 = vpop.f32.mrb[54].mxu1  ;;  %2475 = vmax.xlane.f32.xlu0 %v2474_v30  ;;  %v2024_v26 = vpop.f32.mrb[42].mxu0 }
 0x1f2   :  { %v20857_v22 = vmul.f32 0.35355338, %v1340_v50  ;;  %v18843_v41 = vpop.f32.mrb[43].mxu0  ;;  %v18798_v18 = vpop.f32.mrb[55].mxu1  ;;  %v20865_v30 = vmul.f32 0.35355338, %v2024_v26 }
 0x1f3   :  { %v2480_v41 = vsel %vm583_vm2, %v20859_v2, -inf }
 0x1f4   :  { %v2459_v46 = vsel %vm583_vm2, %v20857_v22, -inf }
 0x1f5   :  { %2460 = vmax.xlane.f32.xlu1 %v2459_v46  ;;  %2457 = vmax.xlane.f32.xlu0 %v2456_v20  ;;  %v2176_v28 = vpop.f32.mrb[44].mxu0  ;;  %v1416_v34 = vpop.f32.mrb[56].mxu1  ;;  %v2486_v46 = vsel %vm583_vm2, %v20865_v30, -inf }
 0x1f6   :  { %v18853_v43 = vpop.f32.mrb[45].mxu0  ;;  %v18803_v15 = vpop.f32.mrb[57].mxu1  ;;  %v20869_v31 = vmul.f32 0.35355338, %v1416_v34 }
 0x1f8   :  { %v2462_v15 = vsel %vm583_vm2, %v20869_v31, -inf }
 0x1f9   :  { %2481 = vmax.xlane.f32.xlu0 %v2480_v41  ;;  %v2328_v18 = vpop.f32.mrb[46].mxu0  ;;  %v1492_v52 = vpop.f32.mrb[58].mxu1 }
 0x1fa   :  { %v18863_v50 = vpop.f32.mrb[47].mxu0  ;;  %v18808_v32 = vpop.f32.mrb[59].mxu1 }
 0x1fd   :  { %v1644_v20 = vpop.f32.mrb[60].mxu1  ;;  %2487 = vmax.xlane.f32.xlu0 %v2486_v46 }
 0x1fe   :  { %v18818_v16 = vpop.f32.mrb[61].mxu1  ;;  %v20881_v46 = vmul.f32 0.35355338, %v1644_v20  ;;  %v20897_v20 = vpop.permute.xlu0 %4604 }
 0x1ff   :  { %v20879_v16 = vmul.f32 0.35355338, %v1492_v52  ;;  %24566 = vst [vmem:[#allocation62_spill] sm:$0xff] %v20897_v20 }
 0x201   :  { %v1796_v26 = vpop.f32.mrb[62].mxu1  ;;  %2463 = vmax.xlane.f32.xlu0 %v2462_v15  ;;  %v2465_v15 = vsel %vm583_vm2, %v20879_v16, -inf }
 0x202   :  { %v18828_v43 = vpop.f32.mrb[63].mxu1 }
 0x203   :  { %v20885_v43 = vmul.f32 0.35355338, %v1796_v26 }
 0x205   :  { %v1948_v61 = vpop.f32.mrb[64].mxu1  ;;  %v2477_v52 = vsel %vm583_vm2, %v20885_v43, -inf }
 0x206   :  { %5150 = vrot.lane.b32.xlu1 %v20525_v42, %s20321_s3  ;;  %v18838_v41 = vpop.f32.mrb[65].mxu1  ;;  %v20899_v42 = vmul.f32 0.35355338, %v2328_v18 }
 0x207   :  { %v2471_v41 = vsel %vm583_vm2, %v20881_v46, -inf }
 0x208   :  { %v2498_v18 = vsel %vm583_vm2, %v20899_v42, -inf }
 0x209   :  { %v2100_v32 = vpop.f32.mrb[66].mxu1 }
 0x20a   :  { %v18848_v34 = vpop.f32.mrb[67].mxu1  ;;  %v20901_v26 = vmul.f32 0.35355338, %v2100_v32  ;;  %v20915_v32 = vpop.permute.xlu0 %4916 }
 0x20b   :  { %v20893_v34 = vmul.f32 0.35355338, %v1948_v61  ;;  %24568 = vst [vmem:[#allocation64_spill] sm:$0xff] %v20915_v32 }
 0x20d   :  { %v2252_v50 = vpop.f32.mrb[68].mxu1 }
 0x20e   :  { %v18858_v33 = vpop.f32.mrb[69].mxu1  ;;  %v20909_v61 = vmul.f32 0.35355338, %v2252_v50  ;;  %v20923_v50 = vpop.permute.xlu0 %4760 }
 0x20f   :  { %v20889_v33 = vpop.permute.xlu1 %4448  ;;  %24570 = vst [vmem:[#allocation66_spill] sm:$0xff] %v20923_v50 }
 0x210   :  { %24565 = vst [vmem:[#allocation61_spill] sm:$0xff] %v20889_v33 }
 0x211   :  { %v2404_v62 = vpop.f32.mrb[70].mxu1 }
 0x212   :  { %v18868_v11 = vpop.f32.mrb[71].mxu1  ;;  %v20919_v33 = vmul.f32 0.35355338, %v2404_v62 }
 0x213   :  { %v20891_v11 = vmul.f32 0.35355338, %v2176_v28  ;;  %v20907_v28 = vpop.permute.xlu1 %4682 }
 0x214   :  { %24567 = vst [vmem:[#allocation63_spill] sm:$0xff] %v20907_v28 }
 0x217   :  { %5072 = vrot.lane.b32.xlu0 %v20515_v38, %s20321_s3  ;;  %v20917_v20 = vpop.permute.xlu1 %4526  ;;  %v20929_v38 = vpop.permute.xlu0 %4606 }
 0x218   :  { %24569 = vst [vmem:[#allocation65_spill] sm:$0xff] %v20917_v20  ;;  %24572 = vst [vmem:[#allocation68_spill] sm:$0xff] %v20929_v38 }
 0x21b   :  { %v20927_v28 = vpop.permute.xlu1 %4994 }
 0x21c   :  { %24571 = vst [vmem:[#allocation67_spill] sm:$0xff] %v20927_v28 }
 0x22a   :  { %2466 = vmax.xlane.f32.xlu1 %v2465_v15  ;;  %v2483_v15 = vsel %vm583_vm2, %v20893_v34, -inf }
 0x22e   :  { %2472 = vmax.xlane.f32.xlu1 %v2471_v41  ;;  %v2492_v41 = vsel %vm583_vm2, %v20891_v11, -inf }
 0x232   :  { %2478 = vmax.xlane.f32.xlu1 %v2477_v52  ;;  %v2489_v52 = vsel %vm583_vm2, %v20901_v26, -inf }
 0x236   :  { %2484 = vmax.xlane.f32.xlu1 %v2483_v15  ;;  %2493 = vmax.xlane.f32.xlu0 %v2492_v41  ;;  %v2495_v15 = vsel %vm583_vm2, %v20909_v61, -inf  ;;  %v2501_v41 = vsel %vm583_vm2, %v20919_v33, -inf }
 0x23a   :  { %2490 = vmax.xlane.f32.xlu1 %v2489_v52  ;;  %2499 = vmax.xlane.f32.xlu0 %v2498_v18  ;;  %v20931_v52 = vpop.permute.xlu1 %4838  ;;  %v20933_v18 = vpop.permute.xlu0 %4450 }
 0x23b   :  { %24573 = vst [vmem:[#allocation69_spill] sm:$0xff] %v20931_v52  ;;  %24574 = vst [vmem:[#allocation70_spill] sm:$0xff] %v20933_v18 }
 0x23e   :  { %2496 = vmax.xlane.f32.xlu1 %v2495_v15  ;;  %v20935_v62 = vpop.permute.xlu1 %4684  ;;  %v20937_v20 = vpop.permute.xlu0 %4918 }
 0x23f   :  { %24575 = vst [vmem:[#allocation71_spill] sm:$0xff] %v20935_v62  ;;  %24576 = vst [vmem:[#allocation72_spill] sm:$0xff] %v20937_v20 }
 0x242   :  { %2502 = vmax.xlane.f32.xlu1 %v2501_v41  ;;  %v20939_v32 = vpop.permute.xlu1 %4528  ;;  %v20941_v15 = vpop.permute.xlu0 %4762 }
 0x243   :  { %24577 = vst [vmem:[#allocation73_spill] sm:$0xff] %v20939_v32  ;;  %24578 = vst [vmem:[#allocation74_spill] sm:$0xff] %v20941_v15 }
 0x246   :  { %v20943_v50 = vpop.permute.xlu1 %4996  ;;  %v20945_v13 = vpop.permute.xlu0 %5074 }
 0x247   :  { %24579 = vst [vmem:[#allocation75_spill] sm:$0xff] %v20943_v50  ;;  %24580 = vst [vmem:[#allocation76_spill] sm:$0xff] %v20945_v13 }
 0x24a   :  { %v20947_v28 = vpop.permute.xlu1 %4840 }
 0x24b   :  { %24581 = vst [vmem:[#allocation77_spill] sm:$0xff] %v20947_v28 }
 0x24e   :  { %v20950_v23 = vpop.permute.xlu1 %5152 }
 0x25e   :  { %v2434_v41 = vpop.xlane.xlu0 %2433 }
 0x25f   :  { %v2504_v38 = vsub.f32 %v20815_v17, %v2434_v41 }
 0x261   :  { %v2528_v52 = vmul.f32 1.442695, %v2504_v38 }
 0x262   :  { %v2437_v18 = vpop.xlane.xlu0 %2436 }
 0x263   :  { %19791 = vpow2.f32 %v2528_v52  ;;  %v2505_v62 = vsub.f32 %v20819_v49, %v2437_v18 }
 0x265   :  { %v2530_v20 = vmul.f32 1.442695, %v2505_v62 }
 0x266   :  { %v2440_v32 = vpop.xlane.xlu1 %2439 }
 0x267   :  { %19793 = vpow2.f32 %v2530_v20  ;;  %v2506_v15 = vsub.f32 %v20823_v45, %v2440_v32 }
 0x269   :  { %v2532_v50 = vmul.f32 1.442695, %v2506_v15 }
 0x26a   :  { %v2443_v57 = vpop.xlane.xlu1 %2442 }
 0x26b   :  { %19795 = vpow2.f32 %v2532_v50  ;;  %v2507_v28 = vsub.f32 %v20827_v48, %v2443_v57 }
 0x26d   :  { %v20955_v13 = vpop.eup %19791  ;;  %v2534_v17 = vmul.f32 1.442695, %v2507_v28 }
 0x26e   :  { %v2446_v38 = vpop.xlane.xlu0 %2445  ;;  %v2576_v41 = vsel %vm583_vm2, %v20955_v13, 0.0 }
 0x26f   :  { %19797 = vpow2.f32 %v2534_v17  ;;  %v2508_v49 = vsub.f32 %v20831_v47, %v2446_v38  ;;  %2577 = vadd.xlane.f32.xlu0 %v2576_v41 }
 0x271   :  { %v20960_v52 = vpop.eup %19793  ;;  %v2536_v20 = vmul.f32 1.442695, %v2508_v49 }
 0x272   :  { %v2449_v45 = vpop.xlane.xlu1 %2448  ;;  %v2579_v32 = vsel %vm583_vm2, %v20960_v52, 0.0 }
 0x273   :  { %19799 = vpow2.f32 %v2536_v20  ;;  %v2509_v48 = vsub.f32 %v20835_v54, %v2449_v45  ;;  %2580 = vadd.xlane.f32.xlu1 %v2579_v32 }
 0x275   :  { %v20965_v57 = vpop.eup %19795  ;;  %v2538_v28 = vmul.f32 1.442695, %v2509_v48 }
 0x276   :  { %v2452_v50 = vpop.xlane.xlu0 %2451  ;;  %v2582_v18 = vsel %vm583_vm2, %v20965_v57, 0.0 }
 0x277   :  { %19801 = vpow2.f32 %v2538_v28  ;;  %v2510_v47 = vsub.f32 %v20839_v6, %v2452_v50  ;;  %2583 = vadd.xlane.f32.xlu0 %v2582_v18 }
 0x279   :  { %v20970_v62 = vpop.eup %19797  ;;  %v2540_v15 = vmul.f32 1.442695, %v2510_v47 }
 0x27a   :  { %v2455_v17 = vpop.xlane.xlu1 %2454  ;;  %v2470_v38 = vpop.xlane.xlu0 %2469  ;;  %v2585_v54 = vsel %vm583_vm2, %v20970_v62, 0.0 }
 0x27b   :  { %19803 = vpow2.f32 %v2540_v15  ;;  %v2511_v41 = vsub.f32 %v20845_v39, %v2455_v17  ;;  %v2516_v49 = vsub.f32 %v20841_v44, %v2470_v38  ;;  %2586 = vadd.xlane.f32.xlu1 %v2585_v54 }
 0x27d   :  { %v20976_v20 = vpop.eup %19799  ;;  %v2542_v45 = vmul.f32 1.442695, %v2511_v41  ;;  %v2552_v32 = vmul.f32 1.442695, %v2516_v49 }
 0x27e   :  { %v2476_v6 = vpop.xlane.xlu0 %2475  ;;  %v2588_v48 = vsel %vm583_vm2, %v20976_v20, 0.0 }
 0x27f   :  { %19805 = vpow2.f32 %v2542_v45  ;;  %v2518_v28 = vsub.f32 %v20847_v1, %v2476_v6  ;;  %2589 = vadd.xlane.f32.xlu0 %v2588_v48 }
 0x280   :  { %19807 = vpow2.f32 %v2552_v32 }
 0x281   :  { %v20981_v50 = vpop.eup %19801  ;;  %v2556_v18 = vmul.f32 1.442695, %v2518_v28 }
 0x282   :  { %v2461_v39 = vpop.xlane.xlu1 %2460  ;;  %v2458_v47 = vpop.xlane.xlu0 %2457  ;;  %v2591_v44 = vsel %vm583_vm2, %v20981_v50, 0.0 }
 0x283   :  { %19809 = vpow2.f32 %v2556_v18  ;;  %v2513_v15 = vsub.f32 %v20857_v22, %v2461_v39  ;;  %v2512_v17 = vsub.f32 %v20853_v24, %v2458_v47  ;;  %2592 = vadd.xlane.f32.xlu1 %v2591_v44 }
 0x285   :  { %v20987_v38 = vpop.eup %19803  ;;  %v2546_v54 = vmul.f32 1.442695, %v2513_v15  ;;  %v2544_v1 = vmul.f32 1.442695, %v2512_v17 }
 0x286   :  { %v2482_v41 = vpop.xlane.xlu0 %2481  ;;  %v2594_v49 = vsel %vm583_vm2, %v20987_v38, 0.0 }
 0x287   :  { %19811 = vpow2.f32 %v2546_v54  ;;  %v2520_v45 = vsub.f32 %v20859_v2, %v2482_v41  ;;  %2595 = vadd.xlane.f32.xlu0 %v2594_v49 }
 0x288   :  { %19813 = vpow2.f32 %v2544_v1 }
 0x289   :  { %v20992_v32 = vpop.eup %19805  ;;  %v2560_v6 = vmul.f32 1.442695, %v2520_v45 }
 0x28a   :  { %v20994_v22 = vpop.eup %19807  ;;  %v2488_v24 = vpop.xlane.xlu0 %2487  ;;  %v2597_v48 = vsel %vm583_vm2, %v20992_v32, 0.0 }
 0x28b   :  { %19815 = vpow2.f32 %v2560_v6  ;;  %v2522_v28 = vsub.f32 %v20865_v30, %v2488_v24  ;;  %2598 = vadd.xlane.f32.xlu1 %v2597_v48  ;;  %v2612_v18 = vsel %vm583_vm2, %v20994_v22, 0.0 }
 0x28c   :  { %2613 = vadd.xlane.f32.xlu0 %v2612_v18 }
 0x28d   :  { %v21001_v2 = vpop.eup %19809  ;;  %v2564_v39 = vmul.f32 1.442695, %v2522_v28  ;;  %v21028_v28 = vpop.permute.xlu1 %5150 }
 0x28e   :  { %v2464_v47 = vpop.xlane.xlu0 %2463  ;;  %v2618_v44 = vsel %vm583_vm2, %v21001_v2, 0.0 }
 0x28f   :  { %19817 = vpow2.f32 %v2564_v39  ;;  %v2514_v15 = vsub.f32 %v20869_v31, %v2464_v47 }
 0x290   :  { %2619 = vadd.xlane.f32.xlu0 %v2618_v44 }
 0x291   :  { %v21006_v17 = vpop.eup %19811  ;;  %v2548_v54 = vmul.f32 1.442695, %v2514_v15 }
 0x292   :  { %v21008_v30 = vpop.eup %19813  ;;  %v2603_v1 = vsel %vm583_vm2, %v21006_v17, 0.0  ;;  %v21033_v44 = vpop.permute.xlu0 %5072 }
 0x293   :  { %19819 = vpow2.f32 %v2548_v54  ;;  %2604 = vadd.xlane.f32.xlu1 %v2603_v1  ;;  %v2600_v41 = vsel %vm583_vm2, %v21008_v30, 0.0 }
 0x294   :  { %2601 = vadd.xlane.f32.xlu0 %v2600_v41 }
 0x295   :  { %v21014_v49 = vpop.eup %19815 }
 0x296   :  { %v2624_v31 = vsel %vm583_vm2, %v21014_v49, 0.0 }
 0x298   :  { %2625 = vadd.xlane.f32.xlu0 %v2624_v31 }
 0x299   :  { %v21018_v45 = vpop.eup %19817 }
 0x29a   :  { %v2630_v6 = vsel %vm583_vm2, %v21018_v45, 0.0 }
 0x29c   :  { %2631 = vadd.xlane.f32.xlu0 %v2630_v6 }
 0x29d   :  { %v21022_v24 = vpop.eup %19819 }
 0x29e   :  { %v2606_v48 = vsel %vm583_vm2, %v21022_v24, 0.0 }
 0x2a0   :  { %2607 = vadd.xlane.f32.xlu0 %v2606_v48 }
 0x2a4   :  { %5308 = vrot.lane.b32.xlu1 %v20593_v53, %s20321_s3 }
 0x2b6   :  { %5230 = vrot.lane.b32.xlu0 %v20583_v51, %s20321_s3 }
 0x2b7   :  { %v2467_v18 = vpop.xlane.xlu1 %2466 }
 0x2b8   :  { %v2515_v39 = vsub.f32 %v20879_v16, %v2467_v18 }
 0x2ba   :  { %v2550_v47 = vmul.f32 1.442695, %v2515_v39 }
 0x2bc   :  { %19821 = vpow2.f32 %v2550_v47 }
 0x2c3   :  { %v2494_v15 = vpop.xlane.xlu0 %2493 }
 0x2c4   :  { %v2524_v54 = vsub.f32 %v20891_v11, %v2494_v15 }
 0x2c6   :  { %v21036_v1 = vpop.eup %19821  ;;  %v2568_v41 = vmul.f32 1.442695, %v2524_v54 }
 0x2c7   :  { %v2500_v31 = vpop.xlane.xlu0 %2499  ;;  %v2609_v6 = vsel %vm583_vm2, %v21036_v1, 0.0 }
 0x2c8   :  { %v2526_v48 = vsub.f32 %v20899_v42, %v2500_v31  ;;  %2610 = vadd.xlane.f32.xlu1 %v2609_v6  ;;  %19823 = vpow2.f32 %v2568_v41  ;;  %v2473_v42 = vpop.xlane.xlu1 %2472 }
 0x2ca   :  { %v2572_v51 = vmul.f32 1.442695, %v2526_v48 }
 0x2cc   :  { %19825 = vpow2.f32 %v2572_v51  ;;  %v2479_v47 = vpop.xlane.xlu1 %2478  ;;  %v2517_v51 = vsub.f32 %v20881_v46, %v2473_v42 }
 0x2cd   :  { %v2519_v41 = vsub.f32 %v20885_v43, %v2479_v47 }
 0x2ce   :  { %v2554_v54 = vmul.f32 1.442695, %v2517_v51 }
 0x2cf   :  { %v2558_v6 = vmul.f32 1.442695, %v2519_v41 }
 0x2d0   :  { %v2485_v15 = vpop.xlane.xlu1 %2484  ;;  %19827 = vpow2.f32 %v2554_v54 }
 0x2d1   :  { %v2521_v48 = vsub.f32 %v20893_v34, %v2485_v15  ;;  %19829 = vpow2.f32 %v2558_v6 }
 0x2d2   :  { %v21041_v16 = vpop.eup %19823 }
 0x2d3   :  { %v2636_v18 = vsel %vm583_vm2, %v21041_v16, 0.0 }
 0x2d4   :  { %v2491_v31 = vpop.xlane.xlu1 %2490 }
 0x2d5   :  { %2637 = vadd.xlane.f32.xlu0 %v2636_v18 }
 0x2d6   :  { %v21045_v11 = vpop.eup %19825 }
 0x2d7   :  { %v2642_v39 = vsel %vm583_vm2, %v21045_v11, 0.0 }
 0x2d8   :  { %v2497_v18 = vpop.xlane.xlu1 %2496 }
 0x2d9   :  { %2643 = vadd.xlane.f32.xlu0 %v2642_v39  ;;  %5306 = vrot.lane.b32.xlu1 %v20521_v40, %s20321_s3  ;;  %v2562_v39 = vmul.f32 1.442695, %v2521_v48  ;;  %v2523_v40 = vsub.f32 %v20901_v26, %v2491_v31  ;;  %v2525_v43 = vsub.f32 %v20909_v61, %v2497_v18 }
 0x2da   :  { %v21062_v34 = vpop.eup %19827 }
 0x2db   :  { %19831 = vpow2.f32 %v2562_v39  ;;  %v2566_v46 = vmul.f32 1.442695, %v2523_v40  ;;  %v2570_v47 = vmul.f32 1.442695, %v2525_v43  ;;  %v2615_v51 = vsel %vm583_vm2, %v21062_v34, 0.0  ;;  %v21069_v40 = vpop.eup %19829 }
 0x2dc   :  { %v2503_v42 = vpop.xlane.xlu1 %2502 }
 0x2dd   :  { %19833 = vpow2.f32 %v2566_v46  ;;  %v2527_v15 = vsub.f32 %v20919_v33, %v2503_v42  ;;  %v2621_v33 = vsel %vm583_vm2, %v21069_v40, 0.0 }
 0x2df   :  { %v2574_v61 = vmul.f32 1.442695, %v2527_v15 }
 0x2e5   :  { %v21075_v41 = vpop.eup %19831 }
 0x2e6   :  { %v2627_v6 = vsel %vm583_vm2, %v21075_v41, 0.0 }
 0x2e7   :  { %v21081_v48 = vpop.eup %19833 }
 0x2e8   :  { %v2633_v46 = vsel %vm583_vm2, %v21081_v48, 0.0 }
 0x2ef   :  { %5228 = vrot.lane.b32.xlu0 %v20511_v36, %s20321_s3 }
 0x2f3   :  { %5386 = vrot.lane.b32.xlu0 %v20611_v56, %s20321_s3 }
 0x2f7   :  { %5384 = vrot.lane.b32.xlu0 %v20467_v21, %s20321_s3 }
 0x2fb   :  { %5542 = vrot.lane.b32.xlu0 %v20609_v55, %s20321_s3 }
 0x2fc   :  { %v2578_v26 = vpop.xlane.xlu0 %2577 }
 0x2fd   :  { %19835 = vrcp.f32 %v2578_v26  ;;  %2616 = vadd.xlane.f32.xlu1 %v2615_v51 }
 0x2fe   :  { %19837 = vpow2.f32 %v2570_v47 }
 0x2ff   :  { %5540 = vrot.lane.b32.xlu0 %v20463_v19, %s20321_s3 }
 0x300   :  { %v2581_v54 = vpop.xlane.xlu1 %2580 }
 0x301   :  { %19839 = vrcp.f32 %v2581_v54  ;;  %2622 = vadd.xlane.f32.xlu1 %v2621_v33 }
 0x302   :  { %19841 = vpow2.f32 %v2574_v61  ;;  %v24582_v61 = vmov 0.0  }
 0x303   :  { %5698 = vrot.lane.b32.xlu0 %v20643_v60, %s20321_s3 }
 0x304   :  { %v2584_v31 = vpop.xlane.xlu0 %2583 }
 0x305   :  { %19843 = vrcp.f32 %v2584_v31  ;;  %2628 = vadd.xlane.f32.xlu1 %v2627_v6 }
 0x307   :  { %v19836_v18 = vpop.eup %19835  ;;  %5696 = vrot.lane.b32.xlu0 %v20489_v29, %s20321_s3 }
 0x308   :  { %v2587_v39 = vpop.xlane.xlu1 %2586  ;;  %v2672_v43 = vmul.f32 %v19836_v18, %v20955_v13  ;;  %v21088_v42 = vpop.eup %19837 }
 0x309   :  { %19845 = vrcp.f32 %v2587_v39  ;;  %2634 = vadd.xlane.f32.xlu1 %v2633_v46  ;;  %v2639_v26 = vsel %vm583_vm2, %v21088_v42, 0.0 }
 0x30a   :  { %18872 = vmatmul.mubr.msk.f32.vlgmr.msra.gmra.mrb[48].mxu0 %vm583_vm2, %v2672_v43 }
 0x30b   :  { %v19840_v47 = vpop.eup %19839  ;;  %5854 = vrot.lane.b32.xlu0 %v20639_v59, %s20321_s3  ;;  %18880 = vmatpush3.msra.mxu0 %v20745_v3 }
 0x30c   :  { %v2590_v15 = vpop.xlane.xlu0 %2589  ;;  %v2673_v51 = vmul.f32 %v19840_v47, %v20960_v52  ;;  %18881 = vmatprep.mubr.msk.f32.mxu0 %vm20320_vm1, %v24582_v61  ;;  %18889 = vmatprep.subr.mxu0 %v24582_v61  ;;  %v21100_v13 = vpop.eup %19841 }
 0x30d   :  { %19847 = vrcp.f32 %v2590_v15  ;;  %2640 = vadd.xlane.f32.xlu1 %v2639_v26  ;;  %v2645_v52 = vsel %vm583_vm2, %v21100_v13, 0.0 }
 0x30e   :  { %18877 = vmatmul.mubr.msk.f32.vlgmr.msra.gmra.mrb[72].mxu1 %vm583_vm2, %v2673_v51 }
 0x30f   :  { %v19844_v54 = vpop.eup %19843  ;;  %18885 = vmatpush3.msra.mxu1 %v20767_v5  ;;  %5852 = vrot.lane.b32.xlu0 %v20485_v27, %s20321_s3 }
 0x310   :  { %v2593_v33 = vpop.xlane.xlu1 %2592  ;;  %v2674_v31 = vmul.f32 %v19844_v54, %v20965_v57  ;;  %18886 = vmatprep.mubr.msk.f32.mxu1 %vm20320_vm1, %v24582_v61  ;;  %18894 = vmatprep.subr.mxu1 %v24582_v61 }
 0x311   :  { %19849 = vrcp.f32 %v2593_v33  ;;  %2646 = vadd.xlane.f32.xlu1 %v2645_v52 }
 0x312   :  { %18882 = vmatmul.mubr.msk.f32.vlgmr.msra.gmra.mrb[50].mxu0 %vm583_vm2, %v2674_v31  ;;  %v24583_v31 = vld [vmem:[#allocation31_spill] sm:$0xff] }
 0x313   :  { %v19846_v6 = vpop.eup %19845  ;;  %6010 = vrot.lane.b32.xlu0 %v20679_v0, %s20321_s3  ;;  %18890 = vmatpush3.msra.mxu0 %v20776_v8 }
 0x314   :  { %v2596_v18 = vpop.xlane.xlu0 %2595  ;;  %v2675_v39 = vmul.f32 %v19846_v6, %v20970_v62  ;;  %18891 = vmatprep.mubr.msk.f32.mxu0 %vm20320_vm1, %v24582_v61  ;;  %18899 = vmatprep.subr.mxu0 %v24582_v61 }
 0x315   :  { %19851 = vrcp.f32 %v2596_v18 }
 0x316   :  { %18887 = vmatmul.mubr.msk.f32.vlgmr.msra.gmra.mrb[74].mxu1 %vm583_vm2, %v2675_v39 }
 0x317   :  { %v19848_v57 = vpop.eup %19847  ;;  %18895 = vmatpush3.msra.mxu1 %v20781_v10  ;;  %6008 = vrot.lane.b32.xlu0 %v20513_v37, %s20321_s3 }
 0x318   :  { %v2599_v46 = vpop.xlane.xlu1 %2598  ;;  %v2676_v43 = vmul.f32 %v19848_v57, %v20976_v20  ;;  %18896 = vmatprep.mubr.msk.f32.mxu1 %vm20320_vm1, %v24582_v61  ;;  %18904 = vmatprep.subr.mxu1 %v24582_v61 }
 0x319   :  { %19853 = vrcp.f32 %v2599_v46  ;;  %v2614_v62 = vpop.xlane.xlu0 %2613 }
 0x31a   :  { %18892 = vmatmul.mubr.msk.f32.vlgmr.msra.gmra.mrb[52].mxu0 %vm583_vm2, %v2676_v43  ;;  %v24584_v43 = vld [vmem:[#allocation4_spill] sm:$0xff] }
 0x31b   :  { %v19850_v47 = vpop.eup %19849  ;;  %6166 = vrot.lane.b32.xlu0 %v20675_v63, %s20321_s3  ;;  %18900 = vmatpush3.msra.mxu0 %v20773_v7 }
 0x31c   :  { %v2677_v15 = vmul.f32 %v19850_v47, %v20981_v50  ;;  %18901 = vmatprep.mubr.msk.f32.mxu0 %vm20320_vm1, %v24582_v61  ;;  %18909 = vmatprep.subr.mxu0 %v24582_v61  ;;  %v24585_v47 = vld [vmem:[#allocation47_spill] sm:$0xff] }
 0x31d   :  { %v2620_v20 = vpop.xlane.xlu0 %2619 }
 0x31e   :  { %18897 = vmatmul.mubr.msk.f32.vlgmr.msra.gmra.mrb[76].mxu1 %vm583_vm2, %v2677_v15 }
 0x31f   :  { %v19852_v26 = vpop.eup %19851  ;;  %18905 = vmatpush3.msra.mxu1 %v20779_v9  ;;  %6164 = vrot.lane.b32.xlu0 %v20509_v35, %s20321_s3 }
 0x320   :  { %v2605_v51 = vpop.xlane.xlu1 %2604  ;;  %v2678_v54 = vmul.f32 %v19852_v26, %v20987_v38  ;;  %18906 = vmatprep.mubr.msk.f32.mxu1 %vm20320_vm1, %v24582_v61  ;;  %18914 = vmatprep.subr.mxu1 %v24582_v61 }
 0x321   :  { %19855 = vrcp.f32 %v2605_v51  ;;  %v2602_v50 = vpop.xlane.xlu0 %2601 }
 0x322   :  { %19857 = vrcp.f32 %v2602_v50  ;;  %5464 = vrot.lane.b32.xlu1 %v20624_v58, %s20321_s3  ;;  %18902 = vmatmul.mubr.msk.f32.vlgmr.msra.gmra.mrb[54].mxu0 %vm583_vm2, %v2678_v54  ;;  %v24589_v54 = vld [vmem:[#allocation32_spill] sm:$0xff]  ;;  %v24590_v50 = vld [vmem:[#allocation50_spill] sm:$0xff] }
 0x323   :  { %v19854_v33 = vpop.eup %19853  ;;  %6609 = vrot.lane.b32.xlu0 %v20765_v4, %s20321_s3  ;;  %18910 = vmatpush3.msra.mxu0 %v20785_v12 }
 0x324   :  { %v2679_v38 = vmul.f32 %v19854_v33, %v20992_v32  ;;  %18911 = vmatprep.mubr.msk.f32.mxu0 %vm20320_vm1, %v24582_v61  ;;  %18919 = vmatprep.subr.mxu0 %v24582_v61  ;;  %v24591_v33 = vld [vmem:[#allocation9_spill] sm:$0xff] }
 0x325   :  { %v2626_v52 = vpop.xlane.xlu0 %2625 }
 0x326   :  { %5462 = vrot.lane.b32.xlu1 %v20479_v25, %s20321_s3  ;;  %18907 = vmatmul.mubr.msk.f32.vlgmr.msra.gmra.mrb[78].mxu1 %vm583_vm2, %v2679_v38  ;;  %v24592_v38 = vld [vmem:[#allocation54_spill] sm:$0xff] }
 0x327   :  { %18915 = vmatpush3.msra.mxu1 %v20789_v14  ;;  %6763 = vrot.lane.b32.xlu0 %v20745_v3, %s20321_s3 }
 0x328   :  { %18916 = vmatprep.mubr.msk.f32.mxu1 %vm20320_vm1, %v24582_v61  ;;  %18924 = vmatprep.subr.mxu1 %v24582_v61 }
 0x329   :  { %v2632_v32 = vpop.xlane.xlu0 %2631 }
 0x32a   :  { %5620 = vrot.lane.b32.xlu1 %v24583_v31, %s20321_s3 }
 0x32b   :  { %v19856_v6 = vpop.eup %19855  ;;  %6917 = vrot.lane.b32.xlu0 %v20776_v8, %s20321_s3  ;;  %v24628_v8 = vld [vmem:[#allocation6_spill] sm:$0xff] }
 0x32c   :  { %v19858_v18 = vpop.eup %19857  ;;  %v2681_v39 = vmul.f32 %v19856_v6, %v21006_v17  ;;  %v24586_v17 = vld [vmem:[#allocation45_spill] sm:$0xff] }
 0x32d   :  { %v2608_v57 = vpop.xlane.xlu0 %2607  ;;  %v2680_v46 = vmul.f32 %v19858_v18, %v21008_v30  ;;  %v24587_v30 = vld [vmem:[#allocation33_spill] sm:$0xff] }
 0x32e   :  { %19859 = vrcp.f32 %v2608_v57  ;;  %5618 = vrot.lane.b32.xlu1 %v24584_v43, %s20321_s3  ;;  %18917 = vmatmul.mubr.msk.f32.vlgmr.msra.gmra.mrb[80].mxu1 %vm583_vm2, %v2681_v39  ;;  %v24595_v18 = vld [vmem:[#allocation53_spill] sm:$0xff] }
 0x32f   :  { %18925 = vmatpush3.msra.mxu1 %v24585_v47  ;;  %7071 = vrot.lane.b32.xlu0 %v20773_v7, %s20321_s3  ;;  %19861 = vrcp.f32 %v2614_v62  ;;  %v24588_v62 = vld [vmem:[#allocation11_spill] sm:$0xff]  ;;  %v24626_v7 = vld [vmem:[#allocation64_spill] sm:$0xff] }
 0x330   :  { %18912 = vmatmul.mubr.msk.f32.vlgmr.msra.gmra.mrb[56].mxu0 %vm583_vm2, %v2680_v46  ;;  %18926 = vmatprep.mubr.msk.f32.mxu1 %vm20320_vm1, %v24582_v61  ;;  %19863 = vrcp.f32 %v2620_v20  ;;  %v24597_v46 = vld [vmem:[#allocation58_spill] sm:$0xff] }
 0x331   :  { %18920 = vmatpush3.msra.mxu0 %v24586_v17  ;;  %18921 = vmatprep.mubr.msk.f32.mxu0 %vm20320_vm1, %v24582_v61  ;;  %19865 = vrcp.f32 %v2626_v52  ;;  %v24593_v52 = vld [vmem:[#allocation49_spill] sm:$0xff] }
 0x332   :  { %5776 = vrot.lane.b32.xlu1 %v24587_v30, %s20321_s3  ;;  %18929 = vmatprep.subr.mxu0 %v24582_v61  ;;  %19867 = vrcp.f32 %v2632_v32 }
 0x333   :  { %7225 = vrot.lane.b32.xlu0 %v20785_v12, %s20321_s3  ;;  %18934 = vmatprep.subr.mxu1 %v24582_v61  ;;  %v24624_v12 = vld [vmem:[#allocation72_spill] sm:$0xff] }
 0x336   :  { %5774 = vrot.lane.b32.xlu1 %v24588_v62, %s20321_s3 }
 0x337   :  { %7379 = vrot.lane.b32.xlu0 %v24586_v17, %s20321_s3  ;;  %v24621_v17 = vld [vmem:[#allocation74_spill] sm:$0xff] }
 0x338   :  { %v19860_v15 = vpop.eup %19859 }
 0x339   :  { %v2682_v26 = vmul.f32 %v19860_v15, %v21022_v24  ;;  %v19862_v51 = vpop.eup %19861 }
 0x33a   :  { %5932 = vrot.lane.b32.xlu1 %v24589_v54, %s20321_s3  ;;  %v2684_v20 = vmul.f32 %v19862_v51, %v20994_v22  ;;  %v19864_v24 = vpop.eup %19863  ;;  %v24594_v22 = vld [vmem:[#allocation36_spill] sm:$0xff]  ;;  %v24600_v51 = vld [vmem:[#allocation15_spill] sm:$0xff] }
 0x33b   :  { %7533 = vrot.lane.b32.xlu0 %v24590_v50, %s20321_s3  ;;  %18922 = vmatmul.mubr.msk.f32.vlgmr.msra.gmra.mrb[58].mxu0 %vm583_vm2, %v2682_v26  ;;  %v2686_v32 = vmul.f32 %v19864_v24, %v21001_v2  ;;  %v19866_v6 = vpop.eup %19865  ;;  %v24596_v2 = vld [vmem:[#allocation17_spill] sm:$0xff]  ;;  %v24602_v24 = vld [vmem:[#allocation40_spill] sm:$0xff] }
 0x33c   :  { %18930 = vmatpush3.msra.mxu0 %v24590_v50  ;;  %18931 = vmatprep.mubr.msk.f32.mxu0 %vm20320_vm1, %v24582_v61  ;;  %v2688_v39 = vmul.f32 %v19866_v6, %v21014_v49  ;;  %v19868_v57 = vpop.eup %19867  ;;  %v24598_v49 = vld [vmem:[#allocation35_spill] sm:$0xff]  ;;  %v24599_v26 = vld [vmem:[#allocation57_spill] sm:$0xff] }
 0x33d   :  { %18939 = vmatprep.subr.mxu0 %v24582_v61  ;;  %v2690_v15 = vmul.f32 %v19868_v57, %v21018_v45  ;;  %v24601_v45 = vld [vmem:[#allocation20_spill] sm:$0xff]  ;;  %v24605_v57 = vld [vmem:[#allocation2_spill] sm:$0xff] }
 0x33e   :  { %5930 = vrot.lane.b32.xlu1 %v24591_v33, %s20321_s3 }
 0x33f   :  { %7841 = vrot.lane.b32.xlu0 %v24592_v38, %s20321_s3  ;;  %18932 = vmatmul.mubr.msk.f32.vlgmr.msra.gmra.mrb[60].mxu0 %vm583_vm2, %v2684_v20  ;;  %v21245_v20 = vpop.permute.xlu1 %5308 }
 0x340   :  { %18940 = vmatpush3.msra.mxu0 %v24593_v52  ;;  %18941 = vmatprep.mubr.msk.f32.mxu0 %vm20320_vm1, %v24582_v61 }
 0x341   :  { %18949 = vmatprep.subr.mxu0 %v24582_v61 }
 0x342   :  { %6088 = vrot.lane.b32.xlu1 %v24594_v22, %s20321_s3 }
 0x343   :  { %7995 = vrot.lane.b32.xlu0 %v24595_v18, %s20321_s3  ;;  %18942 = vmatmul.mubr.msk.f32.vlgmr.msra.gmra.mrb[62].mxu0 %vm583_vm2, %v2686_v32  ;;  %v24603_v32 = vld [vmem:[#allocation3_spill] sm:$0xff] }
 0x344   :  { %18950 = vmatpush3.msra.mxu0 %v24592_v38  ;;  %18951 = vmatprep.mubr.msk.f32.mxu0 %vm20320_vm1, %v24582_v61  ;;  %v24611_v38 = vld [vmem:[#allocation28_spill] sm:$0xff] }
 0x345   :  { %18959 = vmatprep.subr.mxu0 %v24582_v61 }
 0x346   :  { %6086 = vrot.lane.b32.xlu1 %v24596_v2, %s20321_s3 }
 0x347   :  { %8149 = vrot.lane.b32.xlu0 %v24597_v46, %s20321_s3  ;;  %18952 = vmatmul.mubr.msk.f32.vlgmr.msra.gmra.mrb[64].mxu0 %vm583_vm2, %v2688_v39  ;;  %v24604_v39 = vld [vmem:[#allocation19_spill] sm:$0xff] }
 0x348   :  { %18960 = vmatpush3.msra.mxu0 %v24595_v18  ;;  %18961 = vmatprep.mubr.msk.f32.mxu0 %vm20320_vm1, %v24582_v61 }
 0x349   :  { %18969 = vmatprep.subr.mxu0 %v24582_v61 }
 0x34a   :  { %6244 = vrot.lane.b32.xlu1 %v24598_v49, %s20321_s3 }
 0x34b   :  { %8303 = vrot.lane.b32.xlu0 %v24599_v26, %s20321_s3  ;;  %18962 = vmatmul.mubr.msk.f32.vlgmr.msra.gmra.mrb[66].mxu0 %vm583_vm2, %v2690_v15  ;;  %v21259_v15 = vpop.permute.xlu0 %5230 }
 0x34c   :  { %18970 = vmatpush3.msra.mxu0 %v24597_v46  ;;  %18971 = vmatprep.mubr.msk.f32.mxu0 %vm20320_vm1, %v24582_v61 }
 0x34d   :  { %18979 = vmatprep.subr.mxu0 %v24582_v61 }
 0x34e   :  { %6242 = vrot.lane.b32.xlu1 %v24600_v51, %s20321_s3 }
 0x34f   :  { %8458 = vrot.lane.b32.xlu0 %v24601_v45, %s20322_s1 }
 0x352   :  { %6686 = vrot.lane.b32.xlu1 %v24602_v24, %s20321_s3 }
 0x353   :  { %8456 = vrot.lane.b32.xlu0 %v24603_v32, %s20322_s1  ;;  %v24606_v32 = vld [vmem:[#allocation24_spill] sm:$0xff] }
 0x355   :  { %v2611_v6 = vpop.xlane.xlu1 %2610 }
 0x356   :  { %19869 = vrcp.f32 %v2611_v6  ;;  %6840 = vrot.lane.b32.xlu1 %v20767_v5, %s20321_s3 }
 0x357   :  { %8614 = vrot.lane.b32.xlu0 %v24604_v39, %s20322_s1  ;;  %v24607_v39 = vld [vmem:[#allocation8_spill] sm:$0xff] }
 0x35a   :  { %6994 = vrot.lane.b32.xlu1 %v20781_v10, %s20321_s3 }
 0x35b   :  { %8612 = vrot.lane.b32.xlu0 %v24605_v57, %s20322_s1  ;;  %v24608_v57 = vld [vmem:[#allocation52_spill] sm:$0xff] }
 0x35e   :  { %7148 = vrot.lane.b32.xlu1 %v20779_v9, %s20321_s3 }
 0x35f   :  { %8770 = vrot.lane.b32.xlu0 %v24606_v32, %s20322_s1 }
 0x360   :  { %v19870_v6 = vpop.eup %19869 }
 0x361   :  { %v2683_v45 = vmul.f32 %v19870_v6, %v21036_v1  ;;  %v24609_v1 = vld [vmem:[#allocation23_spill] sm:$0xff] }
 0x362   :  { %v2638_v46 = vpop.xlane.xlu0 %2637  ;;  %7302 = vrot.lane.b32.xlu1 %v20789_v14, %s20321_s3  ;;  %v24627_v14 = vld [vmem:[#allocation76_spill] sm:$0xff] }
 0x363   :  { %19871 = vrcp.f32 %v2638_v46  ;;  %8768 = vrot.lane.b32.xlu0 %v24607_v39, %s20322_s1  ;;  %18927 = vmatmul.mubr.msk.f32.vlgmr.msra.gmra.mrb[82].mxu1 %vm583_vm2, %v2683_v45  ;;  %v24610_v45 = vld [vmem:[#allocation7_spill] sm:$0xff] }
 0x364   :  { %18935 = vmatpush3.msra.mxu1 %v24608_v57  ;;  %18936 = vmatprep.mubr.msk.f32.mxu1 %vm20320_vm1, %v24582_v61 }
 0x365   :  { %18944 = vmatprep.subr.mxu1 %v24582_v61 }
 0x366   :  { %v2644_v32 = vpop.xlane.xlu0 %2643  ;;  %7456 = vrot.lane.b32.xlu1 %v24585_v47, %s20321_s3  ;;  %v24625_v47 = vld [vmem:[#allocation22_spill] sm:$0xff] }
 0x367   :  { %19873 = vrcp.f32 %v2644_v32  ;;  %8926 = vrot.lane.b32.xlu0 %v24609_v1, %s20322_s1 }
 0x36a   :  { %v5229_v46 = vpop.permute.xlu0 %5228  ;;  %7610 = vrot.lane.b32.xlu1 %v24608_v57, %s20321_s3  ;;  %v24623_v57 = vld [vmem:[#allocation66_spill] sm:$0xff] }
 0x36b   :  { %8924 = vrot.lane.b32.xlu0 %v24610_v45, %s20322_s1  ;;  %v24612_v45 = vld [vmem:[#allocation51_spill] sm:$0xff] }
 0x36d   :  { %v19872_v6 = vpop.eup %19871 }
 0x36e   :  { %v5387_v39 = vpop.permute.xlu0 %5386  ;;  %7687 = vrot.lane.b32.xlu1 %v24593_v52, %s20321_s3  ;;  %v2692_v18 = vmul.f32 %v19872_v6, %v21041_v16  ;;  %v24613_v16 = vld [vmem:[#allocation14_spill] sm:$0xff]  ;;  %v24614_v6 = vld [vmem:[#allocation56_spill] sm:$0xff] }
 0x36f   :  { %9082 = vrot.lane.b32.xlu0 %v24611_v38, %s20322_s1  ;;  %v24615_v38 = vld [vmem:[#allocation70_spill] sm:$0xff] }
 0x370   :  { %18972 = vmatmul.mubr.msk.f32.vlgmr.msra.gmra.mrb[68].mxu0 %vm583_vm2, %v2692_v18  ;;  %v24620_v52 = vld [vmem:[#allocation62_spill] sm:$0xff] }
 0x371   :  { %v19874_v32 = vpop.eup %19873  ;;  %18980 = vmatpush3.msra.mxu0 %v24599_v26  ;;  %18981 = vmatprep.mubr.msk.f32.mxu0 %vm20320_vm1, %v24582_v61  ;;  %v24617_v26 = vld [vmem:[#allocation61_spill] sm:$0xff] }
 0x372   :  { %v5385_v1 = vpop.permute.xlu0 %5384  ;;  %7764 = vrot.lane.b32.xlu1 %v24612_v45, %s20321_s3  ;;  %v2694_v50 = vmul.f32 %v19874_v32, %v21045_v11  ;;  %18989 = vmatprep.subr.mxu0 %v24582_v61  ;;  %v24616_v32 = vld [vmem:[#allocation55_spill] sm:$0xff] }
 0x373   :  { %9080 = vrot.lane.b32.xlu0 %v24613_v16, %s20322_s1 }
 0x374   :  { %18982 = vmatmul.mubr.msk.f32.vlgmr.msra.gmra.mrb[70].mxu0 %vm583_vm2, %v2694_v50  ;;  %v24618_v50 = vld [vmem:[#allocation68_spill] sm:$0xff] }
 0x375   :  { %18991 = vmatprep.mubr.msk.f32.mxu0 %vm20320_vm1, %v24582_v61 }
 0x376   :  { %v5543_v18 = vpop.permute.xlu0 %5542  ;;  %7918 = vrot.lane.b32.xlu1 %v24614_v6, %s20321_s3 }
 0x378   :  { %18990 = vmatpush3.xpose.msk.msra.mxu0 %vm583_vm2, %v24615_v38  ;;  %v24619_v38 = vld [vmem:[#allocation60_spill] sm:$0xff] }
 0x379   :  { %18999 = vmatprep.subr.mxu0 %v24582_v61 }
 0x37a   :  { %v5541_v11 = vpop.permute.xlu0 %5540  ;;  %8072 = vrot.lane.b32.xlu1 %v24616_v32, %s20321_s3 }
 0x37b   :  { %18992 = vmatmul.mubr.msk.f32.vlgmr.msra.gmra.mrb[72].mxu0 %vm583_vm2, %v24617_v26 }
 0x37c   :  { %19000 = vmatpush3.xpose.msk.msra.mxu0 %vm583_vm2, %v24618_v50  ;;  %19001 = vmatprep.mubr.msk.f32.mxu0 %vm20320_vm1, %v24582_v61  ;;  %v24622_v50 = vld [vmem:[#allocation59_spill] sm:$0xff] }
 0x37d   :  { %19009 = vmatprep.subr.mxu0 %v24582_v61 }
 0x37e   :  { %v5699_v16 = vpop.permute.xlu0 %5698  ;;  %8226 = vrot.lane.b32.xlu1 %v24619_v38, %s20321_s3 }
 0x37f   :  { %19002 = vmatmul.mubr.msk.f32.vlgmr.msra.gmra.mrb[74].mxu0 %vm583_vm2, %v24620_v52 }
 0x380   :  { %19010 = vmatpush3.xpose.msk.msra.mxu0 %vm583_vm2, %v24621_v17  ;;  %19011 = vmatprep.mubr.msk.f32.mxu0 %vm20320_vm1, %v24582_v61  ;;  %v21333_v17 = vpop.permute.xlu1 %5306 }
 0x381   :  { %19019 = vmatprep.subr.mxu0 %v24582_v61 }
 0x382   :  { %v5697_v26 = vpop.permute.xlu0 %5696  ;;  %8380 = vrot.lane.b32.xlu1 %v24622_v50, %s20321_s3 }
 0x383   :  { %19012 = vmatmul.mubr.msk.f32.vlgmr.msra.gmra.mrb[76].mxu0 %vm583_vm2, %v24623_v57 }
 0x384   :  { %19020 = vmatpush3.xpose.msk.msra.mxu0 %vm583_vm2, %v24624_v12  ;;  %19021 = vmatprep.mubr.msk.f32.mxu0 %vm20320_vm1, %v24582_v61 }
 0x385   :  { %19029 = vmatprep.subr.mxu0 %v24582_v61 }
 0x386   :  { %v5855_v52 = vpop.permute.xlu0 %5854  ;;  %8536 = vrot.lane.b32.xlu1 %v24625_v47, %s20322_s1 }
 0x387   :  { %19022 = vmatmul.mubr.msk.f32.vlgmr.msra.gmra.mrb[78].mxu0 %vm583_vm2, %v24626_v7 }
 0x388   :  { %19030 = vmatpush3.xpose.msk.msra.mxu0 %vm583_vm2, %v24627_v14  ;;  %19031 = vmatprep.mubr.msk.f32.mxu0 %vm20320_vm1, %v24582_v61  ;;  %v24629_v14 = vld [vmem:[#allocation21_spill] sm:$0xff] }
 0x389   :  { %19039 = vmatprep.subr.mxu0 %v24582_v61 }
 0x38a   :  { %v5853_v12 = vpop.permute.xlu0 %5852  ;;  %v2617_v57 = vpop.xlane.xlu1 %2616  ;;  %8534 = vrot.lane.b32.xlu1 %v24628_v8, %s20322_s1 }
 0x38b   :  { %19032 = vmatmul.mubr.msk.f32.vlgmr.msra.gmra.mrb[80].mxu0 %vm583_vm2, %v21033_v44  ;;  %19875 = vrcp.f32 %v2617_v57 }
 0x38c   :  { %19040 = vmatpush3.xpose.msk.msra.mxu0 %vm583_vm2, %v21259_v15  ;;  %19041 = vmatprep.mubr.msk.f32.mxu0 %vm20320_vm1, %v24582_v61  ;;  %v24630_v15 = vld [vmem:[#allocation5_spill] sm:$0xff] }
 0x38d   :  { %19049 = vmatprep.subr.mxu0 %v24582_v61 }
 0x38e   :  { %v2623_v7 = vpop.xlane.xlu1 %2622  ;;  %8692 = vrot.lane.b32.xlu1 %v24629_v14, %s20322_s1  ;;  %v6011_v8 = vpop.permute.xlu0 %6010 }
 0x38f   :  { %19042 = vmatmul.mubr.msk.f32.vlgmr.msra.gmra.mrb[82].mxu0 %vm583_vm2, %v5229_v46  ;;  %19877 = vrcp.f32 %v2623_v7  ;;  %v24631_v7 = vld [vmem:[#allocation26_spill] sm:$0xff] }
 0x390   :  { %19050 = vmatpush3.xpose.msk.msra.mxu0 %vm583_vm2, %v5387_v39  ;;  %19051 = vmatprep.mubr.msk.f32.mxu0 %vm20320_vm1, %v24582_v61 }
 0x391   :  { %19059 = vmatprep.subr.mxu0 %v24582_v61 }
 0x392   :  { %v2629_v44 = vpop.xlane.xlu1 %2628  ;;  %8690 = vrot.lane.b32.xlu1 %v24630_v15, %s20322_s1  ;;  %v6009_v39 = vpop.permute.xlu0 %6008 }
 0x393   :  { %19052 = vmatmul.mubr.msk.f32.vlgmr.msra.gmra.mrb[84].mxu0 %vm583_vm2, %v5385_v1  ;;  %19879 = vrcp.f32 %v2629_v44  ;;  %v24632_v44 = vld [vmem:[#allocation12_spill] sm:$0xff] }
 0x394   :  { %19060 = vmatpush3.xpose.msk.msra.mxu0 %vm583_vm2, %v5543_v18  ;;  %19061 = vmatprep.mubr.msk.f32.mxu0 %vm20320_vm1, %v24582_v61 }
 0x395   :  { %v19876_v46 = vpop.eup %19875  ;;  %19069 = vmatprep.subr.mxu0 %v24582_v61 }
 0x396   :  { %v2635_v57 = vpop.xlane.xlu1 %2634  ;;  %8848 = vrot.lane.b32.xlu1 %v24631_v7, %s20322_s1  ;;  %v2685_v14 = vmul.f32 %v19876_v46, %v21062_v34 }
 0x397   :  { %19062 = vmatmul.mubr.msk.f32.vlgmr.msra.gmra.mrb[86].mxu0 %vm583_vm2, %v5541_v11  ;;  %19881 = vrcp.f32 %v2635_v57 }
 0x398   :  { %19070 = vmatpush3.xpose.msk.msra.mxu0 %vm583_vm2, %v5699_v16  ;;  %18937 = vmatmul.mubr.msk.f32.vlgmr.msra.gmra.mrb[84].mxu1 %vm583_vm2, %v2685_v14  ;;  %v6167_v16 = vpop.permute.xlu0 %6166 }
 0x399   :  { %v19878_v1 = vpop.eup %19877  ;;  %18945 = vmatpush3.msra.mxu1 %v24612_v45  ;;  %19071 = vmatprep.mubr.msk.f32.mxu0 %vm20320_vm1, %v24582_v61 }
 0x39a   :  { %19079 = vmatprep.subr.mxu0 %v24582_v61  ;;  %v2641_v18 = vpop.xlane.xlu1 %2640  ;;  %8846 = vrot.lane.b32.xlu1 %v24632_v44, %s20322_s1  ;;  %v2687_v34 = vmul.f32 %v19878_v1, %v21069_v40 }
 0x39b   :  { %19072 = vmatmul.mubr.msk.f32.vlgmr.msra.gmra.mrb[88].mxu0 %vm583_vm2, %v5697_v26  ;;  %19883 = vrcp.f32 %v2641_v18  ;;  %18946 = vmatprep.mubr.msk.f32.mxu1 %vm20320_vm1, %v24582_v61  ;;  %v24635_v18 = vld [vmem:[#allocation30_spill] sm:$0xff] }
 0x39c   :  { %19080 = vmatpush3.xpose.msk.msra.mxu0 %vm583_vm2, %v5855_v52  ;;  %18954 = vmatprep.subr.mxu1 %v24582_v61  ;;  %v24633_v52 = vld [vmem:[#allocation25_spill] sm:$0xff]  ;;  %v6165_v46 = vpop.permute.xlu0 %6164 }
 0x39d   :  { %v19880_v11 = vpop.eup %19879  ;;  %18947 = vmatmul.mubr.msk.f32.vlgmr.msra.gmra.mrb[86].mxu1 %vm583_vm2, %v2687_v34  ;;  %19081 = vmatprep.mubr.msk.f32.mxu0 %vm20320_vm1, %v24582_v61 }
 0x39e   :  { %18955 = vmatpush3.msra.mxu1 %v24614_v6  ;;  %19089 = vmatprep.subr.mxu0 %v24582_v61  ;;  %v2647_v40 = vpop.xlane.xlu1 %2646  ;;  %v2689_v26 = vmul.f32 %v19880_v11, %v21075_v41  ;;  %v24636_v11 = vld [vmem:[#allocation18_spill] sm:$0xff] }
 0x39f   :  { %19082 = vmatmul.mubr.msk.f32.vlgmr.msra.gmra.mrb[90].mxu0 %vm583_vm2, %v5853_v12  ;;  %19885 = vrcp.f32 %v2647_v40  ;;  %9004 = vrot.lane.b32.xlu1 %v24633_v52, %s20322_s1 }
 0x3a0   :  { %19090 = vmatpush3.xpose.msk.msra.mxu0 %vm583_vm2, %v6011_v8  ;;  %18956 = vmatprep.mubr.msk.f32.mxu1 %vm20320_vm1, %v24582_v61  ;;  %v24634_v8 = vld [vmem:[#allocation10_spill] sm:$0xff]  ;;  %v6610_v1 = vpop.permute.xlu0 %6609 }
 0x3a1   :  { %v19882_v14 = vpop.eup %19881  ;;  %18964 = vmatprep.subr.mxu1 %v24582_v61  ;;  %18957 = vmatmul.mubr.msk.f32.vlgmr.msra.gmra.mrb[88].mxu1 %vm583_vm2, %v2689_v26 }
 0x3a2   :  { %18965 = vmatpush3.msra.mxu1 %v24616_v32  ;;  %19091 = vmatprep.mubr.msk.f32.mxu0 %vm20320_vm1, %v24582_v61  ;;  %v5465_v41 = vpop.permute.xlu1 %5464  ;;  %v2691_v12 = vmul.f32 %v19882_v14, %v21081_v48  ;;  %v24638_v14 = vld [vmem:[#allocation65_spill] sm:$0xff] }
 0x3a3   :  { %19092 = vmatmul.mubr.msk.f32.vlgmr.msra.gmra.mrb[92].mxu0 %vm583_vm2, %v6009_v39  ;;  %19099 = vmatprep.subr.mxu0 %v24582_v61 }
 0x3a4   :  { %9002 = vrot.lane.b32.xlu1 %v24634_v8, %s20322_s1  ;;  %19100 = vmatpush3.xpose.msk.msra.mxu0 %vm583_vm2, %v6167_v16 }
 0x3a5   :  { %v19884_v57 = vpop.eup %19883  ;;  %18966 = vmatprep.mubr.msk.f32.mxu1 %vm20320_vm1, %v24582_v61  ;;  %18974 = vmatprep.subr.mxu1 %v24582_v61 }
 0x3a6   :  { %18967 = vmatmul.mubr.msk.f32.vlgmr.msra.gmra.mrb[90].mxu1 %vm583_vm2, %v2691_v12  ;;  %19101 = vmatprep.mubr.msk.f32.mxu0 %vm20320_vm1, %v24582_v61  ;;  %v5463_v48 = vpop.permute.xlu1 %5462  ;;  %v2693_v39 = vmul.f32 %v19884_v57, %v21088_v42  ;;  %v24640_v57 = vld [vmem:[#allocation63_spill] sm:$0xff] }
 0x3a7   :  { %18975 = vmatpush3.msra.mxu1 %v24619_v38  ;;  %19102 = vmatmul.mubr.msk.f32.vlgmr.msra.gmra.mrb[94].mxu0 %vm583_vm2, %v6165_v46  ;;  %v24639_v46 = vld [vmem:[#allocation71_spill] sm:$0xff] }
 0x3a8   :  { %19109 = vmatprep.subr.mxu0 %v24582_v61  ;;  %9160 = vrot.lane.b32.xlu1 %v24635_v18, %s20322_s1 }
 0x3a9   :  { %v19886_v34 = vpop.eup %19885  ;;  %19110 = vmatpush3.msra.mxu0 %v6610_v1  ;;  %18976 = vmatprep.mubr.msk.f32.mxu1 %vm20320_vm1, %v24582_v61 }
 0x3aa   :  { %18984 = vmatprep.subr.mxu1 %v24582_v61  ;;  %18977 = vmatmul.mubr.msk.f32.vlgmr.msra.gmra.mrb[92].mxu1 %vm583_vm2, %v2693_v39  ;;  %v5621_v42 = vpop.permute.xlu1 %5620  ;;  %v2695_v16 = vmul.f32 %v19886_v34, %v21100_v13  ;;  %v24637_v13 = vld [vmem:[#allocation73_spill] sm:$0xff] }
 0x3ab   :  { %18985 = vmatpush3.msra.mxu1 %v24622_v50  ;;  %18986 = vmatprep.mubr.msk.f32.mxu1 %vm20320_vm1, %v24582_v61  ;;  %v24641_v39 = vld [vmem:[#allocation77_spill] sm:$0xff] }
 0x3ac   :  { %9158 = vrot.lane.b32.xlu1 %v24636_v11, %s20322_s1  ;;  %18994 = vmatprep.subr.mxu1 %v24582_v61  ;;  %v24642_v34 = vld [vmem:[#allocation69_spill] sm:$0xff] }
 0x3ad   :  { %19111 = vmatprep.mubr.msk.f32.mxu0 %vm20320_vm1, %v24582_v61  ;;  %19119 = vmatprep.subr.mxu0 %v24582_v61 }
 0x3ae   :  { %18987 = vmatmul.mubr.msk.f32.vlgmr.msra.gmra.mrb[94].mxu1 %vm583_vm2, %v2695_v16  ;;  %v5619_v40 = vpop.permute.xlu1 %5618  ;;  %v24643_v16 = vld [vmem:[#allocation75_spill] sm:$0xff] }
 0x3af   :  { %18996 = vmatprep.mubr.msk.f32.mxu1 %vm20320_vm1, %v24582_v61 }
 0x3b2   :  { %18995 = vmatpush3.xpose.msk.msra.mxu1 %vm583_vm2, %v24637_v13  ;;  %v5777_v26 = vpop.permute.xlu1 %5776  ;;  %v24644_v13 = vld [vmem:[#allocation67_spill] sm:$0xff] }
 0x3b3   :  { %19004 = vmatprep.subr.mxu1 %v24582_v61 }
 0x3b5   :  { %18997 = vmatmul.mubr.msk.f32.vlgmr.msra.gmra.mrb[96].mxu1 %vm583_vm2, %v24638_v14 }
 0x3b6   :  { %19005 = vmatpush3.xpose.msk.msra.mxu1 %vm583_vm2, %v24639_v46  ;;  %19006 = vmatprep.mubr.msk.f32.mxu1 %vm20320_vm1, %v24582_v61  ;;  %v5775_v12 = vpop.permute.xlu1 %5774 }
 0x3b7   :  { %19014 = vmatprep.subr.mxu1 %v24582_v61 }
 0x3b9   :  { %19007 = vmatmul.mubr.msk.f32.vlgmr.msra.gmra.mrb[98].mxu1 %vm583_vm2, %v24640_v57 }
 0x3ba   :  { %19015 = vmatpush3.xpose.msk.msra.mxu1 %vm583_vm2, %v24641_v39  ;;  %19016 = vmatprep.mubr.msk.f32.mxu1 %vm20320_vm1, %v24582_v61  ;;  %v5933_v1 = vpop.permute.xlu1 %5932 }
 0x3bb   :  { %19024 = vmatprep.subr.mxu1 %v24582_v61 }
 0x3bd   :  { %19017 = vmatmul.mubr.msk.f32.vlgmr.msra.gmra.mrb[100].mxu1 %vm583_vm2, %v24642_v34 }
 0x3be   :  { %19025 = vmatpush3.xpose.msk.msra.mxu1 %vm583_vm2, %v24643_v16  ;;  %19026 = vmatprep.mubr.msk.f32.mxu1 %vm20320_vm1, %v24582_v61  ;;  %v5931_v14 = vpop.permute.xlu1 %5930 }
 0x3bf   :  { %19034 = vmatprep.subr.mxu1 %v24582_v61 }
 0x3c1   :  { %19027 = vmatmul.mubr.msk.f32.vlgmr.msra.gmra.mrb[102].mxu1 %vm583_vm2, %v24644_v13 }
 0x3c2   :  { %19035 = vmatpush3.xpose.msk.msra.mxu1 %vm583_vm2, %v20950_v23  ;;  %19036 = vmatprep.mubr.msk.f32.mxu1 %vm20320_vm1, %v24582_v61  ;;  %v6089_v46 = vpop.permute.xlu1 %6088 }
 0x3c3   :  { %19044 = vmatprep.subr.mxu1 %v24582_v61 }
 0x3c5   :  { %19037 = vmatmul.mubr.msk.f32.vlgmr.msra.gmra.mrb[104].mxu1 %vm583_vm2, %v21028_v28 }
 0x3c6   :  { %19045 = vmatpush3.xpose.msk.msra.mxu1 %vm583_vm2, %v21245_v20  ;;  %19046 = vmatprep.mubr.msk.f32.mxu1 %vm20320_vm1, %v24582_v61  ;;  %v6087_v23 = vpop.permute.xlu1 %6086 }
 0x3c7   :  { %19054 = vmatprep.subr.mxu1 %v24582_v61 }
 0x3c9   :  { %19047 = vmatmul.mubr.msk.f32.vlgmr.msra.gmra.mrb[106].mxu1 %vm583_vm2, %v21333_v17 }
 0x3ca   :  { %19055 = vmatpush3.xpose.msk.msra.mxu1 %vm583_vm2, %v5465_v41  ;;  %19056 = vmatprep.mubr.msk.f32.mxu1 %vm20320_vm1, %v24582_v61  ;;  %v6245_v28 = vpop.permute.xlu1 %6244 }
 0x3cb   :  { %19064 = vmatprep.subr.mxu1 %v24582_v61 }
 0x3cd   :  { %19057 = vmatmul.mubr.msk.f32.vlgmr.msra.gmra.mrb[108].mxu1 %vm583_vm2, %v5463_v48 }
 0x3ce   :  { %19065 = vmatpush3.xpose.msk.msra.mxu1 %vm583_vm2, %v5621_v42  ;;  %19066 = vmatprep.mubr.msk.f32.mxu1 %vm20320_vm1, %v24582_v61  ;;  %v6243_v20 = vpop.permute.xlu1 %6242 }
 0x3cf   :  { %19074 = vmatprep.subr.mxu1 %v24582_v61 }
 0x3d1   :  { %19067 = vmatmul.mubr.msk.f32.vlgmr.msra.gmra.mrb[110].mxu1 %vm583_vm2, %v5619_v40 }
 0x3d2   :  { %19075 = vmatpush3.xpose.msk.msra.mxu1 %vm583_vm2, %v5777_v26  ;;  %19076 = vmatprep.mubr.msk.f32.mxu1 %vm20320_vm1, %v24582_v61  ;;  %v6687_v48 = vpop.permute.xlu1 %6686 }
 0x3d3   :  { %19084 = vmatprep.subr.mxu1 %v24582_v61 }
 0x3d5   :  { %19077 = vmatmul.mubr.msk.f32.vlgmr.msra.gmra.mrb[112].mxu1 %vm583_vm2, %v5775_v12 }
 0x3d6   :  { %19085 = vmatpush3.xpose.msk.msra.mxu1 %vm583_vm2, %v5933_v1  ;;  %19086 = vmatprep.mubr.msk.f32.mxu1 %vm20320_vm1, %v24582_v61 }
 0x3d7   :  { %19094 = vmatprep.subr.mxu1 %v24582_v61 }
 0x3d9   :  { %19087 = vmatmul.mubr.msk.f32.vlgmr.msra.gmra.mrb[114].mxu1 %vm583_vm2, %v5931_v14 }
 0x3da   :  { %19095 = vmatpush3.xpose.msk.msra.mxu1 %vm583_vm2, %v6089_v46  ;;  %19096 = vmatprep.mubr.msk.f32.mxu1 %vm20320_vm1, %v24582_v61 }
 0x3db   :  { %19104 = vmatprep.subr.mxu1 %v24582_v61 }
 0x3dd   :  { %19097 = vmatmul.mubr.msk.f32.vlgmr.msra.gmra.mrb[116].mxu1 %vm583_vm2, %v6087_v23  ;;  %v21502_v17 = vpop.f32.mrb[48].mxu0 }
 0x3de   :  { %24645 = vst [vmem:[#allocation31_spill] sm:$0xff] %v21502_v17  ;;  %19105 = vmatpush3.xpose.msk.msra.mxu1 %vm583_vm2, %v6245_v28  ;;  %19106 = vmatprep.mubr.msk.f32.mxu1 %vm20320_vm1, %v24582_v61  ;;  %v18873_v41 = vpop.f32.mrb[49].mxu0 }
 0x3df   :  { %19114 = vmatprep.subr.mxu1 %v24582_v61 }
 0x3e1   :  { %19107 = vmatmul.mubr.msk.f32.vlgmr.msra.gmra.mrb[118].mxu1 %vm583_vm2, %v6243_v20  ;;  %v21509_v42 = vpop.f32.mrb[72].mxu1 }
 0x3e2   :  { %24646 = vst [vmem:[#allocation4_spill] sm:$0xff] %v21509_v42  ;;  %19115 = vmatpush3.msra.mxu1 %v6687_v48  ;;  %v18878_v40 = vpop.f32.mrb[73].mxu1  ;;  %19116 = vmatprep.mubr.msk.f32.mxu1 %vm20320_vm1, %v24582_v61 }
 0x3e3   :  { %19124 = vmatprep.subr.mxu1 %v24582_v61 }
 0x3e5   :  { %v21514_v26 = vpop.f32.mrb[50].mxu0 }
 0x3e6   :  { %24647 = vst [vmem:[#allocation33_spill] sm:$0xff] %v21514_v26  ;;  %v18883_v12 = vpop.f32.mrb[51].mxu0 }
 0x3e9   :  { %v21516_v57 = vpop.f32.mrb[74].mxu1 }
 0x3ea   :  { %24648 = vst [vmem:[#allocation11_spill] sm:$0xff] %v21516_v57  ;;  %v18888_v39 = vpop.f32.mrb[75].mxu1  ;;  %v21558_v57 = vpop.permute.xlu0 %6763 }
 0x3ed   :  { %v21518_v1 = vpop.f32.mrb[52].mxu0 }
 0x3ee   :  { %24649 = vst [vmem:[#allocation32_spill] sm:$0xff] %v21518_v1  ;;  %v18893_v34 = vpop.f32.mrb[53].mxu0 }
 0x3f1   :  { %v21520_v16 = vpop.f32.mrb[76].mxu1 }
 0x3f2   :  { %24650 = vst [vmem:[#allocation9_spill] sm:$0xff] %v21520_v16  ;;  %v18898_v13 = vpop.f32.mrb[77].mxu1 }
 0x3f5   :  { %v21522_v14 = vpop.f32.mrb[54].mxu0 }
 0x3f6   :  { %24651 = vst [vmem:[#allocation36_spill] sm:$0xff] %v21522_v14  ;;  %v18903_v46 = vpop.f32.mrb[55].mxu0 }
 0x3f9   :  { %v21524_v23 = vpop.f32.mrb[78].mxu1 }
 0x3fa   :  { %24652 = vst [vmem:[#allocation17_spill] sm:$0xff] %v21524_v23  ;;  %v18908_v28 = vpop.f32.mrb[79].mxu1 }
 0x401   :  { %v21526_v20 = vpop.f32.mrb[80].mxu1 }
 0x402   :  { %24653 = vst [vmem:[#allocation35_spill] sm:$0xff] %v21526_v20  ;;  %v18918_v41 = vpop.f32.mrb[81].mxu1 }
 0x403   :  { %v21528_v48 = vpop.f32.mrb[56].mxu0 }
 0x404   :  { %24654 = vst [vmem:[#allocation70_spill] sm:$0xff] %v21528_v48  ;;  %v18913_v40 = vpop.f32.mrb[57].mxu0 }
 0x40e   :  { %v21530_v12 = vpop.f32.mrb[58].mxu0 }
 0x40f   :  { %24655 = vst [vmem:[#allocation61_spill] sm:$0xff] %v21530_v12  ;;  %v18923_v39 = vpop.f32.mrb[59].mxu0 }
 0x412   :  { %v21532_v1 = vpop.f32.mrb[60].mxu0 }
 0x413   :  { %24656 = vst [vmem:[#allocation68_spill] sm:$0xff] %v21532_v1  ;;  %v18933_v34 = vpop.f32.mrb[61].mxu0 }
 0x416   :  { %v21534_v16 = vpop.f32.mrb[62].mxu0 }
 0x417   :  { %24657 = vst [vmem:[#allocation62_spill] sm:$0xff] %v21534_v16  ;;  %v18943_v13 = vpop.f32.mrb[63].mxu0 }
 0x41a   :  { %v21536_v14 = vpop.f32.mrb[64].mxu0 }
 0x41b   :  { %24658 = vst [vmem:[#allocation74_spill] sm:$0xff] %v21536_v14  ;;  %v18953_v46 = vpop.f32.mrb[65].mxu0 }
 0x41e   :  { %v21538_v23 = vpop.f32.mrb[66].mxu0 }
 0x41f   :  { %24659 = vst [vmem:[#allocation66_spill] sm:$0xff] %v21538_v23  ;;  %v18963_v28 = vpop.f32.mrb[67].mxu0 }
 0x436   :  { %v21540_v20 = vpop.f32.mrb[82].mxu1 }
 0x437   :  { %24660 = vst [vmem:[#allocation72_spill] sm:$0xff] %v21540_v20  ;;  %v18928_v41 = vpop.f32.mrb[83].mxu1 }
 0x443   :  { %v21542_v48 = vpop.f32.mrb[68].mxu0 }
 0x444   :  { %24661 = vst [vmem:[#allocation64_spill] sm:$0xff] %v21542_v48  ;;  %v18973_v40 = vpop.f32.mrb[69].mxu0 }
 0x447   :  { %v21544_v12 = vpop.f32.mrb[70].mxu0 }
 0x448   :  { %24662 = vst [vmem:[#allocation76_spill] sm:$0xff] %v21544_v12  ;;  %v18983_v39 = vpop.f32.mrb[71].mxu0 }
 0x44e   :  { %v4522_v1 = vpop.f32.mrb[72].mxu0 }
 0x44f   :  { %v21546_v34 = vmul.f32 0.35355338, %v4522_v1  ;;  %v18993_v16 = vpop.f32.mrb[73].mxu0 }
 0x451   :  { %v6344_v13 = vsel %vm583_vm2, %v21546_v34, -inf }
 0x452   :  { %6345 = vmax.xlane.f32.xlu0 %v6344_v13  ;;  %v4678_v46 = vpop.f32.mrb[74].mxu0 }
 0x453   :  { %v21550_v23 = vmul.f32 0.35355338, %v4678_v46  ;;  %v19003_v28 = vpop.f32.mrb[75].mxu0 }
 0x455   :  { %v6350_v41 = vsel %vm583_vm2, %v21550_v23, -inf }
 0x456   :  { %6351 = vmax.xlane.f32.xlu0 %v6350_v41  ;;  %v4834_v40 = vpop.f32.mrb[76].mxu0 }
 0x457   :  { %v19013_v48 = vpop.f32.mrb[77].mxu0 }
 0x458   :  { %v21566_v48 = vpop.permute.xlu0 %6917 }
 0x45a   :  { %v4990_v12 = vpop.f32.mrb[78].mxu0 }
 0x45b   :  { %v19023_v39 = vpop.f32.mrb[79].mxu0  ;;  %v21608_v50 = vmul.f32 0.35355338, %v4990_v12 }
 0x45c   :  { %v21574_v8 = vpop.permute.xlu0 %7071 }
 0x45d   :  { %24666 = vst [vmem:[#allocation63_spill] sm:$0xff] %v21574_v8 }
 0x45e   :  { %v5146_v14 = vpop.f32.mrb[80].mxu0 }
 0x45f   :  { %v19033_v1 = vpop.f32.mrb[81].mxu0 }
 0x462   :  { %v21554_v20 = vpop.f32.mrb[82].mxu0 }
 0x463   :  { %v19043_v16 = vpop.f32.mrb[83].mxu0 }
 0x466   :  { %v21556_v26 = vpop.f32.mrb[84].mxu0 }
 0x467   :  { %v19053_v13 = vpop.f32.mrb[85].mxu0 }
 0x46a   :  { %v21560_v46 = vpop.f32.mrb[86].mxu0 }
 0x46b   :  { %v19063_v28 = vpop.f32.mrb[87].mxu0  ;;  %v21562_v17 = vpop.f32.mrb[84].mxu1 }
 0x46c   :  { %24663 = vst [vmem:[#allocation73_spill] sm:$0xff] %v21562_v17  ;;  %v18938_v41 = vpop.f32.mrb[85].mxu1 }
 0x46e   :  { %v21564_v42 = vpop.f32.mrb[88].mxu0 }
 0x46f   :  { %v19073_v39 = vpop.f32.mrb[89].mxu0 }
 0x470   :  { %v21568_v1 = vpop.f32.mrb[86].mxu1  ;;  %v21582_v39 = vpop.permute.xlu0 %7225 }
 0x471   :  { %24664 = vst [vmem:[#allocation65_spill] sm:$0xff] %v21568_v1  ;;  %v18948_v11 = vpop.f32.mrb[87].mxu1  ;;  %24668 = vst [vmem:[#allocation69_spill] sm:$0xff] %v21582_v39 }
 0x472   :  { %v21570_v16 = vpop.f32.mrb[90].mxu0 }
 0x473   :  { %v19083_v18 = vpop.f32.mrb[91].mxu0 }
 0x474   :  { %v21572_v13 = vpop.f32.mrb[88].mxu1  ;;  %v21586_v18 = vpop.permute.xlu0 %7379 }
 0x475   :  { %24665 = vst [vmem:[#allocation71_spill] sm:$0xff] %v21572_v13  ;;  %v18958_v52 = vpop.f32.mrb[89].mxu1  ;;  %24670 = vst [vmem:[#allocation67_spill] sm:$0xff] %v21586_v18  ;;  %v21600_v18 = vmul.f32 0.35355338, %v4834_v40 }
 0x476   :  { %v21576_v28 = vpop.f32.mrb[92].mxu0 }
 0x477   :  { %v19093_v17 = vpop.f32.mrb[93].mxu0 }
 0x478   :  { %v21590_v52 = vpop.permute.xlu0 %7533 }
 0x479   :  { %v21578_v41 = vpop.f32.mrb[90].mxu1  ;;  %24672 = vst [vmem:[#allocation79_spill] sm:$0xff] %v21590_v52 }
 0x47a   :  { %24667 = vst [vmem:[#allocation77_spill] sm:$0xff] %v21578_v41  ;;  %v18968_v44 = vpop.f32.mrb[91].mxu1  ;;  %v21580_v7 = vpop.f32.mrb[94].mxu0 }
 0x47b   :  { %v19103_v1 = vpop.f32.mrb[95].mxu0 }
 0x47c   :  { %v21596_v1 = vpop.permute.xlu0 %7841 }
 0x47d   :  { %v21584_v11 = vpop.f32.mrb[92].mxu1  ;;  %24673 = vst [vmem:[#allocation80_spill] sm:$0xff] %v21596_v1 }
 0x47e   :  { %24669 = vst [vmem:[#allocation75_spill] sm:$0xff] %v21584_v11  ;;  %v18978_v15 = vpop.f32.mrb[93].mxu1 }
 0x480   :  { %v21606_v52 = vpop.permute.xlu0 %7995 }
 0x481   :  { %v21588_v13 = vpop.f32.mrb[94].mxu1  ;;  %24674 = vst [vmem:[#allocation81_spill] sm:$0xff] %v21606_v52 }
 0x482   :  { %24671 = vst [vmem:[#allocation78_spill] sm:$0xff] %v21588_v13  ;;  %v18988_v47 = vpop.f32.mrb[95].mxu1 }
 0x484   :  { %v21624_v38 = vpop.permute.xlu0 %8149 }
 0x485   :  { %24676 = vst [vmem:[#allocation83_spill] sm:$0xff] %v21624_v38 }
 0x488   :  { %v4600_v8 = vpop.f32.mrb[96].mxu1 }
 0x489   :  { %v21592_v17 = vmul.f32 0.35355338, %v4600_v8  ;;  %v18998_v41 = vpop.f32.mrb[97].mxu1 }
 0x48b   :  { %v6347_v44 = vsel %vm583_vm2, %v21592_v17, -inf }
 0x48c   :  { %6348 = vmax.xlane.f32.xlu1 %v6347_v44  ;;  %v4756_v39 = vpop.f32.mrb[98].mxu1 }
 0x48d   :  { %v21598_v11 = vmul.f32 0.35355338, %v4756_v39  ;;  %v19008_v15 = vpop.f32.mrb[99].mxu1  ;;  %v6356_v39 = vsel %vm583_vm2, %v21600_v18, -inf }
 0x48f   :  { %v6353_v47 = vsel %vm583_vm2, %v21598_v11, -inf }
 0x490   :  { %v4912_v13 = vpop.f32.mrb[100].mxu1  ;;  %6354 = vmax.xlane.f32.xlu0 %v6353_v47  ;;  %v21616_v47 = vpop.permute.xlu1 %6840 }
 0x491   :  { %v21604_v8 = vmul.f32 0.35355338, %v4912_v13  ;;  %v19018_v41 = vpop.f32.mrb[101].mxu1  ;;  %24675 = vst [vmem:[#allocation82_spill] sm:$0xff] %v21616_v47  ;;  %v21618_v13 = vmul.f32 0.35355338, %v5146_v14 }
 0x492   :  { %v6362_v41 = vsel %vm583_vm2, %v21608_v50, -inf }
 0x493   :  { %v6359_v44 = vsel %vm583_vm2, %v21604_v8, -inf }
 0x494   :  { %6360 = vmax.xlane.f32.xlu1 %v6359_v44  ;;  %v5068_v40 = vpop.f32.mrb[102].mxu1  ;;  %6357 = vmax.xlane.f32.xlu0 %v6356_v39 }
 0x495   :  { %v21614_v15 = vmul.f32 0.35355338, %v5068_v40  ;;  %v19028_v1 = vpop.f32.mrb[103].mxu1  ;;  %v6368_v40 = vsel %vm583_vm2, %v21618_v13, -inf }
 0x496   :  { %v21629_v1 = vmul.f32 0.35355338, %v21554_v20 }
 0x497   :  { %v6365_v12 = vsel %vm583_vm2, %v21614_v15, -inf }
 0x498   :  { %6366 = vmax.xlane.f32.xlu1 %v6365_v12  ;;  %v5224_v52 = vpop.f32.mrb[104].mxu1  ;;  %6363 = vmax.xlane.f32.xlu0 %v6362_v41  ;;  %v21635_v12 = vpop.permute.xlu1 %6994  ;;  %v6374_v32 = vsel %vm583_vm2, %v21629_v1, -inf }
 0x499   :  { %v21626_v44 = vmul.f32 0.35355338, %v5224_v52  ;;  %v19038_v39 = vpop.f32.mrb[105].mxu1  ;;  %24677 = vst [vmem:[#allocation84_spill] sm:$0xff] %v21635_v12  ;;  %v21639_v52 = vpop.permute.xlu0 %8303 }
 0x49a   :  { %24678 = vst [vmem:[#allocation85_spill] sm:$0xff] %v21639_v52  ;;  %v21642_v39 = vmul.f32 0.35355338, %v21556_v26 }
 0x49b   :  { %v6371_v14 = vsel %vm583_vm2, %v21626_v44, -inf }
 0x49c   :  { %6372 = vmax.xlane.f32.xlu1 %v6371_v14  ;;  %v5380_v47 = vpop.f32.mrb[106].mxu1  ;;  %6369 = vmax.xlane.f32.xlu0 %v6368_v40  ;;  %v6380_v52 = vsel %vm583_vm2, %v21642_v39, -inf }
 0x49d   :  { %v21637_v41 = vmul.f32 0.35355338, %v5380_v47  ;;  %v19048_v38 = vpop.f32.mrb[107].mxu1  ;;  %v21650_v47 = vpop.permute.xlu1 %7148 }
 0x49e   :  { %24679 = vst [vmem:[#allocation86_spill] sm:$0xff] %v21650_v47  ;;  %v21653_v38 = vmul.f32 0.35355338, %v21560_v46 }
 0x49f   :  { %v6377_v20 = vsel %vm583_vm2, %v21637_v41, -inf }
 0x4a0   :  { %6378 = vmax.xlane.f32.xlu1 %v6377_v20  ;;  %v5536_v14 = vpop.f32.mrb[108].mxu1  ;;  %6375 = vmax.xlane.f32.xlu0 %v6374_v32  ;;  %v21659_v20 = vpop.permute.xlu0 %8458  ;;  %v6386_v47 = vsel %vm583_vm2, %v21653_v38, -inf }
 0x4a1   :  { %v21648_v40 = vmul.f32 0.35355338, %v5536_v14  ;;  %v19058_v12 = vpop.f32.mrb[109].mxu1  ;;  %24680 = vst [vmem:[#allocation87_spill] sm:$0xff] %v21659_v20 }
 0x4a2   :  { %v21664_v12 = vmul.f32 0.35355338, %v21564_v42 }
 0x4a3   :  { %v6383_v26 = vsel %vm583_vm2, %v21648_v40, -inf }
 0x4a4   :  { %6384 = vmax.xlane.f32.xlu1 %v6383_v26  ;;  %v5692_v6 = vpop.f32.mrb[110].mxu1  ;;  %6381 = vmax.xlane.f32.xlu0 %v6380_v52  ;;  %v21670_v26 = vpop.permute.xlu1 %7302  ;;  %v6392_v9 = vsel %vm583_vm2, %v21664_v12, -inf }
 0x4a5   :  { %v21661_v32 = vmul.f32 0.35355338, %v5692_v6  ;;  %v19068_v14 = vpop.f32.mrb[111].mxu1  ;;  %24681 = vst [vmem:[#allocation88_spill] sm:$0xff] %v21670_v26  ;;  %v21674_v6 = vpop.permute.xlu0 %8456 }
 0x4a6   :  { %24682 = vst [vmem:[#allocation89_spill] sm:$0xff] %v21674_v6  ;;  %v21677_v14 = vmul.f32 0.35355338, %v21570_v16 }
 0x4a7   :  { %v6389_v46 = vsel %vm583_vm2, %v21661_v32, -inf }
 0x4a8   :  { %6390 = vmax.xlane.f32.xlu1 %v6389_v46  ;;  %v5848_v45 = vpop.f32.mrb[112].mxu1  ;;  %6387 = vmax.xlane.f32.xlu0 %v6386_v47  ;;  %v6398_v6 = vsel %vm583_vm2, %v21677_v14, -inf }
 0x4a9   :  { %v21672_v52 = vmul.f32 0.35355338, %v5848_v45  ;;  %v19078_v20 = vpop.f32.mrb[113].mxu1  ;;  %v21685_v45 = vpop.permute.xlu1 %7456 }
 0x4aa   :  { %24683 = vst [vmem:[#allocation90_spill] sm:$0xff] %v21685_v45  ;;  %v21688_v20 = vmul.f32 0.35355338, %v21576_v28 }
 0x4ab   :  { %v6395_v42 = vsel %vm583_vm2, %v21672_v52, -inf }
 0x4ac   :  { %6396 = vmax.xlane.f32.xlu1 %v6395_v42  ;;  %v6004_v46 = vpop.f32.mrb[114].mxu1  ;;  %6393 = vmax.xlane.f32.xlu0 %v6392_v9  ;;  %v21694_v42 = vpop.permute.xlu0 %8614  ;;  %v6404_v45 = vsel %vm583_vm2, %v21688_v20, -inf }
 0x4ad   :  { %v21683_v47 = vmul.f32 0.35355338, %v6004_v46  ;;  %v19088_v26 = vpop.f32.mrb[115].mxu1  ;;  %24684 = vst [vmem:[#allocation91_spill] sm:$0xff] %v21694_v42 }
 0x4ae   :  { %v21699_v26 = vmul.f32 0.35355338, %v21580_v7 }
 0x4af   :  { %v6401_v16 = vsel %vm583_vm2, %v21683_v47, -inf }
 0x4b0   :  { %6402 = vmax.xlane.f32.xlu1 %v6401_v16  ;;  %v6160_v3 = vpop.f32.mrb[116].mxu1  ;;  %6399 = vmax.xlane.f32.xlu0 %v6398_v6  ;;  %v21705_v16 = vpop.permute.xlu1 %7610 }
 0x4b1   :  { %v21696_v9 = vmul.f32 0.35355338, %v6160_v3  ;;  %v19098_v46 = vpop.f32.mrb[117].mxu1  ;;  %24685 = vst [vmem:[#allocation92_spill] sm:$0xff] %v21705_v16  ;;  %v21709_v3 = vpop.permute.xlu0 %8612 }
 0x4b2   :  { %24686 = vst [vmem:[#allocation93_spill] sm:$0xff] %v21709_v3  ;;  %v6410_v46 = vsel %vm583_vm2, %v21699_v26, -inf }
 0x4b3   :  { %v6407_v28 = vsel %vm583_vm2, %v21696_v9, -inf }
 0x4b4   :  { %6408 = vmax.xlane.f32.xlu1 %v6407_v28  ;;  %v6316_v10 = vpop.f32.mrb[118].mxu1  ;;  %6405 = vmax.xlane.f32.xlu0 %v6404_v45  ;;  %v21715_v4 = vpop.permute.xlu1 %7687 }
 0x4b5   :  { %v21707_v6 = vmul.f32 0.35355338, %v6316_v10  ;;  %v19108_v42 = vpop.f32.mrb[119].mxu1  ;;  %24687 = vst [vmem:[#allocation94_spill] sm:$0xff] %v21715_v4  ;;  %v21717_v28 = vpop.permute.xlu0 %8770 }
 0x4b6   :  { %24688 = vst [vmem:[#allocation95_spill] sm:$0xff] %v21717_v28 }
 0x4b7   :  { %v6413_v7 = vsel %vm583_vm2, %v21707_v6, -inf }
 0x4b8   :  { %6414 = vmax.xlane.f32.xlu1 %v6413_v7  ;;  %6411 = vmax.xlane.f32.xlu0 %v6410_v46  ;;  %v21719_v45 = vpop.permute.xlu1 %7764  ;;  %v24694_v7 = vld [vmem:[#allocation27_spill] sm:$0xff] }
 0x4b9   :  { %24689 = vst [vmem:[#allocation96_spill] sm:$0xff] %v21719_v45  ;;  %v21721_v16 = vpop.permute.xlu0 %8768 }
 0x4ba   :  { %24690 = vst [vmem:[#allocation97_spill] sm:$0xff] %v21721_v16 }
 0x4bc   :  { %v21723_v10 = vpop.permute.xlu1 %7918 }
 0x4bd   :  { %24691 = vst [vmem:[#allocation98_spill] sm:$0xff] %v21723_v10  ;;  %v21725_v42 = vpop.permute.xlu0 %8926 }
 0x4be   :  { %24692 = vst [vmem:[#allocation99_spill] sm:$0xff] %v21725_v42 }
 0x4c0   :  { %v21729_v3 = vpop.permute.xlu1 %8072 }
 0x4c1   :  { %24693 = vst [vmem:[#allocation100_spill] sm:$0xff] %v21729_v3  ;;  %v21733_v46 = vpop.permute.xlu0 %8924 }
 0x4c2   :  { %24695 = vst [vmem:[#allocation101_spill] sm:$0xff] %v21733_v46 }
 0x4c4   :  { %v21735_v4 = vpop.permute.xlu1 %8226 }
 0x4c5   :  { %24696 = vst [vmem:[#allocation102_spill] sm:$0xff] %v21735_v4  ;;  %v21737_v28 = vpop.permute.xlu0 %9082 }
 0x4c6   :  { %24697 = vst [vmem:[#allocation103_spill] sm:$0xff] %v21737_v28 }
 0x4c8   :  { %v21739_v45 = vpop.permute.xlu1 %8380 }
 0x4c9   :  { %9316 = vrot.lane.b32.xlu1 %v20593_v53, %s20322_s1  ;;  %24698 = vst [vmem:[#allocation104_spill] sm:$0xff] %v21739_v45  ;;  %v21741_v16 = vpop.permute.xlu0 %9080 }
 0x4ca   :  { %24699 = vst [vmem:[#allocation105_spill] sm:$0xff] %v21741_v16 }
 0x4cc   :  { %v21743_v10 = vpop.permute.xlu1 %8536 }
 0x4cd   :  { %24700 = vst [vmem:[#allocation106_spill] sm:$0xff] %v21743_v10 }
 0x4ce   :  { %9238 = vrot.lane.b32.xlu0 %v24694_v7, %s20322_s1 }
 0x4d0   :  { %v21747_v35 = vpop.permute.xlu1 %8534 }
 0x4d1   :  { %24701 = vst [vmem:[#allocation107_spill] sm:$0xff] %v21747_v35 }
 0x4d4   :  { %v21749_v4 = vpop.permute.xlu1 %8692 }
 0x4d5   :  { %24702 = vst [vmem:[#allocation108_spill] sm:$0xff] %v21749_v4 }
 0x4d8   :  { %v21755_v10 = vpop.permute.xlu1 %8690 }
 0x4d9   :  { %24703 = vst [vmem:[#allocation109_spill] sm:$0xff] %v21755_v10 }
 0x4df   :  { %v6346_v42 = vpop.xlane.xlu0 %6345 }
 0x4e0   :  { %v6416_v53 = vsub.f32 %v21546_v34, %v6346_v42 }
 0x4e2   :  { %v6440_v5 = vmul.f32 1.442695, %v6416_v53 }
 0x4e3   :  { %v6352_v3 = vpop.xlane.xlu0 %6351 }
 0x4e4   :  { %19887 = vpow2.f32 %v6440_v5  ;;  %v6418_v7 = vsub.f32 %v21550_v23, %v6352_v3  ;;  %v21761_v5 = vpop.permute.xlu1 %8848 }
 0x4e5   :  { %24704 = vst [vmem:[#allocation110_spill] sm:$0xff] %v21761_v5 }
 0x4e6   :  { %v6444_v46 = vmul.f32 1.442695, %v6418_v7 }
 0x4e8   :  { %19889 = vpow2.f32 %v6444_v46  ;;  %v21763_v23 = vpop.permute.xlu1 %8846 }
 0x4e9   :  { %24705 = vst [vmem:[#allocation111_spill] sm:$0xff] %v21763_v23 }
 0x4ec   :  { %v21765_v3 = vpop.permute.xlu1 %9004 }
 0x4ed   :  { %24706 = vst [vmem:[#allocation112_spill] sm:$0xff] %v21765_v3 }
 0x4ee   :  { %v21751_v28 = vpop.eup %19887 }
 0x4ef   :  { %v6488_v16 = vsel %vm583_vm2, %v21751_v28, 0.0 }
 0x4f0   :  { %6489 = vadd.xlane.f32.xlu0 %v6488_v16  ;;  %v21767_v42 = vpop.permute.xlu1 %9002 }
 0x4f1   :  { %24707 = vst [vmem:[#allocation113_spill] sm:$0xff] %v21767_v42 }
 0x4f2   :  { %v21757_v34 = vpop.eup %19889 }
 0x4f3   :  { %v6494_v53 = vsel %vm583_vm2, %v21757_v34, 0.0 }
 0x4f4   :  { %6495 = vadd.xlane.f32.xlu0 %v6494_v53  ;;  %v21769_v7 = vpop.permute.xlu1 %9160 }
 0x4f5   :  { %24708 = vst [vmem:[#allocation114_spill] sm:$0xff] %v21769_v7 }
 0x4f8   :  { %v21771_v46 = vpop.permute.xlu1 %9158 }
 0x4f9   :  { %24709 = vst [vmem:[#allocation115_spill] sm:$0xff] %v21771_v46 }
 0x519   :  { %v6349_v16 = vpop.xlane.xlu1 %6348 }
 0x51a   :  { %v6417_v10 = vsub.f32 %v21592_v17, %v6349_v16 }
 0x51c   :  { %v6442_v4 = vmul.f32 1.442695, %v6417_v10 }
 0x51d   :  { %v6355_v35 = vpop.xlane.xlu0 %6354 }
 0x51e   :  { %19891 = vpow2.f32 %v6442_v4  ;;  %v6419_v53 = vsub.f32 %v21598_v11, %v6355_v35 }
 0x520   :  { %v6446_v45 = vmul.f32 1.442695, %v6419_v53 }
 0x521   :  { %v6361_v5 = vpop.xlane.xlu1 %6360  ;;  %v6358_v24 = vpop.xlane.xlu0 %6357 }
 0x522   :  { %19893 = vpow2.f32 %v6446_v45  ;;  %v6421_v3 = vsub.f32 %v21604_v8, %v6361_v5  ;;  %v6420_v42 = vsub.f32 %v21600_v18, %v6358_v24 }
 0x524   :  { %v6450_v23 = vmul.f32 1.442695, %v6421_v3  ;;  %v6448_v7 = vmul.f32 1.442695, %v6420_v42 }
 0x525   :  { %v6367_v63 = vpop.xlane.xlu1 %6366  ;;  %v6364_v46 = vpop.xlane.xlu0 %6363 }
 0x526   :  { %19895 = vpow2.f32 %v6450_v23  ;;  %v6423_v17 = vsub.f32 %v21614_v15, %v6367_v63  ;;  %v6422_v10 = vsub.f32 %v21608_v50, %v6364_v46 }
 0x527   :  { %19897 = vpow2.f32 %v6448_v7 }
 0x528   :  { %v21779_v4 = vpop.eup %19891  ;;  %v6454_v35 = vmul.f32 1.442695, %v6423_v17  ;;  %v6452_v11 = vmul.f32 1.442695, %v6422_v10 }
 0x529   :  { %v6373_v16 = vpop.xlane.xlu1 %6372  ;;  %v6370_v45 = vpop.xlane.xlu0 %6369  ;;  %v6491_v8 = vsel %vm583_vm2, %v21779_v4, 0.0 }
 0x52a   :  { %19899 = vpow2.f32 %v6454_v35  ;;  %v6425_v24 = vsub.f32 %v21626_v44, %v6373_v16  ;;  %v6424_v18 = vsub.f32 %v21618_v13, %v6370_v45  ;;  %6492 = vadd.xlane.f32.xlu1 %v6491_v8 }
 0x52b   :  { %19901 = vpow2.f32 %v6452_v11 }
 0x52c   :  { %v21785_v63 = vpop.eup %19893  ;;  %v6458_v50 = vmul.f32 1.442695, %v6425_v24  ;;  %v6456_v15 = vmul.f32 1.442695, %v6424_v18 }
 0x52d   :  { %v6379_v5 = vpop.xlane.xlu1 %6378  ;;  %v6376_v23 = vpop.xlane.xlu0 %6375  ;;  %v6497_v3 = vsel %vm583_vm2, %v21785_v63, 0.0 }
 0x52e   :  { %19903 = vpow2.f32 %v6458_v50  ;;  %v6427_v42 = vsub.f32 %v21637_v41, %v6379_v5  ;;  %v6426_v7 = vsub.f32 %v21629_v1, %v6376_v23  ;;  %6498 = vadd.xlane.f32.xlu1 %v6497_v3 }
 0x52f   :  { %19905 = vpow2.f32 %v6456_v15 }
 0x530   :  { %v21791_v44 = vpop.eup %19895  ;;  %v6462_v13 = vmul.f32 1.442695, %v6427_v42  ;;  %v6460_v46 = vmul.f32 1.442695, %v6426_v7 }
 0x531   :  { %v21793_v53 = vpop.eup %19897  ;;  %v6385_v17 = vpop.xlane.xlu1 %6384  ;;  %v6503_v35 = vsel %vm583_vm2, %v21791_v44, 0.0 }
 0x532   :  { %v6382_v10 = vpop.xlane.xlu0 %6381  ;;  %19907 = vpow2.f32 %v6462_v13  ;;  %v6429_v11 = vsub.f32 %v21648_v40, %v6385_v17  ;;  %6504 = vadd.xlane.f32.xlu1 %v6503_v35  ;;  %v6500_v1 = vsel %vm583_vm2, %v21793_v53, 0.0 }
 0x533   :  { %v6428_v41 = vsub.f32 %v21642_v39, %v6382_v10  ;;  %19909 = vpow2.f32 %v6460_v46  ;;  %6501 = vadd.xlane.f32.xlu0 %v6500_v1 }
 0x534   :  { %v21801_v16 = vpop.eup %19899  ;;  %v6466_v45 = vmul.f32 1.442695, %v6429_v11 }
 0x535   :  { %v6464_v8 = vmul.f32 1.442695, %v6428_v41  ;;  %v21803_v24 = vpop.eup %19901  ;;  %v6391_v18 = vpop.xlane.xlu1 %6390  ;;  %v6509_v15 = vsel %vm583_vm2, %v21801_v16, 0.0 }
 0x536   :  { %v6388_v50 = vpop.xlane.xlu0 %6387  ;;  %19911 = vpow2.f32 %v6466_v45  ;;  %v6431_v39 = vsub.f32 %v21661_v32, %v6391_v18  ;;  %6510 = vadd.xlane.f32.xlu1 %v6509_v15  ;;  %v6506_v5 = vsel %vm583_vm2, %v21803_v24, 0.0 }
 0x537   :  { %v6430_v40 = vsub.f32 %v21653_v38, %v6388_v50  ;;  %19913 = vpow2.f32 %v6464_v8  ;;  %6507 = vadd.xlane.f32.xlu0 %v6506_v5 }
 0x538   :  { %v21811_v23 = vpop.eup %19903  ;;  %v6470_v3 = vmul.f32 1.442695, %v6431_v39 }
 0x539   :  { %v6468_v42 = vmul.f32 1.442695, %v6430_v40  ;;  %v21813_v7 = vpop.eup %19905  ;;  %v6397_v13 = vpop.xlane.xlu1 %6396  ;;  %v6515_v17 = vsel %vm583_vm2, %v21811_v23, 0.0 }
 0x53a   :  { %v6394_v46 = vpop.xlane.xlu0 %6393  ;;  %19915 = vpow2.f32 %v6470_v3  ;;  %v6433_v38 = vsub.f32 %v21672_v52, %v6397_v13  ;;  %6516 = vadd.xlane.f32.xlu1 %v6515_v17  ;;  %v6512_v10 = vsel %vm583_vm2, %v21813_v7, 0.0 }
 0x53b   :  { %v6432_v32 = vsub.f32 %v21664_v12, %v6394_v46  ;;  %19917 = vpow2.f32 %v6468_v42  ;;  %6513 = vadd.xlane.f32.xlu0 %v6512_v10 }
 0x53c   :  { %v21821_v35 = vpop.eup %19907  ;;  %v6474_v11 = vmul.f32 1.442695, %v6433_v38 }
 0x53d   :  { %v6472_v41 = vmul.f32 1.442695, %v6432_v32  ;;  %v21823_v1 = vpop.eup %19909  ;;  %v6403_v45 = vpop.xlane.xlu1 %6402  ;;  %v6521_v18 = vsel %vm583_vm2, %v21821_v35, 0.0 }
 0x53e   :  { %v6400_v8 = vpop.xlane.xlu0 %6399  ;;  %19919 = vpow2.f32 %v6474_v11  ;;  %v6435_v12 = vsub.f32 %v21683_v47, %v6403_v45  ;;  %6522 = vadd.xlane.f32.xlu1 %v6521_v18  ;;  %v6518_v50 = vsel %vm583_vm2, %v21823_v1, 0.0 }
 0x53f   :  { %v6434_v52 = vsub.f32 %v21677_v14, %v6400_v8  ;;  %19921 = vpow2.f32 %v6472_v41  ;;  %6519 = vadd.xlane.f32.xlu0 %v6518_v50 }
 0x540   :  { %v21831_v15 = vpop.eup %19911  ;;  %v6478_v39 = vmul.f32 1.442695, %v6435_v12 }
 0x541   :  { %v6476_v40 = vmul.f32 1.442695, %v6434_v52  ;;  %v21833_v5 = vpop.eup %19913  ;;  %v6409_v3 = vpop.xlane.xlu1 %6408  ;;  %v6527_v13 = vsel %vm583_vm2, %v21831_v15, 0.0 }
 0x542   :  { %v6406_v42 = vpop.xlane.xlu0 %6405  ;;  %19923 = vpow2.f32 %v6478_v39  ;;  %v6437_v14 = vsub.f32 %v21696_v9, %v6409_v3  ;;  %6528 = vadd.xlane.f32.xlu1 %v6527_v13  ;;  %v6524_v46 = vsel %vm583_vm2, %v21833_v5, 0.0 }
 0x543   :  { %v6436_v47 = vsub.f32 %v21688_v20, %v6406_v42  ;;  %19925 = vpow2.f32 %v6476_v40  ;;  %6525 = vadd.xlane.f32.xlu0 %v6524_v46 }
 0x544   :  { %v21841_v17 = vpop.eup %19915  ;;  %v6482_v38 = vmul.f32 1.442695, %v6437_v14 }
 0x545   :  { %v6480_v32 = vmul.f32 1.442695, %v6436_v47  ;;  %v21843_v10 = vpop.eup %19917  ;;  %v6415_v11 = vpop.xlane.xlu1 %6414  ;;  %v6533_v45 = vsel %vm583_vm2, %v21841_v17, 0.0 }
 0x546   :  { %v6412_v41 = vpop.xlane.xlu0 %6411  ;;  %19927 = vpow2.f32 %v6482_v38  ;;  %v6439_v20 = vsub.f32 %v21707_v6, %v6415_v11  ;;  %v6530_v8 = vsel %vm583_vm2, %v21843_v10, 0.0 }
 0x547   :  { %v6438_v9 = vsub.f32 %v21699_v26, %v6412_v41  ;;  %19929 = vpow2.f32 %v6480_v32  ;;  %6531 = vadd.xlane.f32.xlu1 %v6530_v8  ;;  %6534 = vadd.xlane.f32.xlu0 %v6533_v45  ;;  %v24710_v45 = vld [vmem:[#allocation16_spill] sm:$0xff] }
 0x548   :  { %v21851_v18 = vpop.eup %19919  ;;  %v6486_v12 = vmul.f32 1.442695, %v6439_v20 }
 0x549   :  { %v6484_v52 = vmul.f32 1.442695, %v6438_v9  ;;  %v21853_v50 = vpop.eup %19921  ;;  %v6539_v39 = vsel %vm583_vm2, %v21851_v18, 0.0 }
 0x54a   :  { %19931 = vpow2.f32 %v6486_v12  ;;  %v6536_v6 = vsel %vm583_vm2, %v21853_v50, 0.0  ;;  %v21899_v20 = vpop.permute.xlu0 %9238 }
 0x54b   :  { %19933 = vpow2.f32 %v6484_v52  ;;  %6537 = vadd.xlane.f32.xlu1 %v6536_v6  ;;  %6540 = vadd.xlane.f32.xlu0 %v6539_v39 }
 0x54c   :  { %v21859_v26 = vpop.eup %19923 }
 0x54d   :  { %v21861_v40 = vpop.eup %19925  ;;  %v6545_v3 = vsel %vm583_vm2, %v21859_v26, 0.0 }
 0x54e   :  { %v6542_v42 = vsel %vm583_vm2, %v21861_v40, 0.0 }
 0x54f   :  { %6543 = vadd.xlane.f32.xlu1 %v6542_v42  ;;  %6546 = vadd.xlane.f32.xlu0 %v6545_v3  ;;  %v24715_v3 = vld [vmem:[#allocation38_spill] sm:$0xff]  ;;  %v24716_v42 = vld [vmem:[#allocation44_spill] sm:$0xff] }
 0x550   :  { %v21867_v13 = vpop.eup %19927 }
 0x551   :  { %v21869_v14 = vpop.eup %19929  ;;  %v6551_v47 = vsel %vm583_vm2, %v21867_v13, 0.0 }
 0x552   :  { %v6548_v46 = vsel %vm583_vm2, %v21869_v14, 0.0 }
 0x553   :  { %6549 = vadd.xlane.f32.xlu1 %v6548_v46  ;;  %6552 = vadd.xlane.f32.xlu0 %v6551_v47  ;;  %v24717_v47 = vld [vmem:[#allocation37_spill] sm:$0xff]  ;;  %v24718_v46 = vld [vmem:[#allocation43_spill] sm:$0xff] }
 0x554   :  { %v21875_v38 = vpop.eup %19931 }
 0x555   :  { %v21877_v32 = vpop.eup %19933  ;;  %v6557_v11 = vsel %vm583_vm2, %v21875_v38, 0.0 }
 0x556   :  { %v6554_v41 = vsel %vm583_vm2, %v21877_v32, 0.0 }
 0x557   :  { %6558 = vadd.xlane.f32.xlu0 %v6557_v11  ;;  %6555 = vadd.xlane.f32.xlu1 %v6554_v41  ;;  %v24719_v11 = vld [vmem:[#allocation42_spill] sm:$0xff]  ;;  %v24720_v41 = vld [vmem:[#allocation48_spill] sm:$0xff] }
 0x568   :  { %9314 = vrot.lane.b32.xlu1 %v24710_v45, %s20322_s1 }
 0x56c   :  { %9472 = vrot.lane.b32.xlu1 %v20624_v58, %s20322_s1 }
 0x56d   :  { %9236 = vrot.lane.b32.xlu0 %v20511_v36, %s20322_s1 }
 0x570   :  { %9470 = vrot.lane.b32.xlu1 %v20479_v25, %s20322_s1 }
 0x571   :  { %9394 = vrot.lane.b32.xlu0 %v20611_v56, %s20322_s1 }
 0x574   :  { %9628 = vrot.lane.b32.xlu1 %v24583_v31, %s20322_s1 }
 0x575   :  { %9392 = vrot.lane.b32.xlu0 %v20467_v21, %s20322_s1 }
 0x578   :  { %9626 = vrot.lane.b32.xlu1 %v24584_v43, %s20322_s1 }
 0x579   :  { %9550 = vrot.lane.b32.xlu0 %v20609_v55, %s20322_s1 }
 0x57c   :  { %9784 = vrot.lane.b32.xlu1 %v24587_v30, %s20322_s1 }
 0x57d   :  { %9548 = vrot.lane.b32.xlu0 %v20463_v19, %s20322_s1  ;;  %v6490_v9 = vpop.xlane.xlu0 %6489 }
 0x57e   :  { %19935 = vrcp.f32 %v6490_v9  ;;  %v24721_v9 = vld [vmem:[#allocation41_spill] sm:$0xff] }
 0x580   :  { %9782 = vrot.lane.b32.xlu1 %v24588_v62, %s20322_s1 }
 0x581   :  { %9706 = vrot.lane.b32.xlu0 %v20643_v60, %s20322_s1  ;;  %v6496_v8 = vpop.xlane.xlu0 %6495 }
 0x582   :  { %19937 = vrcp.f32 %v6496_v8  ;;  %v24722_v8 = vld [vmem:[#allocation47_spill] sm:$0xff] }
 0x584   :  { %9940 = vrot.lane.b32.xlu1 %v24589_v54, %s20322_s1 }
 0x585   :  { %9704 = vrot.lane.b32.xlu0 %v20489_v29, %s20322_s1 }
 0x588   :  { %v19936_v12 = vpop.eup %19935  ;;  %9938 = vrot.lane.b32.xlu1 %v24591_v33, %s20322_s1 }
 0x589   :  { %9862 = vrot.lane.b32.xlu0 %v20639_v59, %s20322_s1  ;;  %v6584_v52 = vmul.f32 %v19936_v12, %v21751_v28  ;;  %v24713_v28 = vld [vmem:[#allocation13_spill] sm:$0xff]  ;;  %v24723_v12 = vld [vmem:[#allocation46_spill] sm:$0xff] }
 0x58b   :  { %19112 = vmatmul.mubr.msk.f32.vlgmr.msra.gmra.mrb[96].mxu0 %vm583_vm2, %v6584_v52  ;;  %v21971_v52 = vpop.permute.xlu1 %9316 }
 0x58c   :  { %v19938_v39 = vpop.eup %19937  ;;  %10096 = vrot.lane.b32.xlu1 %v24594_v22, %s20322_s1  ;;  %19120 = vmatpush3.msra.mxu0 %v21558_v57  ;;  %v24711_v57 = vld [vmem:[#allocation34_spill] sm:$0xff] }
 0x58d   :  { %9860 = vrot.lane.b32.xlu0 %v20485_v27, %s20322_s1  ;;  %19121 = vmatprep.mubr.msk.f32.mxu0 %vm20320_vm1, %v24582_v61  ;;  %v6586_v6 = vmul.f32 %v19938_v39, %v21757_v34  ;;  %v24714_v34 = vld [vmem:[#allocation39_spill] sm:$0xff]  ;;  %v24724_v39 = vld [vmem:[#allocation52_spill] sm:$0xff] }
 0x58e   :  { %19129 = vmatprep.subr.mxu0 %v24582_v61 }
 0x58f   :  { %19122 = vmatmul.mubr.msk.f32.vlgmr.msra.gmra.mrb[98].mxu0 %vm583_vm2, %v6586_v6  ;;  %v24725_v6 = vld [vmem:[#allocation45_spill] sm:$0xff] }
 0x590   :  { %10094 = vrot.lane.b32.xlu1 %v24596_v2, %s20322_s1  ;;  %19130 = vmatpush3.msra.mxu0 %v21566_v48  ;;  %v24712_v48 = vld [vmem:[#allocation40_spill] sm:$0xff] }
 0x591   :  { %10018 = vrot.lane.b32.xlu0 %v20679_v0, %s20322_s1  ;;  %19131 = vmatprep.mubr.msk.f32.mxu0 %vm20320_vm1, %v24582_v61 }
 0x592   :  { %19139 = vmatprep.subr.mxu0 %v24582_v61 }
 0x594   :  { %10252 = vrot.lane.b32.xlu1 %v24598_v49, %s20322_s1 }
 0x595   :  { %10016 = vrot.lane.b32.xlu0 %v20513_v37, %s20322_s1 }
 0x598   :  { %10250 = vrot.lane.b32.xlu1 %v24600_v51, %s20322_s1 }
 0x599   :  { %10174 = vrot.lane.b32.xlu0 %v24711_v57, %s20322_s1 }
 0x59c   :  { %10692 = vrot.lane.b32.xlu1 %v24712_v48, %s20322_s1 }
 0x59d   :  { %10172 = vrot.lane.b32.xlu0 %v24713_v28, %s20322_s1 }
 0x5a0   :  { %10844 = vrot.lane.b32.xlu1 %v24714_v34, %s20322_s1 }
 0x5a1   :  { %10616 = vrot.lane.b32.xlu0 %v24715_v3, %s20322_s1 }
 0x5a4   :  { %10996 = vrot.lane.b32.xlu1 %v24716_v42, %s20322_s1 }
 0x5a5   :  { %10768 = vrot.lane.b32.xlu0 %v24717_v47, %s20322_s1 }
 0x5a8   :  { %11148 = vrot.lane.b32.xlu1 %v24718_v46, %s20322_s1  ;;  %v24729_v46 = vld [vmem:[#allocation54_spill] sm:$0xff] }
 0x5a9   :  { %10920 = vrot.lane.b32.xlu0 %v24719_v11, %s20322_s1 }
 0x5ac   :  { %11300 = vrot.lane.b32.xlu1 %v24720_v41, %s20322_s1  ;;  %v24726_v41 = vld [vmem:[#allocation49_spill] sm:$0xff] }
 0x5ad   :  { %11072 = vrot.lane.b32.xlu0 %v24721_v9, %s20322_s1  ;;  %v24727_v9 = vld [vmem:[#allocation50_spill] sm:$0xff] }
 0x5b0   :  { %11452 = vrot.lane.b32.xlu1 %v24722_v8, %s20322_s1 }
 0x5b1   :  { %11224 = vrot.lane.b32.xlu0 %v24723_v12, %s20322_s1  ;;  %v24728_v12 = vld [vmem:[#allocation51_spill] sm:$0xff] }
 0x5b4   :  { %11604 = vrot.lane.b32.xlu1 %v24724_v39, %s20322_s1 }
 0x5b5   :  { %11376 = vrot.lane.b32.xlu0 %v24725_v6, %s20322_s1  ;;  %v24730_v6 = vld [vmem:[#allocation56_spill] sm:$0xff] }
 0x5b7   :  { %v6493_v11 = vpop.xlane.xlu1 %6492 }
 0x5b8   :  { %19939 = vrcp.f32 %v6493_v11  ;;  %11680 = vrot.lane.b32.xlu1 %v24726_v41, %s20322_s1  ;;  %v24731_v41 = vld [vmem:[#allocation53_spill] sm:$0xff] }
 0x5b9   :  { %11528 = vrot.lane.b32.xlu0 %v24727_v9, %s20322_s1 }
 0x5bb   :  { %v6499_v8 = vpop.xlane.xlu1 %6498 }
 0x5bc   :  { %19941 = vrcp.f32 %v6499_v8  ;;  %11756 = vrot.lane.b32.xlu1 %v24728_v12, %s20322_s1  ;;  %v24732_v12 = vld [vmem:[#allocation55_spill] sm:$0xff] }
 0x5bd   :  { %11832 = vrot.lane.b32.xlu0 %v24729_v46, %s20322_s1 }
 0x5bf   :  { %v6505_v39 = vpop.xlane.xlu1 %6504 }
 0x5c0   :  { %19943 = vrcp.f32 %v6505_v39  ;;  %11908 = vrot.lane.b32.xlu1 %v24730_v6, %s20322_s1  ;;  %v6502_v11 = vpop.xlane.xlu0 %6501  ;;  %v24733_v39 = vld [vmem:[#allocation58_spill] sm:$0xff] }
 0x5c1   :  { %19945 = vrcp.f32 %v6502_v11  ;;  %11984 = vrot.lane.b32.xlu0 %v24731_v41, %s20322_s1  ;;  %v24734_v11 = vld [vmem:[#allocation82_spill] sm:$0xff] }
 0x5c2   :  { %v19940_v47 = vpop.eup %19939 }
 0x5c3   :  { %v6511_v9 = vpop.xlane.xlu1 %6510  ;;  %v6585_v8 = vmul.f32 %v19940_v47, %v21779_v4  ;;  %v24735_v47 = vld [vmem:[#allocation60_spill] sm:$0xff] }
 0x5c4   :  { %19947 = vrcp.f32 %v6511_v9  ;;  %12060 = vrot.lane.b32.xlu1 %v24732_v12, %s20322_s1  ;;  %v6508_v42 = vpop.xlane.xlu0 %6507  ;;  %v24736_v9 = vld [vmem:[#allocation57_spill] sm:$0xff] }
 0x5c5   :  { %19949 = vrcp.f32 %v6508_v42  ;;  %12136 = vrot.lane.b32.xlu0 %v24733_v39, %s20322_s1  ;;  %19117 = vmatmul.mubr.msk.f32.vlgmr.msra.gmra.mrb[120].mxu1 %vm583_vm2, %v6585_v8 }
 0x5c6   :  { %v19942_v6 = vpop.eup %19941  ;;  %19125 = vmatpush3.msra.mxu1 %v24734_v11  ;;  %19126 = vmatprep.mubr.msk.f32.mxu1 %vm20320_vm1, %v24582_v61  ;;  %v24737_v11 = vld [vmem:[#allocation84_spill] sm:$0xff] }
 0x5c7   :  { %v6517_v41 = vpop.xlane.xlu1 %6516  ;;  %19134 = vmatprep.subr.mxu1 %v24582_v61  ;;  %v6587_v4 = vmul.f32 %v19942_v6, %v21785_v63 }
 0x5c8   :  { %19951 = vrcp.f32 %v6517_v41  ;;  %12212 = vrot.lane.b32.xlu1 %v24735_v47, %s20322_s1  ;;  %v6514_v42 = vpop.xlane.xlu0 %6513  ;;  %v24738_v41 = vld [vmem:[#allocation59_spill] sm:$0xff] }
 0x5c9   :  { %19953 = vrcp.f32 %v6514_v42  ;;  %12288 = vrot.lane.b32.xlu0 %v24736_v9, %s20322_s1  ;;  %19127 = vmatmul.mubr.msk.f32.vlgmr.msra.gmra.mrb[122].mxu1 %vm583_vm2, %v6587_v4  ;;  %v24739_v4 = vld [vmem:[#allocation20_spill] sm:$0xff]  ;;  %v24740_v9 = vld [vmem:[#allocation86_spill] sm:$0xff] }
 0x5ca   :  { %v19944_v8 = vpop.eup %19943  ;;  %19135 = vmatpush3.msra.mxu1 %v24737_v11  ;;  %19136 = vmatprep.mubr.msk.f32.mxu1 %vm20320_vm1, %v24582_v61 }
 0x5cb   :  { %v19946_v39 = vpop.eup %19945  ;;  %v6523_v12 = vpop.xlane.xlu1 %6522  ;;  %19144 = vmatprep.subr.mxu1 %v24582_v61  ;;  %v6589_v63 = vmul.f32 %v19944_v8, %v21791_v44 }
 0x5cc   :  { %19955 = vrcp.f32 %v6523_v12  ;;  %12364 = vrot.lane.b32.xlu1 %v24738_v41, %s20322_s1  ;;  %v6520_v6 = vpop.xlane.xlu0 %6519  ;;  %v6588_v42 = vmul.f32 %v19946_v39, %v21793_v53  ;;  %v24741_v12 = vld [vmem:[#allocation63_spill] sm:$0xff]  ;;  %v24742_v39 = vld [vmem:[#allocation22_spill] sm:$0xff] }
 0x5cd   :  { %19957 = vrcp.f32 %v6520_v6  ;;  %12442 = vrot.lane.b32.xlu0 %v24739_v4, %s20323_s11  ;;  %19137 = vmatmul.mubr.msk.f32.vlgmr.msra.gmra.mrb[124].mxu1 %vm583_vm2, %v6589_v63  ;;  %v24744_v4 = vld [vmem:[#allocation69_spill] sm:$0xff] }
 0x5ce   :  { %v19948_v11 = vpop.eup %19947  ;;  %19132 = vmatmul.mubr.msk.f32.vlgmr.msra.gmra.mrb[100].mxu0 %vm583_vm2, %v6588_v42  ;;  %19145 = vmatpush3.msra.mxu1 %v24740_v9  ;;  %v24743_v9 = vld [vmem:[#allocation3_spill] sm:$0xff] }
 0x5cf   :  { %v19950_v44 = vpop.eup %19949  ;;  %19140 = vmatpush3.msra.mxu0 %v24741_v12  ;;  %v6529_v8 = vpop.xlane.xlu1 %6528  ;;  %19146 = vmatprep.mubr.msk.f32.mxu1 %vm20320_vm1, %v24582_v61  ;;  %v6591_v53 = vmul.f32 %v19948_v11, %v21801_v16  ;;  %v24745_v11 = vld [vmem:[#allocation88_spill] sm:$0xff] }
 0x5d0   :  { %19959 = vrcp.f32 %v6529_v8  ;;  %12520 = vrot.lane.b32.xlu1 %v24742_v39, %s20323_s11  ;;  %v6526_v6 = vpop.xlane.xlu0 %6525  ;;  %19154 = vmatprep.subr.mxu1 %v24582_v61  ;;  %v6590_v63 = vmul.f32 %v19950_v44, %v21803_v24  ;;  %v24746_v44 = vld [vmem:[#allocation6_spill] sm:$0xff] }
 0x5d1   :  { %19961 = vrcp.f32 %v6526_v6  ;;  %12440 = vrot.lane.b32.xlu0 %v24743_v9, %s20323_s11  ;;  %19141 = vmatprep.mubr.msk.f32.mxu0 %vm20320_vm1, %v24582_v61  ;;  %v24747_v6 = vld [vmem:[#allocation19_spill] sm:$0xff] }
 0x5d2   :  { %v19952_v42 = vpop.eup %19951  ;;  %19149 = vmatprep.subr.mxu0 %v24582_v61  ;;  %19142 = vmatmul.mubr.msk.f32.vlgmr.msra.gmra.mrb[102].mxu0 %vm583_vm2, %v6590_v63 }
 0x5d3   :  { %v19954_v16 = vpop.eup %19953  ;;  %19147 = vmatmul.mubr.msk.f32.vlgmr.msra.gmra.mrb[126].mxu1 %vm583_vm2, %v6591_v53  ;;  %19150 = vmatpush3.msra.mxu0 %v24744_v4  ;;  %v6593_v39 = vmul.f32 %v19952_v42, %v21811_v23  ;;  %v24748_v23 = vld [vmem:[#allocation67_spill] sm:$0xff]  ;;  %v24750_v4 = vld [vmem:[#allocation21_spill] sm:$0xff] }
 0x5d4   :  { %19155 = vmatpush3.msra.mxu1 %v24745_v11  ;;  %v6532_v24 = vpop.xlane.xlu1 %6531  ;;  %12518 = vrot.lane.b32.xlu1 %v24746_v44, %s20323_s11  ;;  %v6535_v12 = vpop.xlane.xlu0 %6534  ;;  %v6592_v8 = vmul.f32 %v19954_v16, %v21813_v7  ;;  %v24749_v16 = vld [vmem:[#allocation90_spill] sm:$0xff] }
 0x5d5   :  { %19963 = vrcp.f32 %v6532_v24  ;;  %19156 = vmatprep.mubr.msk.f32.mxu1 %vm20320_vm1, %v24582_v61  ;;  %19164 = vmatprep.subr.mxu1 %v24582_v61 }
 0x5d6   :  { %v19956_v53 = vpop.eup %19955  ;;  %19965 = vrcp.f32 %v6535_v12  ;;  %12598 = vrot.lane.b32.xlu0 %v24747_v6, %s20323_s11  ;;  %19151 = vmatprep.mubr.msk.f32.mxu0 %vm20320_vm1, %v24582_v61  ;;  %v24751_v12 = vld [vmem:[#allocation2_spill] sm:$0xff]  ;;  %v24754_v6 = vld [vmem:[#allocation5_spill] sm:$0xff] }
 0x5d7   :  { %v19958_v63 = vpop.eup %19957  ;;  %19159 = vmatprep.subr.mxu0 %v24582_v61  ;;  %19152 = vmatmul.mubr.msk.f32.vlgmr.msra.gmra.mrb[104].mxu0 %vm583_vm2, %v6592_v8  ;;  %v6595_v11 = vmul.f32 %v19956_v53, %v21821_v35  ;;  %v24752_v8 = vld [vmem:[#allocation79_spill] sm:$0xff]  ;;  %v24753_v53 = vld [vmem:[#allocation92_spill] sm:$0xff] }
 0x5d8   :  { %19157 = vmatmul.mubr.msk.f32.vlgmr.msra.gmra.mrb[128].mxu1 %vm583_vm2, %v6593_v39  ;;  %19160 = vmatpush3.msra.mxu0 %v24748_v23  ;;  %v6538_v7 = vpop.xlane.xlu1 %6537  ;;  %v6541_v9 = vpop.xlane.xlu0 %6540  ;;  %v6594_v42 = vmul.f32 %v19958_v63, %v21823_v1 }
 0x5d9   :  { %19165 = vmatpush3.msra.mxu1 %v24749_v16  ;;  %12676 = vrot.lane.b32.xlu1 %v24750_v4, %s20323_s11  ;;  %19967 = vrcp.f32 %v6538_v7  ;;  %v24757_v4 = vld [vmem:[#allocation96_spill] sm:$0xff] }
 0x5da   :  { %v19960_v24 = vpop.eup %19959  ;;  %19166 = vmatprep.mubr.msk.f32.mxu1 %vm20320_vm1, %v24582_v61  ;;  %19174 = vmatprep.subr.mxu1 %v24582_v61  ;;  %19969 = vrcp.f32 %v6541_v9  ;;  %v24755_v9 = vld [vmem:[#allocation24_spill] sm:$0xff] }
 0x5db   :  { %v19962_v44 = vpop.eup %19961  ;;  %12596 = vrot.lane.b32.xlu0 %v24751_v12, %s20323_s11  ;;  %19161 = vmatprep.mubr.msk.f32.mxu0 %vm20320_vm1, %v24582_v61  ;;  %v6597_v63 = vmul.f32 %v19960_v24, %v21831_v15  ;;  %v24756_v15 = vld [vmem:[#allocation94_spill] sm:$0xff] }
 0x5dc   :  { %19169 = vmatprep.subr.mxu0 %v24582_v61  ;;  %19162 = vmatmul.mubr.msk.f32.vlgmr.msra.gmra.mrb[106].mxu0 %vm583_vm2, %v6594_v42  ;;  %v6544_v35 = vpop.xlane.xlu1 %6543  ;;  %v6547_v1 = vpop.xlane.xlu0 %6546  ;;  %v6596_v39 = vmul.f32 %v19962_v44, %v21833_v5 }
 0x5dd   :  { %19167 = vmatmul.mubr.msk.f32.vlgmr.msra.gmra.mrb[130].mxu1 %vm583_vm2, %v6595_v11  ;;  %19170 = vmatpush3.msra.mxu0 %v24752_v8  ;;  %19971 = vrcp.f32 %v6544_v35  ;;  %v24758_v11 = vld [vmem:[#allocation26_spill] sm:$0xff] }
 0x5de   :  { %19175 = vmatpush3.msra.mxu1 %v24753_v53  ;;  %12674 = vrot.lane.b32.xlu1 %v24754_v6, %s20323_s11  ;;  %19973 = vrcp.f32 %v6547_v1  ;;  %v24762_v53 = vld [vmem:[#allocation12_spill] sm:$0xff] }
 0x5df   :  { %v19964_v23 = vpop.eup %19963  ;;  %19176 = vmatprep.mubr.msk.f32.mxu1 %vm20320_vm1, %v24582_v61  ;;  %19184 = vmatprep.subr.mxu1 %v24582_v61 }
 0x5e0   :  { %v19966_v7 = vpop.eup %19965  ;;  %12754 = vrot.lane.b32.xlu0 %v24755_v9, %s20323_s11  ;;  %19171 = vmatprep.mubr.msk.f32.mxu0 %vm20320_vm1, %v24582_v61  ;;  %v6550_v5 = vpop.xlane.xlu1 %6549  ;;  %v6598_v16 = vmul.f32 %v19964_v23, %v21843_v10  ;;  %v24759_v10 = vld [vmem:[#allocation8_spill] sm:$0xff]  ;;  %v24763_v9 = vld [vmem:[#allocation23_spill] sm:$0xff] }
 0x5e1   :  { %v6553_v42 = vpop.xlane.xlu0 %6552  ;;  %19179 = vmatprep.subr.mxu0 %v24582_v61  ;;  %19172 = vmatmul.mubr.msk.f32.vlgmr.msra.gmra.mrb[108].mxu0 %vm583_vm2, %v6596_v39  ;;  %v6599_v24 = vmul.f32 %v19966_v7, %v21841_v17  ;;  %19975 = vrcp.f32 %v6550_v5  ;;  %v24760_v17 = vld [vmem:[#allocation80_spill] sm:$0xff]  ;;  %v24761_v39 = vld [vmem:[#allocation98_spill] sm:$0xff] }
 0x5e2   :  { %19177 = vmatmul.mubr.msk.f32.vlgmr.msra.gmra.mrb[132].mxu1 %vm583_vm2, %v6597_v63  ;;  %19180 = vmatpush3.msra.mxu0 %v24756_v15  ;;  %19977 = vrcp.f32 %v6553_v42 }
 0x5e3   :  { %19185 = vmatpush3.msra.mxu1 %v24757_v4  ;;  %12832 = vrot.lane.b32.xlu1 %v24758_v11, %s20323_s11  ;;  %v19968_v44 = vpop.eup %19967  ;;  %v24766_v4 = vld [vmem:[#allocation25_spill] sm:$0xff] }
 0x5e4   :  { %19186 = vmatprep.mubr.msk.f32.mxu1 %vm20320_vm1, %v24582_v61  ;;  %19194 = vmatprep.subr.mxu1 %v24582_v61  ;;  %v6556_v12 = vpop.xlane.xlu1 %6555  ;;  %v19970_v1 = vpop.eup %19969  ;;  %v6600_v8 = vmul.f32 %v19968_v44, %v21853_v50  ;;  %v24767_v44 = vld [vmem:[#allocation7_spill] sm:$0xff] }
 0x5e5   :  { %v6559_v35 = vpop.xlane.xlu0 %6558  ;;  %12752 = vrot.lane.b32.xlu0 %v24759_v10, %s20323_s11  ;;  %19181 = vmatprep.mubr.msk.f32.mxu0 %vm20320_vm1, %v24582_v61  ;;  %19979 = vrcp.f32 %v6556_v12  ;;  %v6601_v6 = vmul.f32 %v19970_v1, %v21851_v18  ;;  %v24764_v18 = vld [vmem:[#allocation81_spill] sm:$0xff] }
 0x5e6   :  { %19189 = vmatprep.subr.mxu0 %v24582_v61  ;;  %19182 = vmatmul.mubr.msk.f32.vlgmr.msra.gmra.mrb[110].mxu0 %vm583_vm2, %v6598_v16  ;;  %19981 = vrcp.f32 %v6559_v35  ;;  %v24765_v16 = vld [vmem:[#allocation100_spill] sm:$0xff]  ;;  %v24768_v35 = vld [vmem:[#allocation83_spill] sm:$0xff] }
 0x5e7   :  { %19187 = vmatmul.mubr.msk.f32.vlgmr.msra.gmra.mrb[134].mxu1 %vm583_vm2, %v6599_v24  ;;  %19190 = vmatpush3.msra.mxu0 %v24760_v17  ;;  %v19972_v7 = vpop.eup %19971  ;;  %v24769_v17 = vld [vmem:[#allocation102_spill] sm:$0xff] }
 0x5e8   :  { %19195 = vmatpush3.msra.mxu1 %v24761_v39  ;;  %12830 = vrot.lane.b32.xlu1 %v24762_v53, %s20323_s11  ;;  %v22103_v63 = vpop.permute.xlu1 %9314  ;;  %v19974_v50 = vpop.eup %19973  ;;  %v6602_v5 = vmul.f32 %v19972_v7, %v21861_v40 }
 0x5e9   :  { %v22105_v23 = vpop.permute.xlu0 %9236  ;;  %12910 = vrot.lane.b32.xlu0 %v24763_v9, %s20323_s11  ;;  %19191 = vmatprep.mubr.msk.f32.mxu0 %vm20320_vm1, %v24582_v61  ;;  %v6603_v11 = vmul.f32 %v19974_v50, %v21859_v26  ;;  %v24772_v9 = vld [vmem:[#allocation85_spill] sm:$0xff] }
 0x5ea   :  { %19196 = vmatprep.mubr.msk.f32.mxu1 %vm20320_vm1, %v24582_v61  ;;  %19199 = vmatprep.subr.mxu0 %v24582_v61 }
 0x5eb   :  { %19204 = vmatprep.subr.mxu1 %v24582_v61  ;;  %19192 = vmatmul.mubr.msk.f32.vlgmr.msra.gmra.mrb[112].mxu0 %vm583_vm2, %v6600_v8  ;;  %v19976_v24 = vpop.eup %19975  ;;  %v24770_v8 = vld [vmem:[#allocation10_spill] sm:$0xff] }
 0x5ec   :  { %19197 = vmatmul.mubr.msk.f32.vlgmr.msra.gmra.mrb[136].mxu1 %vm583_vm2, %v6601_v6  ;;  %19200 = vmatpush3.msra.mxu0 %v24764_v18  ;;  %v22119_v42 = vpop.permute.xlu1 %9472  ;;  %v19978_v12 = vpop.eup %19977  ;;  %v6604_v1 = vmul.f32 %v19976_v24, %v21869_v14  ;;  %v24771_v6 = vld [vmem:[#allocation28_spill] sm:$0xff] }
 0x5ed   :  { %v22121_v15 = vpop.permute.xlu0 %9394  ;;  %19205 = vmatpush3.msra.mxu1 %v24765_v16  ;;  %12988 = vrot.lane.b32.xlu1 %v24766_v4, %s20323_s11  ;;  %v6605_v39 = vmul.f32 %v19978_v12, %v21867_v13  ;;  %v24773_v18 = vld [vmem:[#allocation104_spill] sm:$0xff]  ;;  %v24775_v16 = vld [vmem:[#allocation14_spill] sm:$0xff] }
 0x5ee   :  { %12908 = vrot.lane.b32.xlu0 %v24767_v44, %s20323_s11  ;;  %19201 = vmatprep.mubr.msk.f32.mxu0 %vm20320_vm1, %v24582_v61  ;;  %v24778_v44 = vld [vmem:[#allocation87_spill] sm:$0xff] }
 0x5ef   :  { %19206 = vmatprep.mubr.msk.f32.mxu1 %vm20320_vm1, %v24582_v61  ;;  %19209 = vmatprep.subr.mxu0 %v24582_v61  ;;  %v19980_v10 = vpop.eup %19979 }
 0x5f0   :  { %19214 = vmatprep.subr.mxu1 %v24582_v61  ;;  %19202 = vmatmul.mubr.msk.f32.vlgmr.msra.gmra.mrb[114].mxu0 %vm583_vm2, %v6602_v5  ;;  %v22136_v40 = vpop.permute.xlu1 %9470  ;;  %v19982_v53 = vpop.eup %19981  ;;  %v6606_v13 = vmul.f32 %v19980_v10, %v21877_v32  ;;  %v24774_v5 = vld [vmem:[#allocation30_spill] sm:$0xff]  ;;  %v24781_v10 = vld [vmem:[#allocation89_spill] sm:$0xff] }
 0x5f1   :  { %v22138_v26 = vpop.permute.xlu0 %9392  ;;  %19207 = vmatmul.mubr.msk.f32.vlgmr.msra.gmra.mrb[138].mxu1 %vm583_vm2, %v6603_v11  ;;  %19210 = vmatpush3.msra.mxu0 %v24768_v35  ;;  %v6607_v50 = vmul.f32 %v19982_v53, %v21875_v38  ;;  %v24776_v38 = vld [vmem:[#allocation18_spill] sm:$0xff]  ;;  %v24777_v11 = vld [vmem:[#allocation27_spill] sm:$0xff] }
 0x5f2   :  { %19215 = vmatpush3.msra.mxu1 %v24769_v17  ;;  %12986 = vrot.lane.b32.xlu1 %v24770_v8, %s20323_s11  ;;  %v24779_v35 = vld [vmem:[#allocation106_spill] sm:$0xff]  ;;  %v24782_v17 = vld [vmem:[#allocation107_spill] sm:$0xff] }
 0x5f3   :  { %13066 = vrot.lane.b32.xlu0 %v24771_v6, %s20323_s11  ;;  %19211 = vmatprep.mubr.msk.f32.mxu0 %vm20320_vm1, %v24582_v61  ;;  %v24783_v8 = vld [vmem:[#allocation91_spill] sm:$0xff] }
 0x5f4   :  { %19216 = vmatprep.mubr.msk.f32.mxu1 %vm20320_vm1, %v24582_v61  ;;  %19219 = vmatprep.subr.mxu0 %v24582_v61  ;;  %v22154_v14 = vpop.permute.xlu1 %9628 }
 0x5f5   :  { %v22156_v7 = vpop.permute.xlu0 %9550  ;;  %19224 = vmatprep.subr.mxu1 %v24582_v61  ;;  %19212 = vmatmul.mubr.msk.f32.vlgmr.msra.gmra.mrb[116].mxu0 %vm583_vm2, %v6604_v1  ;;  %v24780_v1 = vld [vmem:[#allocation29_spill] sm:$0xff] }
 0x5f6   :  { %19217 = vmatmul.mubr.msk.f32.vlgmr.msra.gmra.mrb[140].mxu1 %vm583_vm2, %v6605_v39  ;;  %19220 = vmatpush3.msra.mxu0 %v24772_v9  ;;  %v24784_v39 = vld [vmem:[#allocation108_spill] sm:$0xff]  ;;  %v24786_v9 = vld [vmem:[#allocation109_spill] sm:$0xff] }
 0x5f7   :  { %19225 = vmatpush3.msra.mxu1 %v24773_v18  ;;  %13144 = vrot.lane.b32.xlu1 %v24774_v5, %s20323_s11  ;;  %v24788_v18 = vld [vmem:[#allocation110_spill] sm:$0xff]  ;;  %v24789_v5 = vld [vmem:[#allocation97_spill] sm:$0xff] }
 0x5f8   :  { %13064 = vrot.lane.b32.xlu0 %v24775_v16, %s20323_s11  ;;  %19221 = vmatprep.mubr.msk.f32.mxu0 %vm20320_vm1, %v24582_v61  ;;  %v22171_v4 = vpop.permute.xlu1 %9626 }
 0x5f9   :  { %v22173_v32 = vpop.permute.xlu0 %9548  ;;  %19226 = vmatprep.mubr.msk.f32.mxu1 %vm20320_vm1, %v24582_v61  ;;  %19222 = vmatmul.mubr.msk.f32.vlgmr.msra.gmra.mrb[118].mxu0 %vm583_vm2, %v6606_v13  ;;  %v24785_v13 = vld [vmem:[#allocation93_spill] sm:$0xff] }
 0x5fa   :  { %19227 = vmatmul.mubr.msk.f32.vlgmr.msra.gmra.mrb[142].mxu1 %vm583_vm2, %v6607_v50  ;;  %19229 = vmatprep.subr.mxu0 %v24582_v61  ;;  %v24787_v50 = vld [vmem:[#allocation95_spill] sm:$0xff] }
 0x5fb   :  { %13142 = vrot.lane.b32.xlu1 %v24776_v38, %s20323_s11  ;;  %19234 = vmatprep.subr.mxu1 %v24582_v61  ;;  %v24790_v38 = vld [vmem:[#allocation111_spill] sm:$0xff] }
 0x5fc   :  { %13222 = vrot.lane.b32.xlu0 %v24777_v11, %s20323_s11  ;;  %19231 = vmatprep.mubr.msk.f32.mxu0 %vm20320_vm1, %v24582_v61  ;;  %v22193_v12 = vpop.permute.xlu1 %9784  ;;  %v24791_v11 = vld [vmem:[#allocation99_spill] sm:$0xff] }
 0x5fd   :  { %v22187_v24 = vpop.permute.xlu0 %9706  ;;  %19230 = vmatpush3.xpose.msk.msra.mxu0 %vm583_vm2, %v24778_v44  ;;  %19236 = vmatprep.mubr.msk.f32.mxu1 %vm20320_vm1, %v24582_v61 }
 0x5fe   :  { %19235 = vmatpush3.xpose.msk.msra.mxu1 %vm583_vm2, %v24779_v35  ;;  %19239 = vmatprep.subr.mxu0 %v24582_v61  ;;  %v24792_v35 = vld [vmem:[#allocation112_spill] sm:$0xff] }
 0x5ff   :  { %13300 = vrot.lane.b32.xlu1 %v24780_v1, %s20323_s11  ;;  %19244 = vmatprep.subr.mxu1 %v24582_v61  ;;  %v24793_v1 = vld [vmem:[#allocation101_spill] sm:$0xff] }
 0x600   :  { %19232 = vmatmul.mubr.msk.f32.vlgmr.msra.gmra.mrb[120].mxu0 %vm583_vm2, %v24781_v10  ;;  %v22216_v6 = vpop.permute.xlu1 %9782  ;;  %v24794_v10 = vld [vmem:[#allocation113_spill] sm:$0xff] }
 0x601   :  { %19237 = vmatmul.mubr.msk.f32.vlgmr.msra.gmra.mrb[144].mxu1 %vm583_vm2, %v24782_v17  ;;  %19240 = vmatpush3.xpose.msk.msra.mxu0 %vm583_vm2, %v24783_v8  ;;  %v22211_v53 = vpop.permute.xlu0 %9704  ;;  %v24795_v17 = vld [vmem:[#allocation103_spill] sm:$0xff]  ;;  %v24796_v8 = vld [vmem:[#allocation114_spill] sm:$0xff] }
 0x602   :  { %19245 = vmatpush3.xpose.msk.msra.mxu1 %vm583_vm2, %v24784_v39  ;;  %19241 = vmatprep.mubr.msk.f32.mxu0 %vm20320_vm1, %v24582_v61 }
 0x603   :  { %19246 = vmatprep.mubr.msk.f32.mxu1 %vm20320_vm1, %v24582_v61  ;;  %19249 = vmatprep.subr.mxu0 %v24582_v61 }
 0x604   :  { %19242 = vmatmul.mubr.msk.f32.vlgmr.msra.gmra.mrb[122].mxu0 %vm583_vm2, %v24785_v13  ;;  %19254 = vmatprep.subr.mxu1 %v24582_v61  ;;  %v9941_v44 = vpop.permute.xlu1 %9940 }
 0x605   :  { %19247 = vmatmul.mubr.msk.f32.vlgmr.msra.gmra.mrb[146].mxu1 %vm583_vm2, %v24786_v9  ;;  %19250 = vmatpush3.xpose.msk.msra.mxu0 %vm583_vm2, %v24787_v50  ;;  %v9863_v16 = vpop.permute.xlu0 %9862  ;;  %v24797_v9 = vld [vmem:[#allocation105_spill] sm:$0xff]  ;;  %v24798_v50 = vld [vmem:[#allocation115_spill] sm:$0xff] }
 0x606   :  { %19255 = vmatpush3.xpose.msk.msra.mxu1 %vm583_vm2, %v24788_v18  ;;  %19251 = vmatprep.mubr.msk.f32.mxu0 %vm20320_vm1, %v24582_v61 }
 0x607   :  { %19256 = vmatprep.mubr.msk.f32.mxu1 %vm20320_vm1, %v24582_v61  ;;  %19259 = vmatprep.subr.mxu0 %v24582_v61 }
 0x608   :  { %19252 = vmatmul.mubr.msk.f32.vlgmr.msra.gmra.mrb[124].mxu0 %vm583_vm2, %v24789_v5  ;;  %19264 = vmatprep.subr.mxu1 %v24582_v61  ;;  %v9939_v13 = vpop.permute.xlu1 %9938 }
 0x609   :  { %19257 = vmatmul.mubr.msk.f32.vlgmr.msra.gmra.mrb[148].mxu1 %vm583_vm2, %v24790_v38  ;;  %19260 = vmatpush3.xpose.msk.msra.mxu0 %vm583_vm2, %v24791_v11  ;;  %v9861_v39 = vpop.permute.xlu0 %9860 }
 0x60a   :  { %19265 = vmatpush3.xpose.msk.msra.mxu1 %vm583_vm2, %v24792_v35  ;;  %19261 = vmatprep.mubr.msk.f32.mxu0 %vm20320_vm1, %v24582_v61 }
 0x60b   :  { %19266 = vmatprep.mubr.msk.f32.mxu1 %vm20320_vm1, %v24582_v61  ;;  %19269 = vmatprep.subr.mxu0 %v24582_v61 }
 0x60c   :  { %19262 = vmatmul.mubr.msk.f32.vlgmr.msra.gmra.mrb[126].mxu0 %vm583_vm2, %v24793_v1  ;;  %19274 = vmatprep.subr.mxu1 %v24582_v61  ;;  %v10097_v5 = vpop.permute.xlu1 %10096 }
 0x60d   :  { %19267 = vmatmul.mubr.msk.f32.vlgmr.msra.gmra.mrb[150].mxu1 %vm583_vm2, %v24794_v10  ;;  %19270 = vmatpush3.xpose.msk.msra.mxu0 %vm583_vm2, %v24795_v17  ;;  %v10019_v18 = vpop.permute.xlu0 %10018 }
 0x60e   :  { %19275 = vmatpush3.xpose.msk.msra.mxu1 %vm583_vm2, %v24796_v8  ;;  %19271 = vmatprep.mubr.msk.f32.mxu0 %vm20320_vm1, %v24582_v61 }
 0x60f   :  { %19276 = vmatprep.mubr.msk.f32.mxu1 %vm20320_vm1, %v24582_v61  ;;  %19279 = vmatprep.subr.mxu0 %v24582_v61 }
 0x610   :  { %19272 = vmatmul.mubr.msk.f32.vlgmr.msra.gmra.mrb[128].mxu0 %vm583_vm2, %v24797_v9  ;;  %19284 = vmatprep.subr.mxu1 %v24582_v61 }
 0x611   :  { %19277 = vmatmul.mubr.msk.f32.vlgmr.msra.gmra.mrb[152].mxu1 %vm583_vm2, %v24798_v50  ;;  %19280 = vmatpush3.xpose.msk.msra.mxu0 %vm583_vm2, %v21899_v20  ;;  %v10017_v20 = vpop.permute.xlu0 %10016 }
 0x612   :  { %19285 = vmatpush3.xpose.msk.msra.mxu1 %vm583_vm2, %v21971_v52  ;;  %19281 = vmatprep.mubr.msk.f32.mxu0 %vm20320_vm1, %v24582_v61  ;;  %v10095_v52 = vpop.permute.xlu1 %10094 }
 0x613   :  { %19286 = vmatprep.mubr.msk.f32.mxu1 %vm20320_vm1, %v24582_v61  ;;  %19289 = vmatprep.subr.mxu0 %v24582_v61 }
 0x614   :  { %19282 = vmatmul.mubr.msk.f32.vlgmr.msra.gmra.mrb[130].mxu0 %vm583_vm2, %v22105_v23  ;;  %19294 = vmatprep.subr.mxu1 %v24582_v61 }
 0x615   :  { %19287 = vmatmul.mubr.msk.f32.vlgmr.msra.gmra.mrb[154].mxu1 %vm583_vm2, %v22103_v63  ;;  %19290 = vmatpush3.xpose.msk.msra.mxu0 %vm583_vm2, %v22121_v15  ;;  %v10175_v63 = vpop.permute.xlu0 %10174 }
 0x616   :  { %19295 = vmatpush3.xpose.msk.msra.mxu1 %vm583_vm2, %v22119_v42  ;;  %19291 = vmatprep.mubr.msk.f32.mxu0 %vm20320_vm1, %v24582_v61  ;;  %v10253_v23 = vpop.permute.xlu1 %10252 }
 0x617   :  { %19296 = vmatprep.mubr.msk.f32.mxu1 %vm20320_vm1, %v24582_v61  ;;  %19299 = vmatprep.subr.mxu0 %v24582_v61 }
 0x618   :  { %19292 = vmatmul.mubr.msk.f32.vlgmr.msra.gmra.mrb[132].mxu0 %vm583_vm2, %v22138_v26  ;;  %19304 = vmatprep.subr.mxu1 %v24582_v61 }
 0x619   :  { %19297 = vmatmul.mubr.msk.f32.vlgmr.msra.gmra.mrb[156].mxu1 %vm583_vm2, %v22136_v40  ;;  %19300 = vmatpush3.xpose.msk.msra.mxu0 %vm583_vm2, %v22156_v7  ;;  %v10173_v42 = vpop.permute.xlu0 %10172 }
 0x61a   :  { %19305 = vmatpush3.xpose.msk.msra.mxu1 %vm583_vm2, %v22154_v14  ;;  %19301 = vmatprep.mubr.msk.f32.mxu0 %vm20320_vm1, %v24582_v61  ;;  %v10251_v15 = vpop.permute.xlu1 %10250 }
 0x61b   :  { %19306 = vmatprep.mubr.msk.f32.mxu1 %vm20320_vm1, %v24582_v61  ;;  %19309 = vmatprep.subr.mxu0 %v24582_v61 }
 0x61c   :  { %19302 = vmatmul.mubr.msk.f32.vlgmr.msra.gmra.mrb[134].mxu0 %vm583_vm2, %v22173_v32  ;;  %19314 = vmatprep.subr.mxu1 %v24582_v61 }
 0x61d   :  { %19307 = vmatmul.mubr.msk.f32.vlgmr.msra.gmra.mrb[158].mxu1 %vm583_vm2, %v22171_v4  ;;  %19310 = vmatpush3.xpose.msk.msra.mxu0 %vm583_vm2, %v22187_v24  ;;  %v10617_v40 = vpop.permute.xlu0 %10616 }
 0x61e   :  { %19315 = vmatpush3.xpose.msk.msra.mxu1 %vm583_vm2, %v22193_v12  ;;  %19311 = vmatprep.mubr.msk.f32.mxu0 %vm20320_vm1, %v24582_v61  ;;  %v10693_v26 = vpop.permute.xlu1 %10692 }
 0x61f   :  { %19316 = vmatprep.mubr.msk.f32.mxu1 %vm20320_vm1, %v24582_v61  ;;  %19319 = vmatprep.subr.mxu0 %v24582_v61 }
 0x620   :  { %19312 = vmatmul.mubr.msk.f32.vlgmr.msra.gmra.mrb[136].mxu0 %vm583_vm2, %v22211_v53  ;;  %19324 = vmatprep.subr.mxu1 %v24582_v61 }
 0x621   :  { %19317 = vmatmul.mubr.msk.f32.vlgmr.msra.gmra.mrb[160].mxu1 %vm583_vm2, %v22216_v6  ;;  %19320 = vmatpush3.xpose.msk.msra.mxu0 %vm583_vm2, %v9863_v16 }
 0x622   :  { %19325 = vmatpush3.xpose.msk.msra.mxu1 %vm583_vm2, %v9941_v44  ;;  %19321 = vmatprep.mubr.msk.f32.mxu0 %vm20320_vm1, %v24582_v61 }
 0x623   :  { %19326 = vmatprep.mubr.msk.f32.mxu1 %vm20320_vm1, %v24582_v61  ;;  %19329 = vmatprep.subr.mxu0 %v24582_v61 }
 0x624   :  { %19322 = vmatmul.mubr.msk.f32.vlgmr.msra.gmra.mrb[138].mxu0 %vm583_vm2, %v9861_v39  ;;  %19334 = vmatprep.subr.mxu1 %v24582_v61 }
 0x625   :  { %19327 = vmatmul.mubr.msk.f32.vlgmr.msra.gmra.mrb[162].mxu1 %vm583_vm2, %v9939_v13  ;;  %19330 = vmatpush3.xpose.msk.msra.mxu0 %vm583_vm2, %v10019_v18 }
 0x626   :  { %19335 = vmatpush3.xpose.msk.msra.mxu1 %vm583_vm2, %v10097_v5  ;;  %19331 = vmatprep.mubr.msk.f32.mxu0 %vm20320_vm1, %v24582_v61 }
 0x627   :  { %19336 = vmatprep.mubr.msk.f32.mxu1 %vm20320_vm1, %v24582_v61  ;;  %19339 = vmatprep.subr.mxu0 %v24582_v61 }
 0x628   :  { %19332 = vmatmul.mubr.msk.f32.vlgmr.msra.gmra.mrb[140].mxu0 %vm583_vm2, %v10017_v20  ;;  %19344 = vmatprep.subr.mxu1 %v24582_v61 }
 0x629   :  { %19337 = vmatmul.mubr.msk.f32.vlgmr.msra.gmra.mrb[164].mxu1 %vm583_vm2, %v10095_v52  ;;  %19340 = vmatpush3.xpose.msk.msra.mxu0 %vm583_vm2, %v10175_v63 }
 0x62a   :  { %19345 = vmatpush3.xpose.msk.msra.mxu1 %vm583_vm2, %v10253_v23  ;;  %19341 = vmatprep.mubr.msk.f32.mxu0 %vm20320_vm1, %v24582_v61 }
 0x62b   :  { %19346 = vmatprep.mubr.msk.f32.mxu1 %vm20320_vm1, %v24582_v61  ;;  %19349 = vmatprep.subr.mxu0 %v24582_v61 }
 0x62c   :  { %19342 = vmatmul.mubr.msk.f32.vlgmr.msra.gmra.mrb[142].mxu0 %vm583_vm2, %v10173_v42  ;;  %19354 = vmatprep.subr.mxu1 %v24582_v61 }
 0x62d   :  { %19347 = vmatmul.mubr.msk.f32.vlgmr.msra.gmra.mrb[166].mxu1 %vm583_vm2, %v10251_v15  ;;  %19350 = vmatpush3.msra.mxu0 %v10617_v40 }
 0x62e   :  { %19355 = vmatpush3.msra.mxu1 %v10693_v26  ;;  %19351 = vmatprep.mubr.msk.f32.mxu0 %vm20320_vm1, %v24582_v61 }
 0x62f   :  { %19356 = vmatprep.mubr.msk.f32.mxu1 %vm20320_vm1, %v24582_v61  ;;  %19359 = vmatprep.subr.mxu0 %v24582_v61 }
 0x630   :  { %19364 = vmatprep.subr.mxu1 %v24582_v61 }
 0x65e   :  { %v22357_v14 = vpop.f32.mrb[96].mxu0 }
 0x65f   :  { %24799 = vst [vmem:[#allocation16_spill] sm:$0xff] %v22357_v14  ;;  %v19113_v7 = vpop.f32.mrb[97].mxu0 }
 0x662   :  { %v22359_v4 = vpop.f32.mrb[98].mxu0 }
 0x663   :  { %24800 = vst [vmem:[#allocation82_spill] sm:$0xff] %v22359_v4  ;;  %v19123_v32 = vpop.f32.mrb[99].mxu0 }
 0x698   :  { %v22361_v24 = vpop.f32.mrb[120].mxu1 }
 0x699   :  { %24801 = vst [vmem:[#allocation84_spill] sm:$0xff] %v22361_v24  ;;  %v19118_v12 = vpop.f32.mrb[121].mxu1 }
 0x69c   :  { %v22363_v53 = vpop.f32.mrb[122].mxu1 }
 0x69d   :  { %24802 = vst [vmem:[#allocation20_spill] sm:$0xff] %v22363_v53  ;;  %v19128_v6 = vpop.f32.mrb[123].mxu1 }
 0x6a0   :  { %v22365_v16 = vpop.f32.mrb[124].mxu1 }
 0x6a1   :  { %24803 = vst [vmem:[#allocation86_spill] sm:$0xff] %v22365_v16  ;;  %v22367_v38 = vpop.f32.mrb[100].mxu0  ;;  %v19138_v11 = vpop.f32.mrb[125].mxu1 }
 0x6a2   :  { %24804 = vst [vmem:[#allocation63_spill] sm:$0xff] %v22367_v38  ;;  %v19133_v44 = vpop.f32.mrb[101].mxu0 }
 0x6a5   :  { %v22369_v35 = vpop.f32.mrb[102].mxu0 }
 0x6a6   :  { %24805 = vst [vmem:[#allocation22_spill] sm:$0xff] %v22369_v35  ;;  %v22371_v1 = vpop.f32.mrb[126].mxu1  ;;  %v19143_v10 = vpop.f32.mrb[103].mxu0 }
 0x6a7   :  { %24806 = vst [vmem:[#allocation3_spill] sm:$0xff] %v22371_v1  ;;  %v19148_v17 = vpop.f32.mrb[127].mxu1 }
 0x6aa   :  { %v22373_v8 = vpop.f32.mrb[104].mxu0 }
 0x6ab   :  { %24807 = vst [vmem:[#allocation69_spill] sm:$0xff] %v22373_v8  ;;  %v22375_v39 = vpop.f32.mrb[128].mxu1  ;;  %v19153_v13 = vpop.f32.mrb[105].mxu0 }
 0x6ac   :  { %24808 = vst [vmem:[#allocation88_spill] sm:$0xff] %v22375_v39  ;;  %v19158_v9 = vpop.f32.mrb[129].mxu1 }
 0x6af   :  { %v22377_v50 = vpop.f32.mrb[106].mxu0 }
 0x6b0   :  { %24809 = vst [vmem:[#allocation6_spill] sm:$0xff] %v22377_v50  ;;  %v22379_v18 = vpop.f32.mrb[130].mxu1  ;;  %v19163_v5 = vpop.f32.mrb[107].mxu0 }
 0x6b1   :  { %24810 = vst [vmem:[#allocation19_spill] sm:$0xff] %v22379_v18  ;;  %v19168_v20 = vpop.f32.mrb[131].mxu1 }
 0x6b4   :  { %v22381_v52 = vpop.f32.mrb[108].mxu0 }
 0x6b5   :  { %24811 = vst [vmem:[#allocation67_spill] sm:$0xff] %v22381_v52  ;;  %v22383_v63 = vpop.f32.mrb[132].mxu1  ;;  %v19173_v23 = vpop.f32.mrb[109].mxu0 }
 0x6b6   :  { %24812 = vst [vmem:[#allocation90_spill] sm:$0xff] %v22383_v63  ;;  %v19178_v42 = vpop.f32.mrb[133].mxu1 }
 0x6b9   :  { %v22385_v15 = vpop.f32.mrb[110].mxu0 }
 0x6ba   :  { %24813 = vst [vmem:[#allocation21_spill] sm:$0xff] %v22385_v15  ;;  %v22387_v40 = vpop.f32.mrb[134].mxu1  ;;  %v19183_v26 = vpop.f32.mrb[111].mxu0 }
 0x6bb   :  { %24814 = vst [vmem:[#allocation2_spill] sm:$0xff] %v22387_v40  ;;  %v19188_v7 = vpop.f32.mrb[135].mxu1 }
 0x6be   :  { %v22389_v32 = vpop.f32.mrb[112].mxu0 }
 0x6bf   :  { %24815 = vst [vmem:[#allocation79_spill] sm:$0xff] %v22389_v32  ;;  %v22391_v12 = vpop.f32.mrb[136].mxu1  ;;  %v19193_v6 = vpop.f32.mrb[113].mxu0 }
 0x6c0   :  { %24816 = vst [vmem:[#allocation92_spill] sm:$0xff] %v22391_v12  ;;  %v19198_v11 = vpop.f32.mrb[137].mxu1 }
 0x6c3   :  { %v22393_v44 = vpop.f32.mrb[114].mxu0 }
 0x6c4   :  { %24817 = vst [vmem:[#allocation5_spill] sm:$0xff] %v22393_v44  ;;  %v22395_v10 = vpop.f32.mrb[138].mxu1  ;;  %v19203_v17 = vpop.f32.mrb[115].mxu0 }
 0x6c5   :  { %24818 = vst [vmem:[#allocation24_spill] sm:$0xff] %v22395_v10  ;;  %v19208_v13 = vpop.f32.mrb[139].mxu1 }
 0x6c8   :  { %v22397_v9 = vpop.f32.mrb[116].mxu0 }
 0x6c9   :  { %24819 = vst [vmem:[#allocation94_spill] sm:$0xff] %v22397_v9  ;;  %v22399_v5 = vpop.f32.mrb[140].mxu1  ;;  %v19213_v20 = vpop.f32.mrb[117].mxu0 }
 0x6ca   :  { %24820 = vst [vmem:[#allocation96_spill] sm:$0xff] %v22399_v5  ;;  %v19218_v23 = vpop.f32.mrb[141].mxu1  ;;  %v22419_v5 = vpop.permute.xlu1 %10844 }
 0x6cc   :  { %v22401_v42 = vpop.f32.mrb[118].mxu0 }
 0x6cd   :  { %24821 = vst [vmem:[#allocation26_spill] sm:$0xff] %v22401_v42  ;;  %v22403_v26 = vpop.f32.mrb[142].mxu1  ;;  %v19223_v7 = vpop.f32.mrb[119].mxu0 }
 0x6ce   :  { %24822 = vst [vmem:[#allocation8_spill] sm:$0xff] %v22403_v26  ;;  %v19228_v32 = vpop.f32.mrb[143].mxu1 }
 0x6d3   :  { %v8530_v6 = vpop.f32.mrb[120].mxu0 }
 0x6d4   :  { %v22405_v11 = vmul.f32 0.35355338, %v8530_v6  ;;  %v8608_v44 = vpop.f32.mrb[144].mxu1  ;;  %v19233_v12 = vpop.f32.mrb[121].mxu0 }
 0x6d5   :  { %v22407_v10 = vmul.f32 0.35355338, %v8608_v44  ;;  %v19238_v17 = vpop.f32.mrb[145].mxu1 }
 0x6d6   :  { %v10352_v13 = vsel %vm583_vm2, %v22405_v11, -inf }
 0x6d7   :  { %v10355_v20 = vsel %vm583_vm2, %v22407_v10, -inf  ;;  %10353 = vmax.xlane.f32.xlu0 %v10352_v13  ;;  %v8686_v23 = vpop.f32.mrb[122].mxu0 }
 0x6d8   :  { %10356 = vmax.xlane.f32.xlu1 %v10355_v20  ;;  %v8764_v42 = vpop.f32.mrb[146].mxu1  ;;  %v22413_v7 = vmul.f32 0.35355338, %v8686_v23  ;;  %v19243_v32 = vpop.f32.mrb[123].mxu0 }
 0x6d9   :  { %v19248_v6 = vpop.f32.mrb[147].mxu1  ;;  %v22415_v26 = vmul.f32 0.35355338, %v8764_v42 }
 0x6da   :  { %v10358_v12 = vsel %vm583_vm2, %v22413_v7, -inf }
 0x6db   :  { %10359 = vmax.xlane.f32.xlu0 %v10358_v12  ;;  %v8842_v44 = vpop.f32.mrb[124].mxu0  ;;  %v10361_v23 = vsel %vm583_vm2, %v22415_v26, -inf }
 0x6dc   :  { %v8920_v17 = vpop.f32.mrb[148].mxu1  ;;  %v19253_v9 = vpop.f32.mrb[125].mxu0  ;;  %v22423_v20 = vmul.f32 0.35355338, %v8842_v44 }
 0x6dd   :  { %v22421_v15 = vmul.f32 0.35355338, %v8920_v17  ;;  %v19258_v13 = vpop.f32.mrb[149].mxu1  ;;  %v22435_v17 = vpop.permute.xlu1 %10996 }
 0x6de   :  { %v10364_v44 = vsel %vm583_vm2, %v22423_v20, -inf  ;;  %24823 = vst [vmem:[#allocation80_spill] sm:$0xff] %v22435_v17 }
 0x6df   :  { %v10367_v42 = vsel %vm583_vm2, %v22421_v15, -inf  ;;  %10362 = vmax.xlane.f32.xlu0 %v10361_v23  ;;  %v8998_v32 = vpop.f32.mrb[126].mxu0 }
 0x6e0   :  { %10368 = vmax.xlane.f32.xlu1 %v10367_v42  ;;  %v9076_v6 = vpop.f32.mrb[150].mxu1  ;;  %v19263_v12 = vpop.f32.mrb[127].mxu0  ;;  %v22431_v52 = vmul.f32 0.35355338, %v8998_v32 }
 0x6e1   :  { %v22429_v40 = vmul.f32 0.35355338, %v9076_v6  ;;  %v19268_v9 = vpop.f32.mrb[151].mxu1  ;;  %v22449_v39 = vpop.permute.xlu1 %11148 }
 0x6e2   :  { %v10370_v32 = vsel %vm583_vm2, %v22431_v52, -inf  ;;  %v22445_v9 = vpop.permute.xlu0 %10768  ;;  %24824 = vst [vmem:[#allocation98_spill] sm:$0xff] %v22449_v39 }
 0x6e3   :  { %v10373_v13 = vsel %vm583_vm2, %v22429_v40, -inf  ;;  %10365 = vmax.xlane.f32.xlu0 %v10364_v44  ;;  %v9154_v63 = vpop.f32.mrb[128].mxu0 }
 0x6e4   :  { %10374 = vmax.xlane.f32.xlu1 %v10373_v13  ;;  %v9232_v23 = vpop.f32.mrb[152].mxu1  ;;  %v19273_v42 = vpop.f32.mrb[129].mxu0  ;;  %v22441_v12 = vmul.f32 0.35355338, %v9154_v63 }
 0x6e5   :  { %v22439_v50 = vmul.f32 0.35355338, %v9232_v23  ;;  %v19278_v6 = vpop.f32.mrb[153].mxu1 }
 0x6e6   :  { %v10376_v6 = vsel %vm583_vm2, %v22441_v12, -inf  ;;  %v22459_v38 = vpop.permute.xlu0 %10920 }
 0x6e7   :  { %v10379_v18 = vsel %vm583_vm2, %v22439_v50, -inf  ;;  %10371 = vmax.xlane.f32.xlu0 %v10370_v32  ;;  %v9310_v8 = vpop.f32.mrb[130].mxu0  ;;  %24825 = vst [vmem:[#allocation12_spill] sm:$0xff] %v22459_v38 }
 0x6e8   :  { %10380 = vmax.xlane.f32.xlu1 %v10379_v18  ;;  %v9388_v44 = vpop.f32.mrb[154].mxu1  ;;  %v19283_v13 = vpop.f32.mrb[131].mxu0  ;;  %v22453_v63 = vmul.f32 0.35355338, %v9310_v8 }
 0x6e9   :  { %v22451_v23 = vmul.f32 0.35355338, %v9388_v44  ;;  %v19288_v42 = vpop.f32.mrb[155].mxu1 }
 0x6ea   :  { %v10382_v8 = vsel %vm583_vm2, %v22453_v63, -inf  ;;  %v22467_v42 = vpop.permute.xlu1 %11300 }
 0x6eb   :  { %v10385_v35 = vsel %vm583_vm2, %v22451_v23, -inf  ;;  %10377 = vmax.xlane.f32.xlu0 %v10376_v6  ;;  %v9466_v1 = vpop.f32.mrb[132].mxu0  ;;  %24826 = vst [vmem:[#allocation23_spill] sm:$0xff] %v22467_v42 }
 0x6ec   :  { %10386 = vmax.xlane.f32.xlu1 %v10385_v35  ;;  %v9544_v32 = vpop.f32.mrb[156].mxu1  ;;  %v19293_v18 = vpop.f32.mrb[133].mxu0  ;;  %v22463_v16 = vmul.f32 0.35355338, %v9466_v1 }
 0x6ed   :  { %v22461_v13 = vmul.f32 0.35355338, %v9544_v32  ;;  %v19298_v44 = vpop.f32.mrb[157].mxu1 }
 0x6ee   :  { %v10388_v1 = vsel %vm583_vm2, %v22463_v16, -inf  ;;  %v22477_v44 = vpop.permute.xlu0 %11072  ;;  %v22481_v47 = vpop.permute.xlu1 %11452 }
 0x6ef   :  { %v10391_v4 = vsel %vm583_vm2, %v22461_v13, -inf  ;;  %10383 = vmax.xlane.f32.xlu0 %v10382_v8  ;;  %v9622_v6 = vpop.f32.mrb[134].mxu0  ;;  %24827 = vst [vmem:[#allocation81_spill] sm:$0xff] %v22477_v44  ;;  %24828 = vst [vmem:[#allocation100_spill] sm:$0xff] %v22481_v47 }
 0x6f0   :  { %10392 = vmax.xlane.f32.xlu1 %v10391_v4  ;;  %v9700_v35 = vpop.f32.mrb[158].mxu1  ;;  %v19303_v18 = vpop.f32.mrb[135].mxu0  ;;  %v22473_v14 = vmul.f32 0.35355338, %v9622_v6 }
 0x6f1   :  { %v22471_v53 = vmul.f32 0.35355338, %v9700_v35  ;;  %v19308_v32 = vpop.f32.mrb[159].mxu1 }
 0x6f2   :  { %v10394_v32 = vsel %vm583_vm2, %v22473_v14, -inf  ;;  %v22491_v44 = vpop.permute.xlu0 %11224 }
 0x6f3   :  { %v10397_v24 = vsel %vm583_vm2, %v22471_v53, -inf  ;;  %10389 = vmax.xlane.f32.xlu0 %v10388_v1  ;;  %v9778_v41 = vpop.f32.mrb[136].mxu0  ;;  %24829 = vst [vmem:[#allocation25_spill] sm:$0xff] %v22491_v44 }
 0x6f4   :  { %10398 = vmax.xlane.f32.xlu1 %v10397_v24  ;;  %v9856_v8 = vpop.f32.mrb[160].mxu1  ;;  %v19313_v4 = vpop.f32.mrb[137].mxu0  ;;  %v22485_v6 = vmul.f32 0.35355338, %v9778_v41 }
 0x6f5   :  { %v22483_v35 = vmul.f32 0.35355338, %v9856_v8  ;;  %v19318_v18 = vpop.f32.mrb[161].mxu1 }
 0x6f6   :  { %v10400_v41 = vsel %vm583_vm2, %v22485_v6, -inf  ;;  %v22499_v18 = vpop.permute.xlu1 %11604 }
 0x6f7   :  { %v10403_v46 = vsel %vm583_vm2, %v22483_v35, -inf  ;;  %10395 = vmax.xlane.f32.xlu0 %v10394_v32  ;;  %v9934_v42 = vpop.f32.mrb[138].mxu0  ;;  %24830 = vst [vmem:[#allocation7_spill] sm:$0xff] %v22499_v18 }
 0x6f8   :  { %10404 = vmax.xlane.f32.xlu1 %v10403_v46  ;;  %v10012_v1 = vpop.f32.mrb[162].mxu1  ;;  %v19323_v24 = vpop.f32.mrb[139].mxu0  ;;  %v22495_v47 = vmul.f32 0.35355338, %v9934_v42 }
 0x6f9   :  { %v22493_v4 = vmul.f32 0.35355338, %v10012_v1  ;;  %v19328_v8 = vpop.f32.mrb[163].mxu1 }
 0x6fa   :  { %v10406_v42 = vsel %vm583_vm2, %v22495_v47, -inf  ;;  %v22509_v8 = vpop.permute.xlu0 %11376  ;;  %v22513_v17 = vpop.permute.xlu1 %11680 }
 0x6fb   :  { %v10409_v39 = vsel %vm583_vm2, %v22493_v4, -inf  ;;  %10401 = vmax.xlane.f32.xlu0 %v10400_v41  ;;  %v10090_v32 = vpop.f32.mrb[140].mxu0  ;;  %24831 = vst [vmem:[#allocation83_spill] sm:$0xff] %v22509_v8  ;;  %24832 = vst [vmem:[#allocation102_spill] sm:$0xff] %v22513_v17 }
 0x6fc   :  { %10410 = vmax.xlane.f32.xlu1 %v10409_v39  ;;  %v10168_v46 = vpop.f32.mrb[164].mxu1  ;;  %v19333_v24 = vpop.f32.mrb[141].mxu0  ;;  %v22505_v44 = vmul.f32 0.35355338, %v10090_v32 }
 0x6fd   :  { %v22503_v3 = vmul.f32 0.35355338, %v10168_v46  ;;  %v19338_v1 = vpop.f32.mrb[165].mxu1 }
 0x6fe   :  { %v10412_v1 = vsel %vm583_vm2, %v22505_v44, -inf }
 0x6ff   :  { %v10415_v18 = vsel %vm583_vm2, %v22503_v3, -inf  ;;  %10407 = vmax.xlane.f32.xlu0 %v10406_v42  ;;  %v10246_v34 = vpop.f32.mrb[142].mxu0  ;;  %v22523_v42 = vpop.permute.xlu0 %11528 }
 0x700   :  { %10416 = vmax.xlane.f32.xlu1 %v10415_v18  ;;  %v10324_v41 = vpop.f32.mrb[166].mxu1  ;;  %v19343_v39 = vpop.f32.mrb[143].mxu0  ;;  %v22517_v32 = vmul.f32 0.35355338, %v10246_v34  ;;  %24833 = vst [vmem:[#allocation10_spill] sm:$0xff] %v22523_v42 }
 0x701   :  { %v22515_v46 = vmul.f32 0.35355338, %v10324_v41  ;;  %v19348_v24 = vpop.f32.mrb[167].mxu1  ;;  %v22527_v39 = vpop.permute.xlu1 %11756 }
 0x702   :  { %v10418_v18 = vsel %vm583_vm2, %v22517_v32, -inf  ;;  %24834 = vst [vmem:[#allocation28_spill] sm:$0xff] %v22527_v39 }
 0x703   :  { %v10421_v8 = vsel %vm583_vm2, %v22515_v46, -inf  ;;  %10413 = vmax.xlane.f32.xlu0 %v10412_v1  ;;  %v22529_v41 = vpop.permute.xlu0 %11832 }
 0x704   :  { %10422 = vmax.xlane.f32.xlu1 %v10421_v8  ;;  %24835 = vst [vmem:[#allocation85_spill] sm:$0xff] %v22529_v41 }
 0x705   :  { %v22531_v34 = vpop.permute.xlu1 %11908 }
 0x706   :  { %24836 = vst [vmem:[#allocation104_spill] sm:$0xff] %v22531_v34 }
 0x707   :  { %10419 = vmax.xlane.f32.xlu0 %v10418_v18  ;;  %v22533_v24 = vpop.permute.xlu0 %11984 }
 0x708   :  { %24837 = vst [vmem:[#allocation30_spill] sm:$0xff] %v22533_v24 }
 0x709   :  { %v22535_v17 = vpop.permute.xlu1 %12060 }
 0x70a   :  { %24838 = vst [vmem:[#allocation14_spill] sm:$0xff] %v22535_v17 }
 0x70b   :  { %v22537_v28 = vpop.permute.xlu0 %12136 }
 0x70c   :  { %24839 = vst [vmem:[#allocation18_spill] sm:$0xff] %v22537_v28 }
 0x70d   :  { %v22539_v1 = vpop.permute.xlu1 %12212 }
 0x70e   :  { %24840 = vst [vmem:[#allocation27_spill] sm:$0xff] %v22539_v1 }
 0x70f   :  { %v22541_v8 = vpop.permute.xlu0 %12288 }
 0x710   :  { %24841 = vst [vmem:[#allocation87_spill] sm:$0xff] %v22541_v8 }
 0x711   :  { %v22543_v42 = vpop.permute.xlu1 %12364 }
 0x712   :  { %24842 = vst [vmem:[#allocation106_spill] sm:$0xff] %v22543_v42 }
 0x713   :  { %v22545_v48 = vpop.permute.xlu0 %12442 }
 0x714   :  { %24843 = vst [vmem:[#allocation29_spill] sm:$0xff] %v22545_v48 }
 0x715   :  { %v22547_v39 = vpop.permute.xlu1 %12520 }
 0x716   :  { %24844 = vst [vmem:[#allocation89_spill] sm:$0xff] %v22547_v39 }
 0x717   :  { %v22549_v18 = vpop.permute.xlu0 %12440 }
 0x718   :  { %24845 = vst [vmem:[#allocation107_spill] sm:$0xff] %v22549_v18 }
 0x719   :  { %v22551_v41 = vpop.permute.xlu1 %12518 }
 0x71a   :  { %24846 = vst [vmem:[#allocation91_spill] sm:$0xff] %v22551_v41 }
 0x71b   :  { %v22553_v34 = vpop.permute.xlu0 %12598 }
 0x71c   :  { %24847 = vst [vmem:[#allocation108_spill] sm:$0xff] %v22553_v34 }
 0x71d   :  { %v22555_v24 = vpop.permute.xlu1 %12676 }
 0x71e   :  { %24848 = vst [vmem:[#allocation93_spill] sm:$0xff] %v22555_v24 }
 0x71f   :  { %v22557_v17 = vpop.permute.xlu0 %12596 }
 0x720   :  { %24849 = vst [vmem:[#allocation109_spill] sm:$0xff] %v22557_v17 }
 0x721   :  { %v22559_v28 = vpop.permute.xlu1 %12674 }
 0x722   :  { %24850 = vst [vmem:[#allocation95_spill] sm:$0xff] %v22559_v28 }
 0x723   :  { %v22561_v1 = vpop.permute.xlu0 %12754 }
 0x724   :  { %24851 = vst [vmem:[#allocation110_spill] sm:$0xff] %v22561_v1 }
 0x725   :  { %v22563_v8 = vpop.permute.xlu1 %12832 }
 0x726   :  { %24852 = vst [vmem:[#allocation97_spill] sm:$0xff] %v22563_v8 }
 0x727   :  { %v22565_v42 = vpop.permute.xlu0 %12752 }
 0x728   :  { %24853 = vst [vmem:[#allocation111_spill] sm:$0xff] %v22565_v42 }
 0x729   :  { %v22567_v48 = vpop.permute.xlu1 %12830 }
 0x72a   :  { %24854 = vst [vmem:[#allocation99_spill] sm:$0xff] %v22567_v48 }
 0x72b   :  { %v22569_v39 = vpop.permute.xlu0 %12910 }
 0x72c   :  { %24855 = vst [vmem:[#allocation112_spill] sm:$0xff] %v22569_v39 }
 0x72d   :  { %v22571_v18 = vpop.permute.xlu1 %12988 }
 0x72e   :  { %24856 = vst [vmem:[#allocation101_spill] sm:$0xff] %v22571_v18 }
 0x72f   :  { %v22573_v41 = vpop.permute.xlu0 %12908 }
 0x730   :  { %24857 = vst [vmem:[#allocation113_spill] sm:$0xff] %v22573_v41 }
 0x731   :  { %v22575_v34 = vpop.permute.xlu1 %12986 }
 0x732   :  { %24858 = vst [vmem:[#allocation103_spill] sm:$0xff] %v22575_v34 }
 0x733   :  { %v22577_v24 = vpop.permute.xlu0 %13066 }
 0x734   :  { %24859 = vst [vmem:[#allocation114_spill] sm:$0xff] %v22577_v24 }
 0x735   :  { %v22579_v17 = vpop.permute.xlu1 %13144 }
 0x736   :  { %24860 = vst [vmem:[#allocation105_spill] sm:$0xff] %v22579_v17 }
 0x737   :  { %v22581_v28 = vpop.permute.xlu0 %13064 }
 0x738   :  { %24861 = vst [vmem:[#allocation115_spill] sm:$0xff] %v22581_v28 }
 0x739   :  { %v22583_v1 = vpop.permute.xlu1 %13142 }
 0x73a   :  { %24862 = vst [vmem:[#allocation116_spill] sm:$0xff] %v22583_v1 }
 0x73b   :  { %v22585_v8 = vpop.permute.xlu0 %13222 }
 0x73c   :  { %24863 = vst [vmem:[#allocation117_spill] sm:$0xff] %v22585_v8 }
 0x73d   :  { %v22587_v42 = vpop.permute.xlu1 %13300 }
 0x73e   :  { %24864 = vst [vmem:[#allocation118_spill] sm:$0xff] %v22587_v42 }
 0x764   :  { %v10354_v48 = vpop.xlane.xlu0 %10353 }
 0x765   :  { %v10357_v39 = vpop.xlane.xlu1 %10356  ;;  %v10424_v18 = vsub.f32 %v22405_v11, %v10354_v48 }
 0x766   :  { %v10425_v41 = vsub.f32 %v22407_v10, %v10357_v39 }
 0x767   :  { %v10448_v38 = vmul.f32 1.442695, %v10424_v18 }
 0x768   :  { %v10450_v34 = vmul.f32 1.442695, %v10425_v41  ;;  %v10360_v57 = vpop.xlane.xlu0 %10359 }
 0x769   :  { %19983 = vpow2.f32 %v10448_v38  ;;  %v10426_v17 = vsub.f32 %v22413_v7, %v10360_v57 }
 0x76a   :  { %19985 = vpow2.f32 %v10450_v34 }
 0x76b   :  { %v10452_v28 = vmul.f32 1.442695, %v10426_v17 }
 0x76c   :  { %v10363_v24 = vpop.xlane.xlu0 %10362 }
 0x76d   :  { %19987 = vpow2.f32 %v10452_v28  ;;  %v10369_v1 = vpop.xlane.xlu1 %10368  ;;  %v10427_v8 = vsub.f32 %v22415_v26, %v10363_v24 }
 0x76e   :  { %v10429_v42 = vsub.f32 %v22421_v15, %v10369_v1 }
 0x76f   :  { %v10454_v51 = vmul.f32 1.442695, %v10427_v8 }
 0x770   :  { %v10458_v61 = vmul.f32 1.442695, %v10429_v42  ;;  %v10366_v48 = vpop.xlane.xlu0 %10365 }
 0x771   :  { %19989 = vpow2.f32 %v10454_v51  ;;  %v10375_v10 = vpop.xlane.xlu1 %10374  ;;  %v10428_v11 = vsub.f32 %v22423_v20, %v10366_v48 }
 0x772   :  { %v10431_v38 = vsub.f32 %v22429_v40, %v10375_v10  ;;  %19991 = vpow2.f32 %v10458_v61 }
 0x773   :  { %v22596_v39 = vpop.eup %19983  ;;  %v10456_v57 = vmul.f32 1.442695, %v10428_v11 }
 0x774   :  { %v22598_v7 = vpop.eup %19985  ;;  %v10462_v28 = vmul.f32 1.442695, %v10431_v38  ;;  %v10372_v17 = vpop.xlane.xlu0 %10371  ;;  %v10496_v15 = vsel %vm583_vm2, %v22596_v39, 0.0 }
 0x775   :  { %19993 = vpow2.f32 %v10456_v57  ;;  %v10381_v26 = vpop.xlane.xlu1 %10380  ;;  %v10430_v51 = vsub.f32 %v22431_v52, %v10372_v17  ;;  %v10499_v20 = vsel %vm583_vm2, %v22598_v7, 0.0  ;;  %10497 = vadd.xlane.f32.xlu0 %v10496_v15 }
 0x776   :  { %v10433_v40 = vsub.f32 %v22439_v50, %v10381_v26  ;;  %10500 = vadd.xlane.f32.xlu1 %v10499_v20  ;;  %19995 = vpow2.f32 %v10462_v28 }
 0x777   :  { %v22606_v61 = vpop.eup %19987  ;;  %v10460_v42 = vmul.f32 1.442695, %v10430_v51 }
 0x778   :  { %v10466_v41 = vmul.f32 1.442695, %v10433_v40  ;;  %v10378_v34 = vpop.xlane.xlu0 %10377  ;;  %v10502_v24 = vsel %vm583_vm2, %v22606_v61, 0.0 }
 0x779   :  { %19997 = vpow2.f32 %v10460_v42  ;;  %v10387_v1 = vpop.xlane.xlu1 %10386  ;;  %v10432_v52 = vsub.f32 %v22441_v12, %v10378_v34  ;;  %10503 = vadd.xlane.f32.xlu0 %v10502_v24 }
 0x77a   :  { %v10435_v8 = vsub.f32 %v22451_v23, %v10387_v1  ;;  %19999 = vpow2.f32 %v10466_v41 }
 0x77b   :  { %v22612_v18 = vpop.eup %19989  ;;  %v10464_v50 = vmul.f32 1.442695, %v10432_v52 }
 0x77c   :  { %v10470_v48 = vmul.f32 1.442695, %v10435_v8  ;;  %v10384_v10 = vpop.xlane.xlu0 %10383  ;;  %v10505_v11 = vsel %vm583_vm2, %v22612_v18, 0.0  ;;  %v22616_v38 = vpop.eup %19991 }
 0x77d   :  { %20001 = vpow2.f32 %v10464_v50  ;;  %v10393_v57 = vpop.xlane.xlu1 %10392  ;;  %v10434_v28 = vsub.f32 %v22453_v63, %v10384_v10  ;;  %10506 = vadd.xlane.f32.xlu1 %v10505_v11  ;;  %v10511_v51 = vsel %vm583_vm2, %v22616_v38, 0.0 }
 0x77e   :  { %v10437_v12 = vsub.f32 %v22461_v13, %v10393_v57  ;;  %20003 = vpow2.f32 %v10470_v48 }
 0x77f   :  { %v22620_v17 = vpop.eup %19993  ;;  %v10468_v23 = vmul.f32 1.442695, %v10434_v28 }
 0x780   :  { %v10474_v15 = vmul.f32 1.442695, %v10437_v12  ;;  %v10390_v26 = vpop.xlane.xlu0 %10389  ;;  %v10508_v20 = vsel %vm583_vm2, %v22620_v17, 0.0  ;;  %v22626_v40 = vpop.eup %19995 }
 0x781   :  { %20005 = vpow2.f32 %v10468_v23  ;;  %v10399_v42 = vpop.xlane.xlu1 %10398  ;;  %v10436_v63 = vsub.f32 %v22463_v16, %v10390_v26  ;;  %10512 = vadd.xlane.f32.xlu1 %v10511_v51  ;;  %10509 = vadd.xlane.f32.xlu0 %v10508_v20  ;;  %v10517_v52 = vsel %vm583_vm2, %v22626_v40, 0.0 }
 0x782   :  { %v10439_v13 = vsub.f32 %v22471_v53, %v10399_v42  ;;  %20007 = vpow2.f32 %v10474_v15 }
 0x783   :  { %v22630_v41 = vpop.eup %19997  ;;  %v10472_v34 = vmul.f32 1.442695, %v10436_v63 }
 0x784   :  { %v10478_v24 = vmul.f32 1.442695, %v10439_v13  ;;  %v10396_v1 = vpop.xlane.xlu0 %10395  ;;  %v10514_v8 = vsel %vm583_vm2, %v22630_v41, 0.0  ;;  %v22636_v50 = vpop.eup %19999 }
 0x785   :  { %20009 = vpow2.f32 %v10472_v34  ;;  %v10405_v16 = vpop.xlane.xlu1 %10404  ;;  %v10438_v48 = vsub.f32 %v22473_v14, %v10396_v1  ;;  %10518 = vadd.xlane.f32.xlu1 %v10517_v52  ;;  %10515 = vadd.xlane.f32.xlu0 %v10514_v8  ;;  %v10523_v12 = vsel %vm583_vm2, %v22636_v50, 0.0 }
 0x786   :  { %v10441_v53 = vsub.f32 %v22483_v35, %v10405_v16  ;;  %20011 = vpow2.f32 %v10478_v24 }
 0x787   :  { %v22640_v10 = vpop.eup %20001  ;;  %v10476_v11 = vmul.f32 1.442695, %v10438_v48 }
 0x788   :  { %v10482_v57 = vmul.f32 1.442695, %v10441_v53  ;;  %v10402_v28 = vpop.xlane.xlu0 %10401  ;;  %v10520_v23 = vsel %vm583_vm2, %v22640_v10, 0.0  ;;  %v22646_v15 = vpop.eup %20003 }
 0x789   :  { %20013 = vpow2.f32 %v10476_v11  ;;  %v10411_v14 = vpop.xlane.xlu1 %10410  ;;  %v10440_v26 = vsub.f32 %v22485_v6, %v10402_v28  ;;  %10524 = vadd.xlane.f32.xlu1 %v10523_v12  ;;  %10521 = vadd.xlane.f32.xlu0 %v10520_v23  ;;  %v10529_v13 = vsel %vm583_vm2, %v22646_v15, 0.0 }
 0x78a   :  { %v10443_v35 = vsub.f32 %v22493_v4, %v10411_v14  ;;  %20015 = vpow2.f32 %v10482_v57 }
 0x78b   :  { %v22650_v51 = vpop.eup %20005  ;;  %v10480_v20 = vmul.f32 1.442695, %v10440_v26 }
 0x78c   :  { %v10486_v42 = vmul.f32 1.442695, %v10443_v35  ;;  %v10408_v63 = vpop.xlane.xlu0 %10407  ;;  %v10526_v34 = vsel %vm583_vm2, %v22650_v51, 0.0  ;;  %v22656_v24 = vpop.eup %20007 }
 0x78d   :  { %20017 = vpow2.f32 %v10480_v20  ;;  %v10417_v6 = vpop.xlane.xlu1 %10416  ;;  %v10442_v1 = vsub.f32 %v22495_v47, %v10408_v63  ;;  %10530 = vadd.xlane.f32.xlu1 %v10529_v13  ;;  %10527 = vadd.xlane.f32.xlu0 %v10526_v34  ;;  %v10535_v53 = vsel %vm583_vm2, %v22656_v24, 0.0 }
 0x78e   :  { %v10445_v4 = vsub.f32 %v22503_v3, %v10417_v6  ;;  %20019 = vpow2.f32 %v10486_v42 }
 0x78f   :  { %v22660_v52 = vpop.eup %20009  ;;  %v10484_v8 = vmul.f32 1.442695, %v10442_v1 }
 0x790   :  { %v10490_v16 = vmul.f32 1.442695, %v10445_v4  ;;  %v10414_v48 = vpop.xlane.xlu0 %10413  ;;  %v10532_v11 = vsel %vm583_vm2, %v22660_v52, 0.0  ;;  %v22666_v57 = vpop.eup %20011 }
 0x791   :  { %20021 = vpow2.f32 %v10484_v8  ;;  %v10444_v47 = vsub.f32 %v22505_v44, %v10414_v48  ;;  %10536 = vadd.xlane.f32.xlu1 %v10535_v53  ;;  %10533 = vadd.xlane.f32.xlu0 %v10532_v11  ;;  %v10541_v23 = vsel %vm583_vm2, %v22666_v57, 0.0  ;;  %v10423_v8 = vpop.xlane.xlu1 %10422 }
 0x792   :  { %20023 = vpow2.f32 %v10490_v16  ;;  %v10447_v48 = vsub.f32 %v22515_v46, %v10423_v8  ;;  %v24870_v46 = vld [vmem:[#allocation13_spill] sm:$0xff] }
 0x793   :  { %v22669_v3 = vpop.eup %20013  ;;  %v10488_v28 = vmul.f32 1.442695, %v10444_v47  ;;  %v24875_v8 = vld [vmem:[#allocation81_spill] sm:$0xff] }
 0x794   :  { %v10538_v12 = vsel %vm583_vm2, %v22669_v3, 0.0  ;;  %v22675_v14 = vpop.eup %20015  ;;  %v10420_v16 = vpop.xlane.xlu0 %10419  ;;  %v10494_v11 = vmul.f32 1.442695, %v10447_v48  ;;  %v24876_v48 = vld [vmem:[#allocation44_spill] sm:$0xff] }
 0x795   :  { %20025 = vpow2.f32 %v10488_v28  ;;  %10539 = vadd.xlane.f32.xlu1 %v10538_v12  ;;  %10542 = vadd.xlane.f32.xlu0 %v10541_v23  ;;  %v10547_v35 = vsel %vm583_vm2, %v22675_v14, 0.0  ;;  %v10446_v53 = vsub.f32 %v22517_v32, %v10420_v16 }
 0x796   :  { %20027 = vpow2.f32 %v10494_v11 }
 0x797   :  { %v22677_v26 = vpop.eup %20017  ;;  %v10492_v47 = vmul.f32 1.442695, %v10446_v53 }
 0x798   :  { %v10544_v44 = vsel %vm583_vm2, %v22677_v26, 0.0  ;;  %v22683_v20 = vpop.eup %20019 }
 0x799   :  { %10545 = vadd.xlane.f32.xlu1 %v10544_v44  ;;  %10548 = vadd.xlane.f32.xlu0 %v10547_v35  ;;  %v10553_v13 = vsel %vm583_vm2, %v22683_v20, 0.0  ;;  %20029 = vpow2.f32 %v10492_v47  ;;  %v24872_v44 = vld [vmem:[#allocation39_spill] sm:$0xff]  ;;  %v24877_v47 = vld [vmem:[#allocation37_spill] sm:$0xff] }
 0x79b   :  { %v22685_v42 = vpop.eup %20021 }
 0x79c   :  { %v10550_v63 = vsel %vm583_vm2, %v22685_v42, 0.0  ;;  %v22691_v34 = vpop.eup %20023 }
 0x79d   :  { %10551 = vadd.xlane.f32.xlu1 %v10550_v63  ;;  %10554 = vadd.xlane.f32.xlu0 %v10553_v13  ;;  %v10559_v4 = vsel %vm583_vm2, %v22691_v34, 0.0  ;;  %v24873_v63 = vld [vmem:[#allocation38_spill] sm:$0xff] }
 0x79f   :  { %v22693_v6 = vpop.eup %20025 }
 0x7a0   :  { %v10556_v1 = vsel %vm583_vm2, %v22693_v6, 0.0  ;;  %v22705_v28 = vpop.eup %20027 }
 0x7a1   :  { %10557 = vadd.xlane.f32.xlu1 %v10556_v1  ;;  %10560 = vadd.xlane.f32.xlu0 %v10559_v4  ;;  %v24874_v1 = vld [vmem:[#allocation98_spill] sm:$0xff] }
 0x7a3   :  { %v22707_v12 = vpop.eup %20029 }
 0x7b2   :  { %13298 = vrot.lane.b32.xlu1 %v24710_v45, %s20323_s11  ;;  %v10565_v45 = vsel %vm583_vm2, %v22705_v28, 0.0 }
 0x7b7   :  { %13220 = vrot.lane.b32.xlu0 %v20511_v36, %s20323_s11  ;;  %v10562_v36 = vsel %vm583_vm2, %v22707_v12, 0.0 }
 0x7d6   :  { %10566 = vadd.xlane.f32.xlu0 %v10565_v45  ;;  %10563 = vadd.xlane.f32.xlu1 %v10562_v36  ;;  %v24878_v45 = vld [vmem:[#allocation23_spill] sm:$0xff] }
 0x7e7   :  { %13456 = vrot.lane.b32.xlu1 %v20624_v58, %s20323_s11 }
 0x7eb   :  { %13454 = vrot.lane.b32.xlu1 %v20479_v25, %s20323_s11 }
 0x7ec   :  { %13378 = vrot.lane.b32.xlu0 %v20611_v56, %s20323_s11 }
 0x7ef   :  { %13612 = vrot.lane.b32.xlu1 %v24583_v31, %s20323_s11 }
 0x7f0   :  { %13376 = vrot.lane.b32.xlu0 %v20467_v21, %s20323_s11 }
 0x7f3   :  { %13610 = vrot.lane.b32.xlu1 %v24584_v43, %s20323_s11 }
 0x7f4   :  { %13534 = vrot.lane.b32.xlu0 %v20609_v55, %s20323_s11 }
 0x7f7   :  { %13768 = vrot.lane.b32.xlu1 %v24587_v30, %s20323_s11  ;;  %v24865_v30 = vmov 0.0  }
 0x7f8   :  { %13532 = vrot.lane.b32.xlu0 %v20463_v19, %s20323_s11 }
 0x7fb   :  { %13766 = vrot.lane.b32.xlu1 %v24588_v62, %s20323_s11 }
 0x7fc   :  { %13690 = vrot.lane.b32.xlu0 %v20643_v60, %s20323_s11 }
 0x7ff   :  { %13924 = vrot.lane.b32.xlu1 %v24589_v54, %s20323_s11  ;;  %v24866_v54 = vld [vmem:[#allocation15_spill] sm:$0xff] }
 0x800   :  { %13688 = vrot.lane.b32.xlu0 %v20489_v29, %s20323_s11 }
 0x802   :  { %v10498_v21 = vpop.xlane.xlu0 %10497 }
 0x803   :  { %v10501_v25 = vpop.xlane.xlu1 %10500  ;;  %20031 = vrcp.f32 %v10498_v21  ;;  %13922 = vrot.lane.b32.xlu1 %v24591_v33, %s20323_s11 }
 0x804   :  { %20033 = vrcp.f32 %v10501_v25  ;;  %13846 = vrot.lane.b32.xlu0 %v20639_v59, %s20323_s11  ;;  %v24879_v25 = vld [vmem:[#allocation25_spill] sm:$0xff] }
 0x806   :  { %v10504_v19 = vpop.xlane.xlu0 %10503 }
 0x807   :  { %20035 = vrcp.f32 %v10504_v19  ;;  %14080 = vrot.lane.b32.xlu1 %v24594_v22, %s20323_s11  ;;  %v24868_v22 = vld [vmem:[#allocation12_spill] sm:$0xff] }
 0x808   :  { %13844 = vrot.lane.b32.xlu0 %v20485_v27, %s20323_s11 }
 0x80a   :  { %v10507_v55 = vpop.xlane.xlu1 %10506 }
 0x80b   :  { %20037 = vrcp.f32 %v10507_v55  ;;  %14078 = vrot.lane.b32.xlu1 %v24596_v2, %s20323_s11  ;;  %v24880_v55 = vld [vmem:[#allocation43_spill] sm:$0xff] }
 0x80c   :  { %14002 = vrot.lane.b32.xlu0 %v20679_v0, %s20323_s11 }
 0x80d   :  { %v20032_v29 = vpop.eup %20031 }
 0x80e   :  { %v20034_v56 = vpop.eup %20033  ;;  %v10513_v58 = vpop.xlane.xlu1 %10512  ;;  %v10592_v60 = vmul.f32 %v20032_v29, %v22596_v39  ;;  %v24871_v39 = vld [vmem:[#allocation80_spill] sm:$0xff] }
 0x80f   :  { %v10510_v59 = vpop.xlane.xlu0 %10509  ;;  %20039 = vrcp.f32 %v10513_v58  ;;  %14236 = vrot.lane.b32.xlu1 %v24598_v49, %s20323_s11  ;;  %v10593_v27 = vmul.f32 %v20034_v56, %v22598_v7  ;;  %v24881_v56 = vld [vmem:[#allocation42_spill] sm:$0xff] }
 0x810   :  { %20041 = vrcp.f32 %v10510_v59  ;;  %14000 = vrot.lane.b32.xlu0 %v20513_v37, %s20323_s11  ;;  %19352 = vmatmul.mubr.msk.f32.vlgmr.msra.gmra.mrb[144].mxu0 %vm583_vm2, %v10592_v60  ;;  %v24867_v37 = vld [vmem:[#allocation34_spill] sm:$0xff]  ;;  %v24882_v59 = vld [vmem:[#allocation100_spill] sm:$0xff] }
 0x811   :  { %v20036_v31 = vpop.eup %20035  ;;  %19357 = vmatmul.mubr.msk.f32.vlgmr.msra.gmra.mrb[168].mxu1 %vm583_vm2, %v10593_v27  ;;  %19360 = vmatpush3.msra.mxu0 %v22445_v9  ;;  %v24869_v9 = vld [vmem:[#allocation40_spill] sm:$0xff]  ;;  %v24883_v27 = vld [vmem:[#allocation83_spill] sm:$0xff] }
 0x812   :  { %19365 = vmatpush3.msra.mxu1 %v22419_v5  ;;  %v10519_v0 = vpop.xlane.xlu1 %10518  ;;  %19361 = vmatprep.mubr.msk.f32.mxu0 %vm20320_vm1, %v24865_v30  ;;  %v10594_v62 = vmul.f32 %v20036_v31, %v22606_v61 }
 0x813   :  { %v10516_v43 = vpop.xlane.xlu0 %10515  ;;  %20043 = vrcp.f32 %v10519_v0  ;;  %14234 = vrot.lane.b32.xlu1 %v24866_v54, %s20323_s11  ;;  %19369 = vmatprep.subr.mxu0 %v24865_v30  ;;  %v24885_v54 = vld [vmem:[#allocation41_spill] sm:$0xff] }
 0x814   :  { %20045 = vrcp.f32 %v10516_v43  ;;  %14158 = vrot.lane.b32.xlu0 %v24867_v37, %s20323_s11  ;;  %19362 = vmatmul.mubr.msk.f32.vlgmr.msra.gmra.mrb[146].mxu0 %vm583_vm2, %v10594_v62  ;;  %v24884_v43 = vld [vmem:[#allocation48_spill] sm:$0xff]  ;;  %v24886_v37 = vld [vmem:[#allocation7_spill] sm:$0xff] }
 0x815   :  { %v20038_v33 = vpop.eup %20037  ;;  %19370 = vmatpush3.msra.mxu0 %v24868_v22  ;;  %19366 = vmatprep.mubr.msk.f32.mxu1 %vm20320_vm1, %v24865_v30  ;;  %v24887_v22 = vld [vmem:[#allocation10_spill] sm:$0xff] }
 0x816   :  { %v10525_v2 = vpop.xlane.xlu1 %10524  ;;  %19374 = vmatprep.subr.mxu1 %v24865_v30  ;;  %v10595_v5 = vmul.f32 %v20038_v33, %v22612_v18  ;;  %19371 = vmatprep.mubr.msk.f32.mxu0 %vm20320_vm1, %v24865_v30 }
 0x817   :  { %v10522_v49 = vpop.xlane.xlu0 %10521  ;;  %20047 = vrcp.f32 %v10525_v2  ;;  %14676 = vrot.lane.b32.xlu1 %v24869_v9, %s20323_s11  ;;  %19379 = vmatprep.subr.mxu0 %v24865_v30 }
 0x818   :  { %20049 = vrcp.f32 %v10522_v49  ;;  %19367 = vmatmul.mubr.msk.f32.vlgmr.msra.gmra.mrb[170].mxu1 %vm583_vm2, %v10595_v5  ;;  %14156 = vrot.lane.b32.xlu0 %v24870_v46, %s20323_s11  ;;  %v24888_v5 = vld [vmem:[#allocation47_spill] sm:$0xff]  ;;  %v24890_v46 = vld [vmem:[#allocation28_spill] sm:$0xff] }
 0x819   :  { %v20040_v32 = vpop.eup %20039  ;;  %19375 = vmatpush3.msra.mxu1 %v24871_v39  ;;  %19376 = vmatprep.mubr.msk.f32.mxu1 %vm20320_vm1, %v24865_v30 }
 0x81a   :  { %v20042_v7 = vpop.eup %20041  ;;  %v10531_v61 = vpop.xlane.xlu1 %10530  ;;  %19384 = vmatprep.subr.mxu1 %v24865_v30  ;;  %v10597_v23 = vmul.f32 %v20040_v32, %v22616_v38 }
 0x81b   :  { %v10528_v18 = vpop.xlane.xlu0 %10527  ;;  %20051 = vrcp.f32 %v10531_v61  ;;  %14828 = vrot.lane.b32.xlu1 %v24872_v44, %s20323_s11  ;;  %v10596_v35 = vmul.f32 %v20042_v7, %v22620_v17  ;;  %v24891_v7 = vld [vmem:[#allocation102_spill] sm:$0xff] }
 0x81c   :  { %20053 = vrcp.f32 %v10528_v18  ;;  %19377 = vmatmul.mubr.msk.f32.vlgmr.msra.gmra.mrb[172].mxu1 %vm583_vm2, %v10597_v23  ;;  %14600 = vrot.lane.b32.xlu0 %v24873_v63, %s20323_s11  ;;  %v24892_v23 = vld [vmem:[#allocation50_spill] sm:$0xff]  ;;  %v24895_v63 = vld [vmem:[#allocation104_spill] sm:$0xff] }
 0x81d   :  { %v20044_v13 = vpop.eup %20043  ;;  %19385 = vmatpush3.msra.mxu1 %v24874_v1  ;;  %19372 = vmatmul.mubr.msk.f32.vlgmr.msra.gmra.mrb[148].mxu0 %vm583_vm2, %v10596_v35 }
 0x81e   :  { %v20046_v4 = vpop.eup %20045  ;;  %19380 = vmatpush3.msra.mxu0 %v24875_v8  ;;  %v10537_v38 = vpop.xlane.xlu1 %10536  ;;  %19386 = vmatprep.mubr.msk.f32.mxu1 %vm20320_vm1, %v24865_v30  ;;  %v10599_v17 = vmul.f32 %v20044_v13, %v22626_v40  ;;  %v24896_v13 = vld [vmem:[#allocation52_spill] sm:$0xff] }
 0x81f   :  { %v10534_v16 = vpop.xlane.xlu0 %10533  ;;  %20055 = vrcp.f32 %v10537_v38  ;;  %19394 = vmatprep.subr.mxu1 %v24865_v30  ;;  %14980 = vrot.lane.b32.xlu1 %v24876_v48, %s20323_s11  ;;  %v10598_v53 = vmul.f32 %v20046_v4, %v22630_v41 }
 0x820   :  { %20057 = vrcp.f32 %v10534_v16  ;;  %19381 = vmatprep.mubr.msk.f32.mxu0 %vm20320_vm1, %v24865_v30  ;;  %19389 = vmatprep.subr.mxu0 %v24865_v30  ;;  %v24899_v16 = vld [vmem:[#allocation14_spill] sm:$0xff] }
 0x821   :  { %v20048_v11 = vpop.eup %20047  ;;  %19387 = vmatmul.mubr.msk.f32.vlgmr.msra.gmra.mrb[174].mxu1 %vm583_vm2, %v10599_v17  ;;  %14752 = vrot.lane.b32.xlu0 %v24877_v47, %s20323_s11  ;;  %v24900_v17 = vld [vmem:[#allocation51_spill] sm:$0xff] }
 0x822   :  { %v20050_v40 = vpop.eup %20049  ;;  %19395 = vmatpush3.msra.mxu1 %v24878_v45  ;;  %19382 = vmatmul.mubr.msk.f32.vlgmr.msra.gmra.mrb[150].mxu0 %vm583_vm2, %v10598_v53  ;;  %v10540_v36 = vpop.xlane.xlu1 %10539  ;;  %v10601_v41 = vmul.f32 %v20048_v11, %v22636_v50  ;;  %v24904_v45 = vld [vmem:[#allocation56_spill] sm:$0xff] }
 0x823   :  { %v10543_v21 = vpop.xlane.xlu0 %10542  ;;  %19390 = vmatpush3.msra.mxu0 %v24879_v25  ;;  %19396 = vmatprep.mubr.msk.f32.mxu1 %vm20320_vm1, %v24865_v30  ;;  %v10600_v19 = vmul.f32 %v20050_v40, %v22640_v10  ;;  %20059 = vrcp.f32 %v10540_v36  ;;  %v24903_v40 = vld [vmem:[#allocation27_spill] sm:$0xff] }
 0x824   :  { %19404 = vmatprep.subr.mxu1 %v24865_v30  ;;  %15132 = vrot.lane.b32.xlu1 %v24880_v55, %s20323_s11  ;;  %20061 = vrcp.f32 %v10543_v21  ;;  %v24905_v21 = vld [vmem:[#allocation53_spill] sm:$0xff] }
 0x825   :  { %v20052_v29 = vpop.eup %20051  ;;  %19391 = vmatprep.mubr.msk.f32.mxu0 %vm20320_vm1, %v24865_v30  ;;  %19399 = vmatprep.subr.mxu0 %v24865_v30 }
 0x826   :  { %v20054_v50 = vpop.eup %20053  ;;  %19397 = vmatmul.mubr.msk.f32.vlgmr.msra.gmra.mrb[176].mxu1 %vm583_vm2, %v10601_v41  ;;  %14904 = vrot.lane.b32.xlu0 %v24881_v56, %s20323_s11  ;;  %v10546_v10 = vpop.xlane.xlu1 %10545  ;;  %v10603_v60 = vmul.f32 %v20052_v29, %v22646_v15  ;;  %v24908_v41 = vld [vmem:[#allocation55_spill] sm:$0xff] }
 0x827   :  { %v10549_v58 = vpop.xlane.xlu0 %10548  ;;  %19405 = vmatpush3.msra.mxu1 %v24882_v59  ;;  %19392 = vmatmul.mubr.msk.f32.vlgmr.msra.gmra.mrb[152].mxu0 %vm583_vm2, %v10600_v19  ;;  %v10602_v31 = vmul.f32 %v20054_v50, %v22650_v51  ;;  %20063 = vrcp.f32 %v10546_v10 }
 0x828   :  { %19400 = vmatpush3.msra.mxu0 %v24883_v27  ;;  %19406 = vmatprep.mubr.msk.f32.mxu1 %vm20320_vm1, %v24865_v30  ;;  %20065 = vrcp.f32 %v10549_v58 }
 0x829   :  { %v20056_v0 = vpop.eup %20055  ;;  %19414 = vmatprep.subr.mxu1 %v24865_v30  ;;  %15284 = vrot.lane.b32.xlu1 %v24884_v43, %s20323_s11 }
 0x82a   :  { %v20058_v62 = vpop.eup %20057  ;;  %19401 = vmatprep.mubr.msk.f32.mxu0 %vm20320_vm1, %v24865_v30  ;;  %19409 = vmatprep.subr.mxu0 %v24865_v30  ;;  %v10552_v15 = vpop.xlane.xlu1 %10551  ;;  %v10605_v33 = vmul.f32 %v20056_v0, %v22656_v24  ;;  %v24889_v24 = vld [vmem:[#allocation46_spill] sm:$0xff] }
 0x82b   :  { %19407 = vmatmul.mubr.msk.f32.vlgmr.msra.gmra.mrb[178].mxu1 %vm583_vm2, %v10603_v60  ;;  %15056 = vrot.lane.b32.xlu0 %v24885_v54, %s20323_s11  ;;  %v10555_v51 = vpop.xlane.xlu0 %10554  ;;  %v10604_v2 = vmul.f32 %v20058_v62, %v22660_v52  ;;  %20067 = vrcp.f32 %v10552_v15  ;;  %v24909_v62 = vld [vmem:[#allocation29_spill] sm:$0xff] }
 0x82c   :  { %19415 = vmatpush3.msra.mxu1 %v24886_v37  ;;  %19402 = vmatmul.mubr.msk.f32.vlgmr.msra.gmra.mrb[154].mxu0 %vm583_vm2, %v10602_v31  ;;  %20069 = vrcp.f32 %v10555_v51  ;;  %v24910_v15 = vld [vmem:[#allocation89_spill] sm:$0xff]  ;;  %v24913_v37 = vld [vmem:[#allocation108_spill] sm:$0xff] }
 0x82d   :  { %19410 = vmatpush3.msra.mxu0 %v24887_v22  ;;  %19416 = vmatprep.mubr.msk.f32.mxu1 %vm20320_vm1, %v24865_v30  ;;  %v20060_v49 = vpop.eup %20059 }
 0x82e   :  { %19424 = vmatprep.subr.mxu1 %v24865_v30  ;;  %15436 = vrot.lane.b32.xlu1 %v24888_v5, %s20323_s11  ;;  %v20062_v9 = vpop.eup %20061  ;;  %v10558_v52 = vpop.xlane.xlu1 %10557  ;;  %v10606_v39 = vmul.f32 %v20060_v49, %v22669_v3  ;;  %v24893_v3 = vld [vmem:[#allocation45_spill] sm:$0xff]  ;;  %v24916_v5 = vld [vmem:[#allocation95_spill] sm:$0xff] }
 0x82f   :  { %19411 = vmatprep.mubr.msk.f32.mxu0 %vm20320_vm1, %v24865_v30  ;;  %19419 = vmatprep.subr.mxu0 %v24865_v30  ;;  %v10561_v32 = vpop.xlane.xlu0 %10560  ;;  %v10607_v61 = vmul.f32 %v20062_v9, %v22666_v57  ;;  %20071 = vrcp.f32 %v10558_v52  ;;  %v24894_v57 = vld [vmem:[#allocation85_spill] sm:$0xff]  ;;  %v24917_v9 = vld [vmem:[#allocation110_spill] sm:$0xff] }
 0x830   :  { %19417 = vmatmul.mubr.msk.f32.vlgmr.msra.gmra.mrb[180].mxu1 %vm583_vm2, %v10605_v33  ;;  %15208 = vrot.lane.b32.xlu0 %v24889_v24, %s20323_s11  ;;  %20073 = vrcp.f32 %v10561_v32  ;;  %v24914_v33 = vld [vmem:[#allocation93_spill] sm:$0xff]  ;;  %v24919_v32 = vld [vmem:[#allocation111_spill] sm:$0xff] }
 0x831   :  { %19425 = vmatpush3.msra.mxu1 %v24890_v46  ;;  %19412 = vmatmul.mubr.msk.f32.vlgmr.msra.gmra.mrb[156].mxu0 %vm583_vm2, %v10604_v2  ;;  %v20064_v18 = vpop.eup %20063  ;;  %v24915_v49 = vld [vmem:[#allocation109_spill] sm:$0xff] }
 0x832   :  { %19420 = vmatpush3.msra.mxu0 %v24891_v7  ;;  %19426 = vmatprep.mubr.msk.f32.mxu1 %vm20320_vm1, %v24865_v30  ;;  %v20066_v44 = vpop.eup %20065  ;;  %v10608_v35 = vmul.f32 %v20064_v18, %v22677_v26  ;;  %v24897_v26 = vld [vmem:[#allocation49_spill] sm:$0xff]  ;;  %v22933_v25 = vpop.permute.xlu1 %13298  ;;  %v24921_v7 = vld [vmem:[#allocation112_spill] sm:$0xff] }
 0x833   :  { %19434 = vmatprep.subr.mxu1 %v24865_v30  ;;  %15512 = vrot.lane.b32.xlu1 %v24892_v23, %s20323_s11  ;;  %v10609_v1 = vmul.f32 %v20066_v44, %v22675_v14  ;;  %v24898_v14 = vld [vmem:[#allocation30_spill] sm:$0xff]  ;;  %v22935_v19 = vpop.permute.xlu0 %13220  ;;  %v24918_v24 = vld [vmem:[#allocation97_spill] sm:$0xff] }
 0x834   :  { %19421 = vmatprep.mubr.msk.f32.mxu0 %vm20320_vm1, %v24865_v30  ;;  %19429 = vmatprep.subr.mxu0 %v24865_v30  ;;  %v24923_v44 = vld [vmem:[#allocation113_spill] sm:$0xff] }
 0x835   :  { %15360 = vrot.lane.b32.xlu0 %v24893_v3, %s20323_s11  ;;  %19422 = vmatmul.mubr.msk.f32.vlgmr.msra.gmra.mrb[158].mxu0 %vm583_vm2, %v10606_v39  ;;  %v20068_v4 = vpop.eup %20067  ;;  %v24920_v39 = vld [vmem:[#allocation99_spill] sm:$0xff] }
 0x836   :  { %19427 = vmatmul.mubr.msk.f32.vlgmr.msra.gmra.mrb[182].mxu1 %vm583_vm2, %v10607_v61  ;;  %19430 = vmatpush3.msra.mxu0 %v24894_v57  ;;  %v20070_v8 = vpop.eup %20069  ;;  %v10610_v38 = vmul.f32 %v20068_v4, %v22685_v42  ;;  %v24901_v42 = vld [vmem:[#allocation54_spill] sm:$0xff]  ;;  %v24922_v61 = vld [vmem:[#allocation101_spill] sm:$0xff]  ;;  %v24924_v3 = vld [vmem:[#allocation103_spill] sm:$0xff] }
 0x837   :  { %19435 = vmatpush3.msra.mxu1 %v24895_v63  ;;  %15588 = vrot.lane.b32.xlu1 %v24896_v13, %s20323_s11  ;;  %v10611_v48 = vmul.f32 %v20070_v8, %v22683_v20  ;;  %v24902_v20 = vld [vmem:[#allocation18_spill] sm:$0xff]  ;;  %v24928_v4 = vld [vmem:[#allocation116_spill] sm:$0xff]  ;;  %v24929_v8 = vld [vmem:[#allocation117_spill] sm:$0xff] }
 0x838   :  { %19431 = vmatprep.mubr.msk.f32.mxu0 %vm20320_vm1, %v24865_v30  ;;  %19436 = vmatprep.mubr.msk.f32.mxu1 %vm20320_vm1, %v24865_v30  ;;  %v24925_v57 = vld [vmem:[#allocation114_spill] sm:$0xff] }
 0x839   :  { %19439 = vmatprep.subr.mxu0 %v24865_v30  ;;  %19444 = vmatprep.subr.mxu1 %v24865_v30  ;;  %v20072_v53 = vpop.eup %20071 }
 0x83a   :  { %15664 = vrot.lane.b32.xlu0 %v24897_v26, %s20323_s11  ;;  %19432 = vmatmul.mubr.msk.f32.vlgmr.msra.gmra.mrb[160].mxu0 %vm583_vm2, %v10608_v35  ;;  %v20074_v11 = vpop.eup %20073  ;;  %v10612_v47 = vmul.f32 %v20072_v53, %v22693_v6  ;;  %v24906_v6 = vld [vmem:[#allocation87_spill] sm:$0xff]  ;;  %v24926_v35 = vld [vmem:[#allocation105_spill] sm:$0xff]  ;;  %v24930_v26 = vld [vmem:[#allocation118_spill] sm:$0xff] }
 0x83b   :  { %19437 = vmatmul.mubr.msk.f32.vlgmr.msra.gmra.mrb[184].mxu1 %vm583_vm2, %v10609_v1  ;;  %19440 = vmatpush3.msra.mxu0 %v24898_v14  ;;  %v10613_v36 = vmul.f32 %v20074_v11, %v22691_v34  ;;  %v24907_v34 = vld [vmem:[#allocation106_spill] sm:$0xff]  ;;  %v24927_v1 = vld [vmem:[#allocation115_spill] sm:$0xff] }
 0x83c   :  { %19445 = vmatpush3.msra.mxu1 %v24899_v16  ;;  %15740 = vrot.lane.b32.xlu1 %v24900_v17, %s20323_s11 }
 0x83d   :  { %19441 = vmatprep.mubr.msk.f32.mxu0 %vm20320_vm1, %v24865_v30  ;;  %19446 = vmatprep.mubr.msk.f32.mxu1 %vm20320_vm1, %v24865_v30 }
 0x83e   :  { %19449 = vmatprep.subr.mxu0 %v24865_v30  ;;  %19454 = vmatprep.subr.mxu1 %v24865_v30 }
 0x83f   :  { %15816 = vrot.lane.b32.xlu0 %v24901_v42, %s20323_s11  ;;  %19442 = vmatmul.mubr.msk.f32.vlgmr.msra.gmra.mrb[162].mxu0 %vm583_vm2, %v10610_v38 }
 0x840   :  { %19447 = vmatmul.mubr.msk.f32.vlgmr.msra.gmra.mrb[186].mxu1 %vm583_vm2, %v10611_v48  ;;  %19450 = vmatpush3.msra.mxu0 %v24902_v20 }
 0x841   :  { %19455 = vmatpush3.msra.mxu1 %v24903_v40  ;;  %15892 = vrot.lane.b32.xlu1 %v24904_v45, %s20323_s11 }
 0x842   :  { %19451 = vmatprep.mubr.msk.f32.mxu0 %vm20320_vm1, %v24865_v30  ;;  %19456 = vmatprep.mubr.msk.f32.mxu1 %vm20320_vm1, %v24865_v30 }
 0x843   :  { %19459 = vmatprep.subr.mxu0 %v24865_v30  ;;  %19464 = vmatprep.subr.mxu1 %v24865_v30 }
 0x844   :  { %15968 = vrot.lane.b32.xlu0 %v24905_v21, %s20323_s11  ;;  %19452 = vmatmul.mubr.msk.f32.vlgmr.msra.gmra.mrb[164].mxu0 %vm583_vm2, %v10612_v47 }
 0x845   :  { %19457 = vmatmul.mubr.msk.f32.vlgmr.msra.gmra.mrb[188].mxu1 %vm583_vm2, %v10613_v36  ;;  %19460 = vmatpush3.msra.mxu0 %v24906_v6 }
 0x846   :  { %19465 = vmatpush3.msra.mxu1 %v24907_v34  ;;  %16044 = vrot.lane.b32.xlu1 %v24908_v41, %s20323_s11 }
 0x847   :  { %19461 = vmatprep.mubr.msk.f32.mxu0 %vm20320_vm1, %v24865_v30  ;;  %19466 = vmatprep.mubr.msk.f32.mxu1 %vm20320_vm1, %v24865_v30 }
 0x848   :  { %19469 = vmatprep.subr.mxu0 %v24865_v30  ;;  %19474 = vmatprep.subr.mxu1 %v24865_v30 }
 0x863   :  { %v10564_v55 = vpop.xlane.xlu1 %10563  ;;  %v10567_v29 = vpop.xlane.xlu0 %10566 }
 0x864   :  { %20075 = vrcp.f32 %v10564_v55 }
 0x865   :  { %20077 = vrcp.f32 %v10567_v29 }
 0x867   :  { %v22937_v50 = vpop.permute.xlu1 %13456  ;;  %v22939_v56 = vpop.permute.xlu0 %13378 }
 0x86b   :  { %v22941_v10 = vpop.permute.xlu1 %13454  ;;  %v22943_v58 = vpop.permute.xlu0 %13376 }
 0x86e   :  { %v20076_v59 = vpop.eup %20075 }
 0x86f   :  { %v20078_v60 = vpop.eup %20077  ;;  %v22945_v27 = vpop.permute.xlu1 %13612  ;;  %v10614_v0 = vmul.f32 %v20076_v59, %v22707_v12  ;;  %v24912_v12 = vld [vmem:[#allocation91_spill] sm:$0xff] }
 0x870   :  { %v22947_v31 = vpop.permute.xlu0 %13534  ;;  %v10615_v43 = vmul.f32 %v20078_v60, %v22705_v28  ;;  %v24911_v28 = vld [vmem:[#allocation107_spill] sm:$0xff] }
 0x871   :  { %19462 = vmatmul.mubr.msk.f32.vlgmr.msra.gmra.mrb[166].mxu0 %vm583_vm2, %v10614_v0 }
 0x872   :  { %19467 = vmatmul.mubr.msk.f32.vlgmr.msra.gmra.mrb[190].mxu1 %vm583_vm2, %v10615_v43  ;;  %19470 = vmatpush3.xpose.msk.msra.mxu0 %vm583_vm2, %v24909_v62 }
 0x873   :  { %19475 = vmatpush3.xpose.msk.msra.mxu1 %vm583_vm2, %v24910_v15  ;;  %v22957_v54 = vpop.permute.xlu1 %13610  ;;  %19471 = vmatprep.mubr.msk.f32.mxu0 %vm20320_vm1, %v24865_v30 }
 0x874   :  { %v22959_v51 = vpop.permute.xlu0 %13532  ;;  %19476 = vmatprep.mubr.msk.f32.mxu1 %vm20320_vm1, %v24865_v30  ;;  %19479 = vmatprep.subr.mxu0 %v24865_v30 }
 0x875   :  { %19484 = vmatprep.subr.mxu1 %v24865_v30  ;;  %19472 = vmatmul.mubr.msk.f32.vlgmr.msra.gmra.mrb[168].mxu0 %vm583_vm2, %v24911_v28 }
 0x876   :  { %19477 = vmatmul.mubr.msk.f32.vlgmr.msra.gmra.mrb[192].mxu1 %vm583_vm2, %v24912_v12  ;;  %19480 = vmatpush3.xpose.msk.msra.mxu0 %vm583_vm2, %v24913_v37 }
 0x877   :  { %19485 = vmatpush3.xpose.msk.msra.mxu1 %vm583_vm2, %v24914_v33  ;;  %v22975_v22 = vpop.permute.xlu1 %13768  ;;  %19481 = vmatprep.mubr.msk.f32.mxu0 %vm20320_vm1, %v24865_v30 }
 0x878   :  { %v22977_v2 = vpop.permute.xlu0 %13690  ;;  %19486 = vmatprep.mubr.msk.f32.mxu1 %vm20320_vm1, %v24865_v30  ;;  %19489 = vmatprep.subr.mxu0 %v24865_v30 }
 0x879   :  { %19494 = vmatprep.subr.mxu1 %v24865_v30  ;;  %19482 = vmatmul.mubr.msk.f32.vlgmr.msra.gmra.mrb[170].mxu0 %vm583_vm2, %v24915_v49 }
 0x87a   :  { %19487 = vmatmul.mubr.msk.f32.vlgmr.msra.gmra.mrb[194].mxu1 %vm583_vm2, %v24916_v5  ;;  %19490 = vmatpush3.xpose.msk.msra.mxu0 %vm583_vm2, %v24917_v9 }
 0x87b   :  { %19495 = vmatpush3.xpose.msk.msra.mxu1 %vm583_vm2, %v24918_v24  ;;  %v22993_v52 = vpop.permute.xlu1 %13766  ;;  %19491 = vmatprep.mubr.msk.f32.mxu0 %vm20320_vm1, %v24865_v30 }
 0x87c   :  { %v13689_v46 = vpop.permute.xlu0 %13688  ;;  %19496 = vmatprep.mubr.msk.f32.mxu1 %vm20320_vm1, %v24865_v30  ;;  %19499 = vmatprep.subr.mxu0 %v24865_v30 }
 0x87d   :  { %19504 = vmatprep.subr.mxu1 %v24865_v30  ;;  %19492 = vmatmul.mubr.msk.f32.vlgmr.msra.gmra.mrb[172].mxu0 %vm583_vm2, %v24919_v32 }
 0x87e   :  { %19497 = vmatmul.mubr.msk.f32.vlgmr.msra.gmra.mrb[196].mxu1 %vm583_vm2, %v24920_v39  ;;  %19500 = vmatpush3.xpose.msk.msra.mxu0 %vm583_vm2, %v24921_v7 }
 0x87f   :  { %19505 = vmatpush3.xpose.msk.msra.mxu1 %vm583_vm2, %v24922_v61  ;;  %v13925_v18 = vpop.permute.xlu1 %13924  ;;  %19501 = vmatprep.mubr.msk.f32.mxu0 %vm20320_vm1, %v24865_v30 }
 0x880   :  { %v13847_v23 = vpop.permute.xlu0 %13846  ;;  %19506 = vmatprep.mubr.msk.f32.mxu1 %vm20320_vm1, %v24865_v30  ;;  %19509 = vmatprep.subr.mxu0 %v24865_v30 }
 0x881   :  { %19514 = vmatprep.subr.mxu1 %v24865_v30  ;;  %19502 = vmatmul.mubr.msk.f32.vlgmr.msra.gmra.mrb[174].mxu0 %vm583_vm2, %v24923_v44 }
 0x882   :  { %19507 = vmatmul.mubr.msk.f32.vlgmr.msra.gmra.mrb[198].mxu1 %vm583_vm2, %v24924_v3  ;;  %19510 = vmatpush3.xpose.msk.msra.mxu0 %vm583_vm2, %v24925_v57 }
 0x883   :  { %19515 = vmatpush3.xpose.msk.msra.mxu1 %vm583_vm2, %v24926_v35  ;;  %19511 = vmatprep.mubr.msk.f32.mxu0 %vm20320_vm1, %v24865_v30  ;;  %v13923_v13 = vpop.permute.xlu1 %13922 }
 0x884   :  { %v13845_v63 = vpop.permute.xlu0 %13844  ;;  %19516 = vmatprep.mubr.msk.f32.mxu1 %vm20320_vm1, %v24865_v30  ;;  %19519 = vmatprep.subr.mxu0 %v24865_v30 }
 0x885   :  { %19524 = vmatprep.subr.mxu1 %v24865_v30  ;;  %19512 = vmatmul.mubr.msk.f32.vlgmr.msra.gmra.mrb[176].mxu0 %vm583_vm2, %v24927_v1 }
 0x886   :  { %19517 = vmatmul.mubr.msk.f32.vlgmr.msra.gmra.mrb[200].mxu1 %vm583_vm2, %v24928_v4  ;;  %19520 = vmatpush3.xpose.msk.msra.mxu0 %vm583_vm2, %v24929_v8 }
 0x887   :  { %19525 = vmatpush3.xpose.msk.msra.mxu1 %vm583_vm2, %v24930_v26  ;;  %19521 = vmatprep.mubr.msk.f32.mxu0 %vm20320_vm1, %v24865_v30  ;;  %v14081_v38 = vpop.permute.xlu1 %14080 }
 0x888   :  { %19526 = vmatprep.mubr.msk.f32.mxu1 %vm20320_vm1, %v24865_v30  ;;  %19529 = vmatprep.subr.mxu0 %v24865_v30  ;;  %v14003_v14 = vpop.permute.xlu0 %14002 }
 0x889   :  { %19534 = vmatprep.subr.mxu1 %v24865_v30  ;;  %19522 = vmatmul.mubr.msk.f32.vlgmr.msra.gmra.mrb[178].mxu0 %vm583_vm2, %v22935_v19 }
 0x88a   :  { %19527 = vmatmul.mubr.msk.f32.vlgmr.msra.gmra.mrb[202].mxu1 %vm583_vm2, %v22933_v25  ;;  %19530 = vmatpush3.xpose.msk.msra.mxu0 %vm583_vm2, %v22939_v56 }
 0x88b   :  { %19535 = vmatpush3.xpose.msk.msra.mxu1 %vm583_vm2, %v22937_v50  ;;  %19531 = vmatprep.mubr.msk.f32.mxu0 %vm20320_vm1, %v24865_v30  ;;  %v14079_v17 = vpop.permute.xlu1 %14078 }
 0x88c   :  { %19536 = vmatprep.mubr.msk.f32.mxu1 %vm20320_vm1, %v24865_v30  ;;  %19539 = vmatprep.subr.mxu0 %v24865_v30  ;;  %v14001_v16 = vpop.permute.xlu0 %14000 }
 0x88d   :  { %19544 = vmatprep.subr.mxu1 %v24865_v30  ;;  %19532 = vmatmul.mubr.msk.f32.vlgmr.msra.gmra.mrb[180].mxu0 %vm583_vm2, %v22943_v58 }
 0x88e   :  { %19537 = vmatmul.mubr.msk.f32.vlgmr.msra.gmra.mrb[204].mxu1 %vm583_vm2, %v22941_v10  ;;  %19540 = vmatpush3.xpose.msk.msra.mxu0 %vm583_vm2, %v22947_v31 }
 0x88f   :  { %19545 = vmatpush3.xpose.msk.msra.mxu1 %vm583_vm2, %v22945_v27  ;;  %19541 = vmatprep.mubr.msk.f32.mxu0 %vm20320_vm1, %v24865_v30  ;;  %v14237_v53 = vpop.permute.xlu1 %14236 }
 0x890   :  { %19546 = vmatprep.mubr.msk.f32.mxu1 %vm20320_vm1, %v24865_v30  ;;  %19549 = vmatprep.subr.mxu0 %v24865_v30  ;;  %v14159_v48 = vpop.permute.xlu0 %14158 }
 0x891   :  { %19554 = vmatprep.subr.mxu1 %v24865_v30  ;;  %19542 = vmatmul.mubr.msk.f32.vlgmr.msra.gmra.mrb[182].mxu0 %vm583_vm2, %v22959_v51 }
 0x892   :  { %19547 = vmatmul.mubr.msk.f32.vlgmr.msra.gmra.mrb[206].mxu1 %vm583_vm2, %v22957_v54  ;;  %19550 = vmatpush3.xpose.msk.msra.mxu0 %vm583_vm2, %v22977_v2 }
 0x893   :  { %19555 = vmatpush3.xpose.msk.msra.mxu1 %vm583_vm2, %v22975_v22  ;;  %19551 = vmatprep.mubr.msk.f32.mxu0 %vm20320_vm1, %v24865_v30  ;;  %v14235_v42 = vpop.permute.xlu1 %14234 }
 0x894   :  { %19556 = vmatprep.mubr.msk.f32.mxu1 %vm20320_vm1, %v24865_v30  ;;  %19559 = vmatprep.subr.mxu0 %v24865_v30  ;;  %v14157_v11 = vpop.permute.xlu0 %14156 }
 0x895   :  { %19564 = vmatprep.subr.mxu1 %v24865_v30  ;;  %19552 = vmatmul.mubr.msk.f32.vlgmr.msra.gmra.mrb[184].mxu0 %vm583_vm2, %v13689_v46 }
 0x896   :  { %19557 = vmatmul.mubr.msk.f32.vlgmr.msra.gmra.mrb[208].mxu1 %vm583_vm2, %v22993_v52  ;;  %19560 = vmatpush3.xpose.msk.msra.mxu0 %vm583_vm2, %v13847_v23 }
 0x897   :  { %19565 = vmatpush3.xpose.msk.msra.mxu1 %vm583_vm2, %v13925_v18  ;;  %19561 = vmatprep.mubr.msk.f32.mxu0 %vm20320_vm1, %v24865_v30  ;;  %v14677_v47 = vpop.permute.xlu1 %14676 }
 0x898   :  { %19566 = vmatprep.mubr.msk.f32.mxu1 %vm20320_vm1, %v24865_v30  ;;  %19569 = vmatprep.subr.mxu0 %v24865_v30  ;;  %v14601_v20 = vpop.permute.xlu0 %14600 }
 0x899   :  { %19574 = vmatprep.subr.mxu1 %v24865_v30  ;;  %19562 = vmatmul.mubr.msk.f32.vlgmr.msra.gmra.mrb[186].mxu0 %vm583_vm2, %v13845_v63 }
 0x89a   :  { %19567 = vmatmul.mubr.msk.f32.vlgmr.msra.gmra.mrb[210].mxu1 %vm583_vm2, %v13923_v13  ;;  %19570 = vmatpush3.xpose.msk.msra.mxu0 %vm583_vm2, %v14003_v14 }
 0x89b   :  { %19575 = vmatpush3.xpose.msk.msra.mxu1 %vm583_vm2, %v14081_v38  ;;  %19571 = vmatprep.mubr.msk.f32.mxu0 %vm20320_vm1, %v24865_v30 }
 0x89c   :  { %19576 = vmatprep.mubr.msk.f32.mxu1 %vm20320_vm1, %v24865_v30  ;;  %19579 = vmatprep.subr.mxu0 %v24865_v30 }
 0x89d   :  { %19584 = vmatprep.subr.mxu1 %v24865_v30  ;;  %19572 = vmatmul.mubr.msk.f32.vlgmr.msra.gmra.mrb[188].mxu0 %vm583_vm2, %v14001_v16 }
 0x89e   :  { %19577 = vmatmul.mubr.msk.f32.vlgmr.msra.gmra.mrb[212].mxu1 %vm583_vm2, %v14079_v17  ;;  %19580 = vmatpush3.xpose.msk.msra.mxu0 %vm583_vm2, %v14159_v48 }
 0x89f   :  { %19585 = vmatpush3.xpose.msk.msra.mxu1 %vm583_vm2, %v14237_v53  ;;  %19581 = vmatprep.mubr.msk.f32.mxu0 %vm20320_vm1, %v24865_v30 }
 0x8a0   :  { %19586 = vmatprep.mubr.msk.f32.mxu1 %vm20320_vm1, %v24865_v30  ;;  %19589 = vmatprep.subr.mxu0 %v24865_v30 }
 0x8a1   :  { %19594 = vmatprep.subr.mxu1 %v24865_v30  ;;  %19582 = vmatmul.mubr.msk.f32.vlgmr.msra.gmra.mrb[190].mxu0 %vm583_vm2, %v14157_v11 }
 0x8a2   :  { %19587 = vmatmul.mubr.msk.f32.vlgmr.msra.gmra.mrb[214].mxu1 %vm583_vm2, %v14235_v42  ;;  %19590 = vmatpush3.msra.mxu0 %v14601_v20 }
 0x8a3   :  { %19595 = vmatpush3.msra.mxu1 %v14677_v47  ;;  %19591 = vmatprep.mubr.msk.f32.mxu0 %vm20320_vm1, %v24865_v30 }
 0x8a4   :  { %19596 = vmatprep.mubr.msk.f32.mxu1 %vm20320_vm1, %v24865_v30  ;;  %19599 = vmatprep.subr.mxu0 %v24865_v30 }
 0x8a5   :  { %19604 = vmatprep.subr.mxu1 %v24865_v30 }
 0x8e3   :  { %v23124_v40 = vpop.f32.mrb[144].mxu0 }
 0x8e4   :  { %v23126_v45 = vpop.f32.mrb[168].mxu1  ;;  %v19353_v36 = vpop.f32.mrb[145].mxu0 }
 0x8e5   :  { %v19358_v21 = vpop.f32.mrb[169].mxu1 }
 0x8e7   :  { %v23128_v6 = vpop.f32.mrb[146].mxu0 }
 0x8e8   :  { %v19363_v34 = vpop.f32.mrb[147].mxu0 }
 0x8eb   :  { %v23130_v41 = vpop.f32.mrb[170].mxu1 }
 0x8ec   :  { %v19368_v25 = vpop.f32.mrb[171].mxu1 }
 0x8ef   :  { %v23132_v19 = vpop.f32.mrb[172].mxu1 }
 0x8f0   :  { %v23134_v55 = vpop.f32.mrb[148].mxu0  ;;  %v19378_v29 = vpop.f32.mrb[173].mxu1 }
 0x8f1   :  { %v19373_v50 = vpop.f32.mrb[149].mxu0 }
 0x8f4   :  { %v23136_v56 = vpop.f32.mrb[174].mxu1 }
 0x8f5   :  { %v23138_v10 = vpop.f32.mrb[150].mxu0  ;;  %v19388_v58 = vpop.f32.mrb[175].mxu1 }
 0x8f6   :  { %v19383_v59 = vpop.f32.mrb[151].mxu0 }
 0x8f9   :  { %v23140_v60 = vpop.f32.mrb[176].mxu1 }
 0x8fa   :  { %v23142_v27 = vpop.f32.mrb[152].mxu0  ;;  %v19398_v31 = vpop.f32.mrb[177].mxu1 }
 0x8fb   :  { %v19393_v0 = vpop.f32.mrb[153].mxu0 }
 0x8fe   :  { %v23144_v43 = vpop.f32.mrb[178].mxu1 }
 0x8ff   :  { %v23146_v62 = vpop.f32.mrb[154].mxu0  ;;  %v19408_v15 = vpop.f32.mrb[179].mxu1 }
 0x900   :  { %v19403_v54 = vpop.f32.mrb[155].mxu0 }
 0x903   :  { %v23148_v51 = vpop.f32.mrb[180].mxu1 }
 0x904   :  { %v23150_v28 = vpop.f32.mrb[156].mxu0  ;;  %v19418_v12 = vpop.f32.mrb[181].mxu1 }
 0x905   :  { %v19413_v37 = vpop.f32.mrb[157].mxu0 }
 0x908   :  { %v23152_v33 = vpop.f32.mrb[158].mxu0 }
 0x909   :  { %v23154_v22 = vpop.f32.mrb[182].mxu1  ;;  %v19423_v2 = vpop.f32.mrb[159].mxu0 }
 0x90a   :  { %v19428_v49 = vpop.f32.mrb[183].mxu1 }
 0x90d   :  { %v23156_v5 = vpop.f32.mrb[160].mxu0 }
 0x90e   :  { %v23158_v9 = vpop.f32.mrb[184].mxu1  ;;  %v19433_v24 = vpop.f32.mrb[161].mxu0 }
 0x90f   :  { %v19438_v52 = vpop.f32.mrb[185].mxu1 }
 0x912   :  { %v23160_v46 = vpop.f32.mrb[162].mxu0 }
 0x913   :  { %v23162_v32 = vpop.f32.mrb[186].mxu1  ;;  %v19443_v39 = vpop.f32.mrb[163].mxu0 }
 0x914   :  { %v19448_v7 = vpop.f32.mrb[187].mxu1 }
 0x917   :  { %v23164_v61 = vpop.f32.mrb[164].mxu0 }
 0x918   :  { %v23166_v18 = vpop.f32.mrb[188].mxu1  ;;  %v19453_v23 = vpop.f32.mrb[165].mxu0 }
 0x919   :  { %v19458_v44 = vpop.f32.mrb[189].mxu1 }
 0x944   :  { %v23168_v3 = vpop.f32.mrb[166].mxu0 }
 0x945   :  { %24931 = vst [vmem:[#allocation15_spill] sm:$0xff] %v23168_v3  ;;  %v23170_v57 = vpop.f32.mrb[190].mxu1  ;;  %v19463_v35 = vpop.f32.mrb[167].mxu0 }
 0x946   :  { %24932 = vst [vmem:[#allocation34_spill] sm:$0xff] %v23170_v57  ;;  %v19468_v63 = vpop.f32.mrb[191].mxu1 }
 0x948   :  { %v12514_v13 = vpop.f32.mrb[168].mxu0 }
 0x949   :  { %v23172_v1 = vmul.f32 0.35355338, %v12514_v13  ;;  %v12592_v4 = vpop.f32.mrb[192].mxu1  ;;  %v19473_v8 = vpop.f32.mrb[169].mxu0 }
 0x94a   :  { %v23174_v26 = vmul.f32 0.35355338, %v12592_v4  ;;  %v19478_v14 = vpop.f32.mrb[193].mxu1 }
 0x94b   :  { %v14336_v38 = vsel %vm583_vm2, %v23172_v1, -inf }
 0x94c   :  { %v14339_v16 = vsel %vm583_vm2, %v23174_v26, -inf  ;;  %14337 = vmax.xlane.f32.xlu0 %v14336_v38  ;;  %v12670_v17 = vpop.f32.mrb[170].mxu0 }
 0x94d   :  { %14340 = vmax.xlane.f32.xlu1 %v14339_v16  ;;  %v12748_v48 = vpop.f32.mrb[194].mxu1  ;;  %v23180_v53 = vmul.f32 0.35355338, %v12670_v17  ;;  %v19483_v11 = vpop.f32.mrb[171].mxu0 }
 0x94e   :  { %v19488_v42 = vpop.f32.mrb[195].mxu1  ;;  %v23182_v20 = vmul.f32 0.35355338, %v12748_v48 }
 0x94f   :  { %v14342_v47 = vsel %vm583_vm2, %v23180_v53, -inf }
 0x950   :  { %14343 = vmax.xlane.f32.xlu0 %v14342_v47  ;;  %v12826_v36 = vpop.f32.mrb[172].mxu0  ;;  %v14345_v58 = vsel %vm583_vm2, %v23182_v20, -inf }
 0x951   :  { %v12904_v21 = vpop.f32.mrb[196].mxu1  ;;  %v19493_v34 = vpop.f32.mrb[173].mxu0  ;;  %v23188_v50 = vmul.f32 0.35355338, %v12826_v36 }
 0x952   :  { %v23186_v25 = vmul.f32 0.35355338, %v12904_v21  ;;  %v19498_v29 = vpop.f32.mrb[197].mxu1 }
 0x953   :  { %v14348_v2 = vsel %vm583_vm2, %v23188_v50, -inf }
 0x954   :  { %v14351_v59 = vsel %vm583_vm2, %v23186_v25, -inf  ;;  %14346 = vmax.xlane.f32.xlu0 %v14345_v58  ;;  %v12982_v31 = vpop.f32.mrb[174].mxu0 }
 0x955   :  { %14352 = vmax.xlane.f32.xlu1 %v14351_v59  ;;  %v13060_v0 = vpop.f32.mrb[198].mxu1  ;;  %v19503_v15 = vpop.f32.mrb[175].mxu0  ;;  %v23196_v37 = vmul.f32 0.35355338, %v12982_v31 }
 0x956   :  { %v23194_v54 = vmul.f32 0.35355338, %v13060_v0  ;;  %v19508_v12 = vpop.f32.mrb[199].mxu1 }
 0x957   :  { %v14354_v35 = vsel %vm583_vm2, %v23196_v37, -inf }
 0x958   :  { %v14357_v49 = vsel %vm583_vm2, %v23194_v54, -inf  ;;  %14349 = vmax.xlane.f32.xlu0 %v14348_v2  ;;  %v13138_v24 = vpop.f32.mrb[176].mxu0 }
 0x959   :  { %14358 = vmax.xlane.f32.xlu1 %v14357_v49  ;;  %v13216_v52 = vpop.f32.mrb[200].mxu1  ;;  %v19513_v39 = vpop.f32.mrb[177].mxu0  ;;  %v23204_v44 = vmul.f32 0.35355338, %v13138_v24 }
 0x95a   :  { %v23202_v7 = vmul.f32 0.35355338, %v13216_v52  ;;  %v19518_v23 = vpop.f32.mrb[201].mxu1 }
 0x95b   :  { %v14360_v17 = vsel %vm583_vm2, %v23204_v44, -inf }
 0x95c   :  { %v14363_v63 = vsel %vm583_vm2, %v23202_v7, -inf  ;;  %14355 = vmax.xlane.f32.xlu0 %v14354_v35  ;;  %v13294_v13 = vpop.f32.mrb[178].mxu0 }
 0x95d   :  { %14364 = vmax.xlane.f32.xlu1 %v14363_v63  ;;  %v13372_v4 = vpop.f32.mrb[202].mxu1  ;;  %v19523_v8 = vpop.f32.mrb[179].mxu0  ;;  %v23212_v16 = vmul.f32 0.35355338, %v13294_v13 }
 0x95e   :  { %v23210_v14 = vmul.f32 0.35355338, %v13372_v4  ;;  %v19528_v38 = vpop.f32.mrb[203].mxu1 }
 0x95f   :  { %v14366_v29 = vsel %vm583_vm2, %v23212_v16, -inf }
 0x960   :  { %v14369_v48 = vsel %vm583_vm2, %v23210_v14, -inf  ;;  %14361 = vmax.xlane.f32.xlu0 %v14360_v17  ;;  %v13450_v11 = vpop.f32.mrb[180].mxu0 }
 0x961   :  { %14370 = vmax.xlane.f32.xlu1 %v14369_v48  ;;  %v13528_v42 = vpop.f32.mrb[204].mxu1  ;;  %v19533_v47 = vpop.f32.mrb[181].mxu0  ;;  %v23220_v34 = vmul.f32 0.35355338, %v13450_v11 }
 0x962   :  { %v23218_v36 = vmul.f32 0.35355338, %v13528_v42  ;;  %v19538_v21 = vpop.f32.mrb[205].mxu1 }
 0x963   :  { %v14372_v49 = vsel %vm583_vm2, %v23220_v34, -inf }
 0x964   :  { %v14375_v58 = vsel %vm583_vm2, %v23218_v36, -inf  ;;  %14367 = vmax.xlane.f32.xlu0 %v14366_v29  ;;  %v13606_v59 = vpop.f32.mrb[182].mxu0 }
 0x965   :  { %14376 = vmax.xlane.f32.xlu1 %v14375_v58  ;;  %v13684_v31 = vpop.f32.mrb[206].mxu1  ;;  %v19543_v0 = vpop.f32.mrb[183].mxu0  ;;  %v23228_v2 = vmul.f32 0.35355338, %v13606_v59 }
 0x966   :  { %v23226_v15 = vmul.f32 0.35355338, %v13684_v31  ;;  %v19548_v12 = vpop.f32.mrb[207].mxu1 }
 0x967   :  { %v14378_v4 = vsel %vm583_vm2, %v23228_v2, -inf }
 0x968   :  { %v14381_v24 = vsel %vm583_vm2, %v23226_v15, -inf  ;;  %14373 = vmax.xlane.f32.xlu0 %v14372_v49  ;;  %v13762_v52 = vpop.f32.mrb[184].mxu0 }
 0x969   :  { %14382 = vmax.xlane.f32.xlu1 %v14381_v24  ;;  %v13840_v39 = vpop.f32.mrb[208].mxu1  ;;  %v19553_v23 = vpop.f32.mrb[185].mxu0  ;;  %v23236_v13 = vmul.f32 0.35355338, %v13762_v52 }
 0x96a   :  { %v23234_v35 = vmul.f32 0.35355338, %v13840_v39  ;;  %v19558_v63 = vpop.f32.mrb[209].mxu1 }
 0x96b   :  { %v14384_v21 = vsel %vm583_vm2, %v23236_v13, -inf }
 0x96c   :  { %v14387_v8 = vsel %vm583_vm2, %v23234_v35, -inf  ;;  %14379 = vmax.xlane.f32.xlu0 %v14378_v4  ;;  %v13918_v38 = vpop.f32.mrb[186].mxu0 }
 0x96d   :  { %14388 = vmax.xlane.f32.xlu1 %v14387_v8  ;;  %v13996_v17 = vpop.f32.mrb[210].mxu1  ;;  %v19563_v48 = vpop.f32.mrb[187].mxu0  ;;  %v23244_v47 = vmul.f32 0.35355338, %v13918_v38 }
 0x96e   :  { %v23242_v11 = vmul.f32 0.35355338, %v13996_v17  ;;  %v19568_v42 = vpop.f32.mrb[211].mxu1 }
 0x96f   :  { %v14390_v24 = vsel %vm583_vm2, %v23244_v47, -inf }
 0x970   :  { %v14393_v29 = vsel %vm583_vm2, %v23242_v11, -inf  ;;  %14385 = vmax.xlane.f32.xlu0 %v14384_v21  ;;  %v14074_v58 = vpop.f32.mrb[188].mxu0  ;;  %v24933_v21 = vld [vmem:[#allocation60_spill] sm:$0xff] }
 0x971   :  { %14394 = vmax.xlane.f32.xlu1 %v14393_v29  ;;  %v14152_v59 = vpop.f32.mrb[212].mxu1  ;;  %v19573_v31 = vpop.f32.mrb[189].mxu0  ;;  %v23252_v49 = vmul.f32 0.35355338, %v14074_v58  ;;  %v24934_v29 = vld [vmem:[#allocation58_spill] sm:$0xff] }
 0x972   :  { %v23250_v0 = vmul.f32 0.35355338, %v14152_v59  ;;  %v19578_v12 = vpop.f32.mrb[213].mxu1  ;;  %v23272_v58 = vpop.permute.xlu1 %14828 }
 0x973   :  { %v14396_v17 = vsel %vm583_vm2, %v23252_v49, -inf  ;;  %v23276_v31 = vpop.permute.xlu0 %14752 }
 0x974   :  { %v14399_v52 = vsel %vm583_vm2, %v23250_v0, -inf  ;;  %14391 = vmax.xlane.f32.xlu0 %v14390_v24  ;;  %v14230_v39 = vpop.f32.mrb[190].mxu0 }
 0x975   :  { %14400 = vmax.xlane.f32.xlu1 %v14399_v52  ;;  %v14308_v23 = vpop.f32.mrb[214].mxu1  ;;  %v19583_v63 = vpop.f32.mrb[191].mxu0  ;;  %v23260_v38 = vmul.f32 0.35355338, %v14230_v39 }
 0x976   :  { %v23258_v4 = vmul.f32 0.35355338, %v14308_v23  ;;  %v19588_v8 = vpop.f32.mrb[215].mxu1  ;;  %v23274_v59 = vpop.permute.xlu1 %14980 }
 0x977   :  { %v14402_v42 = vsel %vm583_vm2, %v23260_v38, -inf  ;;  %24935 = vst [vmem:[#allocation12_spill] sm:$0xff] %v23274_v59  ;;  %v23280_v24 = vpop.permute.xlu0 %14904 }
 0x978   :  { %v14405_v48 = vsel %vm583_vm2, %v23258_v4, -inf  ;;  %14397 = vmax.xlane.f32.xlu0 %v14396_v17  ;;  %24937 = vst [vmem:[#allocation13_spill] sm:$0xff] %v23280_v24 }
 0x979   :  { %14406 = vmax.xlane.f32.xlu1 %v14405_v48 }
 0x97a   :  { %v23278_v12 = vpop.permute.xlu1 %15132 }
 0x97b   :  { %24936 = vst [vmem:[#allocation40_spill] sm:$0xff] %v23278_v12  ;;  %v23284_v39 = vpop.permute.xlu0 %15056 }
 0x97c   :  { %14403 = vmax.xlane.f32.xlu0 %v14402_v42  ;;  %24939 = vst [vmem:[#allocation39_spill] sm:$0xff] %v23284_v39 }
 0x97e   :  { %v23282_v52 = vpop.permute.xlu1 %15284 }
 0x97f   :  { %24938 = vst [vmem:[#allocation80_spill] sm:$0xff] %v23282_v52  ;;  %v23288_v63 = vpop.permute.xlu0 %15208 }
 0x980   :  { %24941 = vst [vmem:[#allocation98_spill] sm:$0xff] %v23288_v63 }
 0x982   :  { %v23286_v23 = vpop.permute.xlu1 %15436 }
 0x983   :  { %24940 = vst [vmem:[#allocation38_spill] sm:$0xff] %v23286_v23  ;;  %v23292_v17 = vpop.permute.xlu0 %15360 }
 0x984   :  { %24943 = vst [vmem:[#allocation44_spill] sm:$0xff] %v23292_v17 }
 0x986   :  { %v23290_v8 = vpop.permute.xlu1 %15512 }
 0x987   :  { %24942 = vst [vmem:[#allocation81_spill] sm:$0xff] %v23290_v8  ;;  %v23296_v42 = vpop.permute.xlu0 %15664 }
 0x988   :  { %24945 = vst [vmem:[#allocation23_spill] sm:$0xff] %v23296_v42 }
 0x98a   :  { %16196 = vrot.lane.b32.xlu1 %v24933_v21, %s20323_s11  ;;  %v23294_v48 = vpop.permute.xlu1 %15588 }
 0x98b   :  { %24944 = vst [vmem:[#allocation37_spill] sm:$0xff] %v23294_v48 }
 0x98e   :  { %v23298_v21 = vpop.permute.xlu1 %15740 }
 0x98f   :  { %24946 = vst [vmem:[#allocation25_spill] sm:$0xff] %v23298_v21 }
 0x992   :  { %16120 = vrot.lane.b32.xlu0 %v24934_v29, %s20323_s11  ;;  %v23300_v29 = vpop.permute.xlu0 %15816  ;;  %v23302_v12 = vpop.permute.xlu1 %15892 }
 0x993   :  { %24947 = vst [vmem:[#allocation43_spill] sm:$0xff] %v23300_v29  ;;  %24948 = vst [vmem:[#allocation42_spill] sm:$0xff] %v23302_v12 }
 0x996   :  { %v23304_v52 = vpop.permute.xlu0 %15968  ;;  %v23306_v39 = vpop.permute.xlu1 %16044 }
 0x997   :  { %24949 = vst [vmem:[#allocation100_spill] sm:$0xff] %v23304_v52  ;;  %24950 = vst [vmem:[#allocation83_spill] sm:$0xff] %v23306_v39 }
 0x9d9   :  { %v14338_v23 = vpop.xlane.xlu0 %14337 }
 0x9da   :  { %v14341_v63 = vpop.xlane.xlu1 %14340  ;;  %v14408_v8 = vsub.f32 %v23172_v1, %v14338_v23 }
 0x9db   :  { %v14409_v17 = vsub.f32 %v23174_v26, %v14341_v63 }
 0x9dc   :  { %v14432_v3 = vmul.f32 1.442695, %v14408_v8 }
 0x9dd   :  { %v14434_v48 = vmul.f32 1.442695, %v14409_v17  ;;  %v14344_v59 = vpop.xlane.xlu0 %14343 }
 0x9de   :  { %20079 = vpow2.f32 %v14432_v3  ;;  %v14410_v42 = vsub.f32 %v23180_v53, %v14344_v59 }
 0x9df   :  { %20081 = vpow2.f32 %v14434_v48 }
 0x9e0   :  { %v14436_v29 = vmul.f32 1.442695, %v14410_v42 }
 0x9e1   :  { %v14347_v21 = vpop.xlane.xlu0 %14346 }
 0x9e2   :  { %20083 = vpow2.f32 %v14436_v29  ;;  %v14353_v12 = vpop.xlane.xlu1 %14352  ;;  %v14411_v52 = vsub.f32 %v23182_v20, %v14347_v21 }
 0x9e3   :  { %v14413_v39 = vsub.f32 %v23186_v25, %v14353_v12 }
 0x9e4   :  { %v14438_v57 = vmul.f32 1.442695, %v14411_v52 }
 0x9e5   :  { %v14442_v24 = vmul.f32 1.442695, %v14413_v39  ;;  %v14350_v1 = vpop.xlane.xlu0 %14349 }
 0x9e6   :  { %20085 = vpow2.f32 %v14438_v57  ;;  %v14359_v26 = vpop.xlane.xlu1 %14358  ;;  %v14412_v23 = vsub.f32 %v23188_v50, %v14350_v1 }
 0x9e7   :  { %v14415_v3 = vsub.f32 %v23194_v54, %v14359_v26  ;;  %20087 = vpow2.f32 %v14442_v24 }
 0x9e8   :  { %v23315_v63 = vpop.eup %20079  ;;  %v14440_v53 = vmul.f32 1.442695, %v14412_v23 }
 0x9e9   :  { %v23317_v59 = vpop.eup %20081  ;;  %v14446_v8 = vmul.f32 1.442695, %v14415_v3  ;;  %v14356_v17 = vpop.xlane.xlu0 %14355  ;;  %v14480_v20 = vsel %vm583_vm2, %v23315_v63, 0.0 }
 0x9ea   :  { %20089 = vpow2.f32 %v14440_v53  ;;  %v14365_v25 = vpop.xlane.xlu1 %14364  ;;  %v14414_v57 = vsub.f32 %v23196_v37, %v14356_v17  ;;  %v14483_v50 = vsel %vm583_vm2, %v23317_v59, 0.0  ;;  %14481 = vadd.xlane.f32.xlu0 %v14480_v20 }
 0x9eb   :  { %v14417_v54 = vsub.f32 %v23202_v7, %v14365_v25  ;;  %14484 = vadd.xlane.f32.xlu1 %v14483_v50  ;;  %20091 = vpow2.f32 %v14446_v8 }
 0x9ec   :  { %v23325_v12 = vpop.eup %20083  ;;  %v14444_v24 = vmul.f32 1.442695, %v14414_v57 }
 0x9ed   :  { %v14450_v52 = vmul.f32 1.442695, %v14417_v54  ;;  %v14362_v39 = vpop.xlane.xlu0 %14361  ;;  %v14486_v48 = vsel %vm583_vm2, %v23325_v12, 0.0 }
 0x9ee   :  { %20093 = vpow2.f32 %v14444_v24  ;;  %v14371_v42 = vpop.xlane.xlu1 %14370  ;;  %v14416_v37 = vsub.f32 %v23204_v44, %v14362_v39  ;;  %14487 = vadd.xlane.f32.xlu0 %v14486_v48 }
 0x9ef   :  { %v14419_v21 = vsub.f32 %v23210_v14, %v14371_v42  ;;  %20095 = vpow2.f32 %v14450_v52 }
 0x9f0   :  { %v23331_v29 = vpop.eup %20085  ;;  %v14448_v7 = vmul.f32 1.442695, %v14416_v37 }
 0x9f1   :  { %v14454_v1 = vmul.f32 1.442695, %v14419_v21  ;;  %v14368_v26 = vpop.xlane.xlu0 %14367  ;;  %v14489_v23 = vsel %vm583_vm2, %v23331_v29, 0.0  ;;  %v23335_v3 = vpop.eup %20087 }
 0x9f2   :  { %20097 = vpow2.f32 %v14448_v7  ;;  %v14377_v53 = vpop.xlane.xlu1 %14376  ;;  %v14418_v8 = vsub.f32 %v23212_v16, %v14368_v26  ;;  %14490 = vadd.xlane.f32.xlu1 %v14489_v23  ;;  %v14495_v57 = vsel %vm583_vm2, %v23335_v3, 0.0 }
 0x9f3   :  { %v14421_v44 = vsub.f32 %v23218_v36, %v14377_v53  ;;  %20099 = vpow2.f32 %v14454_v1 }
 0x9f4   :  { %v23339_v17 = vpop.eup %20089  ;;  %v14452_v14 = vmul.f32 1.442695, %v14418_v8 }
 0x9f5   :  { %v14458_v20 = vmul.f32 1.442695, %v14421_v44  ;;  %v14374_v25 = vpop.xlane.xlu0 %14373  ;;  %v14492_v50 = vsel %vm583_vm2, %v23339_v17, 0.0  ;;  %v23345_v54 = vpop.eup %20091 }
 0x9f6   :  { %20101 = vpow2.f32 %v14452_v14  ;;  %v14383_v24 = vpop.xlane.xlu1 %14382  ;;  %v14420_v16 = vsub.f32 %v23220_v34, %v14374_v25  ;;  %14496 = vadd.xlane.f32.xlu1 %v14495_v57  ;;  %14493 = vadd.xlane.f32.xlu0 %v14492_v50  ;;  %v14501_v37 = vsel %vm583_vm2, %v23345_v54, 0.0 }
 0x9f7   :  { %v14423_v36 = vsub.f32 %v23226_v15, %v14383_v24  ;;  %20103 = vpow2.f32 %v14458_v20 }
 0x9f8   :  { %v23349_v52 = vpop.eup %20093  ;;  %v14456_v39 = vmul.f32 1.442695, %v14420_v16 }
 0x9f9   :  { %v14462_v48 = vmul.f32 1.442695, %v14423_v36  ;;  %v14380_v42 = vpop.xlane.xlu0 %14379  ;;  %v14498_v21 = vsel %vm583_vm2, %v23349_v52, 0.0  ;;  %v23355_v7 = vpop.eup %20095 }
 0x9fa   :  { %20105 = vpow2.f32 %v14456_v39  ;;  %v14389_v34 = vpop.xlane.xlu1 %14388  ;;  %v14422_v1 = vsub.f32 %v23228_v2, %v14380_v42  ;;  %14502 = vadd.xlane.f32.xlu1 %v14501_v37  ;;  %14499 = vadd.xlane.f32.xlu0 %v14498_v21  ;;  %v14507_v44 = vsel %vm583_vm2, %v23355_v7, 0.0 }
 0x9fb   :  { %v14425_v15 = vsub.f32 %v23234_v35, %v14389_v34  ;;  %20107 = vpow2.f32 %v14462_v48 }
 0x9fc   :  { %v23359_v26 = vpop.eup %20097  ;;  %v14460_v23 = vmul.f32 1.442695, %v14422_v1 }
 0x9fd   :  { %v14466_v53 = vmul.f32 1.442695, %v14425_v15  ;;  %v14386_v8 = vpop.xlane.xlu0 %14385  ;;  %v14504_v14 = vsel %vm583_vm2, %v23359_v26, 0.0  ;;  %v23365_v20 = vpop.eup %20099 }
 0x9fe   :  { %20109 = vpow2.f32 %v14460_v23  ;;  %v14395_v2 = vpop.xlane.xlu1 %14394  ;;  %v14424_v25 = vsub.f32 %v23236_v13, %v14386_v8  ;;  %14508 = vadd.xlane.f32.xlu1 %v14507_v44  ;;  %14505 = vadd.xlane.f32.xlu0 %v14504_v14  ;;  %v14513_v36 = vsel %vm583_vm2, %v23365_v20, 0.0 }
 0x9ff   :  { %v14427_v35 = vsub.f32 %v23242_v11, %v14395_v2  ;;  %20111 = vpow2.f32 %v14466_v53 }
 0xa00   :  { %v23369_v57 = vpop.eup %20101  ;;  %v14464_v50 = vmul.f32 1.442695, %v14424_v25 }
 0xa01   :  { %v14470_v24 = vmul.f32 1.442695, %v14427_v35  ;;  %v14392_v16 = vpop.xlane.xlu0 %14391  ;;  %v14510_v39 = vsel %vm583_vm2, %v23369_v57, 0.0  ;;  %v23375_v48 = vpop.eup %20103 }
 0xa02   :  { %20113 = vpow2.f32 %v14464_v50  ;;  %v14401_v13 = vpop.xlane.xlu1 %14400  ;;  %v14426_v42 = vsub.f32 %v23244_v47, %v14392_v16  ;;  %14514 = vadd.xlane.f32.xlu1 %v14513_v36  ;;  %14511 = vadd.xlane.f32.xlu0 %v14510_v39  ;;  %v14519_v15 = vsel %vm583_vm2, %v23375_v48, 0.0 }
 0xa03   :  { %v14429_v11 = vsub.f32 %v23250_v0, %v14401_v13  ;;  %20115 = vpow2.f32 %v14470_v24 }
 0xa04   :  { %v23379_v37 = vpop.eup %20105  ;;  %v14468_v21 = vmul.f32 1.442695, %v14426_v42 }
 0xa05   :  { %v14474_v34 = vmul.f32 1.442695, %v14429_v11  ;;  %v14398_v1 = vpop.xlane.xlu0 %14397  ;;  %v14516_v23 = vsel %vm583_vm2, %v23379_v37, 0.0  ;;  %v23385_v53 = vpop.eup %20107 }
 0xa06   :  { %20117 = vpow2.f32 %v14468_v21  ;;  %v14407_v47 = vpop.xlane.xlu1 %14406  ;;  %v14428_v8 = vsub.f32 %v23252_v49, %v14398_v1  ;;  %14520 = vadd.xlane.f32.xlu1 %v14519_v15  ;;  %14517 = vadd.xlane.f32.xlu0 %v14516_v23  ;;  %v14525_v50 = vsel %vm583_vm2, %v23385_v53, 0.0 }
 0xa07   :  { %v14431_v0 = vsub.f32 %v23258_v4, %v14407_v47  ;;  %20119 = vpow2.f32 %v14474_v34 }
 0xa08   :  { %v23389_v44 = vpop.eup %20109  ;;  %v14472_v14 = vmul.f32 1.442695, %v14428_v8 }
 0xa09   :  { %v14478_v2 = vmul.f32 1.442695, %v14431_v0  ;;  %v14404_v25 = vpop.xlane.xlu0 %14403  ;;  %v14522_v35 = vsel %vm583_vm2, %v23389_v44, 0.0  ;;  %v23395_v24 = vpop.eup %20111 }
 0xa0a   :  { %20121 = vpow2.f32 %v14472_v14  ;;  %v14430_v49 = vsub.f32 %v23260_v38, %v14404_v25  ;;  %14523 = vadd.xlane.f32.xlu1 %v14522_v35  ;;  %14526 = vadd.xlane.f32.xlu0 %v14525_v50  ;;  %v14531_v39 = vsel %vm583_vm2, %v23395_v24, 0.0  ;;  %v24951_v14 = vld [vmem:[#allocation59_spill] sm:$0xff]  ;;  %v24953_v25 = vld [vmem:[#allocation57_spill] sm:$0xff]  ;;  %v24954_v35 = vld [vmem:[#allocation16_spill] sm:$0xff] }
 0xa0b   :  { %20123 = vpow2.f32 %v14478_v2  ;;  %v24952_v2 = vld [vmem:[#allocation84_spill] sm:$0xff] }
 0xa0c   :  { %v23398_v4 = vpop.eup %20113  ;;  %v14476_v16 = vmul.f32 1.442695, %v14430_v49  ;;  %v24955_v50 = vld [vmem:[#allocation20_spill] sm:$0xff]  ;;  %v24956_v49 = vld [vmem:[#allocation82_spill] sm:$0xff] }
 0xa0d   :  { %v14528_v36 = vsel %vm583_vm2, %v23398_v4, 0.0  ;;  %v23404_v13 = vpop.eup %20115 }
 0xa0e   :  { %20125 = vpow2.f32 %v14476_v16  ;;  %14529 = vadd.xlane.f32.xlu1 %v14528_v36  ;;  %14532 = vadd.xlane.f32.xlu0 %v14531_v39  ;;  %v14537_v11 = vsel %vm583_vm2, %v23404_v13, 0.0  ;;  %v24957_v16 = vld [vmem:[#allocation86_spill] sm:$0xff]  ;;  %v23502_v36 = vpop.permute.xlu1 %16196 }
 0xa10   :  { %v23406_v42 = vpop.eup %20117 }
 0xa11   :  { %v14534_v38 = vsel %vm583_vm2, %v23406_v42, 0.0  ;;  %v23412_v21 = vpop.eup %20119 }
 0xa12   :  { %14535 = vadd.xlane.f32.xlu1 %v14534_v38  ;;  %14538 = vadd.xlane.f32.xlu0 %v14537_v11  ;;  %v14543_v15 = vsel %vm583_vm2, %v23412_v21, 0.0 }
 0xa14   :  { %v23414_v34 = vpop.eup %20121 }
 0xa15   :  { %v14540_v1 = vsel %vm583_vm2, %v23414_v34, 0.0  ;;  %v23420_v23 = vpop.eup %20123 }
 0xa16   :  { %14541 = vadd.xlane.f32.xlu1 %v14540_v1  ;;  %14544 = vadd.xlane.f32.xlu0 %v14543_v15  ;;  %v14549_v8 = vsel %vm583_vm2, %v23420_v23, 0.0  ;;  %v24973_v1 = vld [vmem:[#allocation96_spill] sm:$0xff] }
 0xa18   :  { %v23422_v47 = vpop.eup %20125 }
 0xa19   :  { %v14546_v0 = vsel %vm583_vm2, %v23422_v47, 0.0 }
 0xa1a   :  { %14550 = vadd.xlane.f32.xlu0 %v14549_v8  ;;  %14547 = vadd.xlane.f32.xlu1 %v14546_v0 }
 0xa2b   :  { %16348 = vrot.lane.b32.xlu1 %v24951_v14, %s20323_s11  ;;  %v24974_v14 = vld [vmem:[#allocation94_spill] sm:$0xff] }
 0xa2f   :  { %16450 = vrot.lane.b32.xlu1 %v24952_v2, %s20324_s12 }
 0xa30   :  { %16272 = vrot.lane.b32.xlu0 %v24953_v25, %s20323_s11 }
 0xa33   :  { %16546 = vrot.lane.b32.xlu1 %v23126_v45, %s20325_s13  ;;  %v24958_v45 = vld [vmem:[#allocation63_spill] sm:$0xff] }
 0xa34   :  { %16448 = vrot.lane.b32.xlu0 %v24954_v35, %s20324_s12 }
 0xa37   :  { %16454 = vrot.lane.b32.xlu1 %v24955_v50, %s20324_s12 }
 0xa38   :  { %16544 = vrot.lane.b32.xlu0 %v23124_v40, %s20325_s13  ;;  %v24959_v40 = vld [vmem:[#allocation3_spill] sm:$0xff] }
 0xa3b   :  { %16550 = vrot.lane.b32.xlu1 %v23130_v41, %s20325_s13  ;;  %v24960_v41 = vld [vmem:[#allocation22_spill] sm:$0xff] }
 0xa3c   :  { %16452 = vrot.lane.b32.xlu0 %v24956_v49, %s20324_s12  ;;  %v24978_v49 = vld [vmem:[#allocation26_spill] sm:$0xff] }
 0xa3f   :  { %16458 = vrot.lane.b32.xlu1 %v24957_v16, %s20324_s12 }
 0xa40   :  { %16548 = vrot.lane.b32.xlu0 %v23128_v6, %s20325_s13  ;;  %v24961_v6 = vld [vmem:[#allocation88_spill] sm:$0xff] }
 0xa43   :  { %16554 = vrot.lane.b32.xlu1 %v23132_v19, %s20325_s13  ;;  %v24962_v19 = vld [vmem:[#allocation69_spill] sm:$0xff] }
 0xa44   :  { %16456 = vrot.lane.b32.xlu0 %v24958_v45, %s20324_s12  ;;  %v24979_v45 = vld [vmem:[#allocation12_spill] sm:$0xff] }
 0xa47   :  { %16462 = vrot.lane.b32.xlu1 %v24959_v40, %s20324_s12 }
 0xa48   :  { %16552 = vrot.lane.b32.xlu0 %v23134_v55, %s20325_s13  ;;  %v24963_v55 = vld [vmem:[#allocation19_spill] sm:$0xff] }
 0xa4b   :  { %16558 = vrot.lane.b32.xlu1 %v23136_v56, %s20325_s13  ;;  %v24964_v56 = vld [vmem:[#allocation6_spill] sm:$0xff] }
 0xa4c   :  { %16460 = vrot.lane.b32.xlu0 %v24960_v41, %s20324_s12 }
 0xa4f   :  { %16466 = vrot.lane.b32.xlu1 %v24961_v6, %s20324_s12 }
 0xa50   :  { %16556 = vrot.lane.b32.xlu0 %v23138_v10, %s20325_s13  ;;  %v24965_v10 = vld [vmem:[#allocation90_spill] sm:$0xff] }
 0xa53   :  { %16562 = vrot.lane.b32.xlu1 %v23140_v60, %s20325_s13  ;;  %v24966_v60 = vld [vmem:[#allocation67_spill] sm:$0xff] }
 0xa54   :  { %16464 = vrot.lane.b32.xlu0 %v24962_v19, %s20324_s12  ;;  %v24980_v19 = vld [vmem:[#allocation15_spill] sm:$0xff] }
 0xa57   :  { %16470 = vrot.lane.b32.xlu1 %v24963_v55, %s20324_s12 }
 0xa58   :  { %16560 = vrot.lane.b32.xlu0 %v23142_v27, %s20325_s13  ;;  %v24967_v27 = vld [vmem:[#allocation2_spill] sm:$0xff] }
 0xa5b   :  { %16566 = vrot.lane.b32.xlu1 %v23144_v43, %s20325_s13  ;;  %v24968_v43 = vld [vmem:[#allocation21_spill] sm:$0xff] }
 0xa5c   :  { %16468 = vrot.lane.b32.xlu0 %v24964_v56, %s20324_s12 }
 0xa5f   :  { %16474 = vrot.lane.b32.xlu1 %v24965_v10, %s20324_s12  ;;  %v24981_v10 = vld [vmem:[#allocation40_spill] sm:$0xff] }
 0xa60   :  { %16564 = vrot.lane.b32.xlu0 %v23146_v62, %s20325_s13  ;;  %v24969_v62 = vld [vmem:[#allocation92_spill] sm:$0xff] }
 0xa63   :  { %16570 = vrot.lane.b32.xlu1 %v23148_v51, %s20325_s13  ;;  %v23498_v51 = vpop.permute.xlu0 %16120 }
 0xa64   :  { %16472 = vrot.lane.b32.xlu0 %v24966_v60, %s20324_s12 }
 0xa67   :  { %16478 = vrot.lane.b32.xlu1 %v24967_v27, %s20324_s12  ;;  %v24982_v27 = vld [vmem:[#allocation39_spill] sm:$0xff] }
 0xa68   :  { %16568 = vrot.lane.b32.xlu0 %v23150_v28, %s20325_s13  ;;  %v24970_v28 = vld [vmem:[#allocation79_spill] sm:$0xff] }
 0xa6b   :  { %16574 = vrot.lane.b32.xlu1 %v23154_v22, %s20325_s13  ;;  %v24971_v22 = vld [vmem:[#allocation24_spill] sm:$0xff] }
 0xa6c   :  { %16476 = vrot.lane.b32.xlu0 %v24968_v43, %s20324_s12 }
 0xa6f   :  { %16482 = vrot.lane.b32.xlu1 %v24969_v62, %s20324_s12 }
 0xa70   :  { %16572 = vrot.lane.b32.xlu0 %v23152_v33, %s20325_s13 }
 0xa73   :  { %16578 = vrot.lane.b32.xlu1 %v23158_v9, %s20325_s13  ;;  %v24972_v9 = vld [vmem:[#allocation5_spill] sm:$0xff] }
 0xa74   :  { %16480 = vrot.lane.b32.xlu0 %v24970_v28, %s20324_s12 }
 0xa77   :  { %16486 = vrot.lane.b32.xlu1 %v24971_v22, %s20324_s12  ;;  %v14482_v39 = vpop.xlane.xlu0 %14481  ;;  %v24983_v22 = vld [vmem:[#allocation80_spill] sm:$0xff] }
 0xa78   :  { %v14485_v38 = vpop.xlane.xlu1 %14484  ;;  %20127 = vrcp.f32 %v14482_v39  ;;  %16576 = vrot.lane.b32.xlu0 %v23156_v5, %s20325_s13 }
 0xa79   :  { %20129 = vrcp.f32 %v14485_v38 }
 0xa7b   :  { %16582 = vrot.lane.b32.xlu1 %v23162_v32, %s20325_s13  ;;  %v14488_v33 = vpop.xlane.xlu0 %14487 }
 0xa7c   :  { %20131 = vrcp.f32 %v14488_v33  ;;  %16484 = vrot.lane.b32.xlu0 %v24972_v9, %s20324_s12 }
 0xa7f   :  { %v14491_v11 = vpop.xlane.xlu1 %14490  ;;  %16490 = vrot.lane.b32.xlu1 %v24973_v1, %s20324_s12  ;;  %v24985_v1 = vld [vmem:[#allocation38_spill] sm:$0xff] }
 0xa80   :  { %20133 = vrcp.f32 %v14491_v11  ;;  %16580 = vrot.lane.b32.xlu0 %v23160_v46, %s20325_s13 }
 0xa82   :  { %v20128_v15 = vpop.eup %20127 }
 0xa83   :  { %v20130_v8 = vpop.eup %20129  ;;  %v14497_v5 = vpop.xlane.xlu1 %14496  ;;  %16586 = vrot.lane.b32.xlu1 %v23166_v18, %s20325_s13  ;;  %v14576_v0 = vmul.f32 %v20128_v15, %v23315_v63  ;;  %v24975_v18 = vld [vmem:[#allocation8_spill] sm:$0xff] }
 0xa84   :  { %v14494_v32 = vpop.xlane.xlu0 %14493  ;;  %20135 = vrcp.f32 %v14497_v5  ;;  %16488 = vrot.lane.b32.xlu0 %v24974_v14, %s20324_s12  ;;  %v14577_v2 = vmul.f32 %v20130_v8, %v23317_v59  ;;  %v24987_v14 = vld [vmem:[#allocation37_spill] sm:$0xff] }
 0xa85   :  { %20137 = vrcp.f32 %v14494_v32  ;;  %19592 = vmatmul.mubr.msk.f32.vlgmr.msra.gmra.mrb[192].mxu0 %vm583_vm2, %v14576_v0 }
 0xa86   :  { %v20132_v25 = vpop.eup %20131  ;;  %19597 = vmatmul.mubr.msk.f32.vlgmr.msra.gmra.mrb[216].mxu1 %vm583_vm2, %v14577_v2  ;;  %19600 = vmatpush3.msra.mxu0 %v23276_v31  ;;  %v24976_v31 = vld [vmem:[#allocation13_spill] sm:$0xff] }
 0xa87   :  { %19605 = vmatpush3.msra.mxu1 %v23272_v58  ;;  %v14503_v46 = vpop.xlane.xlu1 %14502  ;;  %16494 = vrot.lane.b32.xlu1 %v24975_v18, %s20324_s12  ;;  %v14578_v35 = vmul.f32 %v20132_v25, %v23325_v12  ;;  %v24977_v12 = vld [vmem:[#allocation34_spill] sm:$0xff] }
 0xa88   :  { %v14500_v63 = vpop.xlane.xlu0 %14499  ;;  %20139 = vrcp.f32 %v14503_v46  ;;  %16584 = vrot.lane.b32.xlu0 %v23164_v61, %s20325_s13  ;;  %19601 = vmatprep.mubr.msk.f32.mxu0 %vm20320_vm1, %v24865_v30 }
 0xa89   :  { %20141 = vrcp.f32 %v14500_v63  ;;  %19609 = vmatprep.subr.mxu0 %v24865_v30  ;;  %19602 = vmatmul.mubr.msk.f32.vlgmr.msra.gmra.mrb[194].mxu0 %vm583_vm2, %v14578_v35  ;;  %v24989_v35 = vld [vmem:[#allocation25_spill] sm:$0xff] }
 0xa8a   :  { %v20134_v58 = vpop.eup %20133  ;;  %19610 = vmatpush3.msra.mxu0 %v24976_v31  ;;  %19606 = vmatprep.mubr.msk.f32.mxu1 %vm20320_vm1, %v24865_v30 }
 0xa8b   :  { %v14509_v59 = vpop.xlane.xlu1 %14508  ;;  %16590 = vrot.lane.b32.xlu1 %v24977_v12, %s20325_s13  ;;  %19614 = vmatprep.subr.mxu1 %v24865_v30  ;;  %v14579_v61 = vmul.f32 %v20134_v58, %v23331_v29 }
 0xa8c   :  { %v14506_v50 = vpop.xlane.xlu0 %14505  ;;  %20143 = vrcp.f32 %v14509_v59  ;;  %16492 = vrot.lane.b32.xlu0 %v24978_v49, %s20324_s12  ;;  %19611 = vmatprep.mubr.msk.f32.mxu0 %vm20320_vm1, %v24865_v30  ;;  %v24991_v49 = vld [vmem:[#allocation43_spill] sm:$0xff] }
 0xa8d   :  { %20145 = vrcp.f32 %v14506_v50  ;;  %19607 = vmatmul.mubr.msk.f32.vlgmr.msra.gmra.mrb[218].mxu1 %vm583_vm2, %v14579_v61  ;;  %19619 = vmatprep.subr.mxu0 %v24865_v30 }
 0xa8e   :  { %v20136_v16 = vpop.eup %20135  ;;  %19615 = vmatpush3.msra.mxu1 %v24979_v45  ;;  %19616 = vmatprep.mubr.msk.f32.mxu1 %vm20320_vm1, %v24865_v30 }
 0xa8f   :  { %v20138_v40 = vpop.eup %20137  ;;  %v14515_v29 = vpop.xlane.xlu1 %14514  ;;  %19624 = vmatprep.subr.mxu1 %v24865_v30  ;;  %v14581_v6 = vmul.f32 %v20136_v16, %v23335_v3 }
 0xa90   :  { %v14512_v41 = vpop.xlane.xlu0 %14511  ;;  %20147 = vrcp.f32 %v14515_v29  ;;  %16588 = vrot.lane.b32.xlu0 %v24980_v19, %s20325_s13  ;;  %v14580_v55 = vmul.f32 %v20138_v40, %v23339_v17 }
 0xa91   :  { %20149 = vrcp.f32 %v14512_v41  ;;  %19617 = vmatmul.mubr.msk.f32.vlgmr.msra.gmra.mrb[220].mxu1 %vm583_vm2, %v14581_v6  ;;  %v24993_v41 = vld [vmem:[#allocation100_spill] sm:$0xff]  ;;  %v24994_v6 = vld [vmem:[#allocation83_spill] sm:$0xff] }
 0xa92   :  { %v20140_v56 = vpop.eup %20139  ;;  %19612 = vmatmul.mubr.msk.f32.vlgmr.msra.gmra.mrb[196].mxu0 %vm583_vm2, %v14580_v55  ;;  %19625 = vmatpush3.msra.mxu1 %v24981_v10 }
 0xa93   :  { %v20142_v60 = vpop.eup %20141  ;;  %19620 = vmatpush3.msra.mxu0 %v24982_v27  ;;  %v14521_v43 = vpop.xlane.xlu1 %14520  ;;  %19621 = vmatprep.mubr.msk.f32.mxu0 %vm20320_vm1, %v24865_v30  ;;  %v14583_v3 = vmul.f32 %v20140_v56, %v23345_v54  ;;  %v24984_v54 = vld [vmem:[#allocation98_spill] sm:$0xff] }
 0xa94   :  { %v14518_v62 = vpop.xlane.xlu0 %14517  ;;  %20151 = vrcp.f32 %v14521_v43  ;;  %19626 = vmatprep.mubr.msk.f32.mxu1 %vm20320_vm1, %v24865_v30  ;;  %19629 = vmatprep.subr.mxu0 %v24865_v30  ;;  %v14582_v17 = vmul.f32 %v20142_v60, %v23349_v52 }
 0xa95   :  { %20153 = vrcp.f32 %v14518_v62  ;;  %19634 = vmatprep.subr.mxu1 %v24865_v30  ;;  %19627 = vmatmul.mubr.msk.f32.vlgmr.msra.gmra.mrb[222].mxu1 %vm583_vm2, %v14583_v3  ;;  %v24995_v62 = vld [vmem:[#allocation4_spill] sm:$0xff]  ;;  %v24996_v3 = vld [vmem:[#allocation31_spill] sm:$0xff] }
 0xa96   :  { %v20144_v28 = vpop.eup %20143  ;;  %19622 = vmatmul.mubr.msk.f32.vlgmr.msra.gmra.mrb[198].mxu0 %vm583_vm2, %v14582_v17  ;;  %19635 = vmatpush3.msra.mxu1 %v24983_v22 }
 0xa97   :  { %v20146_v39 = vpop.eup %20145  ;;  %19630 = vmatpush3.msra.mxu0 %v24984_v54  ;;  %v14524_v38 = vpop.xlane.xlu1 %14523  ;;  %19631 = vmatprep.mubr.msk.f32.mxu0 %vm20320_vm1, %v24865_v30  ;;  %v14585_v52 = vmul.f32 %v20144_v28, %v23355_v7  ;;  %v24986_v7 = vld [vmem:[#allocation44_spill] sm:$0xff] }
 0xa98   :  { %v14527_v33 = vpop.xlane.xlu0 %14526  ;;  %20155 = vrcp.f32 %v14524_v38  ;;  %19636 = vmatprep.mubr.msk.f32.mxu1 %vm20320_vm1, %v24865_v30  ;;  %19639 = vmatprep.subr.mxu0 %v24865_v30  ;;  %v14584_v9 = vmul.f32 %v20146_v39, %v23359_v26 }
 0xa99   :  { %20157 = vrcp.f32 %v14527_v33  ;;  %19644 = vmatprep.subr.mxu1 %v24865_v30  ;;  %19637 = vmatmul.mubr.msk.f32.vlgmr.msra.gmra.mrb[224].mxu1 %vm583_vm2, %v14585_v52  ;;  %v24997_v52 = vld [vmem:[#allocation11_spill] sm:$0xff] }
 0xa9a   :  { %v20148_v11 = vpop.eup %20147  ;;  %19632 = vmatmul.mubr.msk.f32.vlgmr.msra.gmra.mrb[200].mxu0 %vm583_vm2, %v14584_v9  ;;  %19645 = vmatpush3.msra.mxu1 %v24985_v1 }
 0xa9b   :  { %v20150_v15 = vpop.eup %20149  ;;  %19640 = vmatpush3.msra.mxu0 %v24986_v7  ;;  %v14530_v8 = vpop.xlane.xlu1 %14529  ;;  %19641 = vmatprep.mubr.msk.f32.mxu0 %vm20320_vm1, %v24865_v30  ;;  %v14587_v26 = vmul.f32 %v20148_v11, %v23365_v20  ;;  %v24988_v20 = vld [vmem:[#allocation81_spill] sm:$0xff] }
 0xa9c   :  { %v14533_v5 = vpop.xlane.xlu0 %14532  ;;  %20159 = vrcp.f32 %v14530_v8  ;;  %19646 = vmatprep.mubr.msk.f32.mxu1 %vm20320_vm1, %v24865_v30  ;;  %19649 = vmatprep.subr.mxu0 %v24865_v30  ;;  %v14586_v32 = vmul.f32 %v20150_v15, %v23369_v57  ;;  %v24998_v11 = vld [vmem:[#allocation33_spill] sm:$0xff] }
 0xa9d   :  { %20161 = vrcp.f32 %v14533_v5  ;;  %19654 = vmatprep.subr.mxu1 %v24865_v30  ;;  %19647 = vmatmul.mubr.msk.f32.vlgmr.msra.gmra.mrb[226].mxu1 %vm583_vm2, %v14587_v26  ;;  %v24999_v26 = vld [vmem:[#allocation9_spill] sm:$0xff] }
 0xa9e   :  { %v20152_v0 = vpop.eup %20151  ;;  %19642 = vmatmul.mubr.msk.f32.vlgmr.msra.gmra.mrb[202].mxu0 %vm583_vm2, %v14586_v32  ;;  %19655 = vmatpush3.msra.mxu1 %v24987_v14 }
 0xa9f   :  { %v20154_v2 = vpop.eup %20153  ;;  %19650 = vmatpush3.msra.mxu0 %v24988_v20  ;;  %v14536_v25 = vpop.xlane.xlu1 %14535  ;;  %19651 = vmatprep.mubr.msk.f32.mxu0 %vm20320_vm1, %v24865_v30  ;;  %v14589_v57 = vmul.f32 %v20152_v0, %v23375_v48  ;;  %v24990_v48 = vld [vmem:[#allocation23_spill] sm:$0xff]  ;;  %v25000_v0 = vld [vmem:[#allocation32_spill] sm:$0xff] }
 0xaa0   :  { %v14539_v46 = vpop.xlane.xlu0 %14538  ;;  %20163 = vrcp.f32 %v14536_v25  ;;  %19656 = vmatprep.mubr.msk.f32.mxu1 %vm20320_vm1, %v24865_v30  ;;  %19659 = vmatprep.subr.mxu0 %v24865_v30  ;;  %v14588_v18 = vmul.f32 %v20154_v2, %v23379_v37 }
 0xaa1   :  { %20165 = vrcp.f32 %v14539_v46  ;;  %19664 = vmatprep.subr.mxu1 %v24865_v30  ;;  %19657 = vmatmul.mubr.msk.f32.vlgmr.msra.gmra.mrb[228].mxu1 %vm583_vm2, %v14589_v57 }
 0xaa2   :  { %v20156_v63 = vpop.eup %20155  ;;  %19652 = vmatmul.mubr.msk.f32.vlgmr.msra.gmra.mrb[204].mxu0 %vm583_vm2, %v14588_v18  ;;  %19665 = vmatpush3.msra.mxu1 %v24989_v35 }
 0xaa3   :  { %v20158_v58 = vpop.eup %20157  ;;  %19660 = vmatpush3.msra.mxu0 %v24990_v48  ;;  %v14542_v31 = vpop.xlane.xlu1 %14541  ;;  %19661 = vmatprep.mubr.msk.f32.mxu0 %vm20320_vm1, %v24865_v30  ;;  %v14590_v37 = vmul.f32 %v20156_v63, %v23389_v44  ;;  %v24992_v44 = vld [vmem:[#allocation42_spill] sm:$0xff]  ;;  %v25001_v63 = vld [vmem:[#allocation17_spill] sm:$0xff] }
 0xaa4   :  { %v14545_v59 = vpop.xlane.xlu0 %14544  ;;  %20167 = vrcp.f32 %v14542_v31  ;;  %19666 = vmatprep.mubr.msk.f32.mxu1 %vm20320_vm1, %v24865_v30  ;;  %19669 = vmatprep.subr.mxu0 %v24865_v30  ;;  %v14591_v12 = vmul.f32 %v20158_v58, %v23385_v53  ;;  %v25002_v58 = vld [vmem:[#allocation36_spill] sm:$0xff] }
 0xaa5   :  { %20169 = vrcp.f32 %v14545_v59  ;;  %19674 = vmatprep.subr.mxu1 %v24865_v30 }
 0xaa6   :  { %v20160_v50 = vpop.eup %20159  ;;  %19662 = vmatmul.mubr.msk.f32.vlgmr.msra.gmra.mrb[206].mxu0 %vm583_vm2, %v14590_v37  ;;  %19667 = vmatmul.mubr.msk.f32.vlgmr.msra.gmra.mrb[230].mxu1 %vm583_vm2, %v14591_v12 }
 0xaa7   :  { %v20162_v61 = vpop.eup %20161  ;;  %19670 = vmatpush3.msra.mxu0 %v24991_v49  ;;  %19675 = vmatpush3.msra.mxu1 %v24992_v44  ;;  %v14548_v16 = vpop.xlane.xlu1 %14547  ;;  %v14592_v40 = vmul.f32 %v20160_v50, %v23398_v4  ;;  %v25003_v49 = vld [vmem:[#allocation35_spill] sm:$0xff] }
 0xaa8   :  { %v14551_v45 = vpop.xlane.xlu0 %14550  ;;  %20171 = vrcp.f32 %v14548_v16  ;;  %19671 = vmatprep.mubr.msk.f32.mxu0 %vm20320_vm1, %v24865_v30  ;;  %19676 = vmatprep.mubr.msk.f32.mxu1 %vm20320_vm1, %v24865_v30  ;;  %v14593_v53 = vmul.f32 %v20162_v61, %v23395_v24  ;;  %v25004_v16 = vld [vmem:[#allocation70_spill] sm:$0xff] }
 0xaa9   :  { %20173 = vrcp.f32 %v14551_v45  ;;  %19679 = vmatprep.subr.mxu0 %v24865_v30  ;;  %19684 = vmatprep.subr.mxu1 %v24865_v30 }
 0xaaa   :  { %v20164_v29 = vpop.eup %20163  ;;  %19672 = vmatmul.mubr.msk.f32.vlgmr.msra.gmra.mrb[208].mxu0 %vm583_vm2, %v14592_v40  ;;  %19677 = vmatmul.mubr.msk.f32.vlgmr.msra.gmra.mrb[232].mxu1 %vm583_vm2, %v14593_v53 }
 0xaab   :  { %v20166_v4 = vpop.eup %20165  ;;  %19680 = vmatpush3.msra.mxu0 %v24993_v41  ;;  %19685 = vmatpush3.msra.mxu1 %v24994_v6  ;;  %v16349_v19 = vpop.permute.xlu1 %16348  ;;  %v14594_v56 = vmul.f32 %v20164_v29, %v23406_v42 }
 0xaac   :  { %v16273_v55 = vpop.permute.xlu0 %16272  ;;  %19681 = vmatprep.mubr.msk.f32.mxu0 %vm20320_vm1, %v24865_v30  ;;  %19686 = vmatprep.mubr.msk.f32.mxu1 %vm20320_vm1, %v24865_v30  ;;  %v14595_v24 = vmul.f32 %v20166_v4, %v23404_v13 }
 0xaad   :  { %19689 = vmatprep.subr.mxu0 %v24865_v30  ;;  %19694 = vmatprep.subr.mxu1 %v24865_v30 }
 0xaae   :  { %v20168_v10 = vpop.eup %20167  ;;  %19682 = vmatmul.mubr.msk.f32.vlgmr.msra.gmra.mrb[210].mxu0 %vm583_vm2, %v14594_v56  ;;  %19687 = vmatmul.mubr.msk.f32.vlgmr.msra.gmra.mrb[234].mxu1 %vm583_vm2, %v14595_v24  ;;  %v25006_v56 = vld [vmem:[#allocation61_spill] sm:$0xff] }
 0xaaf   :  { %v20170_v60 = vpop.eup %20169  ;;  %19690 = vmatpush3.msra.mxu0 %v23498_v51  ;;  %19695 = vmatpush3.msra.mxu1 %v23502_v36  ;;  %v16451_v42 = vpop.permute.xlu1 %16450  ;;  %v14596_v43 = vmul.f32 %v20168_v10, %v23414_v34 }
 0xab0   :  { %v16449_v27 = vpop.permute.xlu0 %16448  ;;  %v16713_v13 = vsel %vm583_vm2, %v24995_v62, %v16451_v42  ;;  %19691 = vmatprep.mubr.msk.f32.mxu0 %vm20320_vm1, %v24865_v30  ;;  %19696 = vmatprep.mubr.msk.f32.mxu1 %vm20320_vm1, %v24865_v30  ;;  %v14597_v51 = vmul.f32 %v20170_v60, %v23412_v21 }
 0xab1   :  { %v16712_v17 = vsel %vm583_vm2, %v24996_v3, %v16449_v27  ;;  %19699 = vmatprep.subr.mxu0 %v24865_v30  ;;  %19704 = vmatprep.subr.mxu1 %v24865_v30 }
 0xab2   :  { %v20172_v34 = vpop.eup %20171  ;;  %19692 = vmatmul.mubr.msk.f32.vlgmr.msra.gmra.mrb[212].mxu0 %vm583_vm2, %v14596_v43  ;;  %19697 = vmatmul.mubr.msk.f32.vlgmr.msra.gmra.mrb[236].mxu1 %vm583_vm2, %v14597_v51 }
 0xab3   :  { %v20174_v36 = vpop.eup %20173  ;;  %v14598_v28 = vmul.f32 %v20172_v34, %v23422_v47  ;;  %19700 = vmatpush3.msra.mxu0 %v16273_v55  ;;  %19705 = vmatpush3.msra.mxu1 %v16349_v19  ;;  %v16547_v22 = vpop.permute.xlu1 %16546  ;;  %v25005_v19 = vld [vmem:[#allocation72_spill] sm:$0xff] }
 0xab4   :  { %v16545_v39 = vpop.permute.xlu0 %16544  ;;  %v23662_v54 = vsel %vm16736_vm3, %v16713_v13, %v16547_v22  ;;  %19701 = vmatprep.mubr.msk.f32.mxu0 %vm20320_vm1, %v24865_v30  ;;  %19706 = vmatprep.mubr.msk.f32.mxu1 %vm20320_vm1, %v24865_v30  ;;  %v14599_v38 = vmul.f32 %v20174_v36, %v23420_v23  ;;  %v25007_v13 = vld [vmem:[#allocation73_spill] sm:$0xff] }
 0xab5   :  { %v23665_v21 = vsel %vm16736_vm3, %v16712_v17, %v16545_v39  ;;  %v25008_v17 = vld [vmem:[#allocation68_spill] sm:$0xff] }
 0xab6   :  { %19702 = vmatmul.mubr.msk.f32.vlgmr.msra.gmra.mrb[214].mxu0 %vm583_vm2, %v14598_v28  ;;  %19707 = vmatmul.mubr.msk.f32.vlgmr.msra.gmra.mrb[238].mxu1 %vm583_vm2, %v14599_v38 }
 0xab7   :  { %v16455_v47 = vpop.permute.xlu1 %16454 }
 0xab8   :  { %v16453_v33 = vpop.permute.xlu0 %16452  ;;  %v16715_v9 = vsel %vm583_vm2, %v24997_v52, %v16455_v47  ;;  %v25009_v47 = vld [vmem:[#allocation65_spill] sm:$0xff]  ;;  %v25010_v52 = vld [vmem:[#allocation62_spill] sm:$0xff] }
 0xab9   :  { %v16714_v1 = vsel %vm583_vm2, %v24998_v11, %v16453_v33 }
 0xabb   :  { %v16551_v15 = vpop.permute.xlu1 %16550 }
 0xabc   :  { %v16549_v7 = vpop.permute.xlu0 %16548  ;;  %v23679_v8 = vsel %vm16736_vm3, %v16715_v9, %v16551_v15 }
 0xabd   :  { %v23682_v30 = vsel %vm16736_vm3, %v16714_v1, %v16549_v7 }
 0xabf   :  { %v16459_v23 = vpop.permute.xlu1 %16458 }
 0xac0   :  { %v16457_v5 = vpop.permute.xlu0 %16456  ;;  %v16717_v32 = vsel %vm583_vm2, %v24999_v26, %v16459_v23  ;;  %v25011_v26 = vld [vmem:[#allocation71_spill] sm:$0xff] }
 0xac1   :  { %v16716_v14 = vsel %vm583_vm2, %v25000_v0, %v16457_v5  ;;  %v25012_v0 = vld [vmem:[#allocation74_spill] sm:$0xff] }
 0xac3   :  { %v16555_v2 = vpop.permute.xlu1 %16554 }
 0xac4   :  { %v16553_v20 = vpop.permute.xlu0 %16552  ;;  %v23689_v25 = vsel %vm16736_vm3, %v16717_v32, %v16555_v2 }
 0xac5   :  { %v23692_v46 = vsel %vm16736_vm3, %v16716_v14, %v16553_v20 }
 0xac7   :  { %v16463_v57 = vpop.permute.xlu1 %16462 }
 0xac8   :  { %v16461_v18 = vpop.permute.xlu0 %16460  ;;  %v16719_v35 = vsel %vm583_vm2, %v25001_v63, %v16463_v57  ;;  %v16786_v63 = vld [vmem:[%s24381_s4] sm:$0xff] }
 0xac9   :  { %v16718_v48 = vsel %vm583_vm2, %v25002_v58, %v16461_v18  ;;  %v16788_v58 = vld [vmem:[%s24381_s4 + $0x10] sm:$0xff] }
 0xacb   :  { %v16559_v31 = vpop.permute.xlu1 %16558 }
 0xacc   :  { %v16557_v59 = vpop.permute.xlu0 %16556  ;;  %v23699_v37 = vsel %vm16736_vm3, %v16719_v35, %v16559_v31  ;;  %v16787_v35 = vld [vmem:[%s24381_s4 + $0x8] sm:$0xff]  ;;  %v16789_v31 = vld [vmem:[%s24381_s4 + $0x18] sm:$0xff] }
 0xacd   :  { %v23702_v12 = vsel %vm16736_vm3, %v16718_v48, %v16557_v59  ;;  %v19753_v48 = vpack.c.bf16 %v16787_v35, %v16786_v63  ;;  %v19757_v59 = vpack.c.bf16 %v16789_v31, %v16788_v58 }
 0xacf   :  { %v16467_v50 = vpop.permute.xlu1 %16466  ;;  %19754 = vmatprep.subr.bf16.mxu0 %v19753_v48 }
 0xad0   :  { %v16465_v61 = vpop.permute.xlu0 %16464  ;;  %v16721_v44 = vsel %vm583_vm2, %v25003_v49, %v16467_v50  ;;  %19756 = vmatpush3.bf16.msra.mxu0 %v19753_v48 }
 0xad1   :  { %v16720_v45 = vsel %vm583_vm2, %v25004_v16, %v16465_v61  ;;  %19758 = vmatprep.subr.bf16.mxu0 %v19757_v59 }
 0xad3   :  { %v16563_v40 = vpop.permute.xlu1 %16562 }
 0xad4   :  { %v16561_v53 = vpop.permute.xlu0 %16560  ;;  %v23709_v29 = vsel %vm16736_vm3, %v16721_v44, %v16563_v40  ;;  %19760 = vmatpush3.bf16.msra.mxu0 %v19757_v59 }
 0xad5   :  { %v23712_v4 = vsel %vm16736_vm3, %v16720_v45, %v16561_v53 }
 0xad7   :  { %v16471_v41 = vpop.permute.xlu1 %16470 }
 0xad8   :  { %v16469_v6 = vpop.permute.xlu0 %16468  ;;  %v16723_v55 = vsel %vm583_vm2, %v25005_v19, %v16471_v41 }
 0xad9   :  { %v16722_v24 = vsel %vm583_vm2, %v25006_v56, %v16469_v6 }
 0xadb   :  { %v16567_v10 = vpop.permute.xlu1 %16566 }
 0xadc   :  { %v16565_v60 = vpop.permute.xlu0 %16564  ;;  %v23719_v42 = vsel %vm16736_vm3, %v16723_v55, %v16567_v10 }
 0xadd   :  { %v23722_v27 = vsel %vm16736_vm3, %v16722_v24, %v16565_v60 }
 0xadf   :  { %v16475_v43 = vpop.permute.xlu1 %16474 }
 0xae0   :  { %v16473_v62 = vpop.permute.xlu0 %16472  ;;  %v16725_v3 = vsel %vm583_vm2, %v25007_v13, %v16475_v43 }
 0xae1   :  { %v16724_v51 = vsel %vm583_vm2, %v25008_v17, %v16473_v62 }
 0xae3   :  { %v16571_v34 = vpop.permute.xlu1 %16570 }
 0xae4   :  { %v16569_v36 = vpop.permute.xlu0 %16568  ;;  %v23729_v28 = vsel %vm16736_vm3, %v16725_v3, %v16571_v34 }
 0xae5   :  { %v23732_v22 = vsel %vm16736_vm3, %v16724_v51, %v16569_v36 }
 0xae7   :  { %v16479_v39 = vpop.permute.xlu1 %16478 }
 0xae8   :  { %v16477_v38 = vpop.permute.xlu0 %16476  ;;  %v16727_v33 = vsel %vm583_vm2, %v25009_v47, %v16479_v39 }
 0xae9   :  { %v16726_v9 = vsel %vm583_vm2, %v25010_v52, %v16477_v38 }
 0xaeb   :  { %v16575_v11 = vpop.permute.xlu1 %16574 }
 0xaec   :  { %v16573_v1 = vpop.permute.xlu0 %16572  ;;  %v23739_v15 = vsel %vm16736_vm3, %v16727_v33, %v16575_v11 }
 0xaed   :  { %v23742_v7 = vsel %vm16736_vm3, %v16726_v9, %v16573_v1 }
 0xaef   :  { %v16483_v23 = vpop.permute.xlu1 %16482 }
 0xaf0   :  { %v16481_v5 = vpop.permute.xlu0 %16480  ;;  %v16729_v32 = vsel %vm583_vm2, %v25011_v26, %v16483_v23 }
 0xaf1   :  { %v16728_v14 = vsel %vm583_vm2, %v25012_v0, %v16481_v5 }
 0xaf3   :  { %v16579_v2 = vpop.permute.xlu1 %16578 }
 0xaf4   :  { %v16577_v20 = vpop.permute.xlu0 %16576  ;;  %v23749_v57 = vsel %vm16736_vm3, %v16729_v32, %v16579_v2 }
 0xaf5   :  { %v23752_v18 = vsel %vm16736_vm3, %v16728_v14, %v16577_v20 }
 0xb58   :  { %v14672_v50 = vpop.f32.mrb[192].mxu0 }
 0xb59   :  { %v14748_v61 = vpop.f32.mrb[216].mxu1  ;;  %16640 = vrot.lane.b32.xlu0 %v14672_v50, %s20326_s22  ;;  %v19593_v49 = vpop.f32.mrb[193].mxu0 }
 0xb5a   :  { %v19598_v44 = vpop.f32.mrb[217].mxu1  ;;  %16642 = vrot.lane.b32.xlu1 %v14748_v61, %s20326_s22  ;;  %v23790_v49 = vpop.permute.xlu0 %16484 }
 0xb5b   :  { %v23792_v44 = vpop.permute.xlu1 %16486 }
 0xb5c   :  { %v14824_v16 = vpop.f32.mrb[194].mxu0 }
 0xb5d   :  { %16644 = vrot.lane.b32.xlu0 %v14824_v16, %s20326_s22  ;;  %v19603_v45 = vpop.f32.mrb[195].mxu0 }
 0xb5e   :  { %v23794_v16 = vpop.permute.xlu0 %16580 }
 0xb5f   :  { %v23796_v45 = vpop.permute.xlu1 %16582 }
 0xb60   :  { %v14900_v40 = vpop.f32.mrb[218].mxu1 }
 0xb61   :  { %v19608_v53 = vpop.f32.mrb[219].mxu1  ;;  %16646 = vrot.lane.b32.xlu1 %v14900_v40, %s20326_s22 }
 0xb62   :  { %v23798_v40 = vpop.permute.xlu0 %16488 }
 0xb63   :  { %v23800_v53 = vpop.permute.xlu1 %16490 }
 0xb64   :  { %v15052_v41 = vpop.f32.mrb[220].mxu1 }
 0xb65   :  { %v14976_v6 = vpop.f32.mrb[196].mxu0  ;;  %v19618_v19 = vpop.f32.mrb[221].mxu1  ;;  %16650 = vrot.lane.b32.xlu1 %v15052_v41, %s20326_s22 }
 0xb66   :  { %16648 = vrot.lane.b32.xlu0 %v14976_v6, %s20326_s22  ;;  %v19613_v55 = vpop.f32.mrb[197].mxu0  ;;  %v23802_v41 = vpop.permute.xlu0 %16584 }
 0xb67   :  { %v23804_v6 = vpop.permute.xlu1 %16586 }
 0xb68   :  { %v15204_v56 = vpop.f32.mrb[222].mxu1 }
 0xb69   :  { %v15128_v24 = vpop.f32.mrb[198].mxu0  ;;  %v19628_v10 = vpop.f32.mrb[223].mxu1  ;;  %16654 = vrot.lane.b32.xlu1 %v15204_v56, %s20326_s22 }
 0xb6a   :  { %16652 = vrot.lane.b32.xlu0 %v15128_v24, %s20326_s22  ;;  %v19623_v60 = vpop.f32.mrb[199].mxu0  ;;  %v23806_v19 = vpop.permute.xlu0 %16492 }
 0xb6b   :  { %v23808_v55 = vpop.permute.xlu1 %16494 }
 0xb6c   :  { %v15356_v43 = vpop.f32.mrb[224].mxu1 }
 0xb6d   :  { %v15280_v62 = vpop.f32.mrb[200].mxu0  ;;  %v19638_v13 = vpop.f32.mrb[225].mxu1  ;;  %16658 = vrot.lane.b32.xlu1 %v15356_v43, %s20326_s22 }
 0xb6e   :  { %16656 = vrot.lane.b32.xlu0 %v15280_v62, %s20326_s22  ;;  %v19633_v3 = vpop.f32.mrb[201].mxu0  ;;  %v23810_v56 = vpop.permute.xlu0 %16588 }
 0xb6f   :  { %v23812_v24 = vpop.permute.xlu1 %16590 }
 0xb70   :  { %v15508_v17 = vpop.f32.mrb[226].mxu1 }
 0xb71   :  { %v15432_v51 = vpop.f32.mrb[202].mxu0  ;;  %v19648_v34 = vpop.f32.mrb[227].mxu1  ;;  %16662 = vrot.lane.b32.xlu1 %v15508_v17, %s20326_s22 }
 0xb72   :  { %16660 = vrot.lane.b32.xlu0 %v15432_v51, %s20326_s22  ;;  %v19643_v36 = vpop.f32.mrb[203].mxu0 }
 0xb74   :  { %v15660_v39 = vpop.f32.mrb[228].mxu1 }
 0xb75   :  { %v15584_v38 = vpop.f32.mrb[204].mxu0  ;;  %v19658_v47 = vpop.f32.mrb[229].mxu1  ;;  %16666 = vrot.lane.b32.xlu1 %v15660_v39, %s20326_s22 }
 0xb76   :  { %16664 = vrot.lane.b32.xlu0 %v15584_v38, %s20326_s22  ;;  %v19653_v33 = vpop.f32.mrb[205].mxu0 }
 0xb79   :  { %v15736_v52 = vpop.f32.mrb[206].mxu0  ;;  %v15812_v9 = vpop.f32.mrb[230].mxu1 }
 0xb7a   :  { %16670 = vrot.lane.b32.xlu1 %v15812_v9, %s20326_s22  ;;  %v19668_v11 = vpop.f32.mrb[231].mxu1  ;;  %16668 = vrot.lane.b32.xlu0 %v15736_v52, %s20326_s22  ;;  %v19663_v1 = vpop.f32.mrb[207].mxu0 }
 0xb7d   :  { %v15888_v23 = vpop.f32.mrb[208].mxu0  ;;  %v15964_v5 = vpop.f32.mrb[232].mxu1 }
 0xb7e   :  { %16674 = vrot.lane.b32.xlu1 %v15964_v5, %s20326_s22  ;;  %v19678_v26 = vpop.f32.mrb[233].mxu1  ;;  %16672 = vrot.lane.b32.xlu0 %v15888_v23, %s20326_s22  ;;  %v19673_v32 = vpop.f32.mrb[209].mxu0 }
 0xb81   :  { %v16040_v0 = vpop.f32.mrb[210].mxu0  ;;  %v16116_v14 = vpop.f32.mrb[234].mxu1 }
 0xb82   :  { %16678 = vrot.lane.b32.xlu1 %v16116_v14, %s20326_s22  ;;  %v19688_v2 = vpop.f32.mrb[235].mxu1  ;;  %16676 = vrot.lane.b32.xlu0 %v16040_v0, %s20326_s22  ;;  %v19683_v20 = vpop.f32.mrb[211].mxu0  ;;  %v25014_v0 = vld [vmem:[#allocation66_spill] sm:$0xff] }
 0xb83   :  { %v16730_v14 = vsel %vm583_vm2, %v25014_v0, %v23790_v49 }
 0xb85   :  { %v16192_v63 = vpop.f32.mrb[212].mxu0  ;;  %v16268_v35 = vpop.f32.mrb[236].mxu1 }
 0xb86   :  { %16682 = vrot.lane.b32.xlu1 %v16268_v35, %s20326_s22  ;;  %v19698_v58 = vpop.f32.mrb[237].mxu1  ;;  %16680 = vrot.lane.b32.xlu0 %v16192_v63, %s20326_s22  ;;  %v19693_v48 = vpop.f32.mrb[213].mxu0 }
 0xb87   :  { %v25015_v58 = vld [vmem:[#allocation75_spill] sm:$0xff] }
 0xb88   :  { %v16733_v48 = vsel %vm583_vm2, %v25015_v58, %v23800_v53 }
 0xb89   :  { %v16344_v31 = vpop.f32.mrb[214].mxu0  ;;  %v16420_v59 = vpop.f32.mrb[238].mxu1 }
 0xb8a   :  { %16686 = vrot.lane.b32.xlu1 %v16420_v59, %s20326_s22  ;;  %v19708_v50 = vpop.f32.mrb[239].mxu1  ;;  %16684 = vrot.lane.b32.xlu0 %v16344_v31, %s20326_s22  ;;  %v19703_v61 = vpop.f32.mrb[215].mxu0  ;;  %v25016_v31 = vld [vmem:[#allocation64_spill] sm:$0xff] }
 0xb8b   :  { %v16732_v59 = vsel %vm583_vm2, %v25016_v31, %v23798_v40  ;;  %v16758_v50 = vsel %vm16736_vm3, %v16733_v48, %v23804_v6  ;;  %v25017_v40 = vld [vmem:[#allocation78_spill] sm:$0xff]  ;;  %v25018_v6 = vld [vmem:[#allocation76_spill] sm:$0xff] }
 0xb8c   :  { %v16757_v61 = vsel %vm16736_vm3, %v16732_v59, %v23802_v41  ;;  %v16735_v53 = vsel %vm583_vm2, %v25017_v40, %v23808_v55 }
 0xb8d   :  { %v16760_v41 = vsel %vm16736_vm3, %v16735_v53, %v23812_v24 }
 0xbcb   :  { %v16641_v10 = vpop.permute.xlu0 %16640 }
 0xbcc   :  { %v16643_v60 = vpop.permute.xlu1 %16642  ;;  %v23816_v43 = vsel %vm16761_vm4, %v23665_v21, %v16641_v10  ;;  %v16734_v10 = vsel %vm583_vm2, %v25018_v6, %v23806_v19  ;;  %v23985_v19 = vld [vmem:[%s24382_s5] ss:$0 sm:$0xff] }
 0xbcd   :  { %v23820_v62 = vsel %vm16761_vm4, %v23662_v54, %v16643_v60  ;;  %19717 = vmatprep.mubr.msk.f32.mxu0 %vm127_vm0, %v23816_v43  ;;  %v16759_v60 = vsel %vm16736_vm3, %v16734_v10, %v23810_v56 }
 0xbce   :  { %19718 = vmatmul.mubr.msk.f32.vlgmr.msra.gmra.mrb[216].mxu0 %vm127_vm0, %v23820_v62 }
 0xbcf   :  { %v16645_v13 = vpop.permute.xlu0 %16644 }
 0xbd0   :  { %v23828_v3 = vsel %vm16761_vm4, %v23682_v30, %v16645_v13 }
 0xbd1   :  { %19720 = vmatprep.mubr.msk.f32.mxu0 %vm127_vm0, %v23828_v3 }
 0xbd3   :  { %v16647_v21 = vpop.permute.xlu1 %16646 }
 0xbd4   :  { %v23834_v17 = vsel %vm16761_vm4, %v23679_v8, %v16647_v21 }
 0xbd5   :  { %19721 = vmatmul.mubr.msk.f32.gmra.mrb[218].mxu0 %vm127_vm0, %v23834_v17 }
 0xbd7   :  { %v16651_v54 = vpop.permute.xlu1 %16650 }
 0xbd8   :  { %v23840_v51 = vsel %vm16761_vm4, %v23689_v25, %v16651_v54  ;;  %v16649_v34 = vpop.permute.xlu0 %16648 }
 0xbd9   :  { %v23844_v30 = vsel %vm16761_vm4, %v23692_v46, %v16649_v34 }
 0xbda   :  { %19723 = vmatprep.mubr.msk.f32.mxu0 %vm127_vm0, %v23844_v30 }
 0xbdb   :  { %19724 = vmatmul.mubr.msk.f32.gmra.mrb[220].mxu0 %vm127_vm0, %v23840_v51  ;;  %v16655_v8 = vpop.permute.xlu1 %16654 }
 0xbdc   :  { %v23852_v36 = vsel %vm16761_vm4, %v23699_v37, %v16655_v8  ;;  %v16653_v39 = vpop.permute.xlu0 %16652 }
 0xbdd   :  { %v23856_v25 = vsel %vm16761_vm4, %v23702_v12, %v16653_v39 }
 0xbde   :  { %19726 = vmatprep.mubr.msk.f32.mxu0 %vm127_vm0, %v23856_v25 }
 0xbdf   :  { %19727 = vmatmul.mubr.msk.f32.gmra.mrb[222].mxu0 %vm127_vm0, %v23852_v36  ;;  %v16659_v46 = vpop.permute.xlu1 %16658 }
 0xbe0   :  { %v23864_v38 = vsel %vm16761_vm4, %v23709_v29, %v16659_v46  ;;  %v16657_v47 = vpop.permute.xlu0 %16656 }
 0xbe1   :  { %v23868_v37 = vsel %vm16761_vm4, %v23712_v4, %v16657_v47 }
 0xbe2   :  { %19729 = vmatprep.mubr.msk.f32.mxu0 %vm127_vm0, %v23868_v37 }
 0xbe3   :  { %19730 = vmatmul.mubr.msk.f32.gmra.mrb[224].mxu0 %vm127_vm0, %v23864_v38  ;;  %v16663_v12 = vpop.permute.xlu1 %16662 }
 0xbe4   :  { %v23876_v33 = vsel %vm16761_vm4, %v23719_v42, %v16663_v12  ;;  %v16661_v52 = vpop.permute.xlu0 %16660 }
 0xbe5   :  { %v23880_v29 = vsel %vm16761_vm4, %v23722_v27, %v16661_v52  ;;  %v23994_v52 = vld [vmem:[%s24383_s6] ss:$0 sm:$0xff] }
 0xbe6   :  { %19732 = vmatprep.mubr.msk.f32.mxu0 %vm127_vm0, %v23880_v29 }
 0xbe7   :  { %19733 = vmatmul.mubr.msk.f32.gmra.mrb[226].mxu0 %vm127_vm0, %v23876_v33  ;;  %v16667_v4 = vpop.permute.xlu1 %16666 }
 0xbe8   :  { %v23888_v9 = vsel %vm16761_vm4, %v23729_v28, %v16667_v4  ;;  %v16665_v11 = vpop.permute.xlu0 %16664 }
 0xbe9   :  { %v23892_v42 = vsel %vm16761_vm4, %v23732_v22, %v16665_v11 }
 0xbea   :  { %19735 = vmatprep.mubr.msk.f32.mxu0 %vm127_vm0, %v23892_v42 }
 0xbeb   :  { %19736 = vmatmul.mubr.msk.f32.gmra.mrb[228].mxu0 %vm127_vm0, %v23888_v9 }
 0xbec   :  { %v16671_v27 = vpop.permute.xlu1 %16670  ;;  %v16669_v1 = vpop.permute.xlu0 %16668 }
 0xbed   :  { %v23900_v23 = vsel %vm16761_vm4, %v23739_v15, %v16671_v27  ;;  %v23904_v28 = vsel %vm16761_vm4, %v23742_v7, %v16669_v1  ;;  %v25013_v7 = vld [vmem:[#allocation77_spill] sm:$0xff] }
 0xbee   :  { %19738 = vmatprep.mubr.msk.f32.mxu0 %vm127_vm0, %v23904_v28  ;;  %v16731_v32 = vsel %vm583_vm2, %v25013_v7, %v23792_v44 }
 0xbef   :  { %19739 = vmatmul.mubr.msk.f32.gmra.mrb[230].mxu0 %vm127_vm0, %v23900_v23 }
 0xbf0   :  { %v16675_v22 = vpop.permute.xlu1 %16674  ;;  %v16673_v5 = vpop.permute.xlu0 %16672 }
 0xbf1   :  { %v23912_v26 = vsel %vm16761_vm4, %v23749_v57, %v16675_v22  ;;  %v23916_v15 = vsel %vm16761_vm4, %v23752_v18, %v16673_v5  ;;  %v16756_v57 = vsel %vm16736_vm3, %v16731_v32, %v23796_v45  ;;  %v16755_v18 = vsel %vm16736_vm3, %v16730_v14, %v23794_v16 }
 0xbf2   :  { %19741 = vmatprep.mubr.msk.f32.mxu0 %vm127_vm0, %v23916_v15 }
 0xbf3   :  { %19742 = vmatmul.mubr.msk.f32.gmra.mrb[232].mxu0 %vm127_vm0, %v23912_v26 }
 0xbf4   :  { %v16679_v2 = vpop.permute.xlu1 %16678  ;;  %v16677_v20 = vpop.permute.xlu0 %16676 }
 0xbf5   :  { %v23933_v63 = vsel %vm16761_vm4, %v16756_v57, %v16679_v2  ;;  %v23936_v35 = vsel %vm16761_vm4, %v16755_v18, %v16677_v20 }
 0xbf6   :  { %19744 = vmatprep.mubr.msk.f32.mxu0 %vm127_vm0, %v23936_v35 }
 0xbf7   :  { %19745 = vmatmul.mubr.msk.f32.gmra.mrb[234].mxu0 %vm127_vm0, %v23933_v63 }
 0xbf8   :  { %v16683_v49 = vpop.permute.xlu1 %16682  ;;  %v16681_v44 = vpop.permute.xlu0 %16680 }
 0xbf9   :  { %v23953_v16 = vsel %vm16761_vm4, %v16758_v50, %v16683_v49  ;;  %v23956_v45 = vsel %vm16761_vm4, %v16757_v61, %v16681_v44 }
 0xbfa   :  { %19747 = vmatprep.mubr.msk.f32.mxu0 %vm127_vm0, %v23956_v45 }
 0xbfb   :  { %19748 = vmatmul.mubr.msk.f32.gmra.mrb[236].mxu0 %vm127_vm0, %v23953_v16 }
 0xbfc   :  { %v16687_v13 = vpop.permute.xlu1 %16686  ;;  %v16685_v21 = vpop.permute.xlu0 %16684 }
 0xbfd   :  { %v23973_v54 = vsel %vm16761_vm4, %v16760_v41, %v16687_v13  ;;  %v23976_v55 = vsel %vm16761_vm4, %v16759_v60, %v16685_v21 }
 0xbfe   :  { %19750 = vmatprep.mubr.msk.f32.mxu0 %vm127_vm0, %v23976_v55 }
 0xbff   :  { %19751 = vmatmul.mubr.msk.f32.gmra.mrb[238].mxu0 %vm127_vm0, %v23973_v54 }
 0xca1   :  { %v19719_v56 = vpop.f32.mrb[216].mxu0 }
 0xca2   :  { %v16941_v24 = vadd.f32 %v19719_v56, %v23985_v19  ;;  %v16935_v34 = vpop.f32.mrb[217].mxu0 }
 0xca3   :  { %v16936_v8 = vadd.f32 %v23985_v19, %v16935_v34 }
 0xca4   :  { %20175 = vtanh.f32 %v16941_v24 }
 0xca5   :  { %20177 = vtanh.f32 %v16936_v8 }
 0xca8   :  { %v19722_v39 = vpop.f32.mrb[218].mxu0 }
 0xca9   :  { %v16951_v46 = vadd.f32 %v19722_v39, %v23985_v19  ;;  %v16945_v47 = vpop.f32.mrb[219].mxu0 }
 0xcaa   :  { %v16946_v12 = vadd.f32 %v23985_v19, %v16945_v47 }
 0xcab   :  { %20179 = vtanh.f32 %v16951_v46 }
 0xcac   :  { %20181 = vtanh.f32 %v16946_v12 }
 0xcae   :  { %v20176_v4 = vpop.eup %20175  ;;  %v19725_v11 = vpop.f32.mrb[220].mxu0 }
 0xcaf   :  { %v20178_v27 = vpop.eup %20177  ;;  %v16961_v1 = vadd.f32 %v19725_v11, %v23985_v19  ;;  %v16955_v22 = vpop.f32.mrb[221].mxu0  ;;  %v17086_v5 = vmul.f32 %v20176_v4, %v23994_v52 }
 0xcb0   :  { %v16956_v7 = vadd.f32 %v23985_v19, %v16955_v22  ;;  %v17085_v32 = vmul.f32 %v20178_v27, %v23994_v52 }
 0xcb1   :  { %20183 = vtanh.f32 %v16961_v1  ;;  %v17112_v0 = vsel %vm16736_vm3, %v17086_v5, 0.0 }
 0xcb2   :  { %20185 = vtanh.f32 %v16956_v7  ;;  %v19728_v14 = vpop.f32.mrb[222].mxu0  ;;  %17113 = vadd.xlane.f32.xlu1 %v17112_v0  ;;  %v17109_v57 = vsel %vm16736_vm3, %v17085_v32, 0.0 }
 0xcb3   :  { %v16971_v18 = vadd.f32 %v19728_v14, %v23985_v19  ;;  %v16965_v2 = vpop.f32.mrb[223].mxu0  ;;  %17110 = vadd.xlane.f32.xlu0 %v17109_v57 }
 0xcb4   :  { %v16966_v20 = vadd.f32 %v23985_v19, %v16965_v2 }
 0xcb5   :  { %v20180_v58 = vpop.eup %20179  ;;  %20187 = vtanh.f32 %v16971_v18 }
 0xcb6   :  { %v20182_v48 = vpop.eup %20181  ;;  %20189 = vtanh.f32 %v16966_v20  ;;  %v19731_v31 = vpop.f32.mrb[224].mxu0  ;;  %v17088_v59 = vmul.f32 %v20180_v58, %v23994_v52 }
 0xcb7   :  { %v16981_v50 = vadd.f32 %v19731_v31, %v23985_v19  ;;  %v16975_v61 = vpop.f32.mrb[225].mxu0  ;;  %v17087_v49 = vmul.f32 %v20182_v48, %v23994_v52 }
 0xcb8   :  { %v16976_v44 = vadd.f32 %v23985_v19, %v16975_v61  ;;  %v17118_v40 = vsel %vm16736_vm3, %v17088_v59, 0.0 }
 0xcb9   :  { %20191 = vtanh.f32 %v16981_v50  ;;  %17119 = vadd.xlane.f32.xlu1 %v17118_v40  ;;  %v17115_v53 = vsel %vm16736_vm3, %v17087_v49, 0.0 }
 0xcba   :  { %20193 = vtanh.f32 %v16976_v44  ;;  %v19734_v6 = vpop.f32.mrb[226].mxu0  ;;  %17116 = vadd.xlane.f32.xlu0 %v17115_v53 }
 0xcbb   :  { %v20184_v10 = vpop.eup %20183  ;;  %v16991_v41 = vadd.f32 %v19734_v6, %v23985_v19  ;;  %v16985_v60 = vpop.f32.mrb[227].mxu0 }
 0xcbc   :  { %v20186_v13 = vpop.eup %20185  ;;  %v16986_v21 = vadd.f32 %v23985_v19, %v16985_v60  ;;  %v17090_v56 = vmul.f32 %v20184_v10, %v23994_v52 }
 0xcbd   :  { %20195 = vtanh.f32 %v16991_v41  ;;  %v17089_v24 = vmul.f32 %v20186_v13, %v23994_v52 }
 0xcbe   :  { %20197 = vtanh.f32 %v16986_v21  ;;  %v19737_v34 = vpop.f32.mrb[228].mxu0  ;;  %v17124_v8 = vsel %vm16736_vm3, %v17090_v56, 0.0 }
 0xcbf   :  { %v20188_v39 = vpop.eup %20187  ;;  %v17001_v46 = vadd.f32 %v19737_v34, %v23985_v19  ;;  %17125 = vadd.xlane.f32.xlu1 %v17124_v8  ;;  %v16995_v47 = vpop.f32.mrb[229].mxu0  ;;  %v17121_v12 = vsel %vm16736_vm3, %v17089_v24, 0.0 }
 0xcc0   :  { %v20190_v4 = vpop.eup %20189  ;;  %v16996_v11 = vadd.f32 %v23985_v19, %v16995_v47  ;;  %17122 = vadd.xlane.f32.xlu0 %v17121_v12  ;;  %v17092_v27 = vmul.f32 %v20188_v39, %v23994_v52 }
 0xcc1   :  { %20199 = vtanh.f32 %v17001_v46  ;;  %v17091_v1 = vmul.f32 %v20190_v4, %v23994_v52 }
 0xcc2   :  { %20201 = vtanh.f32 %v16996_v11  ;;  %v19740_v22 = vpop.f32.mrb[230].mxu0  ;;  %v17130_v5 = vsel %vm16736_vm3, %v17092_v27, 0.0 }
 0xcc3   :  { %v20192_v7 = vpop.eup %20191  ;;  %17131 = vadd.xlane.f32.xlu1 %v17130_v5  ;;  %v17005_v32 = vpop.f32.mrb[231].mxu0  ;;  %v17127_v0 = vsel %vm16736_vm3, %v17091_v1, 0.0  ;;  %v17011_v4 = vadd.f32 %v19740_v22, %v23985_v19 }
 0xcc4   :  { %v20194_v14 = vpop.eup %20193  ;;  %v17006_v57 = vadd.f32 %v23985_v19, %v17005_v32  ;;  %17128 = vadd.xlane.f32.xlu0 %v17127_v0  ;;  %v17094_v18 = vmul.f32 %v20192_v7, %v23994_v52 }
 0xcc5   :  { %v17093_v59 = vmul.f32 %v20194_v14, %v23994_v52 }
 0xcc6   :  { %20203 = vtanh.f32 %v17006_v57  ;;  %v19743_v2 = vpop.f32.mrb[232].mxu0  ;;  %v17136_v20 = vsel %vm16736_vm3, %v17094_v18, 0.0 }
 0xcc7   :  { %v20196_v58 = vpop.eup %20195  ;;  %v17021_v48 = vadd.f32 %v19743_v2, %v23985_v19  ;;  %v17015_v31 = vpop.f32.mrb[233].mxu0  ;;  %v17133_v41 = vsel %vm16736_vm3, %v17093_v59, 0.0 }
 0xcc8   :  { %v20198_v50 = vpop.eup %20197  ;;  %v17016_v61 = vadd.f32 %v23985_v19, %v17015_v31  ;;  %17137 = vadd.xlane.f32.xlu0 %v17136_v20  ;;  %v17096_v60 = vmul.f32 %v20196_v58, %v23994_v52 }
 0xcc9   :  { %20205 = vtanh.f32 %v17021_v48  ;;  %v17095_v49 = vmul.f32 %v20198_v50, %v23994_v52 }
 0xcca   :  { %20207 = vtanh.f32 %v17016_v61  ;;  %v19746_v44 = vpop.f32.mrb[234].mxu0  ;;  %v17142_v46 = vsel %vm16736_vm3, %v17096_v60, 0.0 }
 0xccb   :  { %v20200_v40 = vpop.eup %20199  ;;  %v17031_v53 = vadd.f32 %v19746_v44, %v23985_v19  ;;  %v17025_v6 = vpop.f32.mrb[235].mxu0  ;;  %v17139_v10 = vsel %vm16736_vm3, %v17095_v49, 0.0 }
 0xccc   :  { %v20202_v13 = vpop.eup %20201  ;;  %v17026_v21 = vadd.f32 %v23985_v19, %v17025_v6  ;;  %17140 = vadd.xlane.f32.xlu1 %v17139_v10  ;;  %17134 = vadd.xlane.f32.xlu0 %v17133_v41  ;;  %v17098_v47 = vmul.f32 %v20200_v40, %v23994_v52 }
 0xccd   :  { %20209 = vtanh.f32 %v17031_v53  ;;  %v17097_v56 = vmul.f32 %v20202_v13, %v23994_v52 }
 0xcce   :  { %20211 = vtanh.f32 %v17026_v21  ;;  %v19749_v24 = vpop.f32.mrb[236].mxu0  ;;  %v17148_v14 = vsel %vm16736_vm3, %v17098_v47, 0.0 }
 0xccf   :  { %v17041_v34 = vadd.f32 %v19749_v24, %v23985_v19  ;;  %v17035_v8 = vpop.f32.mrb[237].mxu0  ;;  %v17145_v39 = vsel %vm16736_vm3, %v17097_v56, 0.0 }
 0xcd0   :  { %v20204_v12 = vpop.eup %20203  ;;  %v17036_v11 = vadd.f32 %v23985_v19, %v17035_v8  ;;  %17146 = vadd.xlane.f32.xlu1 %v17145_v39  ;;  %17143 = vadd.xlane.f32.xlu0 %v17142_v46 }
 0xcd1   :  { %20213 = vtanh.f32 %v17041_v34  ;;  %v17099_v27 = vmul.f32 %v20204_v12, %v23994_v52 }
 0xcd2   :  { %20215 = vtanh.f32 %v17036_v11  ;;  %v19752_v1 = vpop.f32.mrb[238].mxu0 }
 0xcd3   :  { %v20206_v5 = vpop.eup %20205  ;;  %v17051_v7 = vadd.f32 %v19752_v1, %v23985_v19  ;;  %v17045_v32 = vpop.f32.mrb[239].mxu0  ;;  %v17151_v0 = vsel %vm16736_vm3, %v17099_v27, 0.0  ;;  %20217 = vtanh.f32 %v17011_v4 }
 0xcd4   :  { %v20208_v57 = vpop.eup %20207  ;;  %v17046_v22 = vadd.f32 %v23985_v19, %v17045_v32  ;;  %17152 = vadd.xlane.f32.xlu1 %v17151_v0  ;;  %17149 = vadd.xlane.f32.xlu0 %v17148_v14  ;;  %v17102_v18 = vmul.f32 %v20206_v5, %v23994_v52 }
 0xcd5   :  { %20219 = vtanh.f32 %v17051_v7  ;;  %v17101_v2 = vmul.f32 %v20208_v57, %v23994_v52 }
 0xcd6   :  { %20221 = vtanh.f32 %v17046_v22  ;;  %v17160_v20 = vsel %vm16736_vm3, %v17102_v18, 0.0 }
 0xcd7   :  { %v20210_v58 = vpop.eup %20209  ;;  %v17157_v48 = vsel %vm16736_vm3, %v17101_v2, 0.0 }
 0xcd8   :  { %v20212_v31 = vpop.eup %20211  ;;  %17161 = vadd.xlane.f32.xlu1 %v17160_v20  ;;  %17158 = vadd.xlane.f32.xlu0 %v17157_v48  ;;  %v17104_v59 = vmul.f32 %v20210_v58, %v23994_v52 }
 0xcd9   :  { %v17103_v19 = vmul.f32 %v20212_v31, %v23994_v52 }
 0xcda   :  { %v17166_v50 = vsel %vm16736_vm3, %v17104_v59, 0.0 }
 0xcdb   :  { %v20214_v61 = vpop.eup %20213  ;;  %v17163_v49 = vsel %vm16736_vm3, %v17103_v19, 0.0 }
 0xcdc   :  { %v20216_v44 = vpop.eup %20215  ;;  %17167 = vadd.xlane.f32.xlu1 %v17166_v50  ;;  %17164 = vadd.xlane.f32.xlu0 %v17163_v49  ;;  %v17106_v40 = vmul.f32 %v20214_v61, %v23994_v52 }
 0xcdd   :  { %v17105_v53 = vmul.f32 %v20216_v44, %v23994_v52  ;;  %v20218_v6 = vpop.eup %20217 }
 0xcde   :  { %v17172_v10 = vsel %vm16736_vm3, %v17106_v40, 0.0  ;;  %v17100_v8 = vmul.f32 %v20218_v6, %v23994_v52 }
 0xcdf   :  { %v20220_v41 = vpop.eup %20219  ;;  %v17169_v60 = vsel %vm16736_vm3, %v17105_v53, 0.0 }
 0xce0   :  { %v20222_v13 = vpop.eup %20221  ;;  %17173 = vadd.xlane.f32.xlu1 %v17172_v10  ;;  %17170 = vadd.xlane.f32.xlu0 %v17169_v60  ;;  %v17108_v21 = vmul.f32 %v20220_v41, %v23994_v52  ;;  %v17154_v39 = vsel %vm16736_vm3, %v17100_v8, 0.0 }
 0xce1   :  { %v17107_v56 = vmul.f32 %v20222_v13, %v23994_v52 }
 0xce2   :  { %v17178_v24 = vsel %vm16736_vm3, %v17108_v21, 0.0 }
 0xce3   :  { %v17175_v34 = vsel %vm16736_vm3, %v17107_v56, 0.0 }
 0xce4   :  { %17179 = vadd.xlane.f32.xlu1 %v17178_v24  ;;  %17176 = vadd.xlane.f32.xlu0 %v17175_v34 }
 0xce8   :  { %17155 = vadd.xlane.f32.xlu0 %v17154_v39 }
 0xd3f   :  { %v17114_v46 = vpop.xlane.xlu1 %17113 }
 0xd40   :  { %v17187_v47 = vrot.slane %v17114_v46, 4  ;;  %v17111_v12 = vpop.xlane.xlu0 %17110 }
 0xd41   :  { %v17181_v4 = vrot.slane %v17111_v12, 4 }
 0xd42   :  { %v17188_v11 = vmax.f32 %v17114_v46, %v17187_v47 }
 0xd43   :  { %v17182_v27 = vmax.f32 %v17111_v12, %v17181_v4 }
 0xd44   :  { %v17189_v1 = vrot.slane %v17188_v11, 2 }
 0xd45   :  { %v17183_v5 = vrot.slane %v17182_v27, 2 }
 0xd46   :  { %v17190_v7 = vmax.f32 %v17188_v11, %v17189_v1  ;;  %v17120_v32 = vpop.xlane.xlu1 %17119 }
 0xd47   :  { %v17184_v0 = vmax.f32 %v17182_v27, %v17183_v5  ;;  %v17199_v14 = vrot.slane %v17120_v32, 4  ;;  %v17117_v57 = vpop.xlane.xlu0 %17116 }
 0xd48   :  { %v17191_v22 = vrot.slane %v17190_v7, 1  ;;  %v17193_v52 = vrot.slane %v17117_v57, 4 }
 0xd49   :  { %v17185_v18 = vrot.slane %v17184_v0, 1  ;;  %v17200_v2 = vmax.f32 %v17120_v32, %v17199_v14 }
 0xd4a   :  { %v17192_v20 = vmax.f32 %v17190_v7, %v17191_v22  ;;  %v17194_v58 = vmax.f32 %v17117_v57, %v17193_v52 }
 0xd4b   :  { %v17186_v48 = vmax.f32 %v17184_v0, %v17185_v18  ;;  %v17201_v31 = vrot.slane %v17200_v2, 2 }
 0xd4c   :  { %v17326_v59 = vsub.f32 %v17114_v46, %v17192_v20  ;;  %v17195_v19 = vrot.slane %v17194_v58, 2  ;;  %v17126_v50 = vpop.xlane.xlu1 %17125 }
 0xd4d   :  { %v17325_v61 = vsub.f32 %v17111_v12, %v17186_v48  ;;  %v17202_v49 = vmax.f32 %v17200_v2, %v17201_v31  ;;  %v17211_v44 = vrot.slane %v17126_v50, 4  ;;  %v17123_v40 = vpop.xlane.xlu0 %17122 }
 0xd4e   :  { %v17351_v53 = vmul.f32 1.442695, %v17326_v59  ;;  %v17196_v6 = vmax.f32 %v17194_v58, %v17195_v19  ;;  %v17205_v10 = vrot.slane %v17123_v40, 4 }
 0xd4f   :  { %v17349_v41 = vmul.f32 1.442695, %v17325_v61  ;;  %v17203_v60 = vrot.slane %v17202_v49, 1  ;;  %v17212_v13 = vmax.f32 %v17126_v50, %v17211_v44 }
 0xd50   :  { %20223 = vpow2.f32 %v17351_v53  ;;  %v17197_v21 = vrot.slane %v17196_v6, 1  ;;  %v17206_v56 = vmax.f32 %v17123_v40, %v17205_v10  ;;  %v17132_v24 = vpop.xlane.xlu1 %17131 }
 0xd51   :  { %20225 = vpow2.f32 %v17349_v41  ;;  %v17204_v34 = vmax.f32 %v17202_v49, %v17203_v60  ;;  %v17213_v8 = vrot.slane %v17212_v13, 2  ;;  %v17223_v39 = vrot.slane %v17132_v24, 4  ;;  %v17129_v46 = vpop.xlane.xlu0 %17128 }
 0xd52   :  { %v17198_v47 = vmax.f32 %v17196_v6, %v17197_v21  ;;  %v17207_v12 = vrot.slane %v17206_v56, 2  ;;  %v17217_v4 = vrot.slane %v17129_v46, 4 }
 0xd53   :  { %v17328_v11 = vsub.f32 %v17120_v32, %v17204_v34  ;;  %v17214_v27 = vmax.f32 %v17212_v13, %v17213_v8  ;;  %v17224_v1 = vmax.f32 %v17132_v24, %v17223_v39 }
 0xd54   :  { %v17327_v5 = vsub.f32 %v17117_v57, %v17198_v47  ;;  %v17208_v7 = vmax.f32 %v17206_v56, %v17207_v12  ;;  %v17218_v0 = vmax.f32 %v17129_v46, %v17217_v4 }
 0xd55   :  { %v17355_v14 = vmul.f32 1.442695, %v17328_v11  ;;  %v17215_v22 = vrot.slane %v17214_v27, 1  ;;  %v17225_v52 = vrot.slane %v17224_v1, 2  ;;  %v24064_v18 = vpop.xlane.xlu0 %17137 }
 0xd56   :  { %v17353_v2 = vmul.f32 1.442695, %v17327_v5  ;;  %v17209_v20 = vrot.slane %v17208_v7, 1  ;;  %v17219_v58 = vrot.slane %v17218_v0, 2  ;;  %v17235_v48 = vrot.slane %v24064_v18, 4 }
 0xd57   :  { %20227 = vpow2.f32 %v17355_v14  ;;  %v17216_v31 = vmax.f32 %v17214_v27, %v17215_v22  ;;  %v17226_v59 = vmax.f32 %v17224_v1, %v17225_v52 }
 0xd58   :  { %20229 = vpow2.f32 %v17353_v2  ;;  %v17210_v32 = vmax.f32 %v17208_v7, %v17209_v20  ;;  %v17220_v19 = vmax.f32 %v17218_v0, %v17219_v58  ;;  %v17236_v57 = vmax.f32 %v24064_v18, %v17235_v48 }
 0xd59   :  { %v17330_v61 = vsub.f32 %v17126_v50, %v17216_v31  ;;  %v17227_v49 = vrot.slane %v17226_v59, 1  ;;  %v24068_v44 = vpop.xlane.xlu1 %17140  ;;  %v24070_v53 = vpop.xlane.xlu0 %17134 }
 0xd5a   :  { %v24072_v6 = vpop.eup %20223  ;;  %v17329_v10 = vsub.f32 %v17123_v40, %v17210_v32  ;;  %v17221_v41 = vrot.slane %v17220_v19, 1  ;;  %v17237_v60 = vrot.slane %v17236_v57, 2  ;;  %v17241_v13 = vrot.slane %v24068_v44, 4 }
 0xd5b   :  { %v24075_v21 = vpop.eup %20225  ;;  %v17403_v56 = vrot.slane %v24072_v6, 4  ;;  %v17359_v34 = vmul.f32 1.442695, %v17330_v61  ;;  %v17228_v8 = vmax.f32 %v17226_v59, %v17227_v49  ;;  %v17229_v50 = vrot.slane %v24070_v53, 4 }
 0xd5c   :  { %v17397_v39 = vrot.slane %v24075_v21, 4  ;;  %v17357_v47 = vmul.f32 1.442695, %v17329_v10  ;;  %v17222_v12 = vmax.f32 %v17220_v19, %v17221_v41  ;;  %v17238_v4 = vmax.f32 %v17236_v57, %v17237_v60 }
 0xd5d   :  { %v17404_v11 = vadd.f32 %v24072_v6, %v17403_v56  ;;  %20231 = vpow2.f32 %v17359_v34  ;;  %v17332_v40 = vsub.f32 %v17132_v24, %v17228_v8  ;;  %v17242_v27 = vmax.f32 %v24068_v44, %v17241_v13  ;;  %v24082_v1 = vpop.xlane.xlu1 %17146 }
 0xd5e   :  { %v17398_v5 = vadd.f32 %v24075_v21, %v17397_v39  ;;  %20233 = vpow2.f32 %v17357_v47  ;;  %v17331_v7 = vsub.f32 %v17129_v46, %v17222_v12  ;;  %v17239_v0 = vrot.slane %v17238_v4, 1 }
 0xd5f   :  { %v17405_v14 = vrot.slane %v17404_v11, 2  ;;  %v17363_v22 = vmul.f32 1.442695, %v17332_v40  ;;  %v17243_v52 = vrot.slane %v17242_v27, 2  ;;  %v17230_v2 = vmax.f32 %v24070_v53, %v17229_v50 }
 0xd60   :  { %v17399_v20 = vrot.slane %v17398_v5, 2  ;;  %v17361_v58 = vmul.f32 1.442695, %v17331_v7  ;;  %v17240_v48 = vmax.f32 %v17238_v4, %v17239_v0  ;;  %v17253_v31 = vrot.slane %v24082_v1, 4 }
 0xd61   :  { %v24087_v24 = vpop.eup %20227  ;;  %v17406_v59 = vadd.f32 %v17405_v14, %v17404_v11  ;;  %20235 = vpow2.f32 %v17363_v22  ;;  %v17244_v32 = vmax.f32 %v17242_v27, %v17243_v52  ;;  %v17231_v19 = vrot.slane %v17230_v2, 2 }
 0xd62   :  { %v24089_v57 = vpop.eup %20229  ;;  %v17400_v46 = vadd.f32 %v17399_v20, %v17398_v5  ;;  %v17415_v61 = vrot.slane %v24087_v24, 4  ;;  %20237 = vpow2.f32 %v17361_v58  ;;  %v17334_v49 = vsub.f32 %v24064_v18, %v17240_v48 }
 0xd63   :  { %v17407_v10 = vrot.slane %v17406_v59, 1  ;;  %v17409_v41 = vrot.slane %v24089_v57, 4  ;;  %v17245_v60 = vrot.slane %v17244_v32, 1  ;;  %v17232_v13 = vmax.f32 %v17230_v2, %v17231_v19 }
 0xd64   :  { %v17401_v56 = vrot.slane %v17400_v46, 1  ;;  %v17416_v34 = vadd.f32 %v24087_v24, %v17415_v61  ;;  %v17367_v11 = vmul.f32 1.442695, %v17334_v49  ;;  %v17254_v5 = vmax.f32 %v24082_v1, %v17253_v31 }
 0xd65   :  { %v17408_v8 = vadd.f32 %v17407_v10, %v17406_v59  ;;  %v17410_v50 = vadd.f32 %v24089_v57, %v17409_v41  ;;  %v17246_v39 = vmax.f32 %v17244_v32, %v17245_v60  ;;  %v17233_v47 = vrot.slane %v17232_v13, 1 }
 0xd66   :  { %v17402_v12 = vadd.f32 %v17401_v56, %v17400_v46  ;;  %v17417_v4 = vrot.slane %v17416_v34, 2  ;;  %v17255_v32 = vrot.slane %v17254_v5, 2 }
 0xd67   :  { %v24096_v40 = vpop.eup %20231  ;;  %20239 = vrcp.f32 %v17408_v8  ;;  %v17411_v18 = vrot.slane %v17410_v50, 2  ;;  %v17335_v27 = vsub.f32 %v24068_v44, %v17246_v39  ;;  %v17234_v22 = vmax.f32 %v17232_v13, %v17233_v47  ;;  %v24115_v47 = vpop.xlane.xlu0 %17143 }
 0xd68   :  { %v24100_v7 = vpop.eup %20233  ;;  %20241 = vrcp.f32 %v17402_v12  ;;  %v17418_v0 = vadd.f32 %v17417_v4, %v17416_v34  ;;  %v17427_v14 = vrot.slane %v24096_v40, 4  ;;  %v17256_v39 = vmax.f32 %v17254_v5, %v17255_v32 }
 0xd69   :  { %v17412_v52 = vadd.f32 %v17411_v18, %v17410_v50  ;;  %v17421_v2 = vrot.slane %v24100_v7, 4  ;;  %20243 = vpow2.f32 %v17367_v11  ;;  %v17369_v31 = vmul.f32 1.442695, %v17335_v27 }
 0xd6a   :  { %v17419_v20 = vrot.slane %v17418_v0, 1  ;;  %v17428_v58 = vadd.f32 %v24096_v40, %v17427_v14  ;;  %v17333_v10 = vsub.f32 %v24070_v53, %v17234_v22 }
 0xd6b   :  { %v24105_v48 = vpop.eup %20235  ;;  %v17413_v59 = vrot.slane %v17412_v52, 1  ;;  %v17422_v44 = vadd.f32 %v24100_v7, %v17421_v2 }
 0xd6c   :  { %v24108_v19 = vpop.eup %20237  ;;  %v17420_v46 = vadd.f32 %v17419_v20, %v17418_v0  ;;  %v17429_v61 = vrot.slane %v17428_v58, 2  ;;  %v17439_v49 = vrot.slane %v24105_v48, 4  ;;  %v17365_v11 = vmul.f32 1.442695, %v17333_v10 }
 0xd6d   :  { %v17414_v41 = vadd.f32 %v17413_v59, %v17412_v52  ;;  %v17423_v60 = vrot.slane %v17422_v44, 2  ;;  %v17433_v13 = vrot.slane %v24108_v19, 4  ;;  %v17247_v52 = vrot.slane %v24115_v47, 4 }
 0xd6e   :  { %20245 = vrcp.f32 %v17420_v46  ;;  %v17430_v56 = vadd.f32 %v17429_v61, %v17428_v58  ;;  %v17440_v34 = vadd.f32 %v24105_v48, %v17439_v49 }
 0xd6f   :  { %20247 = vrcp.f32 %v17414_v41  ;;  %v17424_v8 = vadd.f32 %v17423_v60, %v17422_v44  ;;  %v17434_v50 = vadd.f32 %v24108_v19, %v17433_v13  ;;  %v17248_v10 = vmax.f32 %v24115_v47, %v17247_v52 }
 0xd70   :  { %v17431_v12 = vrot.slane %v17430_v56, 1  ;;  %v17441_v4 = vrot.slane %v17440_v34, 2  ;;  %20249 = vpow2.f32 %v17369_v31  ;;  %v17257_v31 = vrot.slane %v17256_v39, 1 }
 0xd71   :  { %v20240_v53 = vpop.eup %20239  ;;  %v17425_v18 = vrot.slane %v17424_v8, 1  ;;  %v17435_v27 = vrot.slane %v17434_v50, 2  ;;  %20251 = vpow2.f32 %v17365_v11 }
 0xd72   :  { %v20242_v0 = vpop.eup %20241  ;;  %v17432_v14 = vadd.f32 %v17431_v12, %v17430_v56  ;;  %v17442_v22 = vadd.f32 %v17441_v4, %v17440_v34  ;;  %v17566_v2 = vmul.f32 %v20240_v53, %v24072_v6  ;;  %v17258_v60 = vmax.f32 %v17256_v39, %v17257_v31 }
 0xd73   :  { %v17565_v20 = vmul.f32 %v20242_v0, %v24075_v21  ;;  %v17426_v58 = vadd.f32 %v17425_v18, %v17424_v8  ;;  %v17436_v5 = vadd.f32 %v17435_v27, %v17434_v50  ;;  %v24120_v59 = vpop.eup %20243  ;;  %v17249_v50 = vrot.slane %v17248_v10, 2 }
 0xd74   :  { %v17443_v44 = vrot.slane %v17442_v22, 1  ;;  %v17590_v46 = vmul.f32 %v17566_v2, %v23820_v62  ;;  %v17451_v21 = vrot.slane %v24120_v59, 4  ;;  %v17337_v4 = vsub.f32 %v24082_v1, %v17258_v60 }
 0xd75   :  { %20253 = vrcp.f32 %v17426_v58  ;;  %v17437_v32 = vrot.slane %v17436_v5, 1  ;;  %v17589_v61 = vmul.f32 %v17565_v20, %v23816_v43  ;;  %v17250_v0 = vmax.f32 %v17248_v10, %v17249_v50 }
 0xd76   :  { %20255 = vrcp.f32 %v17432_v14  ;;  %v17444_v41 = vadd.f32 %v17443_v44, %v17442_v22  ;;  %v17620_v8 = vsel %vm127_vm0, %v17590_v46, 0.0  ;;  %v17452_v12 = vadd.f32 %v24120_v59, %v17451_v21 }
 0xd77   :  { %v17438_v49 = vadd.f32 %v17437_v32, %v17436_v5  ;;  %v17613_v62 = vsel %vm127_vm0, %v17589_v61, 0.0  ;;  %v17621_v53 = vrot.slane %v17620_v8, 4 }
 0xd78   :  { %v20246_v6 = vpop.eup %20245  ;;  %v17614_v18 = vrot.slane %v17613_v62, 4  ;;  %v17453_v52 = vrot.slane %v17452_v12, 2 }
 0xd79   :  { %v20248_v13 = vpop.eup %20247  ;;  %20257 = vrcp.f32 %v17438_v49  ;;  %v17568_v43 = vmul.f32 %v20246_v6, %v24087_v24  ;;  %v17373_v24 = vmul.f32 1.442695, %v17337_v4  ;;  %v17622_v1 = vadd.f32 %v17621_v53, %v17620_v8 }
 0xd7a   :  { %v24126_v56 = vpop.eup %20249  ;;  %v17567_v34 = vmul.f32 %v20248_v13, %v24089_v57  ;;  %20259 = vrcp.f32 %v17444_v41  ;;  %v17615_v58 = vadd.f32 %v17614_v18, %v17613_v62  ;;  %v17454_v61 = vadd.f32 %v17453_v52, %v17452_v12 }
 0xd7b   :  { %v17457_v39 = vrot.slane %v24126_v56, 4  ;;  %v24135_v11 = vpop.eup %20251  ;;  %v17592_v22 = vmul.f32 %v17568_v43, %v23834_v17  ;;  %20261 = vpow2.f32 %v17373_v24  ;;  %v17623_v6 = vrot.slane %v17622_v1, 2 }
 0xd7c   :  { %v17591_v57 = vmul.f32 %v17567_v34, %v23828_v3  ;;  %v17445_v44 = vrot.slane %v24135_v11, 4  ;;  %v17251_v3 = vrot.slane %v17250_v0, 1  ;;  %v17616_v41 = vrot.slane %v17615_v58, 2 }
 0xd7d   :  { %v17458_v20 = vadd.f32 %v24126_v56, %v17457_v39  ;;  %v17634_v46 = vsel %vm127_vm0, %v17592_v22, 0.0  ;;  %v17455_v8 = vrot.slane %v17454_v61, 1  ;;  %v17624_v4 = vadd.f32 %v17623_v6, %v17622_v1  ;;  %v24157_v22 = vpop.xlane.xlu0 %17149 }
 0xd7e   :  { %v17627_v5 = vsel %vm127_vm0, %v17591_v57, 0.0  ;;  %v17446_v21 = vadd.f32 %v24135_v11, %v17445_v44  ;;  %v17635_v60 = vrot.slane %v17634_v46, 4  ;;  %v17252_v34 = vmax.f32 %v17250_v0, %v17251_v3 }
 0xd7f   :  { %v20254_v27 = vpop.eup %20253  ;;  %v17628_v17 = vrot.slane %v17627_v5, 4  ;;  %v17617_v39 = vadd.f32 %v17616_v41, %v17615_v58  ;;  %v17456_v0 = vadd.f32 %v17455_v8, %v17454_v61  ;;  %v17259_v8 = vrot.slane %v24157_v22, 4 }
 0xd80   :  { %v20256_v14 = vpop.eup %20255  ;;  %v17569_v2 = vmul.f32 %v20254_v27, %v24100_v7  ;;  %v17459_v7 = vrot.slane %v17458_v20, 2  ;;  %v17447_v53 = vrot.slane %v17446_v21, 2  ;;  %v17636_v18 = vadd.f32 %v17635_v60, %v17634_v46 }
 0xd81   :  { %v17570_v31 = vmul.f32 %v20256_v14, %v24096_v40  ;;  %v17629_v62 = vadd.f32 %v17628_v17, %v17627_v5  ;;  %v17618_v1 = vrot.slane %v17617_v39, 1  ;;  %20263 = vrcp.f32 %v17456_v0  ;;  %v24170_v41 = vpop.xlane.xlu0 %17158 }
 0xd82   :  { %v17593_v49 = vmul.f32 %v17569_v2, %v23844_v30  ;;  %v17460_v12 = vadd.f32 %v17459_v7, %v17458_v20  ;;  %v24151_v30 = vpop.xlane.xlu1 %17152  ;;  %v17625_v20 = vrot.slane %v17624_v4, 1  ;;  %v17637_v5 = vrot.slane %v17636_v18, 2 }
 0xd83   :  { %v20258_v32 = vpop.eup %20257  ;;  %v17594_v13 = vmul.f32 %v17570_v31, %v23840_v51  ;;  %v17265_v14 = vrot.slane %v24151_v30, 4  ;;  %v24163_v44 = vadd.f32 %v17447_v53, %v17446_v21  ;;  %v17619_v7 = vadd.f32 %v17618_v1, %v17617_v39 }
 0xd84   :  { %v20260_v10 = vpop.eup %20259  ;;  %v17571_v40 = vmul.f32 %v20258_v32, %v24108_v19  ;;  %v17641_v50 = vsel %vm127_vm0, %v17593_v49, 0.0  ;;  %v17336_v19 = vsub.f32 %v24115_v47, %v17252_v34  ;;  %v17461_v24 = vrot.slane %v17460_v12, 1 }
 0xd85   :  { %v17572_v43 = vmul.f32 %v20260_v10, %v24105_v48  ;;  %v17648_v57 = vsel %vm127_vm0, %v17594_v13, 0.0  ;;  %v17642_v27 = vrot.slane %v17641_v50, 4  ;;  %v17630_v48 = vrot.slane %v17629_v62, 2  ;;  %v24160_v2 = vpop.eup %20261 }
 0xd86   :  { %v17595_v51 = vmul.f32 %v17571_v40, %v23856_v25  ;;  %v17649_v58 = vrot.slane %v17648_v57, 4  ;;  %v17371_v47 = vmul.f32 1.442695, %v17336_v19  ;;  %v24165_v31 = vpop.xlane.xlu1 %17161  ;;  %v17266_v32 = vmax.f32 %v24151_v30, %v17265_v14 }
 0xd87   :  { %v17596_v52 = vmul.f32 %v17572_v43, %v23852_v36  ;;  %v17643_v3 = vadd.f32 %v17642_v27, %v17641_v50  ;;  %v17631_v36 = vadd.f32 %v17630_v48, %v17629_v62  ;;  %v17462_v61 = vadd.f32 %v17461_v24, %v17460_v12 }
 0xd88   :  { %v17655_v25 = vsel %vm127_vm0, %v17595_v51, 0.0  ;;  %v17469_v17 = vrot.slane %v24160_v2, 4  ;;  %v17626_v49 = vadd.f32 %v17625_v20, %v17624_v4  ;;  %v17650_v10 = vadd.f32 %v17649_v58, %v17648_v57 }
 0xd89   :  { %v17662_v46 = vsel %vm127_vm0, %v17596_v52, 0.0  ;;  %v17656_v6 = vrot.slane %v17655_v25, 4  ;;  %v24172_v21 = vadd.f32 %v17637_v5, %v17636_v18  ;;  %20265 = vpow2.f32 %v17371_v47 }
 0xd8a   :  { %v17267_v13 = vrot.slane %v17266_v32, 2  ;;  %v17644_v40 = vrot.slane %v17643_v3, 2  ;;  %v17663_v34 = vrot.slane %v17662_v46, 4  ;;  %v17283_v62 = vrot.slane %v24165_v31, 4  ;;  %v24178_v4 = vpop.xlane.xlu1 %17167 }
 0xd8b   :  { %v17632_v50 = vrot.slane %v17631_v36, 1  ;;  %20267 = vrcp.f32 %v17462_v61  ;;  %v17277_v12 = vrot.slane %v24170_v41, 4  ;;  %v17806_v39 = vsel %vm17805_vm5, %v17626_v49, %v17619_v7  ;;  %v24188_v47 = vpop.eup %20263 }
 0xd8c   :  { %v17268_v43 = vmax.f32 %v17266_v32, %v17267_v13  ;;  %v17651_v53 = vrot.slane %v17650_v10, 2  ;;  %v17657_v18 = vadd.f32 %v17656_v6, %v17655_v25  ;;  %v17260_v57 = vmax.f32 %v24157_v22, %v17259_v8  ;;  %v24186_v25 = vpop.xlane.xlu0 %17164 }
 0xd8d   :  { %v17639_v51 = vrot.slane %v24172_v21, 1  ;;  %v17284_v27 = vmax.f32 %v24165_v31, %v17283_v62  ;;  %v17278_v0 = vmax.f32 %v24170_v41, %v17277_v12  ;;  %v17645_v14 = vadd.f32 %v17644_v40, %v17643_v3 }
 0xd8e   :  { %v17269_v19 = vrot.slane %v17268_v43, 1  ;;  %v17664_v48 = vadd.f32 %v17663_v34, %v17662_v46  ;;  %v17261_v52 = vrot.slane %v17260_v57, 2  ;;  %v17295_v24 = vrot.slane %v24178_v4, 4 }
 0xd8f   :  { %v17633_v20 = vadd.f32 %v17632_v50, %v17631_v36  ;;  %v17285_v58 = vrot.slane %v17284_v27, 2  ;;  %v17279_v5 = vrot.slane %v17278_v0, 2  ;;  %v17652_v32 = vadd.f32 %v17651_v53, %v17650_v10 }
 0xd90   :  { %v17270_v1 = vmax.f32 %v17268_v43, %v17269_v19  ;;  %v17658_v61 = vrot.slane %v17657_v18, 2  ;;  %v17262_v49 = vmax.f32 %v17260_v57, %v17261_v52  ;;  %v17296_v7 = vmax.f32 %v24178_v4, %v17295_v24 }
 0xd91   :  { %v24192_v3 = vadd.f32 %v24160_v2, %v17469_v17  ;;  %v17286_v6 = vmax.f32 %v17284_v27, %v17285_v58  ;;  %v17280_v36 = vmax.f32 %v17278_v0, %v17279_v5  ;;  %v17646_v13 = vrot.slane %v17645_v14, 1 }
 0xd92   :  { %v17339_v46 = vsub.f32 %v24151_v30, %v17270_v1  ;;  %v17665_v40 = vrot.slane %v17664_v48, 2  ;;  %v17263_v34 = vrot.slane %v17262_v49, 1  ;;  %v17297_v8 = vrot.slane %v17296_v7, 2  ;;  %v24199_v30 = vpop.xlane.xlu1 %17173 }
 0xd93   :  { %v24195_v62 = vpop.eup %20265  ;;  %v17808_v10 = vsel %vm17807_vm6, %v17633_v20, %v17806_v39  ;;  %v17287_v43 = vrot.slane %v17286_v6, 1  ;;  %v17281_v12 = vrot.slane %v17280_v36, 1  ;;  %v17653_v53 = vrot.slane %v17652_v32, 1  ;;  %v24204_v39 = vpop.xlane.xlu0 %17170 }
 0xd94   :  { %v17377_v50 = vmul.f32 1.442695, %v17339_v46  ;;  %v17659_v57 = vadd.f32 %v17658_v61, %v17657_v18  ;;  %v17264_v17 = vmax.f32 %v17262_v49, %v17263_v34  ;;  %v17289_v19 = vrot.slane %v24186_v25, 4 }
 0xd95   :  { %v24201_v27 = vpop.eup %20267  ;;  %v17463_v0 = vrot.slane %v24195_v62, 4  ;;  %v17288_v52 = vmax.f32 %v17286_v6, %v17287_v43  ;;  %v17282_v24 = vmax.f32 %v17280_v36, %v17281_v12  ;;  %v17298_v1 = vmax.f32 %v17296_v7, %v17297_v8 }
 0xd96   :  { %v17640_v20 = vadd.f32 %v17639_v51, %v24172_v21  ;;  %v17647_v58 = vadd.f32 %v17646_v13, %v17645_v14  ;;  %v17666_v5 = vadd.f32 %v17665_v40, %v17664_v48  ;;  %v17338_v18 = vsub.f32 %v24157_v22, %v17264_v17 }
 0xd97   :  { %20269 = vpow2.f32 %v17377_v50  ;;  %v17342_v61 = vsub.f32 %v24165_v31, %v17288_v52  ;;  %v17341_v49 = vsub.f32 %v24170_v41, %v17282_v24  ;;  %v17299_v46 = vrot.slane %v17298_v1, 1  ;;  %v24213_v31 = vpop.xlane.xlu1 %17179 }
 0xd98   :  { %v17810_v34 = vsel %vm17809_vm7, %v17640_v20, %v17808_v10  ;;  %v17660_v60 = vrot.slane %v17659_v57, 1  ;;  %v17375_v6 = vmul.f32 1.442695, %v17338_v18  ;;  %v17290_v7 = vmax.f32 %v24186_v25, %v17289_v19  ;;  %v24218_v10 = vpop.xlane.xlu0 %17176 }
 0xd99   :  { %v17654_v36 = vadd.f32 %v17653_v53, %v17652_v32  ;;  %v17464_v21 = vadd.f32 %v24195_v62, %v17463_v0  ;;  %v17383_v51 = vmul.f32 1.442695, %v17342_v61  ;;  %v17381_v14 = vmul.f32 1.442695, %v17341_v49 }
 0xd9a   :  { %v17667_v48 = vrot.slane %v17666_v5, 1  ;;  %20271 = vpow2.f32 %v17375_v6  ;;  %v17300_v22 = vmax.f32 %v17298_v1, %v17299_v46  ;;  %v17291_v13 = vrot.slane %v17290_v7, 2 }
 0xd9b   :  { %v17812_v41 = vsel %vm17811_vm8, %v17647_v58, %v17810_v34  ;;  %20273 = vpow2.f32 %v17383_v51  ;;  %v17307_v40 = vrot.slane %v24199_v30, 4  ;;  %v17301_v8 = vrot.slane %v24204_v39, 4 }
 0xd9c   :  { %v17661_v32 = vadd.f32 %v17660_v60, %v17659_v57  ;;  %20275 = vpow2.f32 %v17381_v14  ;;  %v17344_v50 = vsub.f32 %v24178_v4, %v17300_v22  ;;  %v17292_v43 = vmax.f32 %v17290_v7, %v17291_v13 }
 0xd9d   :  { %v17465_v12 = vrot.slane %v17464_v21, 2  ;;  %v17308_v53 = vmax.f32 %v24199_v30, %v17307_v40  ;;  %v17302_v17 = vmax.f32 %v24204_v39, %v17301_v8  ;;  %v17319_v19 = vrot.slane %v24213_v31, 4  ;;  %v24240_v8 = vpop.xlane.xlu0 %17155 }
 0xd9e   :  { %v17471_v0 = vrot.slane %v24192_v3, 2  ;;  %v17387_v52 = vmul.f32 1.442695, %v17344_v50  ;;  %v17293_v24 = vrot.slane %v17292_v43, 1  ;;  %v17313_v1 = vrot.slane %v24218_v10, 4 }
 0xd9f   :  { %v17814_v20 = vsel %vm17813_vm9, %v17654_v36, %v17812_v41  ;;  %v17309_v60 = vrot.slane %v17308_v53, 2  ;;  %v17303_v57 = vrot.slane %v17302_v17, 2  ;;  %v17320_v4 = vmax.f32 %v24213_v31, %v17319_v19 }
 0xda0   :  { %v17668_v58 = vadd.f32 %v17667_v48, %v17666_v5  ;;  %v17816_v18 = vsel %vm17815_vm10, %v17661_v32, %v17814_v20  ;;  %v17294_v61 = vmax.f32 %v17292_v43, %v17293_v24  ;;  %v17314_v49 = vmax.f32 %v24218_v10, %v17313_v1 }
 0xda1   :  { %v24230_v46 = vpop.eup %20269  ;;  %v17466_v34 = vadd.f32 %v17465_v12, %v17464_v21  ;;  %20277 = vpow2.f32 %v17387_v52  ;;  %v17310_v6 = vmax.f32 %v17308_v53, %v17309_v60  ;;  %v17304_v7 = vmax.f32 %v17302_v17, %v17303_v57 }
 0xda2   :  { %v25019_v51 = vrot.slane %v24163_v44, 1  ;;  %v17343_v14 = vsub.f32 %v24186_v25, %v17294_v61  ;;  %v17321_v22 = vrot.slane %v17320_v4, 2  ;;  %v17315_v13 = vrot.slane %v17314_v49, 2 }
 0xda3   :  { %v24237_v5 = vadd.f32 %v17471_v0, %v24192_v3  ;;  %v17311_v48 = vrot.slane %v17310_v6, 1  ;;  %v17305_v41 = vrot.slane %v17304_v7, 1  ;;  %v17818_v40 = vsel %vm17817_vm11, %v17668_v58, %v17816_v18 }
 0xda4   :  { %v17450_v36 = vadd.f32 %v25019_v51, %v24163_v44  ;;  %v24242_v21 = vpop.eup %20271  ;;  %v17481_v32 = vrot.slane %v24230_v46, 4  ;;  %v17385_v50 = vmul.f32 1.442695, %v17343_v14  ;;  %v17322_v43 = vmax.f32 %v17320_v4, %v17321_v22  ;;  %17836 = vst.msk [vmem:[%s24384_s7] sm:$0xff] %vm127_vm0, %v17818_v40 }
 0xda5   :  { %v17316_v44 = vmax.f32 %v17314_v49, %v17315_v13  ;;  %v24249_v25 = vpop.eup %20273  ;;  %v17467_v3 = vrot.slane %v17466_v34, 1  ;;  %v17475_v12 = vrot.slane %v24242_v21, 4  ;;  %v17312_v53 = vmax.f32 %v17310_v6, %v17311_v48 }
 0xda6   :  { %v17306_v17 = vmax.f32 %v17304_v7, %v17305_v41  ;;  %v24252_v19 = vpop.eup %20275  ;;  %v17499_v0 = vrot.slane %v24249_v25, 4  ;;  %20279 = vpow2.f32 %v17385_v50  ;;  %v17323_v52 = vrot.slane %v17322_v43, 1 }
 0xda7   :  { %v17271_v24 = vrot.slane %v24240_v8, 4  ;;  %v17476_v1 = vadd.f32 %v24242_v21, %v17475_v12  ;;  %v17493_v20 = vrot.slane %v24252_v19, 4  ;;  %v17346_v60 = vsub.f32 %v24199_v30, %v17312_v53 }
 0xda8   :  { %v17345_v57 = vsub.f32 %v24204_v39, %v17306_v17  ;;  %v17482_v4 = vadd.f32 %v24230_v46, %v17481_v32  ;;  %v17500_v58 = vadd.f32 %v24249_v25, %v17499_v0  ;;  %v17324_v18 = vmax.f32 %v17322_v43, %v17323_v52 }
 0xda9   :  { %v17317_v61 = vrot.slane %v17316_v44, 1  ;;  %v17477_v49 = vrot.slane %v17476_v1, 2  ;;  %v17494_v6 = vadd.f32 %v24252_v19, %v17493_v20  ;;  %v17391_v7 = vmul.f32 1.442695, %v17346_v60 }
 0xdaa   :  { %v17389_v51 = vmul.f32 1.442695, %v17345_v57  ;;  %20281 = vrcp.f32 %v17450_v36  ;;  %v17501_v14 = vrot.slane %v17500_v58, 2  ;;  %v17348_v22 = vsub.f32 %v24213_v31, %v17324_v18 }
 0xdab   :  { %v17318_v13 = vmax.f32 %v17316_v44, %v17317_v61  ;;  %v24264_v48 = vpop.eup %20277  ;;  %v17478_v30 = vadd.f32 %v17477_v49, %v17476_v1  ;;  %v17495_v39 = vrot.slane %v17494_v6, 2  ;;  %20283 = vpow2.f32 %v17391_v7 }
 0xdac   :  { %v17272_v41 = vmax.f32 %v24240_v8, %v17271_v24  ;;  %v17483_v40 = vrot.slane %v17482_v4, 2  ;;  %v17502_v32 = vadd.f32 %v17501_v14, %v17500_v58  ;;  %v17511_v50 = vrot.slane %v24264_v48, 4 }
 0xdad   :  { %v17395_v43 = vmul.f32 1.442695, %v17348_v22  ;;  %v17473_v12 = vrot.slane %v24237_v5, 1  ;;  %v17468_v53 = vadd.f32 %v17467_v3, %v17466_v34  ;;  %v17496_v36 = vadd.f32 %v17495_v39, %v17494_v6 }
 0xdae   :  { %20285 = vpow2.f32 %v17389_v51  ;;  %v17503_v17 = vrot.slane %v17502_v32, 1  ;;  %v17512_v31 = vadd.f32 %v24264_v48, %v17511_v50  ;;  %v17347_v44 = vsub.f32 %v24218_v10, %v17318_v13 }
 0xdaf   :  { %20287 = vpow2.f32 %v17395_v43  ;;  %v17574_v0 = vmul.f32 %v24188_v47, %v24120_v59  ;;  %v17479_v52 = vrot.slane %v17478_v30, 1  ;;  %v17497_v24 = vrot.slane %v17496_v36, 1 }
 0xdb0   :  { %v17273_v1 = vrot.slane %v17272_v41, 2  ;;  %v24273_v20 = vpop.eup %20279  ;;  %v17484_v60 = vadd.f32 %v17483_v40, %v17482_v4  ;;  %v17504_v57 = vadd.f32 %v17503_v17, %v17502_v32  ;;  %v17513_v58 = vrot.slane %v17512_v31, 2 }
 0xdb1   :  { %v17393_v34 = vmul.f32 1.442695, %v17347_v44  ;;  %20289 = vrcp.f32 %v17468_v53  ;;  %v17498_v3 = vadd.f32 %v17497_v24, %v17496_v36  ;;  %v17505_v18 = vrot.slane %v24273_v20, 4 }
 0xdb2   :  { %v17274_v61 = vmax.f32 %v17272_v41, %v17273_v1  ;;  %v17474_v49 = vadd.f32 %v17473_v12, %v24237_v5  ;;  %20291 = vrcp.f32 %v17504_v57  ;;  %v17514_v10 = vadd.f32 %v17513_v58, %v17512_v31 }
 0xdb3   :  { %v17480_v6 = vadd.f32 %v17479_v52, %v17478_v30  ;;  %20293 = vrcp.f32 %v17498_v3  ;;  %v17506_v59 = vadd.f32 %v24273_v20, %v17505_v18  ;;  %v17485_v51 = vrot.slane %v17484_v60, 1 }
 0xdb4   :  { %v17275_v47 = vrot.slane %v17274_v61, 1  ;;  %v20282_v7 = vpop.eup %20281  ;;  %v17515_v4 = vrot.slane %v17514_v10, 1  ;;  %20295 = vpow2.f32 %v17393_v34  ;;  %v17598_v22 = vmul.f32 %v17574_v0, %v23864_v38 }
 0xdb5   :  { %v24278_v14 = vpop.eup %20283  ;;  %v17507_v13 = vrot.slane %v17506_v59, 2  ;;  %v17575_v5 = vmul.f32 %v24201_v27, %v24126_v56  ;;  %20297 = vrcp.f32 %v17474_v49  ;;  %v17486_v12 = vadd.f32 %v17485_v51, %v17484_v60 }
 0xdb6   :  { %v17276_v39 = vmax.f32 %v17274_v61, %v17275_v47  ;;  %v17516_v41 = vadd.f32 %v17515_v4, %v17514_v10  ;;  %v17523_v30 = vrot.slane %v24278_v14, 4  ;;  %20299 = vrcp.f32 %v17480_v6 }
 0xdb7   :  { %v17508_v32 = vadd.f32 %v17507_v13, %v17506_v59  ;;  %v17676_v56 = vsel %vm127_vm0, %v17598_v22, 0.0  ;;  %v17599_v31 = vmul.f32 %v17575_v5, %v23880_v29  ;;  %v17573_v44 = vmul.f32 %v20282_v7, %v24135_v11 }
 0xdb8   :  { %v24284_v40 = vpop.eup %20285  ;;  %v17340_v50 = vsub.f32 %v24240_v8, %v17276_v39  ;;  %20301 = vrcp.f32 %v17516_v41  ;;  %v17524_v38 = vadd.f32 %v24278_v14, %v17523_v30  ;;  %v17677_v34 = vrot.slane %v17676_v56, 4 }
 0xdb9   :  { %v24287_v43 = vpop.eup %20287  ;;  %v17517_v53 = vrot.slane %v24284_v40, 4  ;;  %v17509_v27 = vrot.slane %v17508_v32, 1  ;;  %v17683_v29 = vsel %vm127_vm0, %v17599_v31, 0.0  ;;  %v17597_v11 = vmul.f32 %v17573_v44, %v23868_v37 }
 0xdba   :  { %v17535_v36 = vrot.slane %v24287_v43, 4  ;;  %v17379_v17 = vmul.f32 1.442695, %v17340_v50  ;;  %v17525_v0 = vrot.slane %v17524_v38, 2  ;;  %v17678_v13 = vadd.f32 %v17677_v34, %v17676_v56 }
 0xdbb   :  { %v17518_v8 = vadd.f32 %v24284_v40, %v17517_v53  ;;  %v20290_v52 = vpop.eup %20289  ;;  %v17510_v24 = vadd.f32 %v17509_v27, %v17508_v32  ;;  %v17684_v30 = vrot.slane %v17683_v29, 4  ;;  %v17669_v37 = vsel %vm127_vm0, %v17597_v11, 0.0 }
 0xdbc   :  { %v17536_v1 = vadd.f32 %v24287_v43, %v17535_v36  ;;  %20303 = vpow2.f32 %v17379_v17  ;;  %v20292_v60 = vpop.eup %20291  ;;  %v17526_v57 = vadd.f32 %v17525_v0, %v17524_v38  ;;  %v17576_v7 = vmul.f32 %v20290_v52, %v24195_v62 }
 0xdbd   :  { %20305 = vrcp.f32 %v17486_v12  ;;  %v20294_v58 = vpop.eup %20293  ;;  %v17519_v3 = vrot.slane %v17518_v8, 2  ;;  %v17582_v49 = vmul.f32 %v20292_v60, %v24249_v25  ;;  %v17679_v27 = vrot.slane %v17678_v13, 2 }
 0xdbe   :  { %20307 = vrcp.f32 %v17510_v24  ;;  %v24297_v18 = vpop.eup %20295  ;;  %v17527_v61 = vrot.slane %v17526_v57, 1  ;;  %v17581_v10 = vmul.f32 %v20294_v58, %v24252_v19  ;;  %v17537_v59 = vrot.slane %v17536_v1, 2 }
 0xdbf   :  { %v17520_v6 = vadd.f32 %v17519_v3, %v17518_v8  ;;  %v20298_v47 = vpop.eup %20297  ;;  %v17529_v4 = vrot.slane %v24297_v18, 4  ;;  %v17606_v19 = vmul.f32 %v17582_v49, %v23912_v26  ;;  %v17600_v62 = vmul.f32 %v17576_v7, %v23876_v33 }
 0xdc0   :  { %v17528_v51 = vadd.f32 %v17527_v61, %v17526_v57  ;;  %v20300_v22 = vpop.eup %20299  ;;  %v17538_v5 = vadd.f32 %v17537_v59, %v17536_v1  ;;  %v17577_v25 = vmul.f32 %v20298_v47, %v24160_v2  ;;  %v17605_v32 = vmul.f32 %v17581_v10, %v23916_v15 }
 0xdc1   :  { %v17521_v39 = vrot.slane %v17520_v6, 1  ;;  %v17530_v53 = vadd.f32 %v24297_v18, %v17529_v4  ;;  %v17578_v36 = vmul.f32 %v20300_v22, %v24242_v21  ;;  %v24315_v2 = vadd.f32 %v17684_v30, %v17683_v29 }
 0xdc2   :  { %v20302_v41 = vpop.eup %20301  ;;  %20309 = vrcp.f32 %v17528_v51  ;;  %v17539_v38 = vrot.slane %v17538_v5, 1  ;;  %v17670_v26 = vrot.slane %v17669_v37, 4  ;;  %v17601_v33 = vmul.f32 %v17577_v25, %v23892_v42 }
 0xdc3   :  { %v17522_v50 = vadd.f32 %v17521_v39, %v17520_v6  ;;  %v17584_v12 = vmul.f32 %v20302_v41, %v24264_v48  ;;  %v17531_v15 = vrot.slane %v17530_v53, 2  ;;  %v17732_v48 = vsel %vm127_vm0, %v17606_v19, 0.0 }
 0xdc4   :  { %v17540_v31 = vadd.f32 %v17539_v38, %v17538_v5  ;;  %v17725_v0 = vsel %vm127_vm0, %v17605_v32, 0.0  ;;  %v17690_v52 = vsel %vm127_vm0, %v17600_v62, 0.0  ;;  %v17602_v60 = vmul.f32 %v17578_v36, %v23888_v9 }
 0xdc5   :  { %20311 = vrcp.f32 %v17522_v50  ;;  %v17608_v21 = vmul.f32 %v17584_v12, %v23933_v63  ;;  %v17532_v57 = vadd.f32 %v17531_v15, %v17530_v53  ;;  %v24327_v58 = vadd.f32 %v17679_v27, %v17678_v13 }
 0xdc6   :  { %v24312_v56 = vpop.eup %20303  ;;  %20313 = vrcp.f32 %v17540_v31  ;;  %v17733_v34 = vrot.slane %v17732_v48, 4  ;;  %v17726_v3 = vrot.slane %v17725_v0, 4  ;;  %v17686_v11 = vrot.slane %v24315_v2, 2 }
 0xdc7   :  { %v20306_v17 = vpop.eup %20305  ;;  %v17487_v8 = vrot.slane %v24312_v56, 4  ;;  %v17671_v61 = vadd.f32 %v17670_v26, %v17669_v37  ;;  %v17533_v63 = vrot.slane %v17532_v57, 1  ;;  %v17697_v10 = vsel %vm127_vm0, %v17601_v33, 0.0 }
 0xdc8   :  { %v20308_v44 = vpop.eup %20307  ;;  %v17579_v1 = vmul.f32 %v20306_v17, %v24230_v46  ;;  %v17691_v46 = vrot.slane %v17690_v52, 4  ;;  %v17746_v9 = vsel %vm127_vm0, %v17608_v21, 0.0  ;;  %v17704_v47 = vsel %vm127_vm0, %v17602_v60, 0.0 }
 0xdc9   :  { %v17583_v24 = vmul.f32 %v20308_v44, %v24273_v20  ;;  %v17488_v42 = vadd.f32 %v24312_v56, %v17487_v8  ;;  %v17734_v51 = vadd.f32 %v17733_v34, %v17732_v48  ;;  %v17727_v4 = vadd.f32 %v17726_v3, %v17725_v0 }
 0xdca   :  { %v17603_v59 = vmul.f32 %v17579_v1, %v23904_v28  ;;  %v17534_v22 = vadd.f32 %v17533_v63, %v17532_v57  ;;  %v17672_v5 = vrot.slane %v17671_v61, 2  ;;  %v17698_v41 = vrot.slane %v17697_v10, 4 }
 0xdcb   :  { %v17607_v29 = vmul.f32 %v17583_v24, %v23936_v35  ;;  %v17489_v49 = vrot.slane %v17488_v42, 2  ;;  %v17747_v30 = vrot.slane %v17746_v9, 4  ;;  %v17692_v32 = vadd.f32 %v17691_v46, %v17690_v52 }
 0xdcc   :  { %v20310_v20 = vpop.eup %20309  ;;  %20315 = vrcp.f32 %v17534_v22  ;;  %v17711_v50 = vsel %vm127_vm0, %v17603_v59, 0.0  ;;  %v17705_v62 = vrot.slane %v17704_v47, 4  ;;  %v17735_v38 = vrot.slane %v17734_v51, 2 }
 0xdcd   :  { %v17739_v6 = vsel %vm127_vm0, %v17607_v29, 0.0  ;;  %v17586_v35 = vmul.f32 %v20310_v20, %v24278_v14  ;;  %v17490_v13 = vadd.f32 %v17489_v49, %v17488_v42  ;;  %v17728_v53 = vrot.slane %v17727_v4, 2 }
 0xdce   :  { %v17740_v7 = vrot.slane %v17739_v6, 4  ;;  %v17673_v17 = vadd.f32 %v17672_v5, %v17671_v61  ;;  %v17748_v26 = vadd.f32 %v17747_v30, %v17746_v9  ;;  %v17693_v33 = vrot.slane %v17692_v32, 2 }
 0xdcf   :  { %v20312_v39 = vpop.eup %20311  ;;  %v17610_v37 = vmul.f32 %v17586_v35, %v23953_v16  ;;  %v17491_v28 = vrot.slane %v17490_v13, 1  ;;  %v17712_v48 = vrot.slane %v17711_v50, 4  ;;  %v17681_v52 = vrot.slane %v24327_v58, 1 }
 0xdd0   :  { %v17741_v25 = vadd.f32 %v17740_v7, %v17739_v6  ;;  %v17585_v19 = vmul.f32 %v20312_v39, %v24284_v40  ;;  %v20314_v12 = vpop.eup %20313  ;;  %v17699_v40 = vadd.f32 %v17698_v41, %v17697_v10  ;;  %v17706_v21 = vadd.f32 %v17705_v62, %v17704_v47 }
 0xdd1   :  { %v17760_v14 = vsel %vm127_vm0, %v17610_v37, 0.0  ;;  %v17492_v36 = vadd.f32 %v17491_v28, %v17490_v13  ;;  %v17588_v31 = vmul.f32 %v20314_v12, %v24287_v43  ;;  %v17729_v24 = vadd.f32 %v17728_v53, %v17727_v4 }
 0xdd2   :  { %v17609_v27 = vmul.f32 %v17585_v19, %v23956_v45  ;;  %v17761_v16 = vrot.slane %v17760_v14, 4  ;;  %v17742_v15 = vrot.slane %v17741_v25, 2  ;;  %v17736_v45 = vadd.f32 %v17735_v38, %v17734_v51 }
 0xdd3   :  { %20317 = vrcp.f32 %v17492_v36  ;;  %v17612_v8 = vmul.f32 %v17588_v31, %v23973_v54  ;;  %v17749_v1 = vrot.slane %v17748_v26, 2  ;;  %v17687_v42 = vadd.f32 %v17686_v11, %v24315_v2 }
 0xdd4   :  { %v17753_v44 = vsel %vm127_vm0, %v17609_v27, 0.0  ;;  %v17762_v60 = vadd.f32 %v17761_v16, %v17760_v14  ;;  %v17674_v34 = vrot.slane %v17673_v17, 1  ;;  %v17743_v3 = vadd.f32 %v17742_v15, %v17741_v25 }
 0xdd5   :  { %v17754_v0 = vrot.slane %v17753_v44, 4  ;;  %v17774_v43 = vsel %vm127_vm0, %v17612_v8, 0.0  ;;  %v17700_v61 = vrot.slane %v17699_v40, 2  ;;  %v17694_v63 = vadd.f32 %v17693_v33, %v17692_v32 }
 0xdd6   :  { %v17775_v29 = vrot.slane %v17774_v43, 4  ;;  %v17713_v49 = vadd.f32 %v17712_v48, %v17711_v50  ;;  %v20316_v54 = vpop.eup %20315  ;;  %v17707_v10 = vrot.slane %v17706_v21, 2  ;;  %v17737_v46 = vrot.slane %v17736_v45, 1 }
 0xdd7   :  { %v17755_v57 = vadd.f32 %v17754_v0, %v17753_v44  ;;  %v17730_v9 = vrot.slane %v17729_v24, 1  ;;  %v17682_v59 = vadd.f32 %v17681_v52, %v24327_v58  ;;  %v17750_v47 = vadd.f32 %v17749_v1, %v17748_v26 }
 0xdd8   :  { %v17776_v6 = vadd.f32 %v17775_v29, %v17774_v43  ;;  %v17763_v7 = vrot.slane %v17762_v60, 2  ;;  %v17587_v35 = vmul.f32 %v20316_v54, %v24297_v18  ;;  %v17688_v51 = vrot.slane %v17687_v42, 1 }
 0xdd9   :  { %v17756_v20 = vrot.slane %v17755_v57, 2  ;;  %v17675_v2 = vadd.f32 %v17674_v34, %v17673_v17  ;;  %v17744_v11 = vrot.slane %v17743_v3, 1  ;;  %v17701_v22 = vadd.f32 %v17700_v61, %v17699_v40 }
 0xdda   :  { %v17695_v13 = vrot.slane %v17694_v63, 1  ;;  %v17777_v39 = vrot.slane %v17776_v6, 2  ;;  %v17611_v5 = vmul.f32 %v17587_v35, %v23976_v55  ;;  %v17714_v30 = vrot.slane %v17713_v49, 2 }
 0xddb   :  { %v17757_v4 = vadd.f32 %v17756_v20, %v17755_v57  ;;  %v17708_v37 = vadd.f32 %v17707_v10, %v17706_v21  ;;  %v17738_v25 = vadd.f32 %v17737_v46, %v17736_v45  ;;  %v17731_v19 = vadd.f32 %v17730_v9, %v17729_v24 }
 0xddc   :  { %v17751_v28 = vrot.slane %v17750_v47, 1  ;;  %v17764_v58 = vadd.f32 %v17763_v7, %v17762_v60  ;;  %v17767_v32 = vsel %vm127_vm0, %v17611_v5, 0.0  ;;  %v17689_v50 = vadd.f32 %v17688_v51, %v17687_v42 }
 0xddd   :  { %v20318_v41 = vpop.eup %20317  ;;  %v17745_v62 = vadd.f32 %v17744_v11, %v17743_v3  ;;  %v17758_v14 = vrot.slane %v17757_v4, 1  ;;  %v17768_v12 = vrot.slane %v17767_v32, 4  ;;  %v17819_v38 = vsel %vm17805_vm5, %v17682_v59, %v17675_v2 }
 0xdde   :  { %v17580_v18 = vmul.f32 %v20318_v41, %v24312_v56  ;;  %v17702_v53 = vrot.slane %v17701_v22, 1  ;;  %v17778_v27 = vadd.f32 %v17777_v39, %v17776_v6  ;;  %v17696_v36 = vadd.f32 %v17695_v13, %v17694_v63 }
 0xddf   :  { %v17715_v17 = vadd.f32 %v17714_v30, %v17713_v49  ;;  %v17709_v26 = vrot.slane %v17708_v37, 1  ;;  %v17769_v16 = vadd.f32 %v17768_v12, %v17767_v32  ;;  %v17826_v31 = vsel %vm17805_vm5, %v17738_v25, %v17731_v19 }
 0xde0   :  { %v17604_v55 = vmul.f32 %v17580_v18, %v23900_v23  ;;  %v17752_v40 = vadd.f32 %v17751_v28, %v17750_v47  ;;  %v17765_v15 = vrot.slane %v17764_v58, 1  ;;  %v17827_v44 = vsel %vm17807_vm6, %v17745_v62, %v17826_v31 }
 0xde1   :  { %v17759_v33 = vadd.f32 %v17758_v14, %v17757_v4  ;;  %v17770_v48 = vrot.slane %v17769_v16, 2  ;;  %v17779_v8 = vrot.slane %v17778_v27, 1  ;;  %v17703_v52 = vadd.f32 %v17702_v53, %v17701_v22 }
 0xde2   :  { %v17718_v56 = vsel %vm127_vm0, %v17604_v55, 0.0  ;;  %v17820_v21 = vsel %vm17807_vm6, %v17689_v50, %v17819_v38  ;;  %v17716_v1 = vrot.slane %v17715_v17, 1  ;;  %v17766_v60 = vadd.f32 %v17765_v15, %v17764_v58 }
 0xde3   :  { %v17719_v0 = vrot.slane %v17718_v56, 4  ;;  %v17771_v23 = vadd.f32 %v17770_v48, %v17769_v16  ;;  %v17821_v24 = vsel %vm17809_vm7, %v17696_v36, %v17820_v21  ;;  %v17828_v57 = vsel %vm17809_vm7, %v17752_v40, %v17827_v44 }
 0xde4   :  { %v17710_v43 = vadd.f32 %v17709_v26, %v17708_v37  ;;  %v17829_v42 = vsel %vm17811_vm8, %v17759_v33, %v17828_v57  ;;  %v17780_v29 = vadd.f32 %v17779_v8, %v17778_v27  ;;  %v17717_v49 = vadd.f32 %v17716_v1, %v17715_v17 }
 0xde5   :  { %v17720_v45 = vadd.f32 %v17719_v0, %v17718_v56  ;;  %v17772_v34 = vrot.slane %v17771_v23, 1  ;;  %v17822_v20 = vsel %vm17811_vm8, %v17703_v52, %v17821_v24  ;;  %v17830_v54 = vsel %vm17813_vm9, %v17766_v60, %v17829_v42 }
 0xde6   :  { %v17823_v10 = vsel %vm17813_vm9, %v17710_v43, %v17822_v20 }
 0xde7   :  { %v17721_v3 = vrot.slane %v17720_v45, 2  ;;  %v17773_v61 = vadd.f32 %v17772_v34, %v17771_v23  ;;  %v17824_v47 = vsel %vm17815_vm10, %v17717_v49, %v17823_v10 }
 0xde9   :  { %v17722_v63 = vadd.f32 %v17721_v3, %v17720_v45  ;;  %v17831_v46 = vsel %vm17815_vm10, %v17773_v61, %v17830_v54 }
 0xdea   :  { %v17832_v6 = vsel %vm17817_vm11, %v17780_v29, %v17831_v46 }
 0xdeb   :  { %v17723_v9 = vrot.slane %v17722_v63, 1  ;;  %17838 = vst.msk [vmem:[%s24384_s7 + $0x10] sm:$0xff] %vm127_vm0, %v17832_v6 }
 0xded   :  { %v17724_v59 = vadd.f32 %v17723_v9, %v17722_v63 }
 0xdef   :  { %v17825_v7 = vsel %vm17817_vm11, %v17724_v59, %v17824_v47 }
 0xdf0   :  { %17837 = vst.msk [vmem:[%s24384_s7 + $0x8] sm:$0xff] %vm127_vm0, %v17825_v7 }

</bundles_post_ra>
